<compile_context>
chip_gen: v6e
topology: v6e:2x2x1
jax: 0.10.0
libtpu: 0.0.40
codegen_flags: <defaults>
</compile_context>

<pallas_src>
import math

import jax
import jax.numpy as jnp
from jax.experimental import pallas as pl
from jax.experimental.pallas import tpu as pltpu

# ---- constants hard-coded in Tail.__init__ ----
SPATIAL_H = 7
SPATIAL_W = 4
SPATIAL = SPATIAL_H * SPATIAL_W
HEAD = 16
NUM_FEATURES = 2048
D_MODEL = NUM_FEATURES // 2        # 1024
D_K = D_MODEL // HEAD              # 64
TX_D_MODEL = 64                    # TX() default (== D_K)
TX_D_FF = TX_D_MODEL // 2          # 32
FF_FLAT = HEAD * TX_D_FF           # 512
NORM_EPS = 1e-6
BN_EPS = 1e-5
KDIM = NUM_FEATURES * SPATIAL      # 57344
SQRT_F = math.sqrt(NUM_FEATURES)


# ============================================================================
# Kernel 1:  relu( x @ W_fold + bias )          (bn1 + posenc folded into W / bias)
#   grid = (D_MODEL//tn [parallel], KDIM//tk [arbitrary, reduction])
# ============================================================================
def _qpr_kernel(x_ref, w_ref, bias_ref, o_ref, acc_ref):
    k = pl.program_id(1)

    @pl.when(k == 0)
    def _():
        acc_ref[...] = bias_ref[...]          # start from the precomputed additive term

    # bf16 weight stream (112 MiB total) + bf16 activations, f32 accumulation on the MXU.
    acc_ref[...] += jnp.dot(x_ref[...].astype(jnp.bfloat16), w_ref[...],
                            preferred_element_type=jnp.float32)

    @pl.when(k == pl.num_programs(1) - 1)
    def _():
        o_ref[...] = jnp.maximum(acc_ref[...], 0.0)          # F.relu(Qpr(x))


def qpr_block(x_flat, w_fold_bf16, bias_rows, *, tk=8192, tn=512):
    n, kdim = x_flat.shape
    assert kdim % tk == 0 and D_MODEL % tn == 0
    return pl.pallas_call(
        _qpr_kernel,
        out_shape=jax.ShapeDtypeStruct((n, D_MODEL), jnp.float32),
        grid_spec=pltpu.PrefetchScalarGridSpec(
            num_scalar_prefetch=0,
            grid=(D_MODEL // tn, kdim // tk),
            in_specs=[
                pl.BlockSpec((n, tk), lambda j, k: (0, k)),
                pl.BlockSpec((tk, tn), lambda j, k: (k, j)),
                pl.BlockSpec((n, tn), lambda j, k: (0, j)),
            ],
            out_specs=pl.BlockSpec((n, tn), lambda j, k: (0, j)),
            scratch_shapes=[pltpu.VMEM((n, tn), jnp.float32)],
        ),
        compiler_params=pltpu.CompilerParams(
            dimension_semantics=("parallel", "arbitrary"),   # output-N axis -> v7x megacore
            vmem_limit_bytes=40 << 20,                       # ~17 MiB used; headroom on v7x (64 MiB phys)
        ),
    )(x_flat, w_fold_bf16, bias_rows)


# ============================================================================
# Kernel 2: bn2 + 16 Block_heads (3 TX layers) + L2 normalize + classifier, fully fused.
# Flat lane-dense layout: rows = b*t frames (or b), columns = 1024 = HEAD * D_K.
#   S    (1024, 16): channel -> head indicator          (per-head sums as matmuls)
#   ST   (16, 1024): head -> channel broadcast
#   Tseg (b, n)    : frame -> batch-segment indicator   (per-batch sums over t)
#   Tmid (b, n)    : selects the middle frame (t//2) per batch
# ============================================================================
def _heads_cls_kernel(x_ref, s_ref, st_ref, tseg_ref, tsegt_ref, tmid_ref,
                      w1_ref, b1_ref, w2_ref, b2_ref, alpha_ref, beta_ref,
                      cw_ref, cb_ref, y_ref, f_ref):
    xr = x_ref[...]                                           # (n, 1024) relu(Qpr) output
    # bn2 = Norm(d_model, trainable=False): alpha=1, bias=0, unbiased std over d_model
    mu = jnp.mean(xr, axis=-1, keepdims=True)
    var = jnp.sum((xr - mu) ** 2, axis=-1, keepdims=True) / (D_MODEL - 1)
    xn = (xr - mu) / (jnp.sqrt(var) + NORM_EPS)               # (n, 1024); k = v = xn

    S = s_ref[...]
    ST = st_ref[...]
    Tseg = tseg_ref[...]
    TsegT = tsegt_ref[...]
    Tmid = tmid_ref[...]

    q = jnp.dot(Tmid, xn, preferred_element_type=jnp.float32)   # (b, 1024) middle-frame query
    inv_sqrt_dk = 1.0 / math.sqrt(TX_D_MODEL)

    def chunk_norm(xv, alpha, beta):
        # per-head (64-wide) Norm() on the flat (b, 1024) layout, unbiased std
        cm = jnp.dot(xv, S, preferred_element_type=jnp.float32) * (1.0 / TX_D_MODEL)   # (b, H)
        cent = xv - jnp.dot(cm, ST, preferred_element_type=jnp.float32)
        cv = jnp.dot(cent * cent, S,
                     preferred_element_type=jnp.float32) * (1.0 / (TX_D_MODEL - 1))
        std = jnp.dot(jnp.sqrt(cv), ST, preferred_element_type=jnp.float32)            # (b, 1024)
        return alpha * cent / (std + NORM_EPS) + beta

    for l in range(3):                                        # Block_head = T1, T2, T3
        # attention: scores[b*t+ti, h] = <q[b, head h], k[b*t+ti, head h]> / sqrt(64)
        qe = jnp.dot(TsegT, q, preferred_element_type=jnp.float32)                     # (n, 1024)
        sc = jnp.dot(qe * xn, S, preferred_element_type=jnp.float32) * inv_sqrt_dk     # (n, H)
        # per-column max is constant within every (batch, head) softmax segment -> exact softmax
        sc = sc - jnp.max(sc, axis=0, keepdims=True)
        e = jnp.exp(sc)
        denom = jnp.dot(Tseg, e, preferred_element_type=jnp.float32)                   # (b, H)
        p = e / jnp.dot(TsegT, denom, preferred_element_type=jnp.float32)              # (n, H)
        pc = jnp.dot(p, ST, preferred_element_type=jnp.float32)                        # (n, 1024)
        att = jnp.dot(Tseg, pc * xn, preferred_element_type=jnp.float32)               # (b, 1024)

        q_ = chunk_norm(att + q, alpha_ref[l, 0], beta_ref[l, 0])                      # norm_1

        # FeedForward(64, d_ff=32) for all heads at once: block-diagonal bf16 matmuls
        h1 = jnp.maximum(
            jnp.dot(q_.astype(jnp.bfloat16), w1_ref[l],
                    preferred_element_type=jnp.float32) + b1_ref[l], 0.0)              # (b, 512)
        ff = jnp.dot(h1.astype(jnp.bfloat16), w2_ref[l],
                     preferred_element_type=jnp.float32) + b2_ref[l]                   # (b, 1024)

        q = chunk_norm(q_ + ff, alpha_ref[l, 1], beta_ref[l, 1])                       # norm_2

    # f = torch.cat(head outputs, 1) is exactly the flat layout; F.normalize(p=2, dim=1)
    nrm = jnp.sqrt(jnp.sum(q * q, axis=-1, keepdims=True))
    fn = q / jnp.maximum(nrm, 1e-12)
    f_ref[...] = fn
    y_ref[...] = jnp.dot(fn, cw_ref[...], preferred_element_type=jnp.float32) + cb_ref[...]


def heads_classifier(xr, tseg, tsegt, tmid, params):
    b = tseg.shape[0]
    nc = params['cls_w_t'].shape[1]
    return pl.pallas_call(
        _heads_cls_kernel,
        out_shape=(jax.ShapeDtypeStruct((b, nc), jnp.float32),
                   jax.ShapeDtypeStruct((b, D_MODEL), jnp.float32)),
        compiler_params=pltpu.CompilerParams(vmem_limit_bytes=32 << 20),
    )(xr, params['head_sel'], params['head_sel_t'], tseg, tsegt, tmid,
      params['ff_w1_bd'], params['ff_b1_flat'], params['ff_w2_bd'], params['ff_b2_flat'],
      params['norm_alpha_flat'], params['norm_beta_flat'],
      params['cls_w_t'], params['cls_b_row'])


# ============================================================================
# Parameter init (deterministic; shapes from Tail.__init__)  + kernel-side derived params
# ============================================================================
def init_params(key, num_classes, num_frames):
    k_qpr, k_clsw, k_clsb, kff = jax.random.split(key, 4)

    # bn1: BatchNorm2d(2048); weight=1, bias=0 (explicit init), running stats default
    bn1 = (jnp.ones((NUM_FEATURES,), jnp.float32),   # gamma
           jnp.zeros((NUM_FEATURES,), jnp.float32),  # beta
           jnp.zeros((NUM_FEATURES,), jnp.float32),  # running_mean
           jnp.ones((NUM_FEATURES,), jnp.float32))   # running_var

    # PositionalEncoder table (num_frames, num_features)
    pos = jnp.arange(num_frames, dtype=jnp.float32)[:, None]
    i_even = jnp.arange(0, NUM_FEATURES, 2, dtype=jnp.float32)
    pe_sin = jnp.sin(pos / jnp.power(10000.0, 2.0 * i_even / NUM_FEATURES))
    pe_cos = jnp.cos(pos / jnp.power(10000.0, 2.0 * (i_even + 1.0) / NUM_FEATURES))
    pe = jnp.stack([pe_sin, pe_cos], axis=-1).reshape(num_frames, NUM_FEATURES)

    # Qpr conv weight (d_model, C, 7, 4), kaiming_normal_ mode='fan_out'
    fan_out = D_MODEL * SPATIAL_H * SPATIAL_W
    qpr_w = jax.random.normal(k_qpr, (D_MODEL, NUM_FEATURES, SPATIAL_H, SPATIAL_W),
                              jnp.float32) * math.sqrt(2.0 / fan_out)

    # classifier Linear(d_model, num_classes)
    cls_w = jax.random.normal(k_clsw, (num_classes, D_MODEL), jnp.float32) * 0.001
    bnd = 1.0 / math.sqrt(D_MODEL)
    cls_b = jax.random.uniform(k_clsb, (num_classes,), jnp.float32, -bnd, bnd)

    # per-head Block_head: 3 TX layers, each with FeedForward(64, d_ff=32)
    kw1, kb1, kw2, kb2 = jax.random.split(kff, 4)
    ff_w1 = jax.random.normal(kw1, (HEAD, 3, TX_D_FF, TX_D_MODEL), jnp.float32) * 0.001
    ff_b1 = jax.random.uniform(kb1, (HEAD, 3, 1, TX_D_FF), jnp.float32,
                               -1.0 / math.sqrt(TX_D_MODEL), 1.0 / math.sqrt(TX_D_MODEL))
    ff_w2 = jax.random.normal(kw2, (HEAD, 3, TX_D_MODEL, TX_D_FF), jnp.float32) * 0.001
    ff_b2 = jax.random.uniform(kb2, (HEAD, 3, 1, TX_D_MODEL), jnp.float32,
                               -1.0 / math.sqrt(TX_D_FF), 1.0 / math.sqrt(TX_D_FF))

    # Norm(64) alphas / biases (init: ones / zeros); index [head, layer, which_norm]
    norm_alpha = jnp.ones((HEAD, 3, 2, 1, TX_D_MODEL), jnp.float32)
    norm_beta = jnp.zeros((HEAD, 3, 2, 1, TX_D_MODEL), jnp.float32)

    ff_w1_t = jnp.transpose(ff_w1, (0, 1, 3, 2))   # (H,3,64,32)  (right-multiply form)
    ff_w2_t = jnp.transpose(ff_w2, (0, 1, 3, 2))   # (H,3,32,64)

    # -------- derived, kernel-side params (built ONCE here, not per forward call) --------
    gamma, beta_bn, rm, rv = bn1
    scale_c = gamma / jnp.sqrt(rv + BN_EPS)                       # (C,)
    shift_c = beta_bn - rm * scale_c                              # (C,)
    scale_k = jnp.repeat(scale_c, SPATIAL)                        # (K,) broadcast over 7x4
    shift_k = jnp.repeat(shift_c, SPATIAL)                        # (K,)

    w_flat = qpr_w.reshape(D_MODEL, KDIM).T                       # (K, d_model) f32, pre-transposed
    # fold bn1 scale * sqrt(num_features) into the weight; stream it as bf16
    qpr_w_fold = (w_flat * (scale_k * SQRT_F)[:, None]).astype(jnp.bfloat16)
    # additive term: (bn1 shift * sqrt(F) + positional encoding) @ W   -> (num_frames, d_model)
    pos_k = jnp.repeat(pe, SPATIAL, axis=1)                       # (num_frames, K)
    add_k = shift_k[None, :] * SQRT_F + pos_k
    qpr_bias = jnp.dot(add_k, w_flat, precision=jax.lax.Precision.HIGHEST)

    # channel -> head indicator matrices for the flat head layout
    head_sel = (jnp.arange(D_MODEL)[:, None] // D_K
                == jnp.arange(HEAD)[None, :]).astype(jnp.float32)        # (1024, 16)
    head_sel_t = head_sel.T                                              # (16, 1024)

    # block-diagonal FeedForward weights over the flat layout (bf16), + flat biases
    eye_h = jnp.eye(HEAD, dtype=jnp.float32)
    w1lh = jnp.transpose(ff_w1_t, (1, 0, 2, 3))                          # (3, H, 64, 32)
    ff_w1_bd = jnp.einsum('lhdf,hg->lhdgf', w1lh, eye_h).reshape(
        3, D_MODEL, FF_FLAT).astype(jnp.bfloat16)                        # (3, 1024, 512)
    w2lh = jnp.transpose(ff_w2_t, (1, 0, 2, 3))                          # (3, H, 32, 64)
    ff_w2_bd = jnp.einsum('lhfd,hg->lhfgd', w2lh, eye_h).reshape(
        3, FF_FLAT, D_MODEL).astype(jnp.bfloat16)                        # (3, 512, 1024)
    ff_b1_flat = jnp.transpose(ff_b1, (1, 0, 2, 3)).reshape(3, 1, FF_FLAT)
    ff_b2_flat = jnp.transpose(ff_b2, (1, 0, 2, 3)).reshape(3, 1, D_MODEL)

    norm_alpha_flat = jnp.transpose(norm_alpha, (1, 2, 0, 3, 4)).reshape(3, 2, 1, D_MODEL)
    norm_beta_flat = jnp.transpose(norm_beta, (1, 2, 0, 3, 4)).reshape(3, 2, 1, D_MODEL)

    return dict(
        # raw module parameters (used by the pure-JAX reference)
        bn1=bn1, pe=pe, qpr_w=qpr_w, cls_w=cls_w, cls_b=cls_b,
        ff_w1_t=ff_w1_t, ff_b1=ff_b1, ff_w2_t=ff_w2_t, ff_b2=ff_b2,
        norm_alpha=norm_alpha, norm_beta=norm_beta,
        # derived kernel-side parameters
        qpr_w_fold=qpr_w_fold, qpr_bias=qpr_bias,
        head_sel=head_sel, head_sel_t=head_sel_t,
        ff_w1_bd=ff_w1_bd, ff_b1_flat=ff_b1_flat,
        ff_w2_bd=ff_w2_bd, ff_b2_flat=ff_b2_flat,
        norm_alpha_flat=norm_alpha_flat, norm_beta_flat=norm_beta_flat,
        cls_w_t=cls_w.T, cls_b_row=cls_b.reshape(1, -1),
    )


# ============================================================================
# Tail.forward
# ============================================================================
def tail_forward(params, x, b, t):
    n = b * t
    x_flat = x.reshape(n, KDIM)

    # (bn1-shift + posenc) @ W, one row per frame, tiled to the b*t rows (b-major)
    bias_rows = jnp.tile(params['qpr_bias'][:t], (b, 1))           # (n, d_model)

    # bn1 + posenc + Qpr(conv) + relu  (Pallas kernel 1; bn2 is fused into kernel 2)
    xr = qpr_block(x_flat, params['qpr_w_fold'], bias_rows)        # (n, d_model)

    # tiny frame->batch / middle-frame selection matrices (depend only on b, t)
    r = jnp.arange(n)
    bi = jnp.arange(b)
    tseg = (r[None, :] // t == bi[:, None]).astype(jnp.float32)            # (b, n)
    tmid = (r[None, :] == (bi * t + t // 2)[:, None]).astype(jnp.float32)  # (b, n)

    # bn2 + 16 Block_heads + L2 normalize + classifier (Pallas kernel 2, fused)
    y, f_norm = heads_classifier(xr, tseg, tseg.T, tmid, params)
    return y, f_norm


# ============================================================================
# Pure-JAX reference (mirrors the PyTorch forward in eval mode)
# ============================================================================
def tail_reference(params, x, b, t):
    n = b * t
    gamma, beta, rm, rv = params['bn1']
    xb = (x - rm[None, :, None, None]) / jnp.sqrt(rv + BN_EPS)[None, :, None, None] \
        * gamma[None, :, None, None] + beta[None, :, None, None]
    xb = xb.reshape(b, t, NUM_FEATURES, SPATIAL_H, SPATIAL_W)
    xb = xb * math.sqrt(NUM_FEATURES) + params['pe'][:t][None, :, :, None, None]
    xb = xb.reshape(n, NUM_FEATURES, SPATIAL_H, SPATIAL_W)
    conv = jnp.einsum('nchw,ochw->no', xb, params['qpr_w'],
                      precision=jax.lax.Precision.HIGHEST)
    xr = jnp.maximum(conv, 0.0).reshape(b, t, D_MODEL)
    mu = xr.mean(-1, keepdims=True)
    std = jnp.sqrt(jnp.sum((xr - mu) ** 2, -1, keepdims=True) / (D_MODEL - 1))
    xr = (xr - mu) / (std + NORM_EPS)
    q_all = xr[:, t // 2, :].reshape(b, HEAD, D_K)
    kv = jnp.transpose(xr.reshape(b, t, HEAD, D_K), (0, 2, 1, 3))
    outs = []
    for h in range(HEAD):
        qh, kh, vh = q_all[:, h], kv[:, h], kv[:, h]
        for l in range(3):
            scores = jnp.sum(qh[:, None, :] * kh, -1) / math.sqrt(TX_D_MODEL)
            p = jax.nn.softmax(scores, axis=-1)
            att = jnp.sum(p[:, :, None] * vh, 1)
            x1 = att + qh
            m1 = x1.mean(-1, keepdims=True)
            s1 = jnp.sqrt(jnp.sum((x1 - m1) ** 2, -1, keepdims=True) / (TX_D_MODEL - 1))
            q_ = params['norm_alpha'][h, l, 0] * (x1 - m1) / (s1 + NORM_EPS) \
                + params['norm_beta'][h, l, 0]
            hh = jnp.maximum(q_ @ params['ff_w1_t'][h, l] + params['ff_b1'][h, l], 0.0)
            ff = hh @ params['ff_w2_t'][h, l] + params['ff_b2'][h, l]
            x2 = q_ + ff
            m2 = x2.mean(-1, keepdims=True)
            s2 = jnp.sqrt(jnp.sum((x2 - m2) ** 2, -1, keepdims=True) / (TX_D_MODEL - 1))
            qh = params['norm_alpha'][h, l, 1] * (x2 - m2) / (s2 + NORM_EPS) \
                + params['norm_beta'][h, l, 1]
        outs.append(qh)
    f = jnp.concatenate(outs, axis=1)
    fn = f / jnp.maximum(jnp.sqrt(jnp.sum(f * f, -1, keepdims=True)), 1e-12)
    y = fn @ params['cls_w'].T + params['cls_b'][None, :]
    return y, fn


if __name__ == "__main__":
    b, t = 2, 4                       # batch, frames (num_frames = t)
    num_classes = 10
    key = jax.random.PRNGKey(0)
    kx, kp = jax.random.split(key)
    params = init_params(kp, num_classes, t)
    x = jax.random.normal(kx, (b * t, NUM_FEATURES, SPATIAL_H, SPATIAL_W), jnp.float32)

    y, f = tail_forward(params, x, b, t)
    y = jax.block_until_ready(y)
    f = jax.block_until_ready(f)

    y_ref, f_ref = tail_reference(params, x, b, t)
    assert y.shape == (b, num_classes) and f.shape == (b, D_MODEL)
    assert jnp.allclose(f, f_ref, rtol=1e-2, atol=5e-3), \
        f"f mismatch, max abs diff {jnp.max(jnp.abs(f - f_ref))}"
    assert jnp.allclose(y, y_ref, rtol=1e-2, atol=5e-3), \
        f"y mismatch, max abs diff {jnp.max(jnp.abs(y - y_ref))}"

    print("KERNEL_OK")
</pallas_src>

<mosaic_0001>
module attributes {stable_mosaic.version = 11 : i64} {
  func.func @_qpr_kernel(%arg0: i32, %arg1: i32, %arg2: memref<8x8192xf32, #tpu.memory_space<vmem>>, %arg3: memref<8192x512xbf16, #tpu.memory_space<vmem>>, %arg4: memref<8x512xf32, #tpu.memory_space<vmem>>, %arg5: memref<8x512xf32, #tpu.memory_space<vmem>>, %arg6: memref<8x512xf32, #tpu.memory_space<vmem>>) attributes {dimension_semantics = [#tpu.dimension_semantics<parallel>, #tpu.dimension_semantics<arbitrary>], iteration_bounds = array<i64: 2, 7>, scalar_prefetch = 0 : i64, scratch_operands = 1 : i64, tpu.core_type = #tpu.core_type<tc>, window_params = [{transform_indices = @transform_0, window_bounds = array<i64: 8, 8192>}, {transform_indices = @transform_1, window_bounds = array<i64: 8192, 512>}, {transform_indices = @transform_2, window_bounds = array<i64: 8, 512>}, {transform_indices = @transform_3, window_bounds = array<i64: 8, 512>}]} {
    %c0_i32 = arith.constant 0 : i32
    %0 = arith.cmpi eq, %arg1, %c0_i32 : i32
    %1 = arith.extui %0 : i1 to i32
    %c0_i32_0 = arith.constant 0 : i32
    %2 = arith.cmpi ne, %1, %c0_i32_0 : i32
    scf.if %2 {
      %c0_9 = arith.constant 0 : index
      %c0_10 = arith.constant 0 : index
      %13 = vector.load %arg4[%c0_9, %c0_10] : memref<8x512xf32, #tpu.memory_space<vmem>>, vector<8x512xf32>
      %c0_11 = arith.constant 0 : index
      %c0_12 = arith.constant 0 : index
      %14 = vector.load %arg6[%c0_11, %c0_12] : memref<8x512xf32, #tpu.memory_space<vmem>>, vector<8x512xf32>
      tpu.vector_store %arg6[%c0_11, %c0_12], %13 {strides = array<i32>} : memref<8x512xf32, #tpu.memory_space<vmem>>, vector<8x512xf32>,
    } else {
    }
    %c0 = arith.constant 0 : index
    %c0_1 = arith.constant 0 : index
    %3 = vector.load %arg6[%c0, %c0_1] : memref<8x512xf32, #tpu.memory_space<vmem>>, vector<8x512xf32>
    %c0_2 = arith.constant 0 : index
    %c0_3 = arith.constant 0 : index
    %4 = vector.load %arg2[%c0_2, %c0_3] : memref<8x8192xf32, #tpu.memory_space<vmem>>, vector<8x8192xf32>
    %5 = arith.truncf %4 : vector<8x8192xf32> to vector<8x8192xbf16>
    %c0_4 = arith.constant 0 : index
    %c0_5 = arith.constant 0 : index
    %6 = vector.load %arg3[%c0_4, %c0_5] : memref<8192x512xbf16, #tpu.memory_space<vmem>>, vector<8192x512xbf16>
    %cst = arith.constant dense<0.000000e+00> : vector<8x512xf32>
    %7 = tpu.matmul %5, %6, %cst {dimension_numbers = #tpu.dot_dimension_numbers<[1], [0], [0], [1], [0, 0, 1, 1], [], []>} : vector<8x8192xbf16>, vector<8192x512xbf16>, vector<8x512xf32> -> vector<8x512xf32>
    %8 = arith.addf %3, %7 : vector<8x512xf32>
    %c0_6 = arith.constant 0 : index
    %c0_7 = arith.constant 0 : index
    %9 = vector.load %arg6[%c0_6, %c0_7] : memref<8x512xf32, #tpu.memory_space<vmem>>, vector<8x512xf32>
    tpu.vector_store %arg6[%c0_6, %c0_7], %8 {strides = array<i32>} : memref<8x512xf32, #tpu.memory_space<vmem>>, vector<8x512xf32>,
    %c6_i32 = arith.constant 6 : i32
    %10 = arith.cmpi eq, %arg1, %c6_i32 : i32
    %11 = arith.extui %10 : i1 to i32
    %c0_i32_8 = arith.constant 0 : i32
    %12 = arith.cmpi ne, %11, %c0_i32_8 : i32
    scf.if %12 {
      %c0_9 = arith.constant 0 : index
      %c0_10 = arith.constant 0 : index
      %13 = vector.load %arg6[%c0_9, %c0_10] : memref<8x512xf32, #tpu.memory_space<vmem>>, vector<8x512xf32>
      %cst_11 = arith.constant 0.000000e+00 : f32
      %14 = vector.broadcast %cst_11 : f32 to vector<8x512xf32>
      %15 = arith.maximumf %13, %14 : vector<8x512xf32>
      %c0_12 = arith.constant 0 : index
      %c0_13 = arith.constant 0 : index
      %16 = vector.load %arg5[%c0_12, %c0_13] : memref<8x512xf32, #tpu.memory_space<vmem>>, vector<8x512xf32>
      tpu.vector_store %arg5[%c0_12, %c0_13], %15 {strides = array<i32>} : memref<8x512xf32, #tpu.memory_space<vmem>>, vector<8x512xf32>,
    } else {
    }
    return
  }
  func.func @transform_0(%arg0: i32, %arg1: i32) -> (i32, i32) {
    %c0_i32 = arith.constant 0 : i32
    %c0_i32_0 = arith.constant 0 : i32
    return %c0_i32, %arg1 : i32, i32
  }
  func.func @transform_1(%arg0: i32, %arg1: i32) -> (i32, i32) {
    %c0_i32 = arith.constant 0 : i32
    return %arg1, %arg0 : i32, i32
  }
  func.func @transform_2(%arg0: i32, %arg1: i32) -> (i32, i32) {
    %c0_i32 = arith.constant 0 : i32
    %c0_i32_0 = arith.constant 0 : i32
    return %c0_i32, %arg0 : i32, i32
  }
  func.func @transform_3(%arg0: i32, %arg1: i32) -> (i32, i32) {
    %c0_i32 = arith.constant 0 : i32
    %c0_i32_0 = arith.constant 0 : i32
    return %c0_i32, %arg0 : i32, i32
  }
}

</mosaic_0001>

<bundles_post_ra>
// kernel: tpu_custom_call.1
= control target key start
LH: loop header
LB: loop body
LE: loop exit
PB: predicated region body
PF: predicated region fallthrough
CT: control target
= control target key end

     0   :  { %s23922_s0 = inlined_call_operand.hbm [shape: f32[8,57344], index: 0, kind: input, shape index: {}]   ;;  %s23923_s1 = inlined_call_operand.hbm [shape: bf16[57344,1024], index: 1, kind: input, shape index: {}]   ;;  %s23924_s2 = inlined_call_operand.hbm [shape: f32[8,1024], index: 2, kind: input, shape index: {}]   ;;  %s23925_s3 = inlined_call_operand.hbm [shape: f32[8,1024], index: 3, kind: output, shape index: {}]  }
   0x1   :  { %23951 = sst [smem:[#allocation39_spill]] %s23922_s0 }
   0x2   :  { %23952 = sst [smem:[#allocation40_spill]] %s23923_s1 }
   0x3   :  { %23953 = sst [smem:[#allocation41_spill]] %s23924_s2 }
   0x4   :  { %23954 = sst [smem:[#allocation42_spill]] %s23925_s3 }
   0x5   :  { %8 = vsyncpa [#allocation4], 0 }
   0x6   :  { %10 = vsyncpa [#allocation4 + $0x1], 0 }
   0x7   :  { %11 = vsyncpa [#allocation7], 0 }
   0x8   :  { %13 = vsyncpa [#allocation7 + $0x1], 0 }
   0x9   :  { %14 = vsyncpa [#allocation5], 0 }
   0xa   :  { %16 = vsyncpa [#allocation5 + $0x1], 0  ;;  %s21061_s12 = smov 0   ;;  %s21063_s13 = smov 0  }
   0xb   :  { %s21065_s14 = smov 0   ;;  %s21067_s15 = smov 0  }
   0xc   :  { %s21069_s16 = smov 0   ;;  %s21071_s17 = smov 0  }
   0xd   :  { %s21073_s18 = smov 0   ;;  %s21075_s19 = smov 0  }
   0xe   :  { %s21077_s20 = smov 0   ;;  %s21079_s21 = smov 0  }
   0xf   :  { %s21081_s22 = smov 0   ;;  %s21083_s23 = smov 0  }
  0x10   :  { %s21085_s24 = smov 0   ;;  %s21087_s25 = smov 0  }
  0x11 LB: > { %23955 = sst [smem:[#allocation14_spill]] %s20980_s12  ;;  %s31_s26 = sadd.s32 1, %s21024_s23  ;;  %s21032_s25 = sphi %s21087_s25, %s22_s25   ;;  %s21028_s24 = sphi %s21085_s24, %s24038_s24   ;;  %s21024_s23 = sphi %s21083_s23, %s24037_s23   ;;  %s21020_s22 = sphi %s21081_s22, %s24036_s22   ;;  %s21016_s21 = sphi %s21079_s21, %s24035_s21   ;;  %s21012_s20 = sphi %s21077_s20, %s24034_s20   ;;  %s21008_s19 = sphi %s21075_s19, %s24033_s19   ;;  %s21004_s18 = sphi %s21073_s18, %s24032_s18   ;;  %s21000_s17 = sphi %s21071_s17, %s24031_s17   ;;  %s20996_s16 = sphi %s21069_s16, %s24030_s16   ;;  %s20992_s15 = sphi %s21067_s15, %s24029_s15   ;;  %s20988_s14 = sphi %s21065_s14, %s24028_s14   ;;  %s20984_s13 = sphi %s21063_s13, %s24027_s13   ;;  %s20980_s12 = sphi %s21061_s12, %s24024_s12  }
  0x12   : > { %23956 = sst [smem:[#allocation15_spill]] %s20984_s13  ;;  %s34_s27 = sadd.s32 1, %s21028_s24 }
  0x13   : > { %23957 = sst [smem:[#allocation16_spill]] %s21016_s21  ;;  %p32_p0 = scmp.ge.s32.totalorder %s31_s26, 7 }
  0x14   : > { %23958 = sst [smem:[#allocation17_spill]] %s21020_s22  ;;  %p49_p1 = scmp.eq.s32.totalorder %s21032_s25, 0 }
  0x15   : > { %s69_s28 = sadd.s32 1, %s21000_s17  ;;  %p76_p2 = scmp.ne.s32.totalorder %s21000_s17, %s20996_s16 }
  0x16   : > { %s24040_s26 = smov (%p32_p0, %s31_s26), 0  ;;  %s24042_s27 = smov (!%p32_p0, %s34_s27), %s21028_s24 }
  0x17   : > { %23959 = sst [smem:[#allocation18_spill]] %s24040_s26  ;;  %s21142_s29 = ssub.s32 %s21024_s23, %s24040_s26 }
  0x18   : > { %p21146_p3 = por %p76_p2, %p49_p1  ;;  %p36_p4 = scmp.ge.s32.totalorder %s24042_s27, 2 }
  0x19   : > { %p82_p5 = scmp.ne.s32.totalorder %s20996_s16, %s20992_s15  ;;  %p23931_p6 = scmp.lt.s32.totalorder %s21032_s25, 14 }
  0x1a   : > { %s24044_s27 = smov (%p36_p4, %s24042_s27), 0  ;;  %s17581_s4 = sshll.u32 %s21024_s23, 13 }
  0x1b   : > { %23961 = sst [smem:[#allocation19_spill]] %s24044_s27  ;;  %s177_s5 = sand.u32 1, %s21032_s25  }
  0x1c   : > { %s21159_s6 = ssub.s32 %s21028_s24, %s24044_s27  ;;  %s179_s8 = sand.u32 1, %s21000_s17  }
  0x1d   : > { %s66_s7 = sor.u32 %s21159_s6, %s21142_s29  ;;  %s15513_s9 = sshll.u32 %s179_s8, 14 }
  0x1e   : > { %p67_p7 = scmp.eq.s32.totalorder %s66_s7, 0  ;;  %s15515_s10 = sshll.u32 %s21028_s24, 2 }
  0x1f   : > { %s188_s26 = sadd.s32 %s17581_s4, %s15515_s10  ;;  %s181_s3 = scalar_lea.vmem [#allocation6], %s15513_s9 }
  0x20   : > { %s21166_s11 = scalar_select %p67_p7, %s21000_s17, %s69_s28  }
  0x21   : > { %s191_s22 = sshll.u32 %s181_s3, 4  ;;  %s15517_s21 = sshll.u32 %s188_s26, 6  ;;  %s192_s22 = int_to_ptr.vmem [resolvable:$true] %s191_s22 }
  0x22   : > { %s23962_s1 = sld [smem:[#allocation40_spill]]  ;;  %p21177_p8 = pnand %p23931_p6, %p21146_p3 }
  0x23   : > { %s21181_s7 = scalar_lea.sflag [#allocation7], %s177_s5  ;;  %s20809_s28 = scalar_lea.vmem %s192_s22, 262144 }
  0x24   : > { %p20798_p9 = pneg %p21177_p8  ;;  %p20810_p10 = scmp.ne.s32.totalorder %s192_s22, %s20809_s28 }
  0x25   : > { %s21034_s3 = smov [#allocation6]  }
  0x26   : > { %p20812_p11 = pnand %p20810_p10, %p20798_p9  ;;  %s20814_s26 = sshll.u32 %s21034_s3, 4  ;;  %s20815_s26 = int_to_ptr.vmem [resolvable:$false] %s20814_s26 }
  0x27   : > { %s20816_s2 = scalar_lea.vmem %s20815_s26, 524288  ;;  %p20817_p13 = scmp.lt.s32.totalorder %s192_s22, %s20815_s26 }
  0x28   : > { %s190_s13 = scalar_lea.hbm %s23962_s1, %s15517_s21  ;;  %p20813_p12 = pneg %p20812_p11 }
  0x29   : > { %p20818_p0 = scmp.lt.s32.totalorder %s20816_s2, %s20809_s28 }
  0x2b   : > { %p20819_p2 = por %p20818_p0, %p20817_p13 }
  0x2d   : > { %p20820_p3 = pnand %p20819_p2, %p20813_p12 }
  0x2f   : > { %20823 = shalt.err (!%p20820_p3)
}
  0x30   : > { %s21035_s12 = smov 512   ;;  %s21036_s21 = smov 256  }
  0x31   : > { %s21037_s30 = smov 16   ;;  %p15521_p4 = scmp.ge.s32.totalorder %s21032_s25, 1 }
  0x32   : > { %17599 = dma.hbm_to_vmem [thread:$0]  (!%p21177_p8), %s190_s13, 262144, %s192_s22, %s21181_s7, %s21035_s12, %s21036_s21, %s21037_s30  }
  0x33   : > { %p218_p7 = scmp.lt.s32.totalorder %s21032_s25, 15  ;;  %s21195_s8 = sadd.s32 4294967295, %s21032_s25  }
  0x34   : > { %p39_p10 = scmp.eq.s32.totalorder %s21142_s29, 0  ;;  %s41_s9 = sadd.s32 1, %s21012_s20 }
  0x35   : > { %p21190_p9 = pnand %p15521_p4, %p218_p7  ;;  %p48_p11 = scmp.ne.s32.totalorder %s21012_s20, %s21008_s19 }
  0x36   : > { %p54_p12 = scmp.ne.s32.totalorder %s21008_s19, %s21004_s18  ;;  %p55_p13 = scmp.eq.s32.totalorder %s21195_s8, 0 }
  0x37   : > { %s21204_s27 = scalar_select %p39_p10, %s21012_s20, %s41_s9  }
  0x38   : > { %p50_p8 = por %p49_p1, %p48_p11  ;;  %s158_s13 = sand.u32 1, %s21012_s20  }
  0x39   : > { %s23965_s0 = sld [smem:[#allocation39_spill]]  ;;  %p21217_p0 = por %p55_p13, %p54_p12 }
  0x3a   : > { %p21226_p2 = por %p82_p5, %p55_p13  ;;  %s15510_s29 = sshll.u32 %s158_s13, 9 }
  0x3b   : > { %p21232_p3 = pnand %p23931_p6, %p50_p8  ;;  %s162_s2 = scalar_lea.vmem [#allocation3], %s15510_s29 }
  0x3c   : > { %s159_s12 = scalar_lea.sflag [#allocation4], %s158_s13  ;;  %s21038_s15 = smov [#allocation3]  }
  0x3d   : > { %p20826_p4 = pneg %p21232_p3  ;;  %s20842_s30 = sshll.u32 %s21038_s15, 4  ;;  %s20843_s30 = int_to_ptr.vmem [resolvable:$false] %s20842_s30 }
  0x3e   : > { %s20844_s9 = scalar_lea.vmem %s20843_s30, 16384 }
  0x3f   : > { %s168_s28 = scalar_lea.hbm %s23965_s0, %s17581_s4  ;;  %s170_s4 = sshll.u32 %s162_s2, 4  ;;  %s171_s4 = int_to_ptr.vmem [resolvable:$true] %s170_s4 }
  0x40   : > { %s20837_s21 = scalar_lea.vmem %s171_s4, 8192  ;;  %p20845_p11 = scmp.lt.s32.totalorder %s171_s4, %s20843_s30 }
  0x41   : > { %p20838_p7 = scmp.ne.s32.totalorder %s171_s4, %s20837_s21  ;;  %p20846_p12 = scmp.lt.s32.totalorder %s20844_s9, %s20837_s21 }
  0x43   : > { %p20840_p10 = pnand %p20838_p7, %p20826_p4  ;;  %p20847_p8 = por %p20846_p12, %p20845_p11 }
  0x45   : > { %p20841_p5 = pneg %p20840_p10 }
  0x47   : > { %p20848_p6 = pnand %p20847_p8, %p20841_p5 }
  0x49   : > { %20851 = shalt.err (!%p20848_p6)
}
  0x4a   : > { %s23969_s13 = sld [smem:[#allocation15_spill]]  ;;  %s15507_s10 = sadd.s32 4294967294, %s21032_s25  }
  0x4b   : > { %s23970_s22 = sld [smem:[#allocation14_spill]]  ;;  %p93_p4 = scmp.eq.s32.totalorder %s21159_s6, 0 }
  0x4c   : > { %17596 = dma.hbm_to_vmem [thread:$0]  (!%p21232_p3), %s168_s28, 8192, %s171_s4, %s159_s12  }
  0x4d   : > { %s95_s29 = sadd.s32 1, %s20988_s14  ;;  %p132_p11 = scmp.eq.s32.totalorder %s21195_s8, 13 }
  0x4e   : > { %s21248_s26 = scalar_select %p93_p4, %s20988_s14, %s95_s29  }
  0x4f   : > { %p138_p12 = scmp.eq.s32.totalorder %s15507_s10, 13  ;;  %s203_s21 = sand.u32 1, %s20988_s14  }
  0x50   : > { %p102_p6 = scmp.ne.s32.totalorder %s20988_s14, %s23969_s13  ;;  %s17583_s15 = sshll.u32 %s21028_s24, 9 }
  0x51   : > { %p108_p7 = scmp.ne.s32.totalorder %s23969_s13, %s23970_s22  ;;  %s15518_s4 = sshll.u32 %s203_s21, 5 }
  0x52   : > { %p104_p10 = por %p102_p6, %p49_p1  ;;  %p21261_p3 = por %p132_p11, %p102_p6 }
  0x53   : > { %p21254_p5 = por %p108_p7, %p55_p13  ;;  %p21265_p8 = por %p138_p12, %p108_p7 }
  0x54   : > { %s23974_s9 = sld [smem:[#allocation41_spill]]  ;;  %p23975_p1 = scmp.lt.s32.totalorder %s21032_s25, 14 }
  0x55   : > { %s23973_s6 = scalar_select %p21265_p8, 1, 0 }
  0x56   : > { %p21274_p13 = pnand %p23975_p1, %p104_p10  ;;  %s205_s10 = scalar_lea.vmem [#allocation8], %s15518_s4 }
  0x57   : > { %s213_s29 = sshll.u32 %s205_s10, 4  ;;  %s21039_s21 = smov [#allocation8]   ;;  %s214_s29 = int_to_ptr.vmem [resolvable:$true] %s213_s29 }
  0x58   : > { %p20854_p4 = pneg %p21274_p13  ;;  %s20865_s0 = scalar_lea.vmem %s214_s29, 512 }
  0x59   : > { %p20866_p6 = scmp.ne.s32.totalorder %s214_s29, %s20865_s0  ;;  %s20870_s1 = sshll.u32 %s21039_s21, 4  ;;  %s20871_s1 = int_to_ptr.vmem [resolvable:$false] %s20870_s1 }
  0x5a   : > { %s211_s13 = scalar_lea.hbm %s23974_s9, %s17583_s15  ;;  %s20872_s12 = scalar_lea.vmem %s20871_s1, 1024 }
  0x5b   : > { %p20868_p7 = pnand %p20866_p6, %p20854_p4  ;;  %p20873_p12 = scmp.lt.s32.totalorder %s214_s29, %s20871_s1 }
  0x5c   : > { %p20874_p8 = scmp.lt.s32.totalorder %s20872_s12, %s20865_s0 }
  0x5d   : > { %p20869_p11 = pneg %p20868_p7 }
  0x5e   : > { %p20875_p10 = por %p20874_p8, %p20873_p12 }
  0x60   : > { %p20876_p1 = pnand %p20875_p10, %p20869_p11 }
  0x62   : > { %20879 = shalt.err (!%p20876_p1)
}
  0x63   : > { %17602 = dma.hbm_to_vmem [thread:$0]  (!%p21274_p13), %s211_s13, 512, %s214_s29, %s21181_s7  }
  0x64   : > { %222 = sbr.rel (%p21190_p9) target bundleno = 2424 (0x978), region = 32 }
  0x69   : > { %s224_s15 = sand.u32 1, %s21008_s19  }
  0x6a   : > { %s15522_s4 = sshll.u32 %s224_s15, 9  ;;  %s225_s30 = scalar_lea.sflag [#allocation4], %s224_s15 }
  0x6b   : > { %s21286_s9 = scalar_lea.vmem [#allocation3], %s15522_s4 }
  0x6c   : > { %20963 = dma.done.wait (%p21217_p0), %s225_s30, 8192  }
  0x6d   : > { %20965 = vsyncadd (%p21217_p0), %s225_s30, 4294959104  ;;  %s233_s0 = sand.u32 1, %s21195_s8   ;;  %s235_s1 = sand.u32 1, %s20996_s16  }
  0x6e   : > { %s15523_s7 = sshll.u32 %s235_s1, 14  ;;  %s234_s5 = scalar_lea.sflag [#allocation7], %s233_s0 }
  0x6f   : > { %s21294_s13 = scalar_lea.vmem [#allocation6], %s15523_s7 }
  0x70   : > { %20967 = dma.done.wait (%p21226_p2), %s234_s5, 262144  }
  0x71   : > { %20969 = vsyncadd (%p21226_p2), %s234_s5, 4294705152  ;;  %s23977_s22 = sld [smem:[#allocation15_spill]] }
  0x77   : > { %s244_s10 = sand.u32 1, %s23977_s22  }
  0x78   : > { %s15524_s3 = sshll.u32 %s244_s10, 5 }
  0x79   : > { %s246_s29 = scalar_lea.vmem [#allocation8], %s15524_s3 }
  0x7a   : > { %20971 = dma.done.wait (%p21254_p5), %s234_s5, 512  }
  0x7b   : > { %20973 = vsyncadd (%p21254_p5), %s234_s5, 4294966784  ;;  %s21307_s8 = scalar_lea.vmem [#allocation9], %s15524_s3  ;;  %s23978_s21 = sld [smem:[#allocation16_spill]] }
  0x81   : > { %p15526_p9 = scmp.ne.s32.totalorder %s23978_s21, 0 }
  0x83   : > { %287 = sbr.rel (%p15526_p9) target bundleno = 139 (0x8b), region = 48 }
  0x88   : > { %v288_v0 = vld [vmem:[%s246_s29] sm:$0xff]  ;;  %v289_v1 = vld [vmem:[%s246_s29 + $0x8] sm:$0xff]  ;;  %v290_v2 = vld [vmem:[%s246_s29 + $0x10] sm:$0xff] }
  0x89   : > { %292 = vst [vmem:[#allocation2 + $0x10] sm:$0xff] %v288_v0  ;;  %293 = vst [vmem:[#allocation2] sm:$0xff] %v289_v1  ;;  %v291_v3 = vld [vmem:[%s246_s29 + $0x18] sm:$0xff] }
  0x8a   : > { %294 = vst [vmem:[#allocation2 + $0x18] sm:$0xff] %v290_v2  ;;  %295 = vst [vmem:[#allocation2 + $0x8] sm:$0xff] %v291_v3 }
  0x8b PF: > { %v17724_v4 = vld [vmem:[%s21294_s13 + $0xe4] ss:$16 sps:$4 sm:$0xff]   ;;  %v17728_v6 = vld [vmem:[%s21294_s13 + $0xe0] ss:$16 sps:$4 sm:$0xff]   ;;  %v301_v50 = vld [vmem:[%s21286_s9 + $0x8] sm:$0xff]  ;;  %s24017_s18 = sld [smem:[#allocation16_spill]] }
  0x8c   : > { %v17726_v5 = vld [vmem:[%s21294_s13 + $0x2e4] ss:$16 sps:$4 sm:$0xff]   ;;  %12716 = vmatprep.subr.bf16.mxu0 %v17724_v4  ;;  %v17729_v7 = vld [vmem:[%s21294_s13 + $0x2e0] ss:$16 sps:$4 sm:$0xff]   ;;  %v21359_v53 = vpack.c.bf16 %v301_v50, %v301_v50  ;;  %v303_v54 = vld [vmem:[%s21286_s9 + $0x18] sm:$0xff] }
  0x8d   : > { %12757 = vmatprep.subr.bf16.mxu1 %v17726_v5  ;;  %v17730_v8 = vld [vmem:[%s21294_s13 + $0xc4] ss:$16 sps:$4 sm:$0xff]   ;;  %12717 = vmatpush1.bf16.msra.mxu0 %v17728_v6  ;;  %v17734_v10 = vld [vmem:[%s21294_s13 + $0xc0] ss:$16 sps:$4 sm:$0xff]   ;;  %v21363_v56 = vpack.c.bf16 %v303_v54, %v303_v54 }
  0x8e   : > { %12758 = vmatpush1.bf16.msra.mxu1 %v17729_v7  ;;  %v17732_v9 = vld [vmem:[%s21294_s13 + $0x2c4] ss:$16 sps:$4 sm:$0xff]   ;;  %12718 = vmatprep.subr.bf16.mxu0 %v17730_v8  ;;  %v17735_v11 = vld [vmem:[%s21294_s13 + $0x2c0] ss:$16 sps:$4 sm:$0xff]  }
  0x8f   : > { %12759 = vmatprep.subr.bf16.mxu1 %v17732_v9  ;;  %v17736_v12 = vld [vmem:[%s21294_s13 + $0xa4] ss:$16 sps:$4 sm:$0xff]   ;;  %v17740_v14 = vld [vmem:[%s21294_s13 + $0xa0] ss:$16 sps:$4 sm:$0xff]   ;;  %12748 = vmatprep.mubr.bf16.mxu0 %v21359_v53 }
  0x90   : > { %v17738_v13 = vld [vmem:[%s21294_s13 + $0x2a4] ss:$16 sps:$4 sm:$0xff]   ;;  %v17741_v15 = vld [vmem:[%s21294_s13 + $0x2a0] ss:$16 sps:$4 sm:$0xff]   ;;  %12789 = vmatprep.mubr.bf16.mxu1 %v21363_v56 }
  0x91   : > { %12719 = vmatpush1.bf16.msra.mxu0 %v17734_v10  ;;  %v17742_v16 = vld [vmem:[%s21294_s13 + $0x84] ss:$16 sps:$4 sm:$0xff]   ;;  %v17746_v18 = vld [vmem:[%s21294_s13 + $0x80] ss:$16 sps:$4 sm:$0xff]   ;;  %p17575_p0 = scmp.ne.s32.totalorder %s24017_s18, 6 }
  0x92   : > { %12760 = vmatpush1.bf16.msra.mxu1 %v17735_v11  ;;  %12720 = vmatprep.subr.bf16.mxu0 %v17736_v12  ;;  %v17744_v17 = vld [vmem:[%s21294_s13 + $0x284] ss:$16 sps:$4 sm:$0xff]   ;;  %v17747_v19 = vld [vmem:[%s21294_s13 + $0x280] ss:$16 sps:$4 sm:$0xff]  }
  0x93   : > { %12761 = vmatprep.subr.bf16.mxu1 %v17738_v13  ;;  %v17748_v20 = vld [vmem:[%s21294_s13 + $0x64] ss:$16 sps:$4 sm:$0xff]   ;;  %v17752_v22 = vld [vmem:[%s21294_s13 + $0x60] ss:$16 sps:$4 sm:$0xff]  }
  0x94   : > { %v17750_v21 = vld [vmem:[%s21294_s13 + $0x264] ss:$16 sps:$4 sm:$0xff]   ;;  %v17753_v23 = vld [vmem:[%s21294_s13 + $0x260] ss:$16 sps:$4 sm:$0xff]  }
  0x95   : > { %12721 = vmatpush1.bf16.msra.mxu0 %v17740_v14  ;;  %v17754_v24 = vld [vmem:[%s21294_s13 + $0x44] ss:$16 sps:$4 sm:$0xff]   ;;  %v17758_v26 = vld [vmem:[%s21294_s13 + $0x40] ss:$16 sps:$4 sm:$0xff]  }
  0x96   : > { %12762 = vmatpush1.bf16.msra.mxu1 %v17741_v15  ;;  %12722 = vmatprep.subr.bf16.mxu0 %v17742_v16  ;;  %v17756_v25 = vld [vmem:[%s21294_s13 + $0x244] ss:$16 sps:$4 sm:$0xff]   ;;  %v17759_v27 = vld [vmem:[%s21294_s13 + $0x240] ss:$16 sps:$4 sm:$0xff]  }
  0x97   : > { %12763 = vmatprep.subr.bf16.mxu1 %v17744_v17  ;;  %v17760_v28 = vld [vmem:[%s21294_s13 + $0x24] ss:$16 sps:$4 sm:$0xff]   ;;  %v17764_v30 = vld [vmem:[%s21294_s13 + $0x20] ss:$16 sps:$4 sm:$0xff]  }
  0x98   : > { %v17762_v29 = vld [vmem:[%s21294_s13 + $0x224] ss:$16 sps:$4 sm:$0xff]   ;;  %v17765_v31 = vld [vmem:[%s21294_s13 + $0x220] ss:$16 sps:$4 sm:$0xff]  }
  0x99   : > { %12723 = vmatpush1.bf16.msra.mxu0 %v17746_v18  ;;  %v17766_v32 = vld [vmem:[%s21294_s13 + $0x4] ss:$16 sps:$4 sm:$0xff]   ;;  %v17770_v34 = vld [vmem:[%s21294_s13] ss:$16 sps:$4 sm:$0xff]  }
  0x9a   : > { %12764 = vmatpush1.bf16.msra.mxu1 %v17747_v19  ;;  %12724 = vmatprep.subr.bf16.mxu0 %v17748_v20  ;;  %v17768_v33 = vld [vmem:[%s21294_s13 + $0x204] ss:$16 sps:$4 sm:$0xff]   ;;  %v17771_v35 = vld [vmem:[%s21294_s13 + $0x200] ss:$16 sps:$4 sm:$0xff]  }
  0x9b   : > { %12765 = vmatprep.subr.bf16.mxu1 %v17750_v21  ;;  %v17772_v36 = vld [vmem:[%s21294_s13 + $0x1e4] ss:$16 sps:$4 sm:$0xff]   ;;  %v17776_v38 = vld [vmem:[%s21294_s13 + $0x1e0] ss:$16 sps:$4 sm:$0xff]  }
  0x9c   : > { %v17774_v37 = vld [vmem:[%s21294_s13 + $0x3e4] ss:$16 sps:$4 sm:$0xff]   ;;  %v17777_v39 = vld [vmem:[%s21294_s13 + $0x3e0] ss:$16 sps:$4 sm:$0xff]  }
  0x9d   : > { %12725 = vmatpush1.bf16.msra.mxu0 %v17752_v22  ;;  %v17778_v40 = vld [vmem:[%s21294_s13 + $0x1c4] ss:$16 sps:$4 sm:$0xff]   ;;  %v17782_v42 = vld [vmem:[%s21294_s13 + $0x1c0] ss:$16 sps:$4 sm:$0xff]  }
  0x9e   : > { %12766 = vmatpush1.bf16.msra.mxu1 %v17753_v23  ;;  %12726 = vmatprep.subr.bf16.mxu0 %v17754_v24  ;;  %v17780_v41 = vld [vmem:[%s21294_s13 + $0x3c4] ss:$16 sps:$4 sm:$0xff]   ;;  %v17783_v43 = vld [vmem:[%s21294_s13 + $0x3c0] ss:$16 sps:$4 sm:$0xff]  }
  0x9f   : > { %12767 = vmatprep.subr.bf16.mxu1 %v17756_v25  ;;  %v17784_v44 = vld [vmem:[%s21294_s13 + $0x1a4] ss:$16 sps:$4 sm:$0xff]   ;;  %v17788_v46 = vld [vmem:[%s21294_s13 + $0x1a0] ss:$16 sps:$4 sm:$0xff]  }
  0xa0   : > { %v17786_v45 = vld [vmem:[%s21294_s13 + $0x3a4] ss:$16 sps:$4 sm:$0xff]   ;;  %v17789_v47 = vld [vmem:[%s21294_s13 + $0x3a0] ss:$16 sps:$4 sm:$0xff]  }
  0xa1   : > { %12727 = vmatpush1.bf16.msra.mxu0 %v17758_v26  ;;  %v17790_v48 = vld [vmem:[%s21294_s13 + $0x184] ss:$16 sps:$4 sm:$0xff]   ;;  %v17794_v51 = vld [vmem:[%s21294_s13 + $0x180] ss:$16 sps:$4 sm:$0xff]  }
  0xa2   : > { %12768 = vmatpush1.bf16.msra.mxu1 %v17759_v27  ;;  %12728 = vmatprep.subr.bf16.mxu0 %v17760_v28  ;;  %v17792_v49 = vld [vmem:[%s21294_s13 + $0x384] ss:$16 sps:$4 sm:$0xff]   ;;  %v17795_v52 = vld [vmem:[%s21294_s13 + $0x380] ss:$16 sps:$4 sm:$0xff]  }
  0xa3   : > { %12769 = vmatprep.subr.bf16.mxu1 %v17762_v29  ;;  %v17796_v55 = vld [vmem:[%s21294_s13 + $0x164] ss:$16 sps:$4 sm:$0xff]   ;;  %v17800_v58 = vld [vmem:[%s21294_s13 + $0x160] ss:$16 sps:$4 sm:$0xff]  }
  0xa4   : > { %v17798_v57 = vld [vmem:[%s21294_s13 + $0x364] ss:$16 sps:$4 sm:$0xff]   ;;  %v17801_v59 = vld [vmem:[%s21294_s13 + $0x360] ss:$16 sps:$4 sm:$0xff]  }
  0xa5   : > { %12729 = vmatpush1.bf16.msra.mxu0 %v17764_v30  ;;  %v17802_v60 = vld [vmem:[%s21294_s13 + $0x144] ss:$16 sps:$4 sm:$0xff]   ;;  %v17806_v62 = vld [vmem:[%s21294_s13 + $0x140] ss:$16 sps:$4 sm:$0xff]  }
  0xa6   : > { %12770 = vmatpush1.bf16.msra.mxu1 %v17765_v31  ;;  %12730 = vmatprep.subr.bf16.mxu0 %v17766_v32  ;;  %v17804_v61 = vld [vmem:[%s21294_s13 + $0x344] ss:$16 sps:$4 sm:$0xff]   ;;  %v17807_v63 = vld [vmem:[%s21294_s13 + $0x340] ss:$16 sps:$4 sm:$0xff]  }
  0xa7   : > { %12771 = vmatprep.subr.bf16.mxu1 %v17768_v33  ;;  %v17808_v0 = vld [vmem:[%s21294_s13 + $0x124] ss:$16 sps:$4 sm:$0xff]   ;;  %v17812_v2 = vld [vmem:[%s21294_s13 + $0x120] ss:$16 sps:$4 sm:$0xff]  }
  0xa8   : > { %v17810_v1 = vld [vmem:[%s21294_s13 + $0x324] ss:$16 sps:$4 sm:$0xff]   ;;  %v17813_v3 = vld [vmem:[%s21294_s13 + $0x320] ss:$16 sps:$4 sm:$0xff]  }
  0xa9   : > { %12731 = vmatpush1.bf16.msra.mxu0 %v17770_v34  ;;  %v17814_v4 = vld [vmem:[%s21294_s13 + $0x104] ss:$16 sps:$4 sm:$0xff]   ;;  %v17818_v6 = vld [vmem:[%s21294_s13 + $0x100] ss:$16 sps:$4 sm:$0xff]  }
  0xaa   : > { %12772 = vmatpush1.bf16.msra.mxu1 %v17771_v35  ;;  %12732 = vmatprep.subr.bf16.mxu0 %v17772_v36  ;;  %v17816_v5 = vld [vmem:[%s21294_s13 + $0x304] ss:$16 sps:$4 sm:$0xff]   ;;  %v17819_v7 = vld [vmem:[%s21294_s13 + $0x300] ss:$16 sps:$4 sm:$0xff]  }
  0xab   : > { %12773 = vmatprep.subr.bf16.mxu1 %v17774_v37  ;;  %v300_v8 = vld [vmem:[%s21286_s9] sm:$0xff]  ;;  %v302_v9 = vld [vmem:[%s21286_s9 + $0x10] sm:$0xff] }
  0xac   : > { %v17822_v10 = vld [vmem:[%s21294_s13 + $0x4e4] ss:$16 sps:$4 sm:$0xff]   ;;  %v21386_v12 = vpack.c.bf16 %v300_v8, %v300_v8  ;;  %v21388_v13 = vpack.c.bf16 %v302_v9, %v302_v9  ;;  %v17820_v14 = vld [vmem:[%s21294_s13 + $0x4e0] ss:$16 sps:$4 sm:$0xff]  }
  0xad   : > { %12733 = vmatpush2.bf16.msra.mxu0 %v17776_v38  ;;  %v17825_v11 = vld [vmem:[%s21294_s13 + $0x6e4] ss:$16 sps:$4 sm:$0xff]   ;;  %v17823_v15 = vld [vmem:[%s21294_s13 + $0x6e0] ss:$16 sps:$4 sm:$0xff]   ;;  %v305_v38 = vld [vmem:[%s21286_s9 + $0x28] sm:$0xff] }
  0xae   : > { %12774 = vmatpush2.bf16.msra.mxu1 %v17777_v39  ;;  %12734 = vmatprep.subr.bf16.mxu0 %v17778_v40  ;;  %v17828_v16 = vld [vmem:[%s21294_s13 + $0x4c4] ss:$16 sps:$4 sm:$0xff]   ;;  %v17826_v18 = vld [vmem:[%s21294_s13 + $0x4c0] ss:$16 sps:$4 sm:$0xff]  }
  0xaf   : > { %12775 = vmatprep.subr.bf16.mxu1 %v17780_v41  ;;  %v17831_v17 = vld [vmem:[%s21294_s13 + $0x6c4] ss:$16 sps:$4 sm:$0xff]   ;;  %v17829_v19 = vld [vmem:[%s21294_s13 + $0x6c0] ss:$16 sps:$4 sm:$0xff]   ;;  %v21419_v41 = vpack.c.bf16 %v305_v38, %v305_v38 }
  0xb0   : > { %v17834_v20 = vld [vmem:[%s21294_s13 + $0x4a4] ss:$16 sps:$4 sm:$0xff]   ;;  %v17832_v22 = vld [vmem:[%s21294_s13 + $0x4a0] ss:$16 sps:$4 sm:$0xff]  }
  0xb1   : > { %12735 = vmatpush2.bf16.msra.mxu0 %v17782_v42  ;;  %v17837_v21 = vld [vmem:[%s21294_s13 + $0x6a4] ss:$16 sps:$4 sm:$0xff]   ;;  %v17835_v23 = vld [vmem:[%s21294_s13 + $0x6a0] ss:$16 sps:$4 sm:$0xff]   ;;  %v307_v42 = vld [vmem:[%s21286_s9 + $0x38] sm:$0xff] }
  0xb2   : > { %12776 = vmatpush2.bf16.msra.mxu1 %v17783_v43  ;;  %12736 = vmatprep.subr.bf16.mxu0 %v17784_v44  ;;  %v17840_v24 = vld [vmem:[%s21294_s13 + $0x484] ss:$16 sps:$4 sm:$0xff]   ;;  %v17838_v26 = vld [vmem:[%s21294_s13 + $0x480] ss:$16 sps:$4 sm:$0xff]   ;;  %v21423_v44 = vpack.c.bf16 %v307_v42, %v307_v42 }
  0xb3   : > { %12777 = vmatprep.subr.bf16.mxu1 %v17786_v45  ;;  %v17843_v25 = vld [vmem:[%s21294_s13 + $0x684] ss:$16 sps:$4 sm:$0xff]   ;;  %v17841_v27 = vld [vmem:[%s21294_s13 + $0x680] ss:$16 sps:$4 sm:$0xff]  }
  0xb4   : > { %v17846_v28 = vld [vmem:[%s21294_s13 + $0x464] ss:$16 sps:$4 sm:$0xff]   ;;  %v17844_v30 = vld [vmem:[%s21294_s13 + $0x460] ss:$16 sps:$4 sm:$0xff]  }
  0xb5   : > { %12737 = vmatpush2.bf16.msra.mxu0 %v17788_v46  ;;  %v17849_v29 = vld [vmem:[%s21294_s13 + $0x664] ss:$16 sps:$4 sm:$0xff]   ;;  %v17847_v31 = vld [vmem:[%s21294_s13 + $0x660] ss:$16 sps:$4 sm:$0xff]  }
  0xb6   : > { %12778 = vmatpush2.bf16.msra.mxu1 %v17789_v47  ;;  %12738 = vmatprep.subr.bf16.mxu0 %v17790_v48  ;;  %v17852_v32 = vld [vmem:[%s21294_s13 + $0x444] ss:$16 sps:$4 sm:$0xff]   ;;  %v17850_v34 = vld [vmem:[%s21294_s13 + $0x440] ss:$16 sps:$4 sm:$0xff]  }
  0xb7   : > { %12779 = vmatprep.subr.bf16.mxu1 %v17792_v49  ;;  %v17855_v33 = vld [vmem:[%s21294_s13 + $0x644] ss:$16 sps:$4 sm:$0xff]   ;;  %v17853_v35 = vld [vmem:[%s21294_s13 + $0x640] ss:$16 sps:$4 sm:$0xff]  }
  0xb8   : > { %v17858_v36 = vld [vmem:[%s21294_s13 + $0x424] ss:$16 sps:$4 sm:$0xff]   ;;  %v17856_v39 = vld [vmem:[%s21294_s13 + $0x420] ss:$16 sps:$4 sm:$0xff]  }
  0xb9   : > { %12739 = vmatpush2.bf16.msra.mxu0 %v17794_v51  ;;  %v17861_v37 = vld [vmem:[%s21294_s13 + $0x624] ss:$16 sps:$4 sm:$0xff]   ;;  %v17859_v40 = vld [vmem:[%s21294_s13 + $0x620] ss:$16 sps:$4 sm:$0xff]  }
  0xba   : > { %12780 = vmatpush2.bf16.msra.mxu1 %v17795_v52  ;;  %12740 = vmatprep.subr.bf16.mxu0 %v17796_v55  ;;  %v17864_v43 = vld [vmem:[%s21294_s13 + $0x404] ss:$16 sps:$4 sm:$0xff]   ;;  %v17862_v46 = vld [vmem:[%s21294_s13 + $0x400] ss:$16 sps:$4 sm:$0xff]  }
  0xbb   : > { %12781 = vmatprep.subr.bf16.mxu1 %v17798_v57  ;;  %v17867_v45 = vld [vmem:[%s21294_s13 + $0x604] ss:$16 sps:$4 sm:$0xff]   ;;  %v17865_v47 = vld [vmem:[%s21294_s13 + $0x600] ss:$16 sps:$4 sm:$0xff]  }
  0xbc   : > { %v17870_v48 = vld [vmem:[%s21294_s13 + $0x5e4] ss:$16 sps:$4 sm:$0xff]   ;;  %v17868_v50 = vld [vmem:[%s21294_s13 + $0x5e0] ss:$16 sps:$4 sm:$0xff]  }
  0xbd   : > { %12741 = vmatpush2.bf16.msra.mxu0 %v17800_v58  ;;  %v17873_v49 = vld [vmem:[%s21294_s13 + $0x7e4] ss:$16 sps:$4 sm:$0xff]   ;;  %v17871_v51 = vld [vmem:[%s21294_s13 + $0x7e0] ss:$16 sps:$4 sm:$0xff]  }
  0xbe   : > { %12782 = vmatpush2.bf16.msra.mxu1 %v17801_v59  ;;  %12742 = vmatprep.subr.bf16.mxu0 %v17802_v60  ;;  %v17876_v52 = vld [vmem:[%s21294_s13 + $0x5c4] ss:$16 sps:$4 sm:$0xff]   ;;  %v17874_v55 = vld [vmem:[%s21294_s13 + $0x5c0] ss:$16 sps:$4 sm:$0xff]  }
  0xbf   : > { %12783 = vmatprep.subr.bf16.mxu1 %v17804_v61  ;;  %v17879_v54 = vld [vmem:[%s21294_s13 + $0x7c4] ss:$16 sps:$4 sm:$0xff]   ;;  %v17877_v57 = vld [vmem:[%s21294_s13 + $0x7c0] ss:$16 sps:$4 sm:$0xff]  }
  0xc0   : > { %v17882_v58 = vld [vmem:[%s21294_s13 + $0x5a4] ss:$16 sps:$4 sm:$0xff]   ;;  %v17880_v60 = vld [vmem:[%s21294_s13 + $0x5a0] ss:$16 sps:$4 sm:$0xff]  }
  0xc1   : > { %12743 = vmatpush2.bf16.msra.mxu0 %v17806_v62  ;;  %v17885_v59 = vld [vmem:[%s21294_s13 + $0x7a4] ss:$16 sps:$4 sm:$0xff]   ;;  %v17883_v61 = vld [vmem:[%s21294_s13 + $0x7a0] ss:$16 sps:$4 sm:$0xff]  }
  0xc2   : > { %12784 = vmatpush2.bf16.msra.mxu1 %v17807_v63  ;;  %12744 = vmatprep.subr.bf16.mxu0 %v17808_v0  ;;  %v17888_v62 = vld [vmem:[%s21294_s13 + $0x584] ss:$16 sps:$4 sm:$0xff]   ;;  %v17886_v0 = vld [vmem:[%s21294_s13 + $0x580] ss:$16 sps:$4 sm:$0xff]  }
  0xc3   : > { %12785 = vmatprep.subr.bf16.mxu1 %v17810_v1  ;;  %v17891_v63 = vld [vmem:[%s21294_s13 + $0x784] ss:$16 sps:$4 sm:$0xff]   ;;  %v17889_v1 = vld [vmem:[%s21294_s13 + $0x780] ss:$16 sps:$4 sm:$0xff]  }
  0xc4   : > { %v17898_v8 = vld [vmem:[%s21294_s13 + $0x540] ss:$16 sps:$4 sm:$0xff]   ;;  %v17939_v42 = vld [vmem:[%s21294_s13 + $0xa84] ss:$16 sps:$4 sm:$0xff]  }
  0xc5   : > { %12745 = vmatpush2.bf16.msra.mxu0 %v17812_v2  ;;  %v17894_v2 = vld [vmem:[%s21294_s13 + $0x564] ss:$16 sps:$4 sm:$0xff]   ;;  %v17901_v9 = vld [vmem:[%s21294_s13 + $0x740] ss:$16 sps:$4 sm:$0xff]  }
  0xc6   : > { %12786 = vmatpush2.bf16.msra.mxu1 %v17813_v3  ;;  %12746 = vmatprep.subr.bf16.mxu0 %v17814_v4  ;;  %v17897_v3 = vld [vmem:[%s21294_s13 + $0x764] ss:$16 sps:$4 sm:$0xff]   ;;  %v17892_v4 = vld [vmem:[%s21294_s13 + $0x560] ss:$16 sps:$4 sm:$0xff]  }
  0xc7   : > { %12787 = vmatprep.subr.bf16.mxu1 %v17816_v5  ;;  %v17895_v5 = vld [vmem:[%s21294_s13 + $0x760] ss:$16 sps:$4 sm:$0xff]  }
  0xc8   : > { %v17928_v38 = vld [vmem:[%s21294_s13 + $0x8a0] ss:$16 sps:$4 sm:$0xff]  }
  0xc9   : > { %12747 = vmatpush2.bf16.msra.mxu0 %v17818_v6  ;;  %v17900_v6 = vld [vmem:[%s21294_s13 + $0x544] ss:$16 sps:$4 sm:$0xff]  }
  0xca   : > { %12788 = vmatpush2.bf16.msra.mxu1 %v17819_v7  ;;  %12798 = vmatprep.subr.bf16.mxu0 %v17822_v10  ;;  %v17903_v7 = vld [vmem:[%s21294_s13 + $0x744] ss:$16 sps:$4 sm:$0xff]  }
  0xcb   : > { %12839 = vmatprep.subr.bf16.mxu1 %v17825_v11  ;;  %v17906_v10 = vld [vmem:[%s21294_s13 + $0x524] ss:$16 sps:$4 sm:$0xff]  }
  0xcc   : > { %12749 = vmatmul.mubr.bf16.vlgmr.msra.gmra.mxu0 %v21386_v12  ;;  %v17909_v11 = vld [vmem:[%s21294_s13 + $0x724] ss:$16 sps:$4 sm:$0xff]  }
  0xcd   : > { %12790 = vmatmul.mubr.bf16.vlgmr.msra.gmra.mxu1 %v21388_v13  ;;  %12799 = vmatpush1.bf16.msra.mxu0 %v17820_v14  ;;  %v17904_v14 = vld [vmem:[%s21294_s13 + $0x520] ss:$16 sps:$4 sm:$0xff]  }
  0xce   : > { %12840 = vmatpush1.bf16.msra.mxu1 %v17823_v15  ;;  %12800 = vmatprep.subr.bf16.mxu0 %v17828_v16  ;;  %v17907_v15 = vld [vmem:[%s21294_s13 + $0x720] ss:$16 sps:$4 sm:$0xff]   ;;  %v17912_v16 = vld [vmem:[%s21294_s13 + $0x504] ss:$16 sps:$4 sm:$0xff]  }
  0xcf   : > { %12841 = vmatprep.subr.bf16.mxu1 %v17831_v17  ;;  %12830 = vmatprep.mubr.bf16.mxu0 %v21419_v41  ;;  %v17915_v17 = vld [vmem:[%s21294_s13 + $0x704] ss:$16 sps:$4 sm:$0xff]  }
  0xd0   : > { %12871 = vmatprep.mubr.bf16.mxu1 %v21423_v44 }
  0xd1   : > { %12801 = vmatpush1.bf16.msra.mxu0 %v17826_v18  ;;  %v17910_v18 = vld [vmem:[%s21294_s13 + $0x500] ss:$16 sps:$4 sm:$0xff]  }
  0xd2   : > { %12842 = vmatpush1.bf16.msra.mxu1 %v17829_v19  ;;  %12802 = vmatprep.subr.bf16.mxu0 %v17834_v20  ;;  %v17913_v19 = vld [vmem:[%s21294_s13 + $0x700] ss:$16 sps:$4 sm:$0xff]  }
  0xd3   : > { %12843 = vmatprep.subr.bf16.mxu1 %v17837_v21  ;;  %v304_v20 = vld [vmem:[%s21286_s9 + $0x20] sm:$0xff]  ;;  %v306_v21 = vld [vmem:[%s21286_s9 + $0x30] sm:$0xff] }
  0xd5   : > { %12803 = vmatpush1.bf16.msra.mxu0 %v17832_v22  ;;  %v17918_v22 = vld [vmem:[%s21294_s13 + $0x8e4] ss:$16 sps:$4 sm:$0xff]  }
  0xd6   : > { %12844 = vmatpush1.bf16.msra.mxu1 %v17835_v23  ;;  %12804 = vmatprep.subr.bf16.mxu0 %v17840_v24  ;;  %v17921_v23 = vld [vmem:[%s21294_s13 + $0xae4] ss:$16 sps:$4 sm:$0xff]   ;;  %v21466_v24 = vpack.c.bf16 %v304_v20, %v304_v20  ;;  %v17988_v20 = vld [vmem:[%s21294_s13 + $0x960] ss:$16 sps:$4 sm:$0xff]  }
  0xd7   : > { %12845 = vmatprep.subr.bf16.mxu1 %v17843_v25  ;;  %v21468_v25 = vpack.c.bf16 %v306_v21, %v306_v21  ;;  %v17991_v21 = vld [vmem:[%s21294_s13 + $0xb60] ss:$16 sps:$4 sm:$0xff]  }
  0xd9   : > { %12805 = vmatpush1.bf16.msra.mxu0 %v17838_v26  ;;  %v17916_v26 = vld [vmem:[%s21294_s13 + $0x8e0] ss:$16 sps:$4 sm:$0xff]  }
  0xda   : > { %12846 = vmatpush1.bf16.msra.mxu1 %v17841_v27  ;;  %12806 = vmatprep.subr.bf16.mxu0 %v17846_v28  ;;  %v17919_v27 = vld [vmem:[%s21294_s13 + $0xae0] ss:$16 sps:$4 sm:$0xff]   ;;  %v17924_v28 = vld [vmem:[%s21294_s13 + $0x8c4] ss:$16 sps:$4 sm:$0xff]  }
  0xdb   : > { %12847 = vmatprep.subr.bf16.mxu1 %v17849_v29  ;;  %v17927_v29 = vld [vmem:[%s21294_s13 + $0xac4] ss:$16 sps:$4 sm:$0xff]  }
  0xdd   : > { %12807 = vmatpush1.bf16.msra.mxu0 %v17844_v30  ;;  %v309_v30 = vld [vmem:[%s21286_s9 + $0x48] sm:$0xff] }
  0xde   : > { %12848 = vmatpush1.bf16.msra.mxu1 %v17847_v31  ;;  %12808 = vmatprep.subr.bf16.mxu0 %v17852_v32  ;;  %v17922_v31 = vld [vmem:[%s21294_s13 + $0x8c0] ss:$16 sps:$4 sm:$0xff]  }
  0xdf   : > { %12849 = vmatprep.subr.bf16.mxu1 %v17855_v33  ;;  %v17925_v32 = vld [vmem:[%s21294_s13 + $0xac0] ss:$16 sps:$4 sm:$0xff]   ;;  %v21479_v33 = vpack.c.bf16 %v309_v30, %v309_v30 }
  0xe0   : > { %v18000_v30 = vld [vmem:[%s21294_s13 + $0x920] ss:$16 sps:$4 sm:$0xff]  }
  0xe1   : > { %12809 = vmatpush1.bf16.msra.mxu0 %v17850_v34  ;;  %v311_v34 = vld [vmem:[%s21286_s9 + $0x58] sm:$0xff] }
  0xe2   : > { %12850 = vmatpush1.bf16.msra.mxu1 %v17853_v35  ;;  %12810 = vmatprep.subr.bf16.mxu0 %v17858_v36  ;;  %v17930_v35 = vld [vmem:[%s21294_s13 + $0x8a4] ss:$16 sps:$4 sm:$0xff]   ;;  %v21483_v36 = vpack.c.bf16 %v311_v34, %v311_v34 }
  0xe3   : > { %12851 = vmatprep.subr.bf16.mxu1 %v17861_v37  ;;  %v17933_v37 = vld [vmem:[%s21294_s13 + $0xaa4] ss:$16 sps:$4 sm:$0xff]  }
  0xe4   : > { %v18011_v34 = vld [vmem:[%s21294_s13 + $0xb04] ss:$16 sps:$4 sm:$0xff]  }
  0xe5   : > { %12811 = vmatpush1.bf16.msra.mxu0 %v17856_v39  ;;  %v17931_v39 = vld [vmem:[%s21294_s13 + $0xaa0] ss:$16 sps:$4 sm:$0xff]  }
  0xe6   : > { %12852 = vmatpush1.bf16.msra.mxu1 %v17859_v40  ;;  %12812 = vmatprep.subr.bf16.mxu0 %v17864_v43  ;;  %v17936_v40 = vld [vmem:[%s21294_s13 + $0x884] ss:$16 sps:$4 sm:$0xff]   ;;  %v17934_v43 = vld [vmem:[%s21294_s13 + $0x880] ss:$16 sps:$4 sm:$0xff]  }
  0xe7   : > { %12853 = vmatprep.subr.bf16.mxu1 %v17867_v45  ;;  %v17937_v45 = vld [vmem:[%s21294_s13 + $0xa80] ss:$16 sps:$4 sm:$0xff]  }
  0xe9   : > { %12813 = vmatpush1.bf16.msra.mxu0 %v17862_v46  ;;  %v17942_v46 = vld [vmem:[%s21294_s13 + $0x864] ss:$16 sps:$4 sm:$0xff]  }
  0xea   : > { %12854 = vmatpush1.bf16.msra.mxu1 %v17865_v47  ;;  %12814 = vmatprep.subr.bf16.mxu0 %v17870_v48  ;;  %v17945_v47 = vld [vmem:[%s21294_s13 + $0xa64] ss:$16 sps:$4 sm:$0xff]   ;;  %v17940_v48 = vld [vmem:[%s21294_s13 + $0x860] ss:$16 sps:$4 sm:$0xff]  }
  0xeb   : > { %12855 = vmatprep.subr.bf16.mxu1 %v17873_v49  ;;  %v17943_v49 = vld [vmem:[%s21294_s13 + $0xa60] ss:$16 sps:$4 sm:$0xff]  }
  0xed   : > { %12815 = vmatpush2.bf16.msra.mxu0 %v17868_v50  ;;  %v17948_v50 = vld [vmem:[%s21294_s13 + $0x844] ss:$16 sps:$4 sm:$0xff]  }
  0xee   : > { %12856 = vmatpush2.bf16.msra.mxu1 %v17871_v51  ;;  %12816 = vmatprep.subr.bf16.mxu0 %v17876_v52  ;;  %v17951_v51 = vld [vmem:[%s21294_s13 + $0xa44] ss:$16 sps:$4 sm:$0xff]   ;;  %v17946_v52 = vld [vmem:[%s21294_s13 + $0x840] ss:$16 sps:$4 sm:$0xff]  }
  0xef   : > { %12857 = vmatprep.subr.bf16.mxu1 %v17879_v54  ;;  %v17949_v54 = vld [vmem:[%s21294_s13 + $0xa40] ss:$16 sps:$4 sm:$0xff]  }
  0xf1   : > { %12817 = vmatpush2.bf16.msra.mxu0 %v17874_v55  ;;  %v17954_v55 = vld [vmem:[%s21294_s13 + $0x824] ss:$16 sps:$4 sm:$0xff]  }
  0xf2   : > { %12858 = vmatpush2.bf16.msra.mxu1 %v17877_v57  ;;  %12818 = vmatprep.subr.bf16.mxu0 %v17882_v58  ;;  %v17957_v57 = vld [vmem:[%s21294_s13 + $0xa24] ss:$16 sps:$4 sm:$0xff]   ;;  %v17952_v58 = vld [vmem:[%s21294_s13 + $0x820] ss:$16 sps:$4 sm:$0xff]  }
  0xf3   : > { %12859 = vmatprep.subr.bf16.mxu1 %v17885_v59  ;;  %v17955_v59 = vld [vmem:[%s21294_s13 + $0xa20] ss:$16 sps:$4 sm:$0xff]  }
  0xf5   : > { %12819 = vmatpush2.bf16.msra.mxu0 %v17880_v60  ;;  %v17960_v60 = vld [vmem:[%s21294_s13 + $0x804] ss:$16 sps:$4 sm:$0xff]  }
  0xf6   : > { %12860 = vmatpush2.bf16.msra.mxu1 %v17883_v61  ;;  %12820 = vmatprep.subr.bf16.mxu0 %v17888_v62  ;;  %v17963_v61 = vld [vmem:[%s21294_s13 + $0xa04] ss:$16 sps:$4 sm:$0xff]   ;;  %v17958_v62 = vld [vmem:[%s21294_s13 + $0x800] ss:$16 sps:$4 sm:$0xff]  }
  0xf7   : > { %12861 = vmatprep.subr.bf16.mxu1 %v17891_v63  ;;  %v17961_v63 = vld [vmem:[%s21294_s13 + $0xa00] ss:$16 sps:$4 sm:$0xff]  }
  0xf9   : > { %12821 = vmatpush2.bf16.msra.mxu0 %v17886_v0  ;;  %v17966_v0 = vld [vmem:[%s21294_s13 + $0x9e4] ss:$16 sps:$4 sm:$0xff]  }
  0xfa   : > { %12862 = vmatpush2.bf16.msra.mxu1 %v17889_v1  ;;  %12822 = vmatprep.subr.bf16.mxu0 %v17894_v2  ;;  %v17969_v1 = vld [vmem:[%s21294_s13 + $0xbe4] ss:$16 sps:$4 sm:$0xff]   ;;  %v17964_v2 = vld [vmem:[%s21294_s13 + $0x9e0] ss:$16 sps:$4 sm:$0xff]  }
  0xfb   : > { %12863 = vmatprep.subr.bf16.mxu1 %v17897_v3  ;;  %v17967_v3 = vld [vmem:[%s21294_s13 + $0xbe0] ss:$16 sps:$4 sm:$0xff]  }
  0xfd   : > { %12823 = vmatpush2.bf16.msra.mxu0 %v17892_v4  ;;  %v17972_v4 = vld [vmem:[%s21294_s13 + $0x9c4] ss:$16 sps:$4 sm:$0xff]  }
  0xfe   : > { %12864 = vmatpush2.bf16.msra.mxu1 %v17895_v5  ;;  %12824 = vmatprep.subr.bf16.mxu0 %v17900_v6  ;;  %v17975_v5 = vld [vmem:[%s21294_s13 + $0xbc4] ss:$16 sps:$4 sm:$0xff]   ;;  %v17970_v6 = vld [vmem:[%s21294_s13 + $0x9c0] ss:$16 sps:$4 sm:$0xff]  }
  0xff   : > { %12865 = vmatprep.subr.bf16.mxu1 %v17903_v7  ;;  %v17973_v7 = vld [vmem:[%s21294_s13 + $0xbc0] ss:$16 sps:$4 sm:$0xff]  }
 0x101   : > { %12825 = vmatpush2.bf16.msra.mxu0 %v17898_v8  ;;  %v17978_v8 = vld [vmem:[%s21294_s13 + $0x9a4] ss:$16 sps:$4 sm:$0xff]  }
 0x102   : > { %12866 = vmatpush2.bf16.msra.mxu1 %v17901_v9  ;;  %12826 = vmatprep.subr.bf16.mxu0 %v17906_v10  ;;  %v17981_v9 = vld [vmem:[%s21294_s13 + $0xba4] ss:$16 sps:$4 sm:$0xff]   ;;  %v17976_v10 = vld [vmem:[%s21294_s13 + $0x9a0] ss:$16 sps:$4 sm:$0xff]  }
 0x103   : > { %12867 = vmatprep.subr.bf16.mxu1 %v17909_v11  ;;  %v17979_v11 = vld [vmem:[%s21294_s13 + $0xba0] ss:$16 sps:$4 sm:$0xff]  }
 0x105   : > { %12827 = vmatpush2.bf16.msra.mxu0 %v17904_v14  ;;  %v17984_v14 = vld [vmem:[%s21294_s13 + $0x984] ss:$16 sps:$4 sm:$0xff]  }
 0x106   : > { %12868 = vmatpush2.bf16.msra.mxu1 %v17907_v15  ;;  %12828 = vmatprep.subr.bf16.mxu0 %v17912_v16  ;;  %v17987_v15 = vld [vmem:[%s21294_s13 + $0xb84] ss:$16 sps:$4 sm:$0xff]   ;;  %v17982_v16 = vld [vmem:[%s21294_s13 + $0x980] ss:$16 sps:$4 sm:$0xff]  }
 0x107   : > { %12869 = vmatprep.subr.bf16.mxu1 %v17915_v17  ;;  %v17985_v17 = vld [vmem:[%s21294_s13 + $0xb80] ss:$16 sps:$4 sm:$0xff]  }
 0x109   : > { %12829 = vmatpush2.bf16.msra.mxu0 %v17910_v18  ;;  %v17990_v18 = vld [vmem:[%s21294_s13 + $0x964] ss:$16 sps:$4 sm:$0xff]  }
 0x10a   : > { %12870 = vmatpush2.bf16.msra.mxu1 %v17913_v19  ;;  %12880 = vmatprep.subr.bf16.mxu0 %v17918_v22  ;;  %v17993_v19 = vld [vmem:[%s21294_s13 + $0xb64] ss:$16 sps:$4 sm:$0xff]  }
 0x10b   : > { %12921 = vmatprep.subr.bf16.mxu1 %v17921_v23  ;;  %v17996_v22 = vld [vmem:[%s21294_s13 + $0x944] ss:$16 sps:$4 sm:$0xff]  }
 0x10c   : > { %12831 = vmatmul.mubr.bf16.vlgmr.msra.gmra.mxu0 %v21466_v24  ;;  %v17999_v23 = vld [vmem:[%s21294_s13 + $0xb44] ss:$16 sps:$4 sm:$0xff]  }
 0x10d   : > { %12872 = vmatmul.mubr.bf16.vlgmr.msra.gmra.mxu1 %v21468_v25  ;;  %12881 = vmatpush1.bf16.msra.mxu0 %v17916_v26  ;;  %v17994_v26 = vld [vmem:[%s21294_s13 + $0x940] ss:$16 sps:$4 sm:$0xff]  }
 0x10e   : > { %12922 = vmatpush1.bf16.msra.mxu1 %v17919_v27  ;;  %12882 = vmatprep.subr.bf16.mxu0 %v17924_v28  ;;  %v17997_v27 = vld [vmem:[%s21294_s13 + $0xb40] ss:$16 sps:$4 sm:$0xff]   ;;  %v18002_v28 = vld [vmem:[%s21294_s13 + $0x924] ss:$16 sps:$4 sm:$0xff]  }
 0x10f   : > { %12923 = vmatprep.subr.bf16.mxu1 %v17927_v29  ;;  %12912 = vmatprep.mubr.bf16.mxu0 %v21479_v33  ;;  %v18005_v29 = vld [vmem:[%s21294_s13 + $0xb24] ss:$16 sps:$4 sm:$0xff]  }
 0x110   : > { %12953 = vmatprep.mubr.bf16.mxu1 %v21483_v36 }
 0x111   : > { %12883 = vmatpush1.bf16.msra.mxu0 %v17922_v31  ;;  %v18003_v31 = vld [vmem:[%s21294_s13 + $0xb20] ss:$16 sps:$4 sm:$0xff]  }
 0x112   : > { %12924 = vmatpush1.bf16.msra.mxu1 %v17925_v32  ;;  %12884 = vmatprep.subr.bf16.mxu0 %v17930_v35  ;;  %v18008_v32 = vld [vmem:[%s21294_s13 + $0x904] ss:$16 sps:$4 sm:$0xff]   ;;  %v18006_v35 = vld [vmem:[%s21294_s13 + $0x900] ss:$16 sps:$4 sm:$0xff]  }
 0x113   : > { %12925 = vmatprep.subr.bf16.mxu1 %v17933_v37  ;;  %v18009_v37 = vld [vmem:[%s21294_s13 + $0xb00] ss:$16 sps:$4 sm:$0xff]  }
 0x115   : > { %12885 = vmatpush1.bf16.msra.mxu0 %v17928_v38  ;;  %v308_v38 = vld [vmem:[%s21286_s9 + $0x40] sm:$0xff] }
 0x116   : > { %12926 = vmatpush1.bf16.msra.mxu1 %v17931_v39  ;;  %12886 = vmatprep.subr.bf16.mxu0 %v17936_v40  ;;  %v310_v39 = vld [vmem:[%s21286_s9 + $0x50] sm:$0xff] }
 0x117   : > { %12927 = vmatprep.subr.bf16.mxu1 %v17939_v42  ;;  %v18014_v40 = vld [vmem:[%s21294_s13 + $0xce4] ss:$16 sps:$4 sm:$0xff]  }
 0x118   : > { %v18017_v42 = vld [vmem:[%s21294_s13 + $0xee4] ss:$16 sps:$4 sm:$0xff]  }
 0x119   : > { %12887 = vmatpush1.bf16.msra.mxu0 %v17934_v43  ;;  %v18012_v43 = vld [vmem:[%s21294_s13 + $0xce0] ss:$16 sps:$4 sm:$0xff]  }
 0x11a   : > { %12928 = vmatpush1.bf16.msra.mxu1 %v17937_v45  ;;  %12888 = vmatprep.subr.bf16.mxu0 %v17942_v46  ;;  %v18015_v45 = vld [vmem:[%s21294_s13 + $0xee0] ss:$16 sps:$4 sm:$0xff]   ;;  %v21548_v46 = vpack.c.bf16 %v308_v38, %v308_v38 }
 0x11b   : > { %12929 = vmatprep.subr.bf16.mxu1 %v17945_v47  ;;  %v21550_v47 = vpack.c.bf16 %v310_v39, %v310_v39  ;;  %v18078_v38 = vld [vmem:[%s21294_s13 + $0xd80] ss:$16 sps:$4 sm:$0xff]  }
 0x11c   : > { %v18081_v39 = vld [vmem:[%s21294_s13 + $0xf80] ss:$16 sps:$4 sm:$0xff]  }
 0x11d   : > { %12889 = vmatpush1.bf16.msra.mxu0 %v17940_v48  ;;  %v313_v48 = vld [vmem:[%s21286_s9 + $0x68] sm:$0xff] }
 0x11e   : > { %12930 = vmatpush1.bf16.msra.mxu1 %v17943_v49  ;;  %12890 = vmatprep.subr.bf16.mxu0 %v17948_v50  ;;  %v315_v49 = vld [vmem:[%s21286_s9 + $0x78] sm:$0xff]  ;;  %v18020_v50 = vld [vmem:[%s21294_s13 + $0xcc4] ss:$16 sps:$4 sm:$0xff]  }
 0x11f   : > { %12931 = vmatprep.subr.bf16.mxu1 %v17951_v51  ;;  %v18023_v51 = vld [vmem:[%s21294_s13 + $0xec4] ss:$16 sps:$4 sm:$0xff]  }
 0x121   : > { %12891 = vmatpush1.bf16.msra.mxu0 %v17946_v52  ;;  %v21556_v52 = vpack.c.bf16 %v313_v48, %v313_v48  ;;  %v18092_v48 = vld [vmem:[%s21294_s13 + $0xd44] ss:$16 sps:$4 sm:$0xff]  }
 0x122   : > { %12932 = vmatpush1.bf16.msra.mxu1 %v17949_v54  ;;  %12892 = vmatprep.subr.bf16.mxu0 %v17954_v55  ;;  %v21558_v54 = vpack.c.bf16 %v315_v49, %v315_v49  ;;  %v18018_v55 = vld [vmem:[%s21294_s13 + $0xcc0] ss:$16 sps:$4 sm:$0xff]   ;;  %v18095_v49 = vld [vmem:[%s21294_s13 + $0xf44] ss:$16 sps:$4 sm:$0xff]  }
 0x123   : > { %12933 = vmatprep.subr.bf16.mxu1 %v17957_v57  ;;  %v18021_v57 = vld [vmem:[%s21294_s13 + $0xec0] ss:$16 sps:$4 sm:$0xff]  }
 0x125   : > { %12893 = vmatpush1.bf16.msra.mxu0 %v17952_v58  ;;  %v18026_v58 = vld [vmem:[%s21294_s13 + $0xca4] ss:$16 sps:$4 sm:$0xff]  }
 0x126   : > { %12934 = vmatpush1.bf16.msra.mxu1 %v17955_v59  ;;  %12894 = vmatprep.subr.bf16.mxu0 %v17960_v60  ;;  %v18029_v59 = vld [vmem:[%s21294_s13 + $0xea4] ss:$16 sps:$4 sm:$0xff]   ;;  %v18024_v60 = vld [vmem:[%s21294_s13 + $0xca0] ss:$16 sps:$4 sm:$0xff]  }
 0x127   : > { %12935 = vmatprep.subr.bf16.mxu1 %v17963_v61  ;;  %v18027_v61 = vld [vmem:[%s21294_s13 + $0xea0] ss:$16 sps:$4 sm:$0xff]  }
 0x129   : > { %12895 = vmatpush1.bf16.msra.mxu0 %v17958_v62  ;;  %v18032_v62 = vld [vmem:[%s21294_s13 + $0xc84] ss:$16 sps:$4 sm:$0xff]  }
 0x12a   : > { %12936 = vmatpush1.bf16.msra.mxu1 %v17961_v63  ;;  %12896 = vmatprep.subr.bf16.mxu0 %v17966_v0  ;;  %v18035_v63 = vld [vmem:[%s21294_s13 + $0xe84] ss:$16 sps:$4 sm:$0xff]   ;;  %v18030_v0 = vld [vmem:[%s21294_s13 + $0xc80] ss:$16 sps:$4 sm:$0xff]  }
 0x12b   : > { %12937 = vmatprep.subr.bf16.mxu1 %v17969_v1  ;;  %v18033_v1 = vld [vmem:[%s21294_s13 + $0xe80] ss:$16 sps:$4 sm:$0xff]  }
 0x12d   : > { %12897 = vmatpush2.bf16.msra.mxu0 %v17964_v2  ;;  %v18038_v2 = vld [vmem:[%s21294_s13 + $0xc64] ss:$16 sps:$4 sm:$0xff]  }
 0x12e   : > { %12938 = vmatpush2.bf16.msra.mxu1 %v17967_v3  ;;  %12898 = vmatprep.subr.bf16.mxu0 %v17972_v4  ;;  %v18041_v3 = vld [vmem:[%s21294_s13 + $0xe64] ss:$16 sps:$4 sm:$0xff]   ;;  %v18036_v4 = vld [vmem:[%s21294_s13 + $0xc60] ss:$16 sps:$4 sm:$0xff]  }
 0x12f   : > { %12939 = vmatprep.subr.bf16.mxu1 %v17975_v5  ;;  %v18039_v5 = vld [vmem:[%s21294_s13 + $0xe60] ss:$16 sps:$4 sm:$0xff]  }
 0x131   : > { %12899 = vmatpush2.bf16.msra.mxu0 %v17970_v6  ;;  %v18044_v6 = vld [vmem:[%s21294_s13 + $0xc44] ss:$16 sps:$4 sm:$0xff]  }
 0x132   : > { %12940 = vmatpush2.bf16.msra.mxu1 %v17973_v7  ;;  %12900 = vmatprep.subr.bf16.mxu0 %v17978_v8  ;;  %v18047_v7 = vld [vmem:[%s21294_s13 + $0xe44] ss:$16 sps:$4 sm:$0xff]   ;;  %v18042_v8 = vld [vmem:[%s21294_s13 + $0xc40] ss:$16 sps:$4 sm:$0xff]  }
 0x133   : > { %12941 = vmatprep.subr.bf16.mxu1 %v17981_v9  ;;  %v18045_v9 = vld [vmem:[%s21294_s13 + $0xe40] ss:$16 sps:$4 sm:$0xff]  }
 0x135   : > { %12901 = vmatpush2.bf16.msra.mxu0 %v17976_v10  ;;  %v18050_v10 = vld [vmem:[%s21294_s13 + $0xc24] ss:$16 sps:$4 sm:$0xff]  }
 0x136   : > { %12942 = vmatpush2.bf16.msra.mxu1 %v17979_v11  ;;  %12902 = vmatprep.subr.bf16.mxu0 %v17984_v14  ;;  %v18053_v11 = vld [vmem:[%s21294_s13 + $0xe24] ss:$16 sps:$4 sm:$0xff]   ;;  %v18048_v14 = vld [vmem:[%s21294_s13 + $0xc20] ss:$16 sps:$4 sm:$0xff]  }
 0x137   : > { %12943 = vmatprep.subr.bf16.mxu1 %v17987_v15  ;;  %v18051_v15 = vld [vmem:[%s21294_s13 + $0xe20] ss:$16 sps:$4 sm:$0xff]  }
 0x139   : > { %12903 = vmatpush2.bf16.msra.mxu0 %v17982_v16  ;;  %v18056_v16 = vld [vmem:[%s21294_s13 + $0xc04] ss:$16 sps:$4 sm:$0xff]  }
 0x13a   : > { %12944 = vmatpush2.bf16.msra.mxu1 %v17985_v17  ;;  %12904 = vmatprep.subr.bf16.mxu0 %v17990_v18  ;;  %v18059_v17 = vld [vmem:[%s21294_s13 + $0xe04] ss:$16 sps:$4 sm:$0xff]   ;;  %v18054_v18 = vld [vmem:[%s21294_s13 + $0xc00] ss:$16 sps:$4 sm:$0xff]  }
 0x13b   : > { %12945 = vmatprep.subr.bf16.mxu1 %v17993_v19  ;;  %v18057_v19 = vld [vmem:[%s21294_s13 + $0xe00] ss:$16 sps:$4 sm:$0xff]  }
 0x13d   : > { %12905 = vmatpush2.bf16.msra.mxu0 %v17988_v20  ;;  %v18062_v20 = vld [vmem:[%s21294_s13 + $0xde4] ss:$16 sps:$4 sm:$0xff]  }
 0x13e   : > { %12946 = vmatpush2.bf16.msra.mxu1 %v17991_v21  ;;  %12906 = vmatprep.subr.bf16.mxu0 %v17996_v22  ;;  %v18065_v21 = vld [vmem:[%s21294_s13 + $0xfe4] ss:$16 sps:$4 sm:$0xff]   ;;  %v18060_v22 = vld [vmem:[%s21294_s13 + $0xde0] ss:$16 sps:$4 sm:$0xff]  }
 0x13f   : > { %12947 = vmatprep.subr.bf16.mxu1 %v17999_v23  ;;  %v18063_v23 = vld [vmem:[%s21294_s13 + $0xfe0] ss:$16 sps:$4 sm:$0xff]  }
 0x141   : > { %12907 = vmatpush2.bf16.msra.mxu0 %v17994_v26  ;;  %v18068_v26 = vld [vmem:[%s21294_s13 + $0xdc4] ss:$16 sps:$4 sm:$0xff]  }
 0x142   : > { %12948 = vmatpush2.bf16.msra.mxu1 %v17997_v27  ;;  %12908 = vmatprep.subr.bf16.mxu0 %v18002_v28  ;;  %v18071_v27 = vld [vmem:[%s21294_s13 + $0xfc4] ss:$16 sps:$4 sm:$0xff]   ;;  %v18066_v28 = vld [vmem:[%s21294_s13 + $0xdc0] ss:$16 sps:$4 sm:$0xff]  }
 0x143   : > { %12949 = vmatprep.subr.bf16.mxu1 %v18005_v29  ;;  %v18069_v29 = vld [vmem:[%s21294_s13 + $0xfc0] ss:$16 sps:$4 sm:$0xff]  }
 0x145   : > { %12909 = vmatpush2.bf16.msra.mxu0 %v18000_v30  ;;  %v18074_v30 = vld [vmem:[%s21294_s13 + $0xda4] ss:$16 sps:$4 sm:$0xff]  }
 0x146   : > { %12950 = vmatpush2.bf16.msra.mxu1 %v18003_v31  ;;  %12910 = vmatprep.subr.bf16.mxu0 %v18008_v32  ;;  %v18077_v31 = vld [vmem:[%s21294_s13 + $0xfa4] ss:$16 sps:$4 sm:$0xff]   ;;  %v18072_v32 = vld [vmem:[%s21294_s13 + $0xda0] ss:$16 sps:$4 sm:$0xff]  }
 0x147   : > { %12951 = vmatprep.subr.bf16.mxu1 %v18011_v34  ;;  %v18075_v34 = vld [vmem:[%s21294_s13 + $0xfa0] ss:$16 sps:$4 sm:$0xff]  }
 0x149   : > { %12911 = vmatpush2.bf16.msra.mxu0 %v18006_v35  ;;  %v18080_v35 = vld [vmem:[%s21294_s13 + $0xd84] ss:$16 sps:$4 sm:$0xff]  }
 0x14a   : > { %12952 = vmatpush2.bf16.msra.mxu1 %v18009_v37  ;;  %12962 = vmatprep.subr.bf16.mxu0 %v18014_v40  ;;  %v18083_v37 = vld [vmem:[%s21294_s13 + $0xf84] ss:$16 sps:$4 sm:$0xff]  }
 0x14b   : > { %13003 = vmatprep.subr.bf16.mxu1 %v18017_v42  ;;  %v18086_v40 = vld [vmem:[%s21294_s13 + $0xd64] ss:$16 sps:$4 sm:$0xff]  }
 0x14c   : > { %12913 = vmatmul.mubr.bf16.vlgmr.msra.gmra.mxu0 %v21548_v46  ;;  %v18089_v42 = vld [vmem:[%s21294_s13 + $0xf64] ss:$16 sps:$4 sm:$0xff]  }
 0x14d   : > { %12954 = vmatmul.mubr.bf16.vlgmr.msra.gmra.mxu1 %v21550_v47  ;;  %12963 = vmatpush1.bf16.msra.mxu0 %v18012_v43  ;;  %v18084_v43 = vld [vmem:[%s21294_s13 + $0xd60] ss:$16 sps:$4 sm:$0xff]  }
 0x14e   : > { %13004 = vmatpush1.bf16.msra.mxu1 %v18015_v45  ;;  %12964 = vmatprep.subr.bf16.mxu0 %v18020_v50  ;;  %v18087_v45 = vld [vmem:[%s21294_s13 + $0xf60] ss:$16 sps:$4 sm:$0xff]  }
 0x14f   : > { %13005 = vmatprep.subr.bf16.mxu1 %v18023_v51  ;;  %12994 = vmatprep.mubr.bf16.mxu0 %v21556_v52  ;;  %v18090_v50 = vld [vmem:[%s21294_s13 + $0xd40] ss:$16 sps:$4 sm:$0xff]  }
 0x150   : > { %13035 = vmatprep.mubr.bf16.mxu1 %v21558_v54  ;;  %v18093_v51 = vld [vmem:[%s21294_s13 + $0xf40] ss:$16 sps:$4 sm:$0xff]  }
 0x151   : > { %12965 = vmatpush1.bf16.msra.mxu0 %v18018_v55  ;;  %v18098_v55 = vld [vmem:[%s21294_s13 + $0xd24] ss:$16 sps:$4 sm:$0xff]  }
 0x152   : > { %13006 = vmatpush1.bf16.msra.mxu1 %v18021_v57  ;;  %12966 = vmatprep.subr.bf16.mxu0 %v18026_v58  ;;  %v18101_v57 = vld [vmem:[%s21294_s13 + $0xf24] ss:$16 sps:$4 sm:$0xff]   ;;  %v18096_v58 = vld [vmem:[%s21294_s13 + $0xd20] ss:$16 sps:$4 sm:$0xff]  }
 0x153   : > { %13007 = vmatprep.subr.bf16.mxu1 %v18029_v59  ;;  %v18099_v59 = vld [vmem:[%s21294_s13 + $0xf20] ss:$16 sps:$4 sm:$0xff]  }
 0x155   : > { %12967 = vmatpush1.bf16.msra.mxu0 %v18024_v60  ;;  %v18104_v60 = vld [vmem:[%s21294_s13 + $0xd04] ss:$16 sps:$4 sm:$0xff]  }
 0x156   : > { %13008 = vmatpush1.bf16.msra.mxu1 %v18027_v61  ;;  %12968 = vmatprep.subr.bf16.mxu0 %v18032_v62  ;;  %v18107_v61 = vld [vmem:[%s21294_s13 + $0xf04] ss:$16 sps:$4 sm:$0xff]   ;;  %v18102_v62 = vld [vmem:[%s21294_s13 + $0xd00] ss:$16 sps:$4 sm:$0xff]  }
 0x157   : > { %13009 = vmatprep.subr.bf16.mxu1 %v18035_v63  ;;  %v18105_v63 = vld [vmem:[%s21294_s13 + $0xf00] ss:$16 sps:$4 sm:$0xff]  }
 0x159   : > { %12969 = vmatpush1.bf16.msra.mxu0 %v18030_v0  ;;  %v312_v0 = vld [vmem:[%s21286_s9 + $0x60] sm:$0xff] }
 0x15a   : > { %13010 = vmatpush1.bf16.msra.mxu1 %v18033_v1  ;;  %12970 = vmatprep.subr.bf16.mxu0 %v18038_v2  ;;  %v314_v1 = vld [vmem:[%s21286_s9 + $0x70] sm:$0xff] }
 0x15b   : > { %13011 = vmatprep.subr.bf16.mxu1 %v18041_v3  ;;  %v18110_v2 = vld [vmem:[%s21294_s13 + $0x10e4] ss:$16 sps:$4 sm:$0xff]  }
 0x15c   : > { %v18113_v3 = vld [vmem:[%s21294_s13 + $0x12e4] ss:$16 sps:$4 sm:$0xff]  }
 0x15d   : > { %12971 = vmatpush1.bf16.msra.mxu0 %v18036_v4  ;;  %v18108_v4 = vld [vmem:[%s21294_s13 + $0x10e0] ss:$16 sps:$4 sm:$0xff]  }
 0x15e   : > { %13012 = vmatpush1.bf16.msra.mxu1 %v18039_v5  ;;  %12972 = vmatprep.subr.bf16.mxu0 %v18044_v6  ;;  %v18111_v5 = vld [vmem:[%s21294_s13 + $0x12e0] ss:$16 sps:$4 sm:$0xff]   ;;  %v21628_v6 = vpack.c.bf16 %v312_v0, %v312_v0  ;;  %v18158_v0 = vld [vmem:[%s21294_s13 + $0x11e4] ss:$16 sps:$4 sm:$0xff]  }
 0x15f   : > { %13013 = vmatprep.subr.bf16.mxu1 %v18047_v7  ;;  %v21630_v7 = vpack.c.bf16 %v314_v1, %v314_v1  ;;  %v18161_v1 = vld [vmem:[%s21294_s13 + $0x13e4] ss:$16 sps:$4 sm:$0xff]  }
 0x161   : > { %12973 = vmatpush1.bf16.msra.mxu0 %v18042_v8  ;;  %v317_v8 = vld [vmem:[%s21286_s9 + $0x88] sm:$0xff] }
 0x162   : > { %13014 = vmatpush1.bf16.msra.mxu1 %v18045_v9  ;;  %12974 = vmatprep.subr.bf16.mxu0 %v18050_v10  ;;  %v319_v9 = vld [vmem:[%s21286_s9 + $0x98] sm:$0xff]  ;;  %v18116_v10 = vld [vmem:[%s21294_s13 + $0x10c4] ss:$16 sps:$4 sm:$0xff]  }
 0x163   : > { %13015 = vmatprep.subr.bf16.mxu1 %v18053_v11  ;;  %v18119_v11 = vld [vmem:[%s21294_s13 + $0x12c4] ss:$16 sps:$4 sm:$0xff]  }
 0x165   : > { %12975 = vmatpush1.bf16.msra.mxu0 %v18048_v14  ;;  %v21636_v14 = vpack.c.bf16 %v317_v8, %v317_v8  ;;  %v18162_v8 = vld [vmem:[%s21294_s13 + $0x11c0] ss:$16 sps:$4 sm:$0xff]  }
 0x166   : > { %13016 = vmatpush1.bf16.msra.mxu1 %v18051_v15  ;;  %12976 = vmatprep.subr.bf16.mxu0 %v18056_v16  ;;  %v21638_v15 = vpack.c.bf16 %v319_v9, %v319_v9  ;;  %v18165_v9 = vld [vmem:[%s21294_s13 + $0x13c0] ss:$16 sps:$4 sm:$0xff]  }
 0x167   : > { %13017 = vmatprep.subr.bf16.mxu1 %v18059_v17 }
 0x169   : > { %12977 = vmatpush1.bf16.msra.mxu0 %v18054_v18  ;;  %v18114_v18 = vld [vmem:[%s21294_s13 + $0x10c0] ss:$16 sps:$4 sm:$0xff]  }
 0x16a   : > { %13018 = vmatpush1.bf16.msra.mxu1 %v18057_v19  ;;  %12978 = vmatprep.subr.bf16.mxu0 %v18062_v20  ;;  %v18117_v19 = vld [vmem:[%s21294_s13 + $0x12c0] ss:$16 sps:$4 sm:$0xff]  }
 0x16b   : > { %13019 = vmatprep.subr.bf16.mxu1 %v18065_v21  ;;  %v18122_v21 = vld [vmem:[%s21294_s13 + $0x10a4] ss:$16 sps:$4 sm:$0xff]  }
 0x16d   : > { %12979 = vmatpush2.bf16.msra.mxu0 %v18060_v22 }
 0x16e   : > { %13020 = vmatpush2.bf16.msra.mxu1 %v18063_v23  ;;  %12980 = vmatprep.subr.bf16.mxu0 %v18068_v26  ;;  %v18125_v26 = vld [vmem:[%s21294_s13 + $0x12a4] ss:$16 sps:$4 sm:$0xff]  }
 0x16f   : > { %13021 = vmatprep.subr.bf16.mxu1 %v18071_v27 }
 0x171   : > { %12981 = vmatpush2.bf16.msra.mxu0 %v18066_v28 }
 0x172   : > { %13022 = vmatpush2.bf16.msra.mxu1 %v18069_v29  ;;  %12982 = vmatprep.subr.bf16.mxu0 %v18074_v30  ;;  %v18120_v30 = vld [vmem:[%s21294_s13 + $0x10a0] ss:$16 sps:$4 sm:$0xff]  }
 0x173   : > { %13023 = vmatprep.subr.bf16.mxu1 %v18077_v31  ;;  %v18123_v31 = vld [vmem:[%s21294_s13 + $0x12a0] ss:$16 sps:$4 sm:$0xff]  }
 0x175   : > { %12983 = vmatpush2.bf16.msra.mxu0 %v18072_v32  ;;  %v18128_v32 = vld [vmem:[%s21294_s13 + $0x1084] ss:$16 sps:$4 sm:$0xff]  }
 0x176   : > { %13024 = vmatpush2.bf16.msra.mxu1 %v18075_v34  ;;  %12984 = vmatprep.subr.bf16.mxu0 %v18080_v35 }
 0x177   : > { %13025 = vmatprep.subr.bf16.mxu1 %v18083_v37  ;;  %v18131_v37 = vld [vmem:[%s21294_s13 + $0x1284] ss:$16 sps:$4 sm:$0xff]  }
 0x179   : > { %12985 = vmatpush2.bf16.msra.mxu0 %v18078_v38  ;;  %v18126_v38 = vld [vmem:[%s21294_s13 + $0x1080] ss:$16 sps:$4 sm:$0xff]  }
 0x17a   : > { %13026 = vmatpush2.bf16.msra.mxu1 %v18081_v39  ;;  %12986 = vmatprep.subr.bf16.mxu0 %v18086_v40  ;;  %v18129_v39 = vld [vmem:[%s21294_s13 + $0x1280] ss:$16 sps:$4 sm:$0xff]   ;;  %v18134_v40 = vld [vmem:[%s21294_s13 + $0x1064] ss:$16 sps:$4 sm:$0xff]  }
 0x17b   : > { %13027 = vmatprep.subr.bf16.mxu1 %v18089_v42  ;;  %v18137_v42 = vld [vmem:[%s21294_s13 + $0x1264] ss:$16 sps:$4 sm:$0xff]  }
 0x17d   : > { %12987 = vmatpush2.bf16.msra.mxu0 %v18084_v43  ;;  %v18132_v43 = vld [vmem:[%s21294_s13 + $0x1060] ss:$16 sps:$4 sm:$0xff]  }
 0x17e   : > { %13028 = vmatpush2.bf16.msra.mxu1 %v18087_v45  ;;  %12988 = vmatprep.subr.bf16.mxu0 %v18092_v48  ;;  %v18135_v45 = vld [vmem:[%s21294_s13 + $0x1260] ss:$16 sps:$4 sm:$0xff]   ;;  %v18140_v48 = vld [vmem:[%s21294_s13 + $0x1044] ss:$16 sps:$4 sm:$0xff]  }
 0x17f   : > { %13029 = vmatprep.subr.bf16.mxu1 %v18095_v49  ;;  %v18143_v49 = vld [vmem:[%s21294_s13 + $0x1244] ss:$16 sps:$4 sm:$0xff]  }
 0x181   : > { %12989 = vmatpush2.bf16.msra.mxu0 %v18090_v50  ;;  %v18138_v50 = vld [vmem:[%s21294_s13 + $0x1040] ss:$16 sps:$4 sm:$0xff]  }
 0x182   : > { %13030 = vmatpush2.bf16.msra.mxu1 %v18093_v51  ;;  %12990 = vmatprep.subr.bf16.mxu0 %v18098_v55  ;;  %v18141_v51 = vld [vmem:[%s21294_s13 + $0x1240] ss:$16 sps:$4 sm:$0xff]   ;;  %v18146_v55 = vld [vmem:[%s21294_s13 + $0x1024] ss:$16 sps:$4 sm:$0xff]  }
 0x183   : > { %13031 = vmatprep.subr.bf16.mxu1 %v18101_v57  ;;  %v18149_v57 = vld [vmem:[%s21294_s13 + $0x1224] ss:$16 sps:$4 sm:$0xff]  }
 0x185   : > { %12991 = vmatpush2.bf16.msra.mxu0 %v18096_v58  ;;  %v18144_v58 = vld [vmem:[%s21294_s13 + $0x1020] ss:$16 sps:$4 sm:$0xff]  }
 0x186   : > { %13032 = vmatpush2.bf16.msra.mxu1 %v18099_v59  ;;  %12992 = vmatprep.subr.bf16.mxu0 %v18104_v60  ;;  %v18147_v59 = vld [vmem:[%s21294_s13 + $0x1220] ss:$16 sps:$4 sm:$0xff]   ;;  %v18152_v60 = vld [vmem:[%s21294_s13 + $0x1004] ss:$16 sps:$4 sm:$0xff]  }
 0x187   : > { %13033 = vmatprep.subr.bf16.mxu1 %v18107_v61  ;;  %v18155_v61 = vld [vmem:[%s21294_s13 + $0x1204] ss:$16 sps:$4 sm:$0xff]  }
 0x189   : > { %12993 = vmatpush2.bf16.msra.mxu0 %v18102_v62  ;;  %v18150_v62 = vld [vmem:[%s21294_s13 + $0x1000] ss:$16 sps:$4 sm:$0xff]  }
 0x18a   : > { %13034 = vmatpush2.bf16.msra.mxu1 %v18105_v63  ;;  %13044 = vmatprep.subr.bf16.mxu0 %v18110_v2  ;;  %v18153_v63 = vld [vmem:[%s21294_s13 + $0x1200] ss:$16 sps:$4 sm:$0xff]  }
 0x18b   : > { %13085 = vmatprep.subr.bf16.mxu1 %v18113_v3  ;;  %v18156_v2 = vld [vmem:[%s21294_s13 + $0x11e0] ss:$16 sps:$4 sm:$0xff]  }
 0x18c   : > { %v12750_v16 = vpop.f32.mrf.mxu0  ;;  %12995 = vmatmul.mubr.bf16.vlgmr.msra.gmra.mxu0 %v21628_v6  ;;  %v18159_v3 = vld [vmem:[%s21294_s13 + $0x13e0] ss:$16 sps:$4 sm:$0xff]  }
 0x18d   : > { %v12791_v17 = vpop.f32.mrf.mxu1  ;;  %13036 = vmatmul.mubr.bf16.vlgmr.msra.gmra.mxu1 %v21630_v7  ;;  %13045 = vmatpush1.bf16.msra.mxu0 %v18108_v4  ;;  %v18164_v4 = vld [vmem:[%s21294_s13 + $0x11c4] ss:$16 sps:$4 sm:$0xff]  }
 0x18e   : > { %v21644_v20 = vadd.f32 %v12791_v17, %v12750_v16  ;;  %13086 = vmatpush1.bf16.msra.mxu1 %v18111_v5  ;;  %v12752_v22 = vpop.f32.mrf.mxu0  ;;  %13046 = vmatprep.subr.bf16.mxu0 %v18116_v10  ;;  %v18167_v5 = vld [vmem:[%s21294_s13 + $0x13c4] ss:$16 sps:$4 sm:$0xff]   ;;  %v18168_v16 = vld [vmem:[%s21294_s13 + $0x11a0] ss:$16 sps:$4 sm:$0xff]  }
 0x18f   : > { %v12793_v23 = vpop.f32.mrf.mxu1  ;;  %13087 = vmatprep.subr.bf16.mxu1 %v18119_v11  ;;  %13076 = vmatprep.mubr.bf16.mxu0 %v21636_v14  ;;  %v18170_v10 = vld [vmem:[%s21294_s13 + $0x11a4] ss:$16 sps:$4 sm:$0xff]   ;;  %v18171_v17 = vld [vmem:[%s21294_s13 + $0x13a0] ss:$16 sps:$4 sm:$0xff]  }
 0x190   : > { %v21648_v27 = vadd.f32 %v12793_v23, %v12752_v22  ;;  %13117 = vmatprep.mubr.bf16.mxu1 %v21638_v15  ;;  %v12754_v28 = vpop.f32.mrf.mxu0  ;;  %v18173_v11 = vld [vmem:[%s21294_s13 + $0x13a4] ss:$16 sps:$4 sm:$0xff]   ;;  %v18177_v22 = vld [vmem:[%s21294_s13 + $0x1380] ss:$16 sps:$4 sm:$0xff]  }
 0x191   : > { %v12795_v29 = vpop.f32.mrf.mxu1  ;;  %13047 = vmatpush1.bf16.msra.mxu0 %v18114_v18  ;;  %v18176_v18 = vld [vmem:[%s21294_s13 + $0x1184] ss:$16 sps:$4 sm:$0xff]   ;;  %v18180_v28 = vld [vmem:[%s21294_s13 + $0x1160] ss:$16 sps:$4 sm:$0xff]  }
 0x192   : > { %13088 = vmatpush1.bf16.msra.mxu1 %v18117_v19  ;;  %v12755_v34 = vpop.f32.mrf.mxu0  ;;  %13048 = vmatprep.subr.bf16.mxu0 %v18122_v21  ;;  %v18179_v19 = vld [vmem:[%s21294_s13 + $0x1384] ss:$16 sps:$4 sm:$0xff]   ;;  %v18174_v21 = vld [vmem:[%s21294_s13 + $0x1180] ss:$16 sps:$4 sm:$0xff]  }
 0x193   : > { %v12796_v35 = vpop.f32.mrf.mxu1  ;;  %13089 = vmatprep.subr.bf16.mxu1 %v18125_v26  ;;  %v18182_v23 = vld [vmem:[%s21294_s13 + $0x1164] ss:$16 sps:$4 sm:$0xff]   ;;  %v18183_v29 = vld [vmem:[%s21294_s13 + $0x1360] ss:$16 sps:$4 sm:$0xff]  }
 0x194   : > { %v18185_v26 = vld [vmem:[%s21294_s13 + $0x1364] ss:$16 sps:$4 sm:$0xff]   ;;  %v18189_v34 = vld [vmem:[%s21294_s13 + $0x1340] ss:$16 sps:$4 sm:$0xff]  }
 0x195   : > { %13049 = vmatpush1.bf16.msra.mxu0 %v18120_v30  ;;  %v18188_v30 = vld [vmem:[%s21294_s13 + $0x1144] ss:$16 sps:$4 sm:$0xff]  }
 0x196   : > { %13090 = vmatpush1.bf16.msra.mxu1 %v18123_v31  ;;  %13050 = vmatprep.subr.bf16.mxu0 %v18128_v32  ;;  %v18191_v31 = vld [vmem:[%s21294_s13 + $0x1344] ss:$16 sps:$4 sm:$0xff]   ;;  %v18186_v32 = vld [vmem:[%s21294_s13 + $0x1140] ss:$16 sps:$4 sm:$0xff]  }
 0x197   : > { %13091 = vmatprep.subr.bf16.mxu1 %v18131_v37  ;;  %v18194_v35 = vld [vmem:[%s21294_s13 + $0x1124] ss:$16 sps:$4 sm:$0xff]  }
 0x198   : > { %v18197_v37 = vld [vmem:[%s21294_s13 + $0x1324] ss:$16 sps:$4 sm:$0xff]  }
 0x199   : > { %13051 = vmatpush1.bf16.msra.mxu0 %v18126_v38  ;;  %v18192_v38 = vld [vmem:[%s21294_s13 + $0x1120] ss:$16 sps:$4 sm:$0xff]  }
 0x19a   : > { %13092 = vmatpush1.bf16.msra.mxu1 %v18129_v39  ;;  %13052 = vmatprep.subr.bf16.mxu0 %v18134_v40  ;;  %v18195_v39 = vld [vmem:[%s21294_s13 + $0x1320] ss:$16 sps:$4 sm:$0xff]   ;;  %v18200_v40 = vld [vmem:[%s21294_s13 + $0x1104] ss:$16 sps:$4 sm:$0xff]  }
 0x19b   : > { %13093 = vmatprep.subr.bf16.mxu1 %v18137_v42  ;;  %v18203_v42 = vld [vmem:[%s21294_s13 + $0x1304] ss:$16 sps:$4 sm:$0xff]  }
 0x19d   : > { %13053 = vmatpush1.bf16.msra.mxu0 %v18132_v43  ;;  %v18198_v43 = vld [vmem:[%s21294_s13 + $0x1100] ss:$16 sps:$4 sm:$0xff]  }
 0x19e   : > { %13094 = vmatpush1.bf16.msra.mxu1 %v18135_v45  ;;  %13054 = vmatprep.subr.bf16.mxu0 %v18140_v48  ;;  %v18201_v45 = vld [vmem:[%s21294_s13 + $0x1300] ss:$16 sps:$4 sm:$0xff]  }
 0x19f   : > { %13095 = vmatprep.subr.bf16.mxu1 %v18143_v49  ;;  %v316_v48 = vld [vmem:[%s21286_s9 + $0x80] sm:$0xff]  ;;  %v318_v49 = vld [vmem:[%s21286_s9 + $0x90] sm:$0xff] }
 0x1a1   : > { %13055 = vmatpush1.bf16.msra.mxu0 %v18138_v50  ;;  %v18206_v50 = vld [vmem:[%s21294_s13 + $0x14e4] ss:$16 sps:$4 sm:$0xff]  }
 0x1a2   : > { %13096 = vmatpush1.bf16.msra.mxu1 %v18141_v51  ;;  %13056 = vmatprep.subr.bf16.mxu0 %v18146_v55  ;;  %v18209_v51 = vld [vmem:[%s21294_s13 + $0x16e4] ss:$16 sps:$4 sm:$0xff]   ;;  %v21710_v55 = vpack.c.bf16 %v316_v48, %v316_v48  ;;  %v18240_v48 = vld [vmem:[%s21294_s13 + $0x1420] ss:$16 sps:$4 sm:$0xff]  }
 0x1a3   : > { %13097 = vmatprep.subr.bf16.mxu1 %v18149_v57  ;;  %v21712_v57 = vpack.c.bf16 %v318_v49, %v318_v49  ;;  %v18243_v49 = vld [vmem:[%s21294_s13 + $0x1620] ss:$16 sps:$4 sm:$0xff]  }
 0x1a5   : > { %13057 = vmatpush1.bf16.msra.mxu0 %v18144_v58  ;;  %v321_v58 = vld [vmem:[%s21286_s9 + $0xa8] sm:$0xff] }
 0x1a6   : > { %13098 = vmatpush1.bf16.msra.mxu1 %v18147_v59  ;;  %13058 = vmatprep.subr.bf16.mxu0 %v18152_v60  ;;  %v323_v59 = vld [vmem:[%s21286_s9 + $0xb8] sm:$0xff]  ;;  %v18204_v60 = vld [vmem:[%s21294_s13 + $0x14e0] ss:$16 sps:$4 sm:$0xff]  }
 0x1a7   : > { %13099 = vmatprep.subr.bf16.mxu1 %v18155_v61  ;;  %v18207_v61 = vld [vmem:[%s21294_s13 + $0x16e0] ss:$16 sps:$4 sm:$0xff]  }
 0x1a9   : > { %13059 = vmatpush1.bf16.msra.mxu0 %v18150_v62  ;;  %v18212_v62 = vld [vmem:[%s21294_s13 + $0x14c4] ss:$16 sps:$4 sm:$0xff]  }
 0x1aa   : > { %13100 = vmatpush1.bf16.msra.mxu1 %v18153_v63  ;;  %13060 = vmatprep.subr.bf16.mxu0 %v18158_v0  ;;  %v18215_v63 = vld [vmem:[%s21294_s13 + $0x16c4] ss:$16 sps:$4 sm:$0xff]   ;;  %v18210_v0 = vld [vmem:[%s21294_s13 + $0x14c0] ss:$16 sps:$4 sm:$0xff]  }
 0x1ab   : > { %13101 = vmatprep.subr.bf16.mxu1 %v18161_v1  ;;  %v18213_v1 = vld [vmem:[%s21294_s13 + $0x16c0] ss:$16 sps:$4 sm:$0xff]  }
 0x1ad   : > { %13061 = vmatpush2.bf16.msra.mxu0 %v18156_v2  ;;  %v21722_v2 = vpack.c.bf16 %v321_v58, %v321_v58  ;;  %v18246_v58 = vld [vmem:[%s21294_s13 + $0x1400] ss:$16 sps:$4 sm:$0xff]  }
 0x1ae   : > { %13102 = vmatpush2.bf16.msra.mxu1 %v18159_v3  ;;  %13062 = vmatprep.subr.bf16.mxu0 %v18164_v4  ;;  %v21724_v3 = vpack.c.bf16 %v323_v59, %v323_v59  ;;  %v18249_v59 = vld [vmem:[%s21294_s13 + $0x1600] ss:$16 sps:$4 sm:$0xff]  }
 0x1af   : > { %13103 = vmatprep.subr.bf16.mxu1 %v18167_v5 }
 0x1b1   : > { %13063 = vmatpush2.bf16.msra.mxu0 %v18162_v8 }
 0x1b2   : > { %13104 = vmatpush2.bf16.msra.mxu1 %v18165_v9  ;;  %13064 = vmatprep.subr.bf16.mxu0 %v18170_v10 }
 0x1b3   : > { %13105 = vmatprep.subr.bf16.mxu1 %v18173_v11  ;;  %v18218_v11 = vld [vmem:[%s21294_s13 + $0x14a4] ss:$16 sps:$4 sm:$0xff]  }
 0x1b5   : > { %13065 = vmatpush2.bf16.msra.mxu0 %v18168_v16  ;;  %v18221_v16 = vld [vmem:[%s21294_s13 + $0x16a4] ss:$16 sps:$4 sm:$0xff]  }
 0x1b6   : > { %13106 = vmatpush2.bf16.msra.mxu1 %v18171_v17  ;;  %13066 = vmatprep.subr.bf16.mxu0 %v18176_v18 }
 0x1b7   : > { %13107 = vmatprep.subr.bf16.mxu1 %v18179_v19  ;;  %v18216_v19 = vld [vmem:[%s21294_s13 + $0x14a0] ss:$16 sps:$4 sm:$0xff]  }
 0x1b9   : > { %13067 = vmatpush2.bf16.msra.mxu0 %v18174_v21  ;;  %v18219_v21 = vld [vmem:[%s21294_s13 + $0x16a0] ss:$16 sps:$4 sm:$0xff]  }
 0x1ba   : > { %13108 = vmatpush2.bf16.msra.mxu1 %v18177_v22  ;;  %13068 = vmatprep.subr.bf16.mxu0 %v18182_v23 }
 0x1bb   : > { %13109 = vmatprep.subr.bf16.mxu1 %v18185_v26 }
 0x1bd   : > { %13069 = vmatpush2.bf16.msra.mxu0 %v18180_v28 }
 0x1be   : > { %13110 = vmatpush2.bf16.msra.mxu1 %v18183_v29  ;;  %13070 = vmatprep.subr.bf16.mxu0 %v18188_v30  ;;  %v18227_v29 = vld [vmem:[%s21294_s13 + $0x1684] ss:$16 sps:$4 sm:$0xff]   ;;  %v18222_v30 = vld [vmem:[%s21294_s13 + $0x1480] ss:$16 sps:$4 sm:$0xff]  }
 0x1bf   : > { %13111 = vmatprep.subr.bf16.mxu1 %v18191_v31  ;;  %v18225_v31 = vld [vmem:[%s21294_s13 + $0x1680] ss:$16 sps:$4 sm:$0xff]  }
 0x1c1   : > { %13071 = vmatpush2.bf16.msra.mxu0 %v18186_v32  ;;  %v18230_v32 = vld [vmem:[%s21294_s13 + $0x1464] ss:$16 sps:$4 sm:$0xff]  }
 0x1c2   : > { %13112 = vmatpush2.bf16.msra.mxu1 %v18189_v34  ;;  %13072 = vmatprep.subr.bf16.mxu0 %v18194_v35  ;;  %v18233_v34 = vld [vmem:[%s21294_s13 + $0x1664] ss:$16 sps:$4 sm:$0xff]   ;;  %v18228_v35 = vld [vmem:[%s21294_s13 + $0x1460] ss:$16 sps:$4 sm:$0xff]  }
 0x1c3   : > { %13113 = vmatprep.subr.bf16.mxu1 %v18197_v37  ;;  %v18231_v37 = vld [vmem:[%s21294_s13 + $0x1660] ss:$16 sps:$4 sm:$0xff]  }
 0x1c5   : > { %13073 = vmatpush2.bf16.msra.mxu0 %v18192_v38  ;;  %v18236_v38 = vld [vmem:[%s21294_s13 + $0x1444] ss:$16 sps:$4 sm:$0xff]  }
 0x1c6   : > { %13114 = vmatpush2.bf16.msra.mxu1 %v18195_v39  ;;  %13074 = vmatprep.subr.bf16.mxu0 %v18200_v40  ;;  %v18239_v39 = vld [vmem:[%s21294_s13 + $0x1644] ss:$16 sps:$4 sm:$0xff]   ;;  %v18234_v40 = vld [vmem:[%s21294_s13 + $0x1440] ss:$16 sps:$4 sm:$0xff]  }
 0x1c7   : > { %13115 = vmatprep.subr.bf16.mxu1 %v18203_v42  ;;  %v18237_v42 = vld [vmem:[%s21294_s13 + $0x1640] ss:$16 sps:$4 sm:$0xff]  }
 0x1c9   : > { %13075 = vmatpush2.bf16.msra.mxu0 %v18198_v43  ;;  %v18242_v43 = vld [vmem:[%s21294_s13 + $0x1424] ss:$16 sps:$4 sm:$0xff]  }
 0x1ca   : > { %13116 = vmatpush2.bf16.msra.mxu1 %v18201_v45  ;;  %13126 = vmatprep.subr.bf16.mxu0 %v18206_v50  ;;  %v18245_v45 = vld [vmem:[%s21294_s13 + $0x1624] ss:$16 sps:$4 sm:$0xff]  }
 0x1cb   : > { %13167 = vmatprep.subr.bf16.mxu1 %v18209_v51  ;;  %v18248_v50 = vld [vmem:[%s21294_s13 + $0x1404] ss:$16 sps:$4 sm:$0xff]  }
 0x1cc   : > { %v12832_v4 = vpop.f32.mrf.mxu0  ;;  %13077 = vmatmul.mubr.bf16.vlgmr.msra.gmra.mxu0 %v21710_v55  ;;  %v18251_v51 = vld [vmem:[%s21294_s13 + $0x1604] ss:$16 sps:$4 sm:$0xff]  }
 0x1cd   : > { %v12873_v5 = vpop.f32.mrf.mxu1  ;;  %13118 = vmatmul.mubr.bf16.vlgmr.msra.gmra.mxu1 %v21712_v57  ;;  %v12833_v8 = vadd.f32 %v12832_v4, %v21644_v20  ;;  %13127 = vmatpush1.bf16.msra.mxu0 %v18204_v60  ;;  %v18254_v60 = vld [vmem:[%s21294_s13 + $0x15e4] ss:$16 sps:$4 sm:$0xff]   ;;  %v18258_v4 = vld [vmem:[%s21294_s13 + $0x15c0] ss:$16 sps:$4 sm:$0xff]  }
 0x1ce   : > { %13168 = vmatpush1.bf16.msra.mxu1 %v18207_v61  ;;  %v12834_v9 = vpop.f32.mrf.mxu0  ;;  %13128 = vmatprep.subr.bf16.mxu0 %v18212_v62  ;;  %v18257_v61 = vld [vmem:[%s21294_s13 + $0x17e4] ss:$16 sps:$4 sm:$0xff]   ;;  %v18252_v62 = vld [vmem:[%s21294_s13 + $0x15e0] ss:$16 sps:$4 sm:$0xff]  }
 0x1cf   : > { %v12875_v10 = vpop.f32.mrf.mxu1  ;;  %13169 = vmatprep.subr.bf16.mxu1 %v18215_v63  ;;  %v21731_v17 = vadd.f32 %v12873_v5, %v12833_v8  ;;  %v12835_v18 = vadd.f32 %v12834_v9, %v21648_v27  ;;  %13158 = vmatprep.mubr.bf16.mxu0 %v21722_v2  ;;  %v18224_v27 = vld [vmem:[%s21294_s13 + $0x1484] ss:$16 sps:$4 sm:$0xff]   ;;  %v18255_v63 = vld [vmem:[%s21294_s13 + $0x17e0] ss:$16 sps:$4 sm:$0xff]  }
 0x1d0   : > { %13199 = vmatprep.mubr.bf16.mxu1 %v21724_v3  ;;  %v12836_v20 = vpop.f32.mrf.mxu0  ;;  %v18261_v5 = vld [vmem:[%s21294_s13 + $0x17c0] ss:$16 sps:$4 sm:$0xff]   ;;  %v18266_v8 = vld [vmem:[%s21294_s13 + $0x15a4] ss:$16 sps:$4 sm:$0xff]  }
 0x1d1   : > { %v12877_v22 = vpop.f32.mrf.mxu1  ;;  %v21738_v23 = vadd.f32 %v12875_v10, %v12835_v18  ;;  %13129 = vmatpush1.bf16.msra.mxu0 %v18210_v0  ;;  %v18260_v0 = vld [vmem:[%s21294_s13 + $0x15c4] ss:$16 sps:$4 sm:$0xff]   ;;  %v18264_v10 = vld [vmem:[%s21294_s13 + $0x15a0] ss:$16 sps:$4 sm:$0xff]  }
 0x1d2   : > { %13170 = vmatpush1.bf16.msra.mxu1 %v18213_v1  ;;  %v12837_v26 = vpop.f32.mrf.mxu0  ;;  %13130 = vmatprep.subr.bf16.mxu0 %v18218_v11  ;;  %v18263_v1 = vld [vmem:[%s21294_s13 + $0x17c4] ss:$16 sps:$4 sm:$0xff]   ;;  %v18267_v11 = vld [vmem:[%s21294_s13 + $0x17a0] ss:$16 sps:$4 sm:$0xff]  }
 0x1d3   : > { %v12878_v28 = vpop.f32.mrf.mxu1  ;;  %13171 = vmatprep.subr.bf16.mxu1 %v18221_v16  ;;  %v18269_v9 = vld [vmem:[%s21294_s13 + $0x17a4] ss:$16 sps:$4 sm:$0xff]   ;;  %v18276_v26 = vld [vmem:[%s21294_s13 + $0x1560] ss:$16 sps:$4 sm:$0xff]  }
 0x1d4   : > { %v18272_v16 = vld [vmem:[%s21294_s13 + $0x1584] ss:$16 sps:$4 sm:$0xff]   ;;  %v18279_v28 = vld [vmem:[%s21294_s13 + $0x1760] ss:$16 sps:$4 sm:$0xff]  }
 0x1d5   : > { %13131 = vmatpush1.bf16.msra.mxu0 %v18216_v19  ;;  %v18275_v18 = vld [vmem:[%s21294_s13 + $0x1784] ss:$16 sps:$4 sm:$0xff]   ;;  %v18270_v19 = vld [vmem:[%s21294_s13 + $0x1580] ss:$16 sps:$4 sm:$0xff]  }
 0x1d6   : > { %13172 = vmatpush1.bf16.msra.mxu1 %v18219_v21  ;;  %13132 = vmatprep.subr.bf16.mxu0 %v18224_v27  ;;  %v18273_v21 = vld [vmem:[%s21294_s13 + $0x1780] ss:$16 sps:$4 sm:$0xff]   ;;  %v18278_v20 = vld [vmem:[%s21294_s13 + $0x1564] ss:$16 sps:$4 sm:$0xff]  }
 0x1d7   : > { %13173 = vmatprep.subr.bf16.mxu1 %v18227_v29  ;;  %v18281_v22 = vld [vmem:[%s21294_s13 + $0x1764] ss:$16 sps:$4 sm:$0xff]  }
 0x1d8   : > { %v18284_v27 = vld [vmem:[%s21294_s13 + $0x1544] ss:$16 sps:$4 sm:$0xff]  }
 0x1d9   : > { %13133 = vmatpush1.bf16.msra.mxu0 %v18222_v30  ;;  %v18287_v29 = vld [vmem:[%s21294_s13 + $0x1744] ss:$16 sps:$4 sm:$0xff]   ;;  %v18282_v30 = vld [vmem:[%s21294_s13 + $0x1540] ss:$16 sps:$4 sm:$0xff]  }
 0x1da   : > { %13174 = vmatpush1.bf16.msra.mxu1 %v18225_v31  ;;  %13134 = vmatprep.subr.bf16.mxu0 %v18230_v32  ;;  %v18285_v31 = vld [vmem:[%s21294_s13 + $0x1740] ss:$16 sps:$4 sm:$0xff]   ;;  %v18290_v32 = vld [vmem:[%s21294_s13 + $0x1524] ss:$16 sps:$4 sm:$0xff]  }
 0x1db   : > { %13175 = vmatprep.subr.bf16.mxu1 %v18233_v34  ;;  %v18293_v34 = vld [vmem:[%s21294_s13 + $0x1724] ss:$16 sps:$4 sm:$0xff]  }
 0x1dd   : > { %13135 = vmatpush1.bf16.msra.mxu0 %v18228_v35  ;;  %v18288_v35 = vld [vmem:[%s21294_s13 + $0x1520] ss:$16 sps:$4 sm:$0xff]  }
 0x1de   : > { %13176 = vmatpush1.bf16.msra.mxu1 %v18231_v37  ;;  %13136 = vmatprep.subr.bf16.mxu0 %v18236_v38  ;;  %v18291_v37 = vld [vmem:[%s21294_s13 + $0x1720] ss:$16 sps:$4 sm:$0xff]   ;;  %v18296_v38 = vld [vmem:[%s21294_s13 + $0x1504] ss:$16 sps:$4 sm:$0xff]  }
 0x1df   : > { %13177 = vmatprep.subr.bf16.mxu1 %v18239_v39  ;;  %v18299_v39 = vld [vmem:[%s21294_s13 + $0x1704] ss:$16 sps:$4 sm:$0xff]  }
 0x1e1   : > { %13137 = vmatpush1.bf16.msra.mxu0 %v18234_v40  ;;  %v18294_v40 = vld [vmem:[%s21294_s13 + $0x1500] ss:$16 sps:$4 sm:$0xff]  }
 0x1e2   : > { %13178 = vmatpush1.bf16.msra.mxu1 %v18237_v42  ;;  %13138 = vmatprep.subr.bf16.mxu0 %v18242_v43  ;;  %v18297_v42 = vld [vmem:[%s21294_s13 + $0x1700] ss:$16 sps:$4 sm:$0xff]  }
 0x1e3   : > { %13179 = vmatprep.subr.bf16.mxu1 %v18245_v45  ;;  %v320_v43 = vld [vmem:[%s21286_s9 + $0xa0] sm:$0xff]  ;;  %v322_v45 = vld [vmem:[%s21286_s9 + $0xb0] sm:$0xff] }
 0x1e5   : > { %13139 = vmatpush1.bf16.msra.mxu0 %v18240_v48  ;;  %v18302_v48 = vld [vmem:[%s21294_s13 + $0x18e4] ss:$16 sps:$4 sm:$0xff]  }
 0x1e6   : > { %13180 = vmatpush1.bf16.msra.mxu1 %v18243_v49  ;;  %13140 = vmatprep.subr.bf16.mxu0 %v18248_v50  ;;  %v18305_v49 = vld [vmem:[%s21294_s13 + $0x1ae4] ss:$16 sps:$4 sm:$0xff]   ;;  %v21796_v50 = vpack.c.bf16 %v320_v43, %v320_v43  ;;  %v18330_v43 = vld [vmem:[%s21294_s13 + $0x1840] ss:$16 sps:$4 sm:$0xff]  }
 0x1e7   : > { %13181 = vmatprep.subr.bf16.mxu1 %v18251_v51  ;;  %v21798_v51 = vpack.c.bf16 %v322_v45, %v322_v45  ;;  %v18333_v45 = vld [vmem:[%s21294_s13 + $0x1a40] ss:$16 sps:$4 sm:$0xff]  }
 0x1e9   : > { %13141 = vmatpush1.bf16.msra.mxu0 %v18246_v58  ;;  %v325_v58 = vld [vmem:[%s21286_s9 + $0xc8] sm:$0xff] }
 0x1ea   : > { %13182 = vmatpush1.bf16.msra.mxu1 %v18249_v59  ;;  %13142 = vmatprep.subr.bf16.mxu0 %v18254_v60  ;;  %v327_v59 = vld [vmem:[%s21286_s9 + $0xd8] sm:$0xff]  ;;  %v18300_v60 = vld [vmem:[%s21294_s13 + $0x18e0] ss:$16 sps:$4 sm:$0xff]  }
 0x1eb   : > { %13183 = vmatprep.subr.bf16.mxu1 %v18257_v61  ;;  %v18303_v61 = vld [vmem:[%s21294_s13 + $0x1ae0] ss:$16 sps:$4 sm:$0xff]  }
 0x1ed   : > { %13143 = vmatpush2.bf16.msra.mxu0 %v18252_v62  ;;  %v18308_v62 = vld [vmem:[%s21294_s13 + $0x18c4] ss:$16 sps:$4 sm:$0xff]  }
 0x1ee   : > { %13184 = vmatpush2.bf16.msra.mxu1 %v18255_v63  ;;  %13144 = vmatprep.subr.bf16.mxu0 %v18260_v0  ;;  %v18311_v63 = vld [vmem:[%s21294_s13 + $0x1ac4] ss:$16 sps:$4 sm:$0xff]   ;;  %v18306_v0 = vld [vmem:[%s21294_s13 + $0x18c0] ss:$16 sps:$4 sm:$0xff]  }
 0x1ef   : > { %13185 = vmatprep.subr.bf16.mxu1 %v18263_v1  ;;  %v18309_v1 = vld [vmem:[%s21294_s13 + $0x1ac0] ss:$16 sps:$4 sm:$0xff]  }
 0x1f1   : > { %13145 = vmatpush2.bf16.msra.mxu0 %v18258_v4  ;;  %v21808_v4 = vpack.c.bf16 %v325_v58, %v325_v58  ;;  %v18336_v58 = vld [vmem:[%s21294_s13 + $0x1820] ss:$16 sps:$4 sm:$0xff]  }
 0x1f2   : > { %13186 = vmatpush2.bf16.msra.mxu1 %v18261_v5  ;;  %13146 = vmatprep.subr.bf16.mxu0 %v18266_v8  ;;  %v21810_v5 = vpack.c.bf16 %v327_v59, %v327_v59  ;;  %v18339_v59 = vld [vmem:[%s21294_s13 + $0x1a20] ss:$16 sps:$4 sm:$0xff]  }
 0x1f3   : > { %13187 = vmatprep.subr.bf16.mxu1 %v18269_v9 }
 0x1f5   : > { %13147 = vmatpush2.bf16.msra.mxu0 %v18264_v10 }
 0x1f6   : > { %13188 = vmatpush2.bf16.msra.mxu1 %v18267_v11  ;;  %13148 = vmatprep.subr.bf16.mxu0 %v18272_v16 }
 0x1f7   : > { %13189 = vmatprep.subr.bf16.mxu1 %v18275_v18  ;;  %v18314_v18 = vld [vmem:[%s21294_s13 + $0x18a4] ss:$16 sps:$4 sm:$0xff]  }
 0x1f9   : > { %13149 = vmatpush2.bf16.msra.mxu0 %v18270_v19  ;;  %v18317_v19 = vld [vmem:[%s21294_s13 + $0x1aa4] ss:$16 sps:$4 sm:$0xff]  }
 0x1fa   : > { %13190 = vmatpush2.bf16.msra.mxu1 %v18273_v21  ;;  %13150 = vmatprep.subr.bf16.mxu0 %v18278_v20 }
 0x1fb   : > { %13191 = vmatprep.subr.bf16.mxu1 %v18281_v22  ;;  %v18312_v22 = vld [vmem:[%s21294_s13 + $0x18a0] ss:$16 sps:$4 sm:$0xff]  }
 0x1fd   : > { %13151 = vmatpush2.bf16.msra.mxu0 %v18276_v26  ;;  %v18315_v26 = vld [vmem:[%s21294_s13 + $0x1aa0] ss:$16 sps:$4 sm:$0xff]  }
 0x1fe   : > { %13192 = vmatpush2.bf16.msra.mxu1 %v18279_v28  ;;  %13152 = vmatprep.subr.bf16.mxu0 %v18284_v27 }
 0x1ff   : > { %13193 = vmatprep.subr.bf16.mxu1 %v18287_v29 }
 0x201   : > { %13153 = vmatpush2.bf16.msra.mxu0 %v18282_v30 }
 0x202   : > { %13194 = vmatpush2.bf16.msra.mxu1 %v18285_v31  ;;  %13154 = vmatprep.subr.bf16.mxu0 %v18290_v32  ;;  %v18323_v31 = vld [vmem:[%s21294_s13 + $0x1a84] ss:$16 sps:$4 sm:$0xff]   ;;  %v18318_v32 = vld [vmem:[%s21294_s13 + $0x1880] ss:$16 sps:$4 sm:$0xff]  }
 0x203   : > { %13195 = vmatprep.subr.bf16.mxu1 %v18293_v34  ;;  %v18321_v34 = vld [vmem:[%s21294_s13 + $0x1a80] ss:$16 sps:$4 sm:$0xff]  }
 0x205   : > { %13155 = vmatpush2.bf16.msra.mxu0 %v18288_v35  ;;  %v18326_v35 = vld [vmem:[%s21294_s13 + $0x1864] ss:$16 sps:$4 sm:$0xff]  }
 0x206   : > { %13196 = vmatpush2.bf16.msra.mxu1 %v18291_v37  ;;  %13156 = vmatprep.subr.bf16.mxu0 %v18296_v38  ;;  %v18329_v37 = vld [vmem:[%s21294_s13 + $0x1a64] ss:$16 sps:$4 sm:$0xff]   ;;  %v18324_v38 = vld [vmem:[%s21294_s13 + $0x1860] ss:$16 sps:$4 sm:$0xff]  }
 0x207   : > { %13197 = vmatprep.subr.bf16.mxu1 %v18299_v39  ;;  %v18327_v39 = vld [vmem:[%s21294_s13 + $0x1a60] ss:$16 sps:$4 sm:$0xff]  }
 0x209   : > { %13157 = vmatpush2.bf16.msra.mxu0 %v18294_v40  ;;  %v18332_v40 = vld [vmem:[%s21294_s13 + $0x1844] ss:$16 sps:$4 sm:$0xff]  }
 0x20a   : > { %13198 = vmatpush2.bf16.msra.mxu1 %v18297_v42  ;;  %13208 = vmatprep.subr.bf16.mxu0 %v18302_v48  ;;  %v18335_v42 = vld [vmem:[%s21294_s13 + $0x1a44] ss:$16 sps:$4 sm:$0xff]  }
 0x20b   : > { %13249 = vmatprep.subr.bf16.mxu1 %v18305_v49  ;;  %v18338_v48 = vld [vmem:[%s21294_s13 + $0x1824] ss:$16 sps:$4 sm:$0xff]  }
 0x20c   : > { %v12914_v8 = vpop.f32.mrf.mxu0  ;;  %13159 = vmatmul.mubr.bf16.vlgmr.msra.gmra.mxu0 %v21796_v50  ;;  %v18341_v49 = vld [vmem:[%s21294_s13 + $0x1a24] ss:$16 sps:$4 sm:$0xff]  }
 0x20d   : > { %v12955_v9 = vpop.f32.mrf.mxu1  ;;  %13200 = vmatmul.mubr.bf16.vlgmr.msra.gmra.mxu1 %v21798_v51  ;;  %v12915_v10 = vadd.f32 %v12914_v8, %v21731_v17  ;;  %13209 = vmatpush1.bf16.msra.mxu0 %v18300_v60  ;;  %v18344_v60 = vld [vmem:[%s21294_s13 + $0x1804] ss:$16 sps:$4 sm:$0xff]   ;;  %v18348_v8 = vld [vmem:[%s21294_s13 + $0x19e0] ss:$16 sps:$4 sm:$0xff]  }
 0x20e   : > { %13250 = vmatpush1.bf16.msra.mxu1 %v18303_v61  ;;  %v12916_v11 = vpop.f32.mrf.mxu0  ;;  %13210 = vmatprep.subr.bf16.mxu0 %v18308_v62  ;;  %v18347_v61 = vld [vmem:[%s21294_s13 + $0x1a04] ss:$16 sps:$4 sm:$0xff]   ;;  %v18342_v62 = vld [vmem:[%s21294_s13 + $0x1800] ss:$16 sps:$4 sm:$0xff]  }
 0x20f   : > { %v12957_v16 = vpop.f32.mrf.mxu1  ;;  %13251 = vmatprep.subr.bf16.mxu1 %v18311_v63  ;;  %v21817_v21 = vadd.f32 %v12955_v9, %v12915_v10  ;;  %v12917_v20 = vadd.f32 %v12916_v11, %v21738_v23  ;;  %13240 = vmatprep.mubr.bf16.mxu0 %v21808_v4  ;;  %v18320_v23 = vld [vmem:[%s21294_s13 + $0x1884] ss:$16 sps:$4 sm:$0xff]   ;;  %v18345_v63 = vld [vmem:[%s21294_s13 + $0x1a00] ss:$16 sps:$4 sm:$0xff]  }
 0x210   : > { %13281 = vmatprep.mubr.bf16.mxu1 %v21810_v5  ;;  %v12918_v17 = vpop.f32.mrf.mxu0  ;;  %v18351_v9 = vld [vmem:[%s21294_s13 + $0x1be0] ss:$16 sps:$4 sm:$0xff]   ;;  %v18356_v10 = vld [vmem:[%s21294_s13 + $0x19c4] ss:$16 sps:$4 sm:$0xff]  }
 0x211   : > { %v12959_v28 = vpop.f32.mrf.mxu1  ;;  %v21824_v27 = vadd.f32 %v12957_v16, %v12917_v20  ;;  %13211 = vmatpush1.bf16.msra.mxu0 %v18306_v0  ;;  %v18350_v0 = vld [vmem:[%s21294_s13 + $0x19e4] ss:$16 sps:$4 sm:$0xff]   ;;  %v18354_v16 = vld [vmem:[%s21294_s13 + $0x19c0] ss:$16 sps:$4 sm:$0xff]  }
 0x212   : > { %13252 = vmatpush1.bf16.msra.mxu1 %v18309_v1  ;;  %v12919_v29 = vpop.f32.mrf.mxu0  ;;  %13212 = vmatprep.subr.bf16.mxu0 %v18314_v18  ;;  %v18353_v1 = vld [vmem:[%s21294_s13 + $0x1be4] ss:$16 sps:$4 sm:$0xff]   ;;  %v18357_v18 = vld [vmem:[%s21294_s13 + $0x1bc0] ss:$16 sps:$4 sm:$0xff]  }
 0x213   : > { %v12960_v30 = vpop.f32.mrf.mxu1  ;;  %13253 = vmatprep.subr.bf16.mxu1 %v18317_v19  ;;  %v18359_v11 = vld [vmem:[%s21294_s13 + $0x1bc4] ss:$16 sps:$4 sm:$0xff]   ;;  %v18366_v29 = vld [vmem:[%s21294_s13 + $0x1980] ss:$16 sps:$4 sm:$0xff]  }
 0x214   : > { %v18362_v19 = vld [vmem:[%s21294_s13 + $0x19a4] ss:$16 sps:$4 sm:$0xff]   ;;  %v18369_v30 = vld [vmem:[%s21294_s13 + $0x1b80] ss:$16 sps:$4 sm:$0xff]  }
 0x215   : > { %13213 = vmatpush1.bf16.msra.mxu0 %v18312_v22  ;;  %v18365_v20 = vld [vmem:[%s21294_s13 + $0x1ba4] ss:$16 sps:$4 sm:$0xff]   ;;  %v18360_v22 = vld [vmem:[%s21294_s13 + $0x19a0] ss:$16 sps:$4 sm:$0xff]  }
 0x216   : > { %13254 = vmatpush1.bf16.msra.mxu1 %v18315_v26  ;;  %13214 = vmatprep.subr.bf16.mxu0 %v18320_v23  ;;  %v18363_v26 = vld [vmem:[%s21294_s13 + $0x1ba0] ss:$16 sps:$4 sm:$0xff]   ;;  %v18368_v17 = vld [vmem:[%s21294_s13 + $0x1984] ss:$16 sps:$4 sm:$0xff]  }
 0x217   : > { %13255 = vmatprep.subr.bf16.mxu1 %v18323_v31  ;;  %v18371_v28 = vld [vmem:[%s21294_s13 + $0x1b84] ss:$16 sps:$4 sm:$0xff]  }
 0x218   : > { %v18374_v23 = vld [vmem:[%s21294_s13 + $0x1964] ss:$16 sps:$4 sm:$0xff]  }
 0x219   : > { %13215 = vmatpush1.bf16.msra.mxu0 %v18318_v32  ;;  %v18377_v31 = vld [vmem:[%s21294_s13 + $0x1b64] ss:$16 sps:$4 sm:$0xff]   ;;  %v18372_v32 = vld [vmem:[%s21294_s13 + $0x1960] ss:$16 sps:$4 sm:$0xff]  }
 0x21a   : > { %13256 = vmatpush1.bf16.msra.mxu1 %v18321_v34  ;;  %13216 = vmatprep.subr.bf16.mxu0 %v18326_v35  ;;  %v18375_v34 = vld [vmem:[%s21294_s13 + $0x1b60] ss:$16 sps:$4 sm:$0xff]   ;;  %v18380_v35 = vld [vmem:[%s21294_s13 + $0x1944] ss:$16 sps:$4 sm:$0xff]  }
 0x21b   : > { %13257 = vmatprep.subr.bf16.mxu1 %v18329_v37  ;;  %v18383_v37 = vld [vmem:[%s21294_s13 + $0x1b44] ss:$16 sps:$4 sm:$0xff]  }
 0x21d   : > { %13217 = vmatpush1.bf16.msra.mxu0 %v18324_v38  ;;  %v18378_v38 = vld [vmem:[%s21294_s13 + $0x1940] ss:$16 sps:$4 sm:$0xff]  }
 0x21e   : > { %13258 = vmatpush1.bf16.msra.mxu1 %v18327_v39  ;;  %13218 = vmatprep.subr.bf16.mxu0 %v18332_v40  ;;  %v18381_v39 = vld [vmem:[%s21294_s13 + $0x1b40] ss:$16 sps:$4 sm:$0xff]   ;;  %v18386_v40 = vld [vmem:[%s21294_s13 + $0x1924] ss:$16 sps:$4 sm:$0xff]  }
 0x21f   : > { %13259 = vmatprep.subr.bf16.mxu1 %v18335_v42  ;;  %v18389_v42 = vld [vmem:[%s21294_s13 + $0x1b24] ss:$16 sps:$4 sm:$0xff]  }
 0x221   : > { %13219 = vmatpush1.bf16.msra.mxu0 %v18330_v43  ;;  %v18384_v43 = vld [vmem:[%s21294_s13 + $0x1920] ss:$16 sps:$4 sm:$0xff]  }
 0x222   : > { %13260 = vmatpush1.bf16.msra.mxu1 %v18333_v45  ;;  %13220 = vmatprep.subr.bf16.mxu0 %v18338_v48  ;;  %v18387_v45 = vld [vmem:[%s21294_s13 + $0x1b20] ss:$16 sps:$4 sm:$0xff]   ;;  %v18392_v48 = vld [vmem:[%s21294_s13 + $0x1904] ss:$16 sps:$4 sm:$0xff]  }
 0x223   : > { %13261 = vmatprep.subr.bf16.mxu1 %v18341_v49  ;;  %v18395_v49 = vld [vmem:[%s21294_s13 + $0x1b04] ss:$16 sps:$4 sm:$0xff]  }
 0x225   : > { %13221 = vmatpush1.bf16.msra.mxu0 %v18336_v58  ;;  %v18390_v58 = vld [vmem:[%s21294_s13 + $0x1900] ss:$16 sps:$4 sm:$0xff]  }
 0x226   : > { %13262 = vmatpush1.bf16.msra.mxu1 %v18339_v59  ;;  %13222 = vmatprep.subr.bf16.mxu0 %v18344_v60  ;;  %v18393_v59 = vld [vmem:[%s21294_s13 + $0x1b00] ss:$16 sps:$4 sm:$0xff]  }
 0x227   : > { %13263 = vmatprep.subr.bf16.mxu1 %v18347_v61  ;;  %v324_v60 = vld [vmem:[%s21286_s9 + $0xc0] sm:$0xff]  ;;  %v326_v61 = vld [vmem:[%s21286_s9 + $0xd0] sm:$0xff] }
 0x229   : > { %13223 = vmatpush1.bf16.msra.mxu0 %v18342_v62  ;;  %v18398_v62 = vld [vmem:[%s21294_s13 + $0x1ce4] ss:$16 sps:$4 sm:$0xff]  }
 0x22a   : > { %13264 = vmatpush1.bf16.msra.mxu1 %v18345_v63  ;;  %13224 = vmatprep.subr.bf16.mxu0 %v18350_v0  ;;  %v18401_v63 = vld [vmem:[%s21294_s13 + $0x1ee4] ss:$16 sps:$4 sm:$0xff]   ;;  %v21882_v0 = vpack.c.bf16 %v324_v60, %v324_v60  ;;  %v18420_v60 = vld [vmem:[%s21294_s13 + $0x1c60] ss:$16 sps:$4 sm:$0xff]  }
 0x22b   : > { %13265 = vmatprep.subr.bf16.mxu1 %v18353_v1  ;;  %v21884_v1 = vpack.c.bf16 %v326_v61, %v326_v61  ;;  %v18423_v61 = vld [vmem:[%s21294_s13 + $0x1e60] ss:$16 sps:$4 sm:$0xff]  }
 0x22d   : > { %13225 = vmatpush2.bf16.msra.mxu0 %v18348_v8  ;;  %v329_v8 = vld [vmem:[%s21286_s9 + $0xe8] sm:$0xff] }
 0x22e   : > { %13266 = vmatpush2.bf16.msra.mxu1 %v18351_v9  ;;  %13226 = vmatprep.subr.bf16.mxu0 %v18356_v10  ;;  %v331_v9 = vld [vmem:[%s21286_s9 + $0xf8] sm:$0xff]  ;;  %v18396_v10 = vld [vmem:[%s21294_s13 + $0x1ce0] ss:$16 sps:$4 sm:$0xff]  }
 0x22f   : > { %13267 = vmatprep.subr.bf16.mxu1 %v18359_v11  ;;  %v18399_v11 = vld [vmem:[%s21294_s13 + $0x1ee0] ss:$16 sps:$4 sm:$0xff]  }
 0x231   : > { %13227 = vmatpush2.bf16.msra.mxu0 %v18354_v16  ;;  %v18404_v16 = vld [vmem:[%s21294_s13 + $0x1cc4] ss:$16 sps:$4 sm:$0xff]  }
 0x232   : > { %13268 = vmatpush2.bf16.msra.mxu1 %v18357_v18  ;;  %13228 = vmatprep.subr.bf16.mxu0 %v18362_v19  ;;  %v18407_v18 = vld [vmem:[%s21294_s13 + $0x1ec4] ss:$16 sps:$4 sm:$0xff]   ;;  %v18402_v19 = vld [vmem:[%s21294_s13 + $0x1cc0] ss:$16 sps:$4 sm:$0xff]  }
 0x233   : > { %13269 = vmatprep.subr.bf16.mxu1 %v18365_v20  ;;  %v18405_v20 = vld [vmem:[%s21294_s13 + $0x1ec0] ss:$16 sps:$4 sm:$0xff]  }
 0x235   : > { %13229 = vmatpush2.bf16.msra.mxu0 %v18360_v22  ;;  %v21894_v22 = vpack.c.bf16 %v329_v8, %v329_v8  ;;  %v18426_v8 = vld [vmem:[%s21294_s13 + $0x1c40] ss:$16 sps:$4 sm:$0xff]  }
 0x236   : > { %13270 = vmatpush2.bf16.msra.mxu1 %v18363_v26  ;;  %13230 = vmatprep.subr.bf16.mxu0 %v18368_v17  ;;  %v21896_v26 = vpack.c.bf16 %v331_v9, %v331_v9  ;;  %v18429_v9 = vld [vmem:[%s21294_s13 + $0x1e40] ss:$16 sps:$4 sm:$0xff]  }
 0x237   : > { %13271 = vmatprep.subr.bf16.mxu1 %v18371_v28 }
 0x239   : > { %13231 = vmatpush2.bf16.msra.mxu0 %v18366_v29 }
 0x23a   : > { %13272 = vmatpush2.bf16.msra.mxu1 %v18369_v30  ;;  %13232 = vmatprep.subr.bf16.mxu0 %v18374_v23 }
 0x23b   : > { %13273 = vmatprep.subr.bf16.mxu1 %v18377_v31  ;;  %v18410_v31 = vld [vmem:[%s21294_s13 + $0x1ca4] ss:$16 sps:$4 sm:$0xff]  }
 0x23d   : > { %13233 = vmatpush2.bf16.msra.mxu0 %v18372_v32  ;;  %v18413_v32 = vld [vmem:[%s21294_s13 + $0x1ea4] ss:$16 sps:$4 sm:$0xff]  }
 0x23e   : > { %13274 = vmatpush2.bf16.msra.mxu1 %v18375_v34  ;;  %13234 = vmatprep.subr.bf16.mxu0 %v18380_v35 }
 0x23f   : > { %13275 = vmatprep.subr.bf16.mxu1 %v18383_v37  ;;  %v18408_v37 = vld [vmem:[%s21294_s13 + $0x1ca0] ss:$16 sps:$4 sm:$0xff]  }
 0x241   : > { %13235 = vmatpush2.bf16.msra.mxu0 %v18378_v38  ;;  %v18411_v38 = vld [vmem:[%s21294_s13 + $0x1ea0] ss:$16 sps:$4 sm:$0xff]  }
 0x242   : > { %13276 = vmatpush2.bf16.msra.mxu1 %v18381_v39  ;;  %13236 = vmatprep.subr.bf16.mxu0 %v18386_v40 }
 0x243   : > { %13277 = vmatprep.subr.bf16.mxu1 %v18389_v42 }
 0x245   : > { %13237 = vmatpush2.bf16.msra.mxu0 %v18384_v43 }
 0x246   : > { %13278 = vmatpush2.bf16.msra.mxu1 %v18387_v45  ;;  %13238 = vmatprep.subr.bf16.mxu0 %v18392_v48  ;;  %v18419_v45 = vld [vmem:[%s21294_s13 + $0x1e84] ss:$16 sps:$4 sm:$0xff]   ;;  %v18414_v48 = vld [vmem:[%s21294_s13 + $0x1c80] ss:$16 sps:$4 sm:$0xff]  }
 0x247   : > { %13279 = vmatprep.subr.bf16.mxu1 %v18395_v49  ;;  %v18417_v49 = vld [vmem:[%s21294_s13 + $0x1e80] ss:$16 sps:$4 sm:$0xff]  }
 0x249   : > { %13239 = vmatpush2.bf16.msra.mxu0 %v18390_v58  ;;  %v18422_v58 = vld [vmem:[%s21294_s13 + $0x1c64] ss:$16 sps:$4 sm:$0xff]  }
 0x24a   : > { %13280 = vmatpush2.bf16.msra.mxu1 %v18393_v59  ;;  %13290 = vmatprep.subr.bf16.mxu0 %v18398_v62  ;;  %v18425_v59 = vld [vmem:[%s21294_s13 + $0x1e64] ss:$16 sps:$4 sm:$0xff]  }
 0x24b   : > { %13331 = vmatprep.subr.bf16.mxu1 %v18401_v63  ;;  %v18428_v62 = vld [vmem:[%s21294_s13 + $0x1c44] ss:$16 sps:$4 sm:$0xff]  }
 0x24c   : > { %v12996_v17 = vpop.f32.mrf.mxu0  ;;  %13241 = vmatmul.mubr.bf16.vlgmr.msra.gmra.mxu0 %v21882_v0  ;;  %v18431_v63 = vld [vmem:[%s21294_s13 + $0x1e44] ss:$16 sps:$4 sm:$0xff]  }
 0x24d   : > { %v13037_v28 = vpop.f32.mrf.mxu1  ;;  %13282 = vmatmul.mubr.bf16.vlgmr.msra.gmra.mxu1 %v21884_v1  ;;  %v12997_v29 = vadd.f32 %v12996_v17, %v21817_v21  ;;  %13291 = vmatpush1.bf16.msra.mxu0 %v18396_v10  ;;  %v18434_v10 = vld [vmem:[%s21294_s13 + $0x1c24] ss:$16 sps:$4 sm:$0xff]   ;;  %v18438_v17 = vld [vmem:[%s21294_s13 + $0x1c00] ss:$16 sps:$4 sm:$0xff]  }
 0x24e   : > { %13332 = vmatpush1.bf16.msra.mxu1 %v18399_v11  ;;  %v12998_v30 = vpop.f32.mrf.mxu0  ;;  %13292 = vmatprep.subr.bf16.mxu0 %v18404_v16  ;;  %v18437_v11 = vld [vmem:[%s21294_s13 + $0x1e24] ss:$16 sps:$4 sm:$0xff]   ;;  %v18432_v16 = vld [vmem:[%s21294_s13 + $0x1c20] ss:$16 sps:$4 sm:$0xff]  }
 0x24f   : > { %v13039_v23 = vpop.f32.mrf.mxu1  ;;  %13333 = vmatprep.subr.bf16.mxu1 %v18407_v18  ;;  %v21903_v34 = vadd.f32 %v13037_v28, %v12997_v29  ;;  %v12999_v35 = vadd.f32 %v12998_v30, %v21824_v27  ;;  %13322 = vmatprep.mubr.bf16.mxu0 %v21894_v22  ;;  %v18416_v27 = vld [vmem:[%s21294_s13 + $0x1c84] ss:$16 sps:$4 sm:$0xff]   ;;  %v18435_v18 = vld [vmem:[%s21294_s13 + $0x1e20] ss:$16 sps:$4 sm:$0xff]  }
 0x250   : > { %13363 = vmatprep.mubr.bf16.mxu1 %v21896_v26  ;;  %v13000_v21 = vpop.f32.mrf.mxu0  ;;  %v18441_v28 = vld [vmem:[%s21294_s13 + $0x1e00] ss:$16 sps:$4 sm:$0xff]   ;;  %v18446_v29 = vld [vmem:[%s21294_s13 + $0x1de4] ss:$16 sps:$4 sm:$0xff]  }
 0x251   : > { %v13041_v39 = vpop.f32.mrf.mxu1  ;;  %v21910_v40 = vadd.f32 %v13039_v23, %v12999_v35  ;;  %13293 = vmatpush1.bf16.msra.mxu0 %v18402_v19  ;;  %v18440_v19 = vld [vmem:[%s21294_s13 + $0x1c04] ss:$16 sps:$4 sm:$0xff]   ;;  %v18444_v23 = vld [vmem:[%s21294_s13 + $0x1de0] ss:$16 sps:$4 sm:$0xff]  }
 0x252   : > { %13334 = vmatpush1.bf16.msra.mxu1 %v18405_v20  ;;  %v13001_v42 = vpop.f32.mrf.mxu0  ;;  %13294 = vmatprep.subr.bf16.mxu0 %v18410_v31  ;;  %v18443_v20 = vld [vmem:[%s21294_s13 + $0x1e04] ss:$16 sps:$4 sm:$0xff]   ;;  %v18447_v31 = vld [vmem:[%s21294_s13 + $0x1fe0] ss:$16 sps:$4 sm:$0xff]  }
 0x253   : > { %v13042_v43 = vpop.f32.mrf.mxu1  ;;  %13335 = vmatprep.subr.bf16.mxu1 %v18413_v32  ;;  %v18449_v30 = vld [vmem:[%s21294_s13 + $0x1fe4] ss:$16 sps:$4 sm:$0xff]   ;;  %v18456_v42 = vld [vmem:[%s21294_s13 + $0x1da0] ss:$16 sps:$4 sm:$0xff]  }
 0x254   : > { %v18452_v32 = vld [vmem:[%s21294_s13 + $0x1dc4] ss:$16 sps:$4 sm:$0xff]   ;;  %v18459_v43 = vld [vmem:[%s21294_s13 + $0x1fa0] ss:$16 sps:$4 sm:$0xff]  }
 0x255   : > { %13295 = vmatpush1.bf16.msra.mxu0 %v18408_v37  ;;  %v18455_v35 = vld [vmem:[%s21294_s13 + $0x1fc4] ss:$16 sps:$4 sm:$0xff]   ;;  %v18450_v37 = vld [vmem:[%s21294_s13 + $0x1dc0] ss:$16 sps:$4 sm:$0xff]  }
 0x256   : > { %13336 = vmatpush1.bf16.msra.mxu1 %v18411_v38  ;;  %13296 = vmatprep.subr.bf16.mxu0 %v18416_v27  ;;  %v18453_v38 = vld [vmem:[%s21294_s13 + $0x1fc0] ss:$16 sps:$4 sm:$0xff]   ;;  %v18458_v21 = vld [vmem:[%s21294_s13 + $0x1da4] ss:$16 sps:$4 sm:$0xff]  }
 0x257   : > { %13337 = vmatprep.subr.bf16.mxu1 %v18419_v45  ;;  %v18461_v39 = vld [vmem:[%s21294_s13 + $0x1fa4] ss:$16 sps:$4 sm:$0xff]  }
 0x258   : > { %v18464_v27 = vld [vmem:[%s21294_s13 + $0x1d84] ss:$16 sps:$4 sm:$0xff]  }
 0x259   : > { %13297 = vmatpush1.bf16.msra.mxu0 %v18414_v48  ;;  %v18467_v45 = vld [vmem:[%s21294_s13 + $0x1f84] ss:$16 sps:$4 sm:$0xff]   ;;  %v18462_v48 = vld [vmem:[%s21294_s13 + $0x1d80] ss:$16 sps:$4 sm:$0xff]  }
 0x25a   : > { %13338 = vmatpush1.bf16.msra.mxu1 %v18417_v49  ;;  %13298 = vmatprep.subr.bf16.mxu0 %v18422_v58  ;;  %v18465_v49 = vld [vmem:[%s21294_s13 + $0x1f80] ss:$16 sps:$4 sm:$0xff]   ;;  %v18470_v58 = vld [vmem:[%s21294_s13 + $0x1d64] ss:$16 sps:$4 sm:$0xff]  }
 0x25b   : > { %13339 = vmatprep.subr.bf16.mxu1 %v18425_v59  ;;  %v18473_v59 = vld [vmem:[%s21294_s13 + $0x1f64] ss:$16 sps:$4 sm:$0xff]  }
 0x25d   : > { %13299 = vmatpush1.bf16.msra.mxu0 %v18420_v60  ;;  %v18468_v60 = vld [vmem:[%s21294_s13 + $0x1d60] ss:$16 sps:$4 sm:$0xff]  }
 0x25e   : > { %13340 = vmatpush1.bf16.msra.mxu1 %v18423_v61  ;;  %13300 = vmatprep.subr.bf16.mxu0 %v18428_v62  ;;  %v18471_v61 = vld [vmem:[%s21294_s13 + $0x1f60] ss:$16 sps:$4 sm:$0xff]   ;;  %v18476_v62 = vld [vmem:[%s21294_s13 + $0x1d44] ss:$16 sps:$4 sm:$0xff]  }
 0x25f   : > { %13341 = vmatprep.subr.bf16.mxu1 %v18431_v63  ;;  %v18479_v63 = vld [vmem:[%s21294_s13 + $0x1f44] ss:$16 sps:$4 sm:$0xff]  }
 0x261   : > { %13301 = vmatpush1.bf16.msra.mxu0 %v18426_v8  ;;  %v18474_v8 = vld [vmem:[%s21294_s13 + $0x1d40] ss:$16 sps:$4 sm:$0xff]  }
 0x262   : > { %13342 = vmatpush1.bf16.msra.mxu1 %v18429_v9  ;;  %13302 = vmatprep.subr.bf16.mxu0 %v18434_v10  ;;  %v18477_v9 = vld [vmem:[%s21294_s13 + $0x1f40] ss:$16 sps:$4 sm:$0xff]   ;;  %v18482_v10 = vld [vmem:[%s21294_s13 + $0x1d24] ss:$16 sps:$4 sm:$0xff]  }
 0x263   : > { %13343 = vmatprep.subr.bf16.mxu1 %v18437_v11  ;;  %v18485_v11 = vld [vmem:[%s21294_s13 + $0x1f24] ss:$16 sps:$4 sm:$0xff]  }
 0x265   : > { %13303 = vmatpush1.bf16.msra.mxu0 %v18432_v16  ;;  %v18480_v16 = vld [vmem:[%s21294_s13 + $0x1d20] ss:$16 sps:$4 sm:$0xff]  }
 0x266   : > { %13344 = vmatpush1.bf16.msra.mxu1 %v18435_v18  ;;  %13304 = vmatprep.subr.bf16.mxu0 %v18440_v19  ;;  %v18483_v18 = vld [vmem:[%s21294_s13 + $0x1f20] ss:$16 sps:$4 sm:$0xff]   ;;  %v18488_v19 = vld [vmem:[%s21294_s13 + $0x1d04] ss:$16 sps:$4 sm:$0xff]  }
 0x267   : > { %13345 = vmatprep.subr.bf16.mxu1 %v18443_v20  ;;  %v18491_v20 = vld [vmem:[%s21294_s13 + $0x1f04] ss:$16 sps:$4 sm:$0xff]  }
 0x269   : > { %13305 = vmatpush1.bf16.msra.mxu0 %v18438_v17  ;;  %v18486_v17 = vld [vmem:[%s21294_s13 + $0x1d00] ss:$16 sps:$4 sm:$0xff]  }
 0x26a   : > { %13346 = vmatpush1.bf16.msra.mxu1 %v18441_v28  ;;  %13306 = vmatprep.subr.bf16.mxu0 %v18446_v29  ;;  %v18489_v28 = vld [vmem:[%s21294_s13 + $0x1f00] ss:$16 sps:$4 sm:$0xff]  }
 0x26b   : > { %13347 = vmatprep.subr.bf16.mxu1 %v18449_v30  ;;  %v328_v29 = vld [vmem:[%s21286_s9 + $0xe0] sm:$0xff]  ;;  %v330_v30 = vld [vmem:[%s21286_s9 + $0xf0] sm:$0xff] }
 0x26d   : > { %13307 = vmatpush2.bf16.msra.mxu0 %v18444_v23  ;;  %v18494_v23 = vld [vmem:[%s21294_s13 + $0x20e4] ss:$16 sps:$4 sm:$0xff]  }
 0x26e   : > { %13348 = vmatpush2.bf16.msra.mxu1 %v18447_v31  ;;  %13308 = vmatprep.subr.bf16.mxu0 %v18452_v32  ;;  %v18497_v31 = vld [vmem:[%s21294_s13 + $0x22e4] ss:$16 sps:$4 sm:$0xff]   ;;  %v21968_v32 = vpack.c.bf16 %v328_v29, %v328_v29  ;;  %v18510_v29 = vld [vmem:[%s21294_s13 + $0x2080] ss:$16 sps:$4 sm:$0xff]  }
 0x26f   : > { %13349 = vmatprep.subr.bf16.mxu1 %v18455_v35  ;;  %v21970_v35 = vpack.c.bf16 %v330_v30, %v330_v30  ;;  %v18513_v30 = vld [vmem:[%s21294_s13 + $0x2280] ss:$16 sps:$4 sm:$0xff]  }
 0x271   : > { %13309 = vmatpush2.bf16.msra.mxu0 %v18450_v37  ;;  %v333_v37 = vld [vmem:[%s21286_s9 + $0x108] sm:$0xff] }
 0x272   : > { %13350 = vmatpush2.bf16.msra.mxu1 %v18453_v38  ;;  %13310 = vmatprep.subr.bf16.mxu0 %v18458_v21  ;;  %v335_v38 = vld [vmem:[%s21286_s9 + $0x118] sm:$0xff]  ;;  %v18492_v21 = vld [vmem:[%s21294_s13 + $0x20e0] ss:$16 sps:$4 sm:$0xff]  }
 0x273   : > { %13351 = vmatprep.subr.bf16.mxu1 %v18461_v39  ;;  %v18495_v39 = vld [vmem:[%s21294_s13 + $0x22e0] ss:$16 sps:$4 sm:$0xff]  }
 0x275   : > { %13311 = vmatpush2.bf16.msra.mxu0 %v18456_v42  ;;  %v18500_v42 = vld [vmem:[%s21294_s13 + $0x20c4] ss:$16 sps:$4 sm:$0xff]  }
 0x276   : > { %13352 = vmatpush2.bf16.msra.mxu1 %v18459_v43  ;;  %13312 = vmatprep.subr.bf16.mxu0 %v18464_v27  ;;  %v18503_v43 = vld [vmem:[%s21294_s13 + $0x22c4] ss:$16 sps:$4 sm:$0xff]   ;;  %v18498_v27 = vld [vmem:[%s21294_s13 + $0x20c0] ss:$16 sps:$4 sm:$0xff]  }
 0x277   : > { %13353 = vmatprep.subr.bf16.mxu1 %v18467_v45  ;;  %v18501_v45 = vld [vmem:[%s21294_s13 + $0x22c0] ss:$16 sps:$4 sm:$0xff]  }
 0x279   : > { %13313 = vmatpush2.bf16.msra.mxu0 %v18462_v48  ;;  %v21980_v48 = vpack.c.bf16 %v333_v37, %v333_v37  ;;  %v18516_v37 = vld [vmem:[%s21294_s13 + $0x2060] ss:$16 sps:$4 sm:$0xff]  }
 0x27a   : > { %13354 = vmatpush2.bf16.msra.mxu1 %v18465_v49  ;;  %13314 = vmatprep.subr.bf16.mxu0 %v18470_v58  ;;  %v21982_v49 = vpack.c.bf16 %v335_v38, %v335_v38  ;;  %v18519_v38 = vld [vmem:[%s21294_s13 + $0x2260] ss:$16 sps:$4 sm:$0xff]  }
 0x27b   : > { %13355 = vmatprep.subr.bf16.mxu1 %v18473_v59 }
 0x27d   : > { %13315 = vmatpush2.bf16.msra.mxu0 %v18468_v60 }
 0x27e   : > { %13356 = vmatpush2.bf16.msra.mxu1 %v18471_v61  ;;  %13316 = vmatprep.subr.bf16.mxu0 %v18476_v62 }
 0x27f   : > { %13357 = vmatprep.subr.bf16.mxu1 %v18479_v63  ;;  %v18506_v63 = vld [vmem:[%s21294_s13 + $0x20a4] ss:$16 sps:$4 sm:$0xff]  }
 0x281   : > { %13317 = vmatpush2.bf16.msra.mxu0 %v18474_v8  ;;  %v18509_v8 = vld [vmem:[%s21294_s13 + $0x22a4] ss:$16 sps:$4 sm:$0xff]  }
 0x282   : > { %13358 = vmatpush2.bf16.msra.mxu1 %v18477_v9  ;;  %13318 = vmatprep.subr.bf16.mxu0 %v18482_v10 }
 0x283   : > { %13359 = vmatprep.subr.bf16.mxu1 %v18485_v11  ;;  %v18504_v11 = vld [vmem:[%s21294_s13 + $0x20a0] ss:$16 sps:$4 sm:$0xff]  }
 0x285   : > { %13319 = vmatpush2.bf16.msra.mxu0 %v18480_v16  ;;  %v18507_v16 = vld [vmem:[%s21294_s13 + $0x22a0] ss:$16 sps:$4 sm:$0xff]  }
 0x286   : > { %13360 = vmatpush2.bf16.msra.mxu1 %v18483_v18  ;;  %13320 = vmatprep.subr.bf16.mxu0 %v18488_v19 }
 0x287   : > { %13361 = vmatprep.subr.bf16.mxu1 %v18491_v20 }
 0x289   : > { %13321 = vmatpush2.bf16.msra.mxu0 %v18486_v17 }
 0x28a   : > { %13362 = vmatpush2.bf16.msra.mxu1 %v18489_v28  ;;  %13372 = vmatprep.subr.bf16.mxu0 %v18494_v23  ;;  %v18515_v28 = vld [vmem:[%s21294_s13 + $0x2284] ss:$16 sps:$4 sm:$0xff]  }
 0x28b   : > { %13413 = vmatprep.subr.bf16.mxu1 %v18497_v31  ;;  %v18518_v23 = vld [vmem:[%s21294_s13 + $0x2064] ss:$16 sps:$4 sm:$0xff]  }
 0x28c   : > { %v13078_v58 = vpop.f32.mrf.mxu0  ;;  %13323 = vmatmul.mubr.bf16.vlgmr.msra.gmra.mxu0 %v21968_v32  ;;  %v18521_v31 = vld [vmem:[%s21294_s13 + $0x2264] ss:$16 sps:$4 sm:$0xff]  }
 0x28d   : > { %v13119_v59 = vpop.f32.mrf.mxu1  ;;  %13364 = vmatmul.mubr.bf16.vlgmr.msra.gmra.mxu1 %v21970_v35  ;;  %v13079_v60 = vadd.f32 %v13078_v58, %v21903_v34  ;;  %13373 = vmatpush1.bf16.msra.mxu0 %v18492_v21  ;;  %v18524_v21 = vld [vmem:[%s21294_s13 + $0x2044] ss:$16 sps:$4 sm:$0xff]   ;;  %v18528_v58 = vld [vmem:[%s21294_s13 + $0x2020] ss:$16 sps:$4 sm:$0xff]  }
 0x28e   : > { %13414 = vmatpush1.bf16.msra.mxu1 %v18495_v39  ;;  %v13080_v61 = vpop.f32.mrf.mxu0  ;;  %13374 = vmatprep.subr.bf16.mxu0 %v18500_v42  ;;  %v18527_v39 = vld [vmem:[%s21294_s13 + $0x2244] ss:$16 sps:$4 sm:$0xff]   ;;  %v18522_v42 = vld [vmem:[%s21294_s13 + $0x2040] ss:$16 sps:$4 sm:$0xff]  }
 0x28f   : > { %v13121_v62 = vpop.f32.mrf.mxu1  ;;  %13415 = vmatprep.subr.bf16.mxu1 %v18503_v43  ;;  %v21989_v9 = vadd.f32 %v13119_v59, %v13079_v60  ;;  %v13081_v10 = vadd.f32 %v13080_v61, %v21910_v40  ;;  %13404 = vmatprep.mubr.bf16.mxu0 %v21980_v48  ;;  %v18512_v40 = vld [vmem:[%s21294_s13 + $0x2084] ss:$16 sps:$4 sm:$0xff]   ;;  %v18525_v43 = vld [vmem:[%s21294_s13 + $0x2240] ss:$16 sps:$4 sm:$0xff]  }
 0x290   : > { %13445 = vmatprep.mubr.bf16.mxu1 %v21982_v49  ;;  %v13082_v34 = vpop.f32.mrf.mxu0  ;;  %v18531_v59 = vld [vmem:[%s21294_s13 + $0x2220] ss:$16 sps:$4 sm:$0xff]   ;;  %v18536_v60 = vld [vmem:[%s21294_s13 + $0x2004] ss:$16 sps:$4 sm:$0xff]  }
 0x291   : > { %v13123_v18 = vpop.f32.mrf.mxu1  ;;  %v21996_v19 = vadd.f32 %v13121_v62, %v13081_v10  ;;  %13375 = vmatpush1.bf16.msra.mxu0 %v18498_v27  ;;  %v18530_v27 = vld [vmem:[%s21294_s13 + $0x2024] ss:$16 sps:$4 sm:$0xff]   ;;  %v18534_v62 = vld [vmem:[%s21294_s13 + $0x2000] ss:$16 sps:$4 sm:$0xff]  }
 0x292   : > { %13416 = vmatpush1.bf16.msra.mxu1 %v18501_v45  ;;  %v13083_v20 = vpop.f32.mrf.mxu0  ;;  %13376 = vmatprep.subr.bf16.mxu0 %v18506_v63  ;;  %v18533_v45 = vld [vmem:[%s21294_s13 + $0x2224] ss:$16 sps:$4 sm:$0xff]   ;;  %v18537_v63 = vld [vmem:[%s21294_s13 + $0x2200] ss:$16 sps:$4 sm:$0xff]  }
 0x293   : > { %v13124_v17 = vpop.f32.mrf.mxu1  ;;  %13417 = vmatprep.subr.bf16.mxu1 %v18509_v8  ;;  %v18539_v61 = vld [vmem:[%s21294_s13 + $0x2204] ss:$16 sps:$4 sm:$0xff]   ;;  %v18546_v20 = vld [vmem:[%s21294_s13 + $0x21c0] ss:$16 sps:$4 sm:$0xff]  }
 0x294   : > { %v18542_v8 = vld [vmem:[%s21294_s13 + $0x21e4] ss:$16 sps:$4 sm:$0xff]   ;;  %v18549_v17 = vld [vmem:[%s21294_s13 + $0x23c0] ss:$16 sps:$4 sm:$0xff]  }
 0x295   : > { %13377 = vmatpush1.bf16.msra.mxu0 %v18504_v11  ;;  %v18545_v10 = vld [vmem:[%s21294_s13 + $0x23e4] ss:$16 sps:$4 sm:$0xff]   ;;  %v18540_v11 = vld [vmem:[%s21294_s13 + $0x21e0] ss:$16 sps:$4 sm:$0xff]  }
 0x296   : > { %13418 = vmatpush1.bf16.msra.mxu1 %v18507_v16  ;;  %13378 = vmatprep.subr.bf16.mxu0 %v18512_v40  ;;  %v18543_v16 = vld [vmem:[%s21294_s13 + $0x23e0] ss:$16 sps:$4 sm:$0xff]   ;;  %v18548_v34 = vld [vmem:[%s21294_s13 + $0x21c4] ss:$16 sps:$4 sm:$0xff]  }
 0x297   : > { %13419 = vmatprep.subr.bf16.mxu1 %v18515_v28  ;;  %v18551_v18 = vld [vmem:[%s21294_s13 + $0x23c4] ss:$16 sps:$4 sm:$0xff]  }
 0x298   : > { %v18554_v40 = vld [vmem:[%s21294_s13 + $0x21a4] ss:$16 sps:$4 sm:$0xff]  }
 0x299   : > { %13379 = vmatpush1.bf16.msra.mxu0 %v18510_v29  ;;  %v18557_v28 = vld [vmem:[%s21294_s13 + $0x23a4] ss:$16 sps:$4 sm:$0xff]   ;;  %v18552_v29 = vld [vmem:[%s21294_s13 + $0x21a0] ss:$16 sps:$4 sm:$0xff]  }
 0x29a   : > { %13420 = vmatpush1.bf16.msra.mxu1 %v18513_v30  ;;  %13380 = vmatprep.subr.bf16.mxu0 %v18518_v23  ;;  %v18555_v30 = vld [vmem:[%s21294_s13 + $0x23a0] ss:$16 sps:$4 sm:$0xff]   ;;  %v18560_v23 = vld [vmem:[%s21294_s13 + $0x2184] ss:$16 sps:$4 sm:$0xff]  }
 0x29b   : > { %13421 = vmatprep.subr.bf16.mxu1 %v18521_v31  ;;  %v18563_v31 = vld [vmem:[%s21294_s13 + $0x2384] ss:$16 sps:$4 sm:$0xff]  }
 0x29d   : > { %13381 = vmatpush1.bf16.msra.mxu0 %v18516_v37  ;;  %v18558_v37 = vld [vmem:[%s21294_s13 + $0x2180] ss:$16 sps:$4 sm:$0xff]  }
 0x29e   : > { %13422 = vmatpush1.bf16.msra.mxu1 %v18519_v38  ;;  %13382 = vmatprep.subr.bf16.mxu0 %v18524_v21  ;;  %v18561_v38 = vld [vmem:[%s21294_s13 + $0x2380] ss:$16 sps:$4 sm:$0xff]   ;;  %v18566_v21 = vld [vmem:[%s21294_s13 + $0x2164] ss:$16 sps:$4 sm:$0xff]  }
 0x29f   : > { %13423 = vmatprep.subr.bf16.mxu1 %v18527_v39  ;;  %v18569_v39 = vld [vmem:[%s21294_s13 + $0x2364] ss:$16 sps:$4 sm:$0xff]  }
 0x2a1   : > { %13383 = vmatpush1.bf16.msra.mxu0 %v18522_v42  ;;  %v18564_v42 = vld [vmem:[%s21294_s13 + $0x2160] ss:$16 sps:$4 sm:$0xff]  }
 0x2a2   : > { %13424 = vmatpush1.bf16.msra.mxu1 %v18525_v43  ;;  %13384 = vmatprep.subr.bf16.mxu0 %v18530_v27  ;;  %v18567_v43 = vld [vmem:[%s21294_s13 + $0x2360] ss:$16 sps:$4 sm:$0xff]   ;;  %v18572_v27 = vld [vmem:[%s21294_s13 + $0x2144] ss:$16 sps:$4 sm:$0xff]  }
 0x2a3   : > { %13425 = vmatprep.subr.bf16.mxu1 %v18533_v45  ;;  %v18575_v45 = vld [vmem:[%s21294_s13 + $0x2344] ss:$16 sps:$4 sm:$0xff]  }
 0x2a5   : > { %13385 = vmatpush1.bf16.msra.mxu0 %v18528_v58  ;;  %v18570_v58 = vld [vmem:[%s21294_s13 + $0x2140] ss:$16 sps:$4 sm:$0xff]  }
 0x2a6   : > { %13426 = vmatpush1.bf16.msra.mxu1 %v18531_v59  ;;  %13386 = vmatprep.subr.bf16.mxu0 %v18536_v60  ;;  %v18573_v59 = vld [vmem:[%s21294_s13 + $0x2340] ss:$16 sps:$4 sm:$0xff]   ;;  %v18578_v60 = vld [vmem:[%s21294_s13 + $0x2124] ss:$16 sps:$4 sm:$0xff]  }
 0x2a7   : > { %13427 = vmatprep.subr.bf16.mxu1 %v18539_v61  ;;  %v18581_v61 = vld [vmem:[%s21294_s13 + $0x2324] ss:$16 sps:$4 sm:$0xff]  }
 0x2a9   : > { %13387 = vmatpush1.bf16.msra.mxu0 %v18534_v62  ;;  %v18576_v62 = vld [vmem:[%s21294_s13 + $0x2120] ss:$16 sps:$4 sm:$0xff]  }
 0x2aa   : > { %13428 = vmatpush1.bf16.msra.mxu1 %v18537_v63  ;;  %13388 = vmatprep.subr.bf16.mxu0 %v18542_v8  ;;  %v18579_v63 = vld [vmem:[%s21294_s13 + $0x2320] ss:$16 sps:$4 sm:$0xff]   ;;  %v18584_v8 = vld [vmem:[%s21294_s13 + $0x2104] ss:$16 sps:$4 sm:$0xff]  }
 0x2ab   : > { %13429 = vmatprep.subr.bf16.mxu1 %v18545_v10  ;;  %v18587_v10 = vld [vmem:[%s21294_s13 + $0x2304] ss:$16 sps:$4 sm:$0xff]  }
 0x2ad   : > { %13389 = vmatpush2.bf16.msra.mxu0 %v18540_v11  ;;  %v18582_v11 = vld [vmem:[%s21294_s13 + $0x2100] ss:$16 sps:$4 sm:$0xff]  }
 0x2ae   : > { %13430 = vmatpush2.bf16.msra.mxu1 %v18543_v16  ;;  %13390 = vmatprep.subr.bf16.mxu0 %v18548_v34  ;;  %v18585_v16 = vld [vmem:[%s21294_s13 + $0x2300] ss:$16 sps:$4 sm:$0xff]  }
 0x2af   : > { %13431 = vmatprep.subr.bf16.mxu1 %v18551_v18  ;;  %v332_v34 = vld [vmem:[%s21286_s9 + $0x100] sm:$0xff]  ;;  %v334_v18 = vld [vmem:[%s21286_s9 + $0x110] sm:$0xff] }
 0x2b1   : > { %13391 = vmatpush2.bf16.msra.mxu0 %v18546_v20  ;;  %v18590_v20 = vld [vmem:[%s21294_s13 + $0x24e4] ss:$16 sps:$4 sm:$0xff]  }
 0x2b2   : > { %13432 = vmatpush2.bf16.msra.mxu1 %v18549_v17  ;;  %13392 = vmatprep.subr.bf16.mxu0 %v18554_v40  ;;  %v18593_v17 = vld [vmem:[%s21294_s13 + $0x26e4] ss:$16 sps:$4 sm:$0xff]   ;;  %v22054_v40 = vpack.c.bf16 %v332_v34, %v332_v34 }
 0x2b3   : > { %13433 = vmatprep.subr.bf16.mxu1 %v18557_v28  ;;  %v22056_v28 = vpack.c.bf16 %v334_v18, %v334_v18 }
 0x2b5   : > { %13393 = vmatpush2.bf16.msra.mxu0 %v18552_v29  ;;  %v337_v29 = vld [vmem:[%s21286_s9 + $0x128] sm:$0xff] }
 0x2b6   : > { %13434 = vmatpush2.bf16.msra.mxu1 %v18555_v30  ;;  %13394 = vmatprep.subr.bf16.mxu0 %v18560_v23  ;;  %v339_v30 = vld [vmem:[%s21286_s9 + $0x138] sm:$0xff]  ;;  %v18588_v23 = vld [vmem:[%s21294_s13 + $0x24e0] ss:$16 sps:$4 sm:$0xff]  }
 0x2b7   : > { %13435 = vmatprep.subr.bf16.mxu1 %v18563_v31  ;;  %v18591_v31 = vld [vmem:[%s21294_s13 + $0x26e0] ss:$16 sps:$4 sm:$0xff]  }
 0x2b9   : > { %13395 = vmatpush2.bf16.msra.mxu0 %v18558_v37  ;;  %v18596_v37 = vld [vmem:[%s21294_s13 + $0x24c4] ss:$16 sps:$4 sm:$0xff]  }
 0x2ba   : > { %13436 = vmatpush2.bf16.msra.mxu1 %v18561_v38  ;;  %13396 = vmatprep.subr.bf16.mxu0 %v18566_v21  ;;  %v18599_v38 = vld [vmem:[%s21294_s13 + $0x26c4] ss:$16 sps:$4 sm:$0xff]   ;;  %v18594_v21 = vld [vmem:[%s21294_s13 + $0x24c0] ss:$16 sps:$4 sm:$0xff]  }
 0x2bb   : > { %13437 = vmatprep.subr.bf16.mxu1 %v18569_v39  ;;  %v18597_v39 = vld [vmem:[%s21294_s13 + $0x26c0] ss:$16 sps:$4 sm:$0xff]  }
 0x2bd   : > { %13397 = vmatpush2.bf16.msra.mxu0 %v18564_v42  ;;  %v22066_v42 = vpack.c.bf16 %v337_v29, %v337_v29  ;;  %v18606_v29 = vld [vmem:[%s21294_s13 + $0x2480] ss:$16 sps:$4 sm:$0xff]  }
 0x2be   : > { %13438 = vmatpush2.bf16.msra.mxu1 %v18567_v43  ;;  %13398 = vmatprep.subr.bf16.mxu0 %v18572_v27  ;;  %v22068_v43 = vpack.c.bf16 %v339_v30, %v339_v30  ;;  %v18609_v30 = vld [vmem:[%s21294_s13 + $0x2680] ss:$16 sps:$4 sm:$0xff]  }
 0x2bf   : > { %13439 = vmatprep.subr.bf16.mxu1 %v18575_v45 }
 0x2c1   : > { %13399 = vmatpush2.bf16.msra.mxu0 %v18570_v58 }
 0x2c2   : > { %13440 = vmatpush2.bf16.msra.mxu1 %v18573_v59  ;;  %13400 = vmatprep.subr.bf16.mxu0 %v18578_v60 }
 0x2c3   : > { %13441 = vmatprep.subr.bf16.mxu1 %v18581_v61  ;;  %v18602_v61 = vld [vmem:[%s21294_s13 + $0x24a4] ss:$16 sps:$4 sm:$0xff]  }
 0x2c5   : > { %13401 = vmatpush2.bf16.msra.mxu0 %v18576_v62  ;;  %v18605_v62 = vld [vmem:[%s21294_s13 + $0x26a4] ss:$16 sps:$4 sm:$0xff]  }
 0x2c6   : > { %13442 = vmatpush2.bf16.msra.mxu1 %v18579_v63  ;;  %13402 = vmatprep.subr.bf16.mxu0 %v18584_v8 }
 0x2c7   : > { %13443 = vmatprep.subr.bf16.mxu1 %v18587_v10  ;;  %v18600_v10 = vld [vmem:[%s21294_s13 + $0x24a0] ss:$16 sps:$4 sm:$0xff]  }
 0x2c9   : > { %13403 = vmatpush2.bf16.msra.mxu0 %v18582_v11  ;;  %v18603_v11 = vld [vmem:[%s21294_s13 + $0x26a0] ss:$16 sps:$4 sm:$0xff]  }
 0x2ca   : > { %13444 = vmatpush2.bf16.msra.mxu1 %v18585_v16  ;;  %13454 = vmatprep.subr.bf16.mxu0 %v18590_v20 }
 0x2cb   : > { %13495 = vmatprep.subr.bf16.mxu1 %v18593_v17  ;;  %v18611_v17 = vld [vmem:[%s21294_s13 + $0x2684] ss:$16 sps:$4 sm:$0xff]  }
 0x2cc   : > { %v13160_v27 = vpop.f32.mrf.mxu0  ;;  %13405 = vmatmul.mubr.bf16.vlgmr.msra.gmra.mxu0 %v22054_v40 }
 0x2cd   : > { %v13201_v45 = vpop.f32.mrf.mxu1  ;;  %13446 = vmatmul.mubr.bf16.vlgmr.msra.gmra.mxu1 %v22056_v28  ;;  %v13161_v58 = vadd.f32 %v13160_v27, %v21989_v9  ;;  %13455 = vmatpush1.bf16.msra.mxu0 %v18588_v23  ;;  %v18614_v23 = vld [vmem:[%s21294_s13 + $0x2464] ss:$16 sps:$4 sm:$0xff]   ;;  %v18618_v27 = vld [vmem:[%s21294_s13 + $0x2440] ss:$16 sps:$4 sm:$0xff]  }
 0x2ce   : > { %13496 = vmatpush1.bf16.msra.mxu1 %v18591_v31  ;;  %v13162_v59 = vpop.f32.mrf.mxu0  ;;  %13456 = vmatprep.subr.bf16.mxu0 %v18596_v37  ;;  %v18617_v31 = vld [vmem:[%s21294_s13 + $0x2664] ss:$16 sps:$4 sm:$0xff]   ;;  %v18612_v37 = vld [vmem:[%s21294_s13 + $0x2460] ss:$16 sps:$4 sm:$0xff]  }
 0x2cf   : > { %v13203_v60 = vpop.f32.mrf.mxu1  ;;  %13497 = vmatprep.subr.bf16.mxu1 %v18599_v38  ;;  %v22075_v63 = vadd.f32 %v13201_v45, %v13161_v58  ;;  %v13163_v8 = vadd.f32 %v13162_v59, %v21996_v19  ;;  %13486 = vmatprep.mubr.bf16.mxu0 %v22066_v42  ;;  %v18608_v19 = vld [vmem:[%s21294_s13 + $0x2484] ss:$16 sps:$4 sm:$0xff]   ;;  %v18615_v38 = vld [vmem:[%s21294_s13 + $0x2660] ss:$16 sps:$4 sm:$0xff]  }
 0x2d0   : > { %13527 = vmatprep.mubr.bf16.mxu1 %v22068_v43  ;;  %v13164_v9 = vpop.f32.mrf.mxu0  ;;  %v18621_v45 = vld [vmem:[%s21294_s13 + $0x2640] ss:$16 sps:$4 sm:$0xff]   ;;  %v18626_v58 = vld [vmem:[%s21294_s13 + $0x2424] ss:$16 sps:$4 sm:$0xff]  }
 0x2d1   : > { %v13205_v16 = vpop.f32.mrf.mxu1  ;;  %v22082_v34 = vadd.f32 %v13203_v60, %v13163_v8  ;;  %13457 = vmatpush1.bf16.msra.mxu0 %v18594_v21  ;;  %v18620_v21 = vld [vmem:[%s21294_s13 + $0x2444] ss:$16 sps:$4 sm:$0xff]   ;;  %v18624_v60 = vld [vmem:[%s21294_s13 + $0x2420] ss:$16 sps:$4 sm:$0xff]  }
 0x2d2   : > { %13498 = vmatpush1.bf16.msra.mxu1 %v18597_v39  ;;  %v13165_v18 = vpop.f32.mrf.mxu0  ;;  %13458 = vmatprep.subr.bf16.mxu0 %v18602_v61  ;;  %v18623_v39 = vld [vmem:[%s21294_s13 + $0x2644] ss:$16 sps:$4 sm:$0xff]   ;;  %v18627_v61 = vld [vmem:[%s21294_s13 + $0x2620] ss:$16 sps:$4 sm:$0xff]  }
 0x2d3   : > { %v13206_v20 = vpop.f32.mrf.mxu1  ;;  %13499 = vmatprep.subr.bf16.mxu1 %v18605_v62  ;;  %v18629_v59 = vld [vmem:[%s21294_s13 + $0x2624] ss:$16 sps:$4 sm:$0xff]   ;;  %v18636_v18 = vld [vmem:[%s21294_s13 + $0x25e0] ss:$16 sps:$4 sm:$0xff]  }
 0x2d4   : > { %v18632_v62 = vld [vmem:[%s21294_s13 + $0x2404] ss:$16 sps:$4 sm:$0xff]   ;;  %v18639_v20 = vld [vmem:[%s21294_s13 + $0x27e0] ss:$16 sps:$4 sm:$0xff]  }
 0x2d5   : > { %13459 = vmatpush1.bf16.msra.mxu0 %v18600_v10  ;;  %v18635_v8 = vld [vmem:[%s21294_s13 + $0x2604] ss:$16 sps:$4 sm:$0xff]   ;;  %v18630_v10 = vld [vmem:[%s21294_s13 + $0x2400] ss:$16 sps:$4 sm:$0xff]  }
 0x2d6   : > { %13500 = vmatpush1.bf16.msra.mxu1 %v18603_v11  ;;  %13460 = vmatprep.subr.bf16.mxu0 %v18608_v19  ;;  %v18633_v11 = vld [vmem:[%s21294_s13 + $0x2600] ss:$16 sps:$4 sm:$0xff]   ;;  %v18638_v9 = vld [vmem:[%s21294_s13 + $0x25e4] ss:$16 sps:$4 sm:$0xff]  }
 0x2d7   : > { %13501 = vmatprep.subr.bf16.mxu1 %v18611_v17  ;;  %v18641_v16 = vld [vmem:[%s21294_s13 + $0x27e4] ss:$16 sps:$4 sm:$0xff]  }
 0x2d8   : > { %v18644_v19 = vld [vmem:[%s21294_s13 + $0x25c4] ss:$16 sps:$4 sm:$0xff]  }
 0x2d9   : > { %13461 = vmatpush1.bf16.msra.mxu0 %v18606_v29  ;;  %v18647_v17 = vld [vmem:[%s21294_s13 + $0x27c4] ss:$16 sps:$4 sm:$0xff]   ;;  %v18642_v29 = vld [vmem:[%s21294_s13 + $0x25c0] ss:$16 sps:$4 sm:$0xff]  }
 0x2da   : > { %13502 = vmatpush1.bf16.msra.mxu1 %v18609_v30  ;;  %13462 = vmatprep.subr.bf16.mxu0 %v18614_v23  ;;  %v18645_v30 = vld [vmem:[%s21294_s13 + $0x27c0] ss:$16 sps:$4 sm:$0xff]   ;;  %v18650_v23 = vld [vmem:[%s21294_s13 + $0x25a4] ss:$16 sps:$4 sm:$0xff]  }
 0x2db   : > { %13503 = vmatprep.subr.bf16.mxu1 %v18617_v31  ;;  %v18653_v31 = vld [vmem:[%s21294_s13 + $0x27a4] ss:$16 sps:$4 sm:$0xff]  }
 0x2dd   : > { %13463 = vmatpush1.bf16.msra.mxu0 %v18612_v37  ;;  %v18648_v37 = vld [vmem:[%s21294_s13 + $0x25a0] ss:$16 sps:$4 sm:$0xff]  }
 0x2de   : > { %13504 = vmatpush1.bf16.msra.mxu1 %v18615_v38  ;;  %13464 = vmatprep.subr.bf16.mxu0 %v18620_v21  ;;  %v18651_v38 = vld [vmem:[%s21294_s13 + $0x27a0] ss:$16 sps:$4 sm:$0xff]   ;;  %v18656_v21 = vld [vmem:[%s21294_s13 + $0x2584] ss:$16 sps:$4 sm:$0xff]  }
 0x2df   : > { %13505 = vmatprep.subr.bf16.mxu1 %v18623_v39  ;;  %v18659_v39 = vld [vmem:[%s21294_s13 + $0x2784] ss:$16 sps:$4 sm:$0xff]  }
 0x2e1   : > { %13465 = vmatpush1.bf16.msra.mxu0 %v18618_v27  ;;  %v18654_v27 = vld [vmem:[%s21294_s13 + $0x2580] ss:$16 sps:$4 sm:$0xff]  }
 0x2e2   : > { %13506 = vmatpush1.bf16.msra.mxu1 %v18621_v45  ;;  %13466 = vmatprep.subr.bf16.mxu0 %v18626_v58  ;;  %v18657_v45 = vld [vmem:[%s21294_s13 + $0x2780] ss:$16 sps:$4 sm:$0xff]   ;;  %v18662_v58 = vld [vmem:[%s21294_s13 + $0x2564] ss:$16 sps:$4 sm:$0xff]  }
 0x2e3   : > { %13507 = vmatprep.subr.bf16.mxu1 %v18629_v59  ;;  %v18665_v59 = vld [vmem:[%s21294_s13 + $0x2764] ss:$16 sps:$4 sm:$0xff]  }
 0x2e5   : > { %13467 = vmatpush1.bf16.msra.mxu0 %v18624_v60  ;;  %v18660_v60 = vld [vmem:[%s21294_s13 + $0x2560] ss:$16 sps:$4 sm:$0xff]  }
 0x2e6   : > { %13508 = vmatpush1.bf16.msra.mxu1 %v18627_v61  ;;  %13468 = vmatprep.subr.bf16.mxu0 %v18632_v62  ;;  %v18663_v61 = vld [vmem:[%s21294_s13 + $0x2760] ss:$16 sps:$4 sm:$0xff]   ;;  %v18668_v62 = vld [vmem:[%s21294_s13 + $0x2544] ss:$16 sps:$4 sm:$0xff]  }
 0x2e7   : > { %13509 = vmatprep.subr.bf16.mxu1 %v18635_v8  ;;  %v18671_v8 = vld [vmem:[%s21294_s13 + $0x2744] ss:$16 sps:$4 sm:$0xff]  }
 0x2e9   : > { %13469 = vmatpush1.bf16.msra.mxu0 %v18630_v10  ;;  %v18666_v10 = vld [vmem:[%s21294_s13 + $0x2540] ss:$16 sps:$4 sm:$0xff]  }
 0x2ea   : > { %13510 = vmatpush1.bf16.msra.mxu1 %v18633_v11  ;;  %13470 = vmatprep.subr.bf16.mxu0 %v18638_v9  ;;  %v18669_v11 = vld [vmem:[%s21294_s13 + $0x2740] ss:$16 sps:$4 sm:$0xff]   ;;  %v18674_v9 = vld [vmem:[%s21294_s13 + $0x2524] ss:$16 sps:$4 sm:$0xff]  }
 0x2eb   : > { %13511 = vmatprep.subr.bf16.mxu1 %v18641_v16  ;;  %v18677_v16 = vld [vmem:[%s21294_s13 + $0x2724] ss:$16 sps:$4 sm:$0xff]  }
 0x2ed   : > { %13471 = vmatpush2.bf16.msra.mxu0 %v18636_v18  ;;  %v18672_v18 = vld [vmem:[%s21294_s13 + $0x2520] ss:$16 sps:$4 sm:$0xff]  }
 0x2ee   : > { %13512 = vmatpush2.bf16.msra.mxu1 %v18639_v20  ;;  %13472 = vmatprep.subr.bf16.mxu0 %v18644_v19  ;;  %v18675_v20 = vld [vmem:[%s21294_s13 + $0x2720] ss:$16 sps:$4 sm:$0xff]   ;;  %v18680_v19 = vld [vmem:[%s21294_s13 + $0x2504] ss:$16 sps:$4 sm:$0xff]  }
 0x2ef   : > { %13513 = vmatprep.subr.bf16.mxu1 %v18647_v17  ;;  %v18683_v17 = vld [vmem:[%s21294_s13 + $0x2704] ss:$16 sps:$4 sm:$0xff]  }
 0x2f1   : > { %13473 = vmatpush2.bf16.msra.mxu0 %v18642_v29  ;;  %v18678_v29 = vld [vmem:[%s21294_s13 + $0x2500] ss:$16 sps:$4 sm:$0xff]  }
 0x2f2   : > { %13514 = vmatpush2.bf16.msra.mxu1 %v18645_v30  ;;  %13474 = vmatprep.subr.bf16.mxu0 %v18650_v23  ;;  %v18681_v30 = vld [vmem:[%s21294_s13 + $0x2700] ss:$16 sps:$4 sm:$0xff]  }
 0x2f3   : > { %13515 = vmatprep.subr.bf16.mxu1 %v18653_v31  ;;  %v336_v23 = vld [vmem:[%s21286_s9 + $0x120] sm:$0xff]  ;;  %v338_v31 = vld [vmem:[%s21286_s9 + $0x130] sm:$0xff] }
 0x2f5   : > { %13475 = vmatpush2.bf16.msra.mxu0 %v18648_v37  ;;  %v18686_v37 = vld [vmem:[%s21294_s13 + $0x28e4] ss:$16 sps:$4 sm:$0xff]  }
 0x2f6   : > { %13516 = vmatpush2.bf16.msra.mxu1 %v18651_v38  ;;  %13476 = vmatprep.subr.bf16.mxu0 %v18656_v21  ;;  %v18689_v38 = vld [vmem:[%s21294_s13 + $0x2ae4] ss:$16 sps:$4 sm:$0xff]   ;;  %v22140_v21 = vpack.c.bf16 %v336_v23, %v336_v23 }
 0x2f7   : > { %13517 = vmatprep.subr.bf16.mxu1 %v18659_v39  ;;  %v22142_v39 = vpack.c.bf16 %v338_v31, %v338_v31  ;;  %v18696_v31 = vld [vmem:[%s21294_s13 + $0x28a0] ss:$16 sps:$4 sm:$0xff]  }
 0x2f9   : > { %13477 = vmatpush2.bf16.msra.mxu0 %v18654_v27  ;;  %v341_v27 = vld [vmem:[%s21286_s9 + $0x148] sm:$0xff] }
 0x2fa   : > { %13518 = vmatpush2.bf16.msra.mxu1 %v18657_v45  ;;  %13478 = vmatprep.subr.bf16.mxu0 %v18662_v58  ;;  %v343_v45 = vld [vmem:[%s21286_s9 + $0x158] sm:$0xff]  ;;  %v18684_v58 = vld [vmem:[%s21294_s13 + $0x28e0] ss:$16 sps:$4 sm:$0xff]  }
 0x2fb   : > { %13519 = vmatprep.subr.bf16.mxu1 %v18665_v59  ;;  %v18687_v59 = vld [vmem:[%s21294_s13 + $0x2ae0] ss:$16 sps:$4 sm:$0xff]  }
 0x2fd   : > { %13479 = vmatpush2.bf16.msra.mxu0 %v18660_v60  ;;  %v18692_v60 = vld [vmem:[%s21294_s13 + $0x28c4] ss:$16 sps:$4 sm:$0xff]  }
 0x2fe   : > { %13520 = vmatpush2.bf16.msra.mxu1 %v18663_v61  ;;  %13480 = vmatprep.subr.bf16.mxu0 %v18668_v62  ;;  %v18695_v61 = vld [vmem:[%s21294_s13 + $0x2ac4] ss:$16 sps:$4 sm:$0xff]   ;;  %v18690_v62 = vld [vmem:[%s21294_s13 + $0x28c0] ss:$16 sps:$4 sm:$0xff]  }
 0x2ff   : > { %13521 = vmatprep.subr.bf16.mxu1 %v18671_v8  ;;  %v18693_v8 = vld [vmem:[%s21294_s13 + $0x2ac0] ss:$16 sps:$4 sm:$0xff]  }
 0x301   : > { %13481 = vmatpush2.bf16.msra.mxu0 %v18666_v10  ;;  %v22152_v10 = vpack.c.bf16 %v341_v27, %v341_v27 }
 0x302   : > { %13522 = vmatpush2.bf16.msra.mxu1 %v18669_v11  ;;  %13482 = vmatprep.subr.bf16.mxu0 %v18674_v9  ;;  %v22154_v11 = vpack.c.bf16 %v343_v45, %v343_v45 }
 0x303   : > { %13523 = vmatprep.subr.bf16.mxu1 %v18677_v16 }
 0x305   : > { %13483 = vmatpush2.bf16.msra.mxu0 %v18672_v18 }
 0x306   : > { %13524 = vmatpush2.bf16.msra.mxu1 %v18675_v20  ;;  %13484 = vmatprep.subr.bf16.mxu0 %v18680_v19 }
 0x307   : > { %13525 = vmatprep.subr.bf16.mxu1 %v18683_v17  ;;  %v18698_v17 = vld [vmem:[%s21294_s13 + $0x28a4] ss:$16 sps:$4 sm:$0xff]  }
 0x309   : > { %13485 = vmatpush2.bf16.msra.mxu0 %v18678_v29  ;;  %v18701_v29 = vld [vmem:[%s21294_s13 + $0x2aa4] ss:$16 sps:$4 sm:$0xff]  }
 0x30a   : > { %13526 = vmatpush2.bf16.msra.mxu1 %v18681_v30  ;;  %13536 = vmatprep.subr.bf16.mxu0 %v18686_v37  ;;  %v18699_v37 = vld [vmem:[%s21294_s13 + $0x2aa0] ss:$16 sps:$4 sm:$0xff]  }
 0x30b   : > { %13577 = vmatprep.subr.bf16.mxu1 %v18689_v38 }
 0x30c   : > { %v13242_v9 = vpop.f32.mrf.mxu0  ;;  %13487 = vmatmul.mubr.bf16.vlgmr.msra.gmra.mxu0 %v22140_v21 }
 0x30d   : > { %v13283_v16 = vpop.f32.mrf.mxu1  ;;  %13528 = vmatmul.mubr.bf16.vlgmr.msra.gmra.mxu1 %v22142_v39  ;;  %v13243_v18 = vadd.f32 %v13242_v9, %v22075_v63  ;;  %13537 = vmatpush1.bf16.msra.mxu0 %v18684_v58  ;;  %v18708_v9 = vld [vmem:[%s21294_s13 + $0x2860] ss:$16 sps:$4 sm:$0xff]  }
 0x30e   : > { %13578 = vmatpush1.bf16.msra.mxu1 %v18687_v59  ;;  %v13244_v20 = vpop.f32.mrf.mxu0  ;;  %13538 = vmatprep.subr.bf16.mxu0 %v18692_v60  ;;  %v18707_v59 = vld [vmem:[%s21294_s13 + $0x2a84] ss:$16 sps:$4 sm:$0xff]   ;;  %v18702_v60 = vld [vmem:[%s21294_s13 + $0x2880] ss:$16 sps:$4 sm:$0xff]  }
 0x30f   : > { %v13285_v19 = vpop.f32.mrf.mxu1  ;;  %13579 = vmatprep.subr.bf16.mxu1 %v18695_v61  ;;  %v22161_v30 = vadd.f32 %v13283_v16, %v13243_v18  ;;  %v13245_v23 = vadd.f32 %v13244_v20, %v22082_v34  ;;  %13568 = vmatprep.mubr.bf16.mxu0 %v22152_v10  ;;  %v18704_v34 = vld [vmem:[%s21294_s13 + $0x2884] ss:$16 sps:$4 sm:$0xff]   ;;  %v18705_v61 = vld [vmem:[%s21294_s13 + $0x2a80] ss:$16 sps:$4 sm:$0xff]  }
 0x310   : > { %13609 = vmatprep.mubr.bf16.mxu1 %v22154_v11  ;;  %v13246_v63 = vpop.f32.mrf.mxu0  ;;  %v18711_v16 = vld [vmem:[%s21294_s13 + $0x2a60] ss:$16 sps:$4 sm:$0xff]   ;;  %v18716_v18 = vld [vmem:[%s21294_s13 + $0x2844] ss:$16 sps:$4 sm:$0xff]  }
 0x311   : > { %v13287_v38 = vpop.f32.mrf.mxu1  ;;  %v22168_v27 = vadd.f32 %v13285_v19, %v13245_v23  ;;  %13539 = vmatpush1.bf16.msra.mxu0 %v18690_v62  ;;  %v18710_v62 = vld [vmem:[%s21294_s13 + $0x2864] ss:$16 sps:$4 sm:$0xff]   ;;  %v18714_v19 = vld [vmem:[%s21294_s13 + $0x2840] ss:$16 sps:$4 sm:$0xff]  }
 0x312   : > { %13580 = vmatpush1.bf16.msra.mxu1 %v18693_v8  ;;  %v13247_v45 = vpop.f32.mrf.mxu0  ;;  %13540 = vmatprep.subr.bf16.mxu0 %v18698_v17  ;;  %v18713_v8 = vld [vmem:[%s21294_s13 + $0x2a64] ss:$16 sps:$4 sm:$0xff]   ;;  %v18717_v17 = vld [vmem:[%s21294_s13 + $0x2a40] ss:$16 sps:$4 sm:$0xff]  }
 0x313   : > { %v13288_v58 = vpop.f32.mrf.mxu1  ;;  %13581 = vmatprep.subr.bf16.mxu1 %v18701_v29  ;;  %v18719_v20 = vld [vmem:[%s21294_s13 + $0x2a44] ss:$16 sps:$4 sm:$0xff]   ;;  %v18726_v45 = vld [vmem:[%s21294_s13 + $0x2800] ss:$16 sps:$4 sm:$0xff]  }
 0x314   : > { %v18722_v29 = vld [vmem:[%s21294_s13 + $0x2824] ss:$16 sps:$4 sm:$0xff]   ;;  %v18729_v58 = vld [vmem:[%s21294_s13 + $0x2a00] ss:$16 sps:$4 sm:$0xff]  }
 0x315   : > { %13541 = vmatpush1.bf16.msra.mxu0 %v18696_v31  ;;  %v18725_v23 = vld [vmem:[%s21294_s13 + $0x2a24] ss:$16 sps:$4 sm:$0xff]   ;;  %v18720_v31 = vld [vmem:[%s21294_s13 + $0x2820] ss:$16 sps:$4 sm:$0xff]  }
 0x316   : > { %13582 = vmatpush1.bf16.msra.mxu1 %v18699_v37  ;;  %13542 = vmatprep.subr.bf16.mxu0 %v18704_v34  ;;  %v18723_v37 = vld [vmem:[%s21294_s13 + $0x2a20] ss:$16 sps:$4 sm:$0xff]   ;;  %v18728_v63 = vld [vmem:[%s21294_s13 + $0x2804] ss:$16 sps:$4 sm:$0xff]  }
 0x317   : > { %13583 = vmatprep.subr.bf16.mxu1 %v18707_v59  ;;  %v18731_v38 = vld [vmem:[%s21294_s13 + $0x2a04] ss:$16 sps:$4 sm:$0xff]  }
 0x318   : > { %v18734_v34 = vld [vmem:[%s21294_s13 + $0x29e4] ss:$16 sps:$4 sm:$0xff]  }
 0x319   : > { %13543 = vmatpush1.bf16.msra.mxu0 %v18702_v60  ;;  %v18737_v59 = vld [vmem:[%s21294_s13 + $0x2be4] ss:$16 sps:$4 sm:$0xff]   ;;  %v18732_v60 = vld [vmem:[%s21294_s13 + $0x29e0] ss:$16 sps:$4 sm:$0xff]  }
 0x31a   : > { %13584 = vmatpush1.bf16.msra.mxu1 %v18705_v61  ;;  %13544 = vmatprep.subr.bf16.mxu0 %v18710_v62  ;;  %v18735_v61 = vld [vmem:[%s21294_s13 + $0x2be0] ss:$16 sps:$4 sm:$0xff]   ;;  %v18740_v62 = vld [vmem:[%s21294_s13 + $0x29c4] ss:$16 sps:$4 sm:$0xff]  }
 0x31b   : > { %13585 = vmatprep.subr.bf16.mxu1 %v18713_v8  ;;  %v18743_v8 = vld [vmem:[%s21294_s13 + $0x2bc4] ss:$16 sps:$4 sm:$0xff]  }
 0x31d   : > { %13545 = vmatpush1.bf16.msra.mxu0 %v18708_v9  ;;  %v18738_v9 = vld [vmem:[%s21294_s13 + $0x29c0] ss:$16 sps:$4 sm:$0xff]  }
 0x31e   : > { %13586 = vmatpush1.bf16.msra.mxu1 %v18711_v16  ;;  %13546 = vmatprep.subr.bf16.mxu0 %v18716_v18  ;;  %v18741_v16 = vld [vmem:[%s21294_s13 + $0x2bc0] ss:$16 sps:$4 sm:$0xff]   ;;  %v18746_v18 = vld [vmem:[%s21294_s13 + $0x29a4] ss:$16 sps:$4 sm:$0xff]  }
 0x31f   : > { %13587 = vmatprep.subr.bf16.mxu1 %v18719_v20  ;;  %v18749_v20 = vld [vmem:[%s21294_s13 + $0x2ba4] ss:$16 sps:$4 sm:$0xff]  }
 0x321   : > { %13547 = vmatpush1.bf16.msra.mxu0 %v18714_v19  ;;  %v18744_v19 = vld [vmem:[%s21294_s13 + $0x29a0] ss:$16 sps:$4 sm:$0xff]  }
 0x322   : > { %13588 = vmatpush1.bf16.msra.mxu1 %v18717_v17  ;;  %13548 = vmatprep.subr.bf16.mxu0 %v18722_v29  ;;  %v18747_v17 = vld [vmem:[%s21294_s13 + $0x2ba0] ss:$16 sps:$4 sm:$0xff]   ;;  %v18752_v29 = vld [vmem:[%s21294_s13 + $0x2984] ss:$16 sps:$4 sm:$0xff]  }
 0x323   : > { %13589 = vmatprep.subr.bf16.mxu1 %v18725_v23  ;;  %v18755_v23 = vld [vmem:[%s21294_s13 + $0x2b84] ss:$16 sps:$4 sm:$0xff]  }
 0x325   : > { %13549 = vmatpush1.bf16.msra.mxu0 %v18720_v31  ;;  %v18750_v31 = vld [vmem:[%s21294_s13 + $0x2980] ss:$16 sps:$4 sm:$0xff]  }
 0x326   : > { %13590 = vmatpush1.bf16.msra.mxu1 %v18723_v37  ;;  %13550 = vmatprep.subr.bf16.mxu0 %v18728_v63  ;;  %v18753_v37 = vld [vmem:[%s21294_s13 + $0x2b80] ss:$16 sps:$4 sm:$0xff]   ;;  %v18758_v63 = vld [vmem:[%s21294_s13 + $0x2964] ss:$16 sps:$4 sm:$0xff]  }
 0x327   : > { %13591 = vmatprep.subr.bf16.mxu1 %v18731_v38  ;;  %v18761_v38 = vld [vmem:[%s21294_s13 + $0x2b64] ss:$16 sps:$4 sm:$0xff]  }
 0x329   : > { %13551 = vmatpush1.bf16.msra.mxu0 %v18726_v45  ;;  %v18756_v45 = vld [vmem:[%s21294_s13 + $0x2960] ss:$16 sps:$4 sm:$0xff]  }
 0x32a   : > { %13592 = vmatpush1.bf16.msra.mxu1 %v18729_v58  ;;  %13552 = vmatprep.subr.bf16.mxu0 %v18734_v34  ;;  %v18759_v58 = vld [vmem:[%s21294_s13 + $0x2b60] ss:$16 sps:$4 sm:$0xff]   ;;  %v18764_v34 = vld [vmem:[%s21294_s13 + $0x2944] ss:$16 sps:$4 sm:$0xff]  }
 0x32b   : > { %13593 = vmatprep.subr.bf16.mxu1 %v18737_v59  ;;  %v18767_v59 = vld [vmem:[%s21294_s13 + $0x2b44] ss:$16 sps:$4 sm:$0xff]  }
 0x32d   : > { %13553 = vmatpush2.bf16.msra.mxu0 %v18732_v60  ;;  %v18762_v60 = vld [vmem:[%s21294_s13 + $0x2940] ss:$16 sps:$4 sm:$0xff]  }
 0x32e   : > { %13594 = vmatpush2.bf16.msra.mxu1 %v18735_v61  ;;  %13554 = vmatprep.subr.bf16.mxu0 %v18740_v62  ;;  %v18765_v61 = vld [vmem:[%s21294_s13 + $0x2b40] ss:$16 sps:$4 sm:$0xff]   ;;  %v18770_v62 = vld [vmem:[%s21294_s13 + $0x2924] ss:$16 sps:$4 sm:$0xff]  }
 0x32f   : > { %13595 = vmatprep.subr.bf16.mxu1 %v18743_v8  ;;  %v18773_v8 = vld [vmem:[%s21294_s13 + $0x2b24] ss:$16 sps:$4 sm:$0xff]  }
 0x331   : > { %13555 = vmatpush2.bf16.msra.mxu0 %v18738_v9  ;;  %v18768_v9 = vld [vmem:[%s21294_s13 + $0x2920] ss:$16 sps:$4 sm:$0xff]  }
 0x332   : > { %13596 = vmatpush2.bf16.msra.mxu1 %v18741_v16  ;;  %13556 = vmatprep.subr.bf16.mxu0 %v18746_v18  ;;  %v18771_v16 = vld [vmem:[%s21294_s13 + $0x2b20] ss:$16 sps:$4 sm:$0xff]   ;;  %v18776_v18 = vld [vmem:[%s21294_s13 + $0x2904] ss:$16 sps:$4 sm:$0xff]  }
 0x333   : > { %13597 = vmatprep.subr.bf16.mxu1 %v18749_v20  ;;  %v18779_v20 = vld [vmem:[%s21294_s13 + $0x2b04] ss:$16 sps:$4 sm:$0xff]  }
 0x335   : > { %13557 = vmatpush2.bf16.msra.mxu0 %v18744_v19  ;;  %v18774_v19 = vld [vmem:[%s21294_s13 + $0x2900] ss:$16 sps:$4 sm:$0xff]  }
 0x336   : > { %13598 = vmatpush2.bf16.msra.mxu1 %v18747_v17  ;;  %13558 = vmatprep.subr.bf16.mxu0 %v18752_v29  ;;  %v18777_v17 = vld [vmem:[%s21294_s13 + $0x2b00] ss:$16 sps:$4 sm:$0xff]  }
 0x337   : > { %13599 = vmatprep.subr.bf16.mxu1 %v18755_v23  ;;  %v340_v29 = vld [vmem:[%s21286_s9 + $0x140] sm:$0xff]  ;;  %v342_v23 = vld [vmem:[%s21286_s9 + $0x150] sm:$0xff] }
 0x339   : > { %13559 = vmatpush2.bf16.msra.mxu0 %v18750_v31  ;;  %v18782_v31 = vld [vmem:[%s21294_s13 + $0x2ce4] ss:$16 sps:$4 sm:$0xff]  }
 0x33a   : > { %13600 = vmatpush2.bf16.msra.mxu1 %v18753_v37  ;;  %13560 = vmatprep.subr.bf16.mxu0 %v18758_v63  ;;  %v18785_v37 = vld [vmem:[%s21294_s13 + $0x2ee4] ss:$16 sps:$4 sm:$0xff]   ;;  %v22226_v63 = vpack.c.bf16 %v340_v29, %v340_v29 }
 0x33b   : > { %13601 = vmatprep.subr.bf16.mxu1 %v18761_v38  ;;  %v22228_v38 = vpack.c.bf16 %v342_v23, %v342_v23  ;;  %v18794_v23 = vld [vmem:[%s21294_s13 + $0x2ca4] ss:$16 sps:$4 sm:$0xff]  }
 0x33c   : > { %23979 = vst [vmem:[#allocation20_spill] sm:$0xff] %v22226_v63 }
 0x33d   : > { %13561 = vmatpush2.bf16.msra.mxu0 %v18756_v45  ;;  %23980 = vst [vmem:[#allocation21_spill] sm:$0xff] %v22228_v38  ;;  %v345_v45 = vld [vmem:[%s21286_s9 + $0x168] sm:$0xff] }
 0x33e   : > { %13602 = vmatpush2.bf16.msra.mxu1 %v18759_v58  ;;  %13562 = vmatprep.subr.bf16.mxu0 %v18764_v34  ;;  %v347_v58 = vld [vmem:[%s21286_s9 + $0x178] sm:$0xff]  ;;  %v18780_v34 = vld [vmem:[%s21294_s13 + $0x2ce0] ss:$16 sps:$4 sm:$0xff]  }
 0x33f   : > { %13603 = vmatprep.subr.bf16.mxu1 %v18767_v59  ;;  %v18783_v59 = vld [vmem:[%s21294_s13 + $0x2ee0] ss:$16 sps:$4 sm:$0xff]  }
 0x341   : > { %13563 = vmatpush2.bf16.msra.mxu0 %v18762_v60  ;;  %v18788_v60 = vld [vmem:[%s21294_s13 + $0x2cc4] ss:$16 sps:$4 sm:$0xff]  }
 0x342   : > { %13604 = vmatpush2.bf16.msra.mxu1 %v18765_v61  ;;  %13564 = vmatprep.subr.bf16.mxu0 %v18770_v62  ;;  %v18791_v61 = vld [vmem:[%s21294_s13 + $0x2ec4] ss:$16 sps:$4 sm:$0xff]   ;;  %v18786_v62 = vld [vmem:[%s21294_s13 + $0x2cc0] ss:$16 sps:$4 sm:$0xff]  }
 0x343   : > { %13605 = vmatprep.subr.bf16.mxu1 %v18773_v8  ;;  %v18789_v8 = vld [vmem:[%s21294_s13 + $0x2ec0] ss:$16 sps:$4 sm:$0xff]  }
 0x345   : > { %13565 = vmatpush2.bf16.msra.mxu0 %v18768_v9  ;;  %v22238_v9 = vpack.c.bf16 %v345_v45, %v345_v45 }
 0x346   : > { %13606 = vmatpush2.bf16.msra.mxu1 %v18771_v16  ;;  %13566 = vmatprep.subr.bf16.mxu0 %v18776_v18  ;;  %v22240_v16 = vpack.c.bf16 %v347_v58, %v347_v58  ;;  %v18792_v58 = vld [vmem:[%s21294_s13 + $0x2ca0] ss:$16 sps:$4 sm:$0xff]  }
 0x347   : > { %13607 = vmatprep.subr.bf16.mxu1 %v18779_v20  ;;  %23981 = vst [vmem:[#allocation22_spill] sm:$0xff] %v22238_v9 }
 0x348   : > { %23982 = vst [vmem:[#allocation23_spill] sm:$0xff] %v22240_v16 }
 0x349   : > { %13567 = vmatpush2.bf16.msra.mxu0 %v18774_v19 }
 0x34a   : > { %13608 = vmatpush2.bf16.msra.mxu1 %v18777_v17  ;;  %13618 = vmatprep.subr.bf16.mxu0 %v18782_v31  ;;  %v18797_v31 = vld [vmem:[%s21294_s13 + $0x2ea4] ss:$16 sps:$4 sm:$0xff]  }
 0x34b   : > { %13659 = vmatprep.subr.bf16.mxu1 %v18785_v37 }
 0x34c   : > { %v13324_v18 = vpop.f32.mrf.mxu0  ;;  %13569 = vmatmul.mubr.bf16.vlgmr.msra.gmra.mxu0 %v22226_v63  ;;  %v18795_v63 = vld [vmem:[%s21294_s13 + $0x2ea0] ss:$16 sps:$4 sm:$0xff]  }
 0x34d   : > { %v13365_v20 = vpop.f32.mrf.mxu1  ;;  %13610 = vmatmul.mubr.bf16.vlgmr.msra.gmra.mxu1 %v22228_v38  ;;  %v13325_v19 = vadd.f32 %v13324_v18, %v22161_v30  ;;  %13619 = vmatpush1.bf16.msra.mxu0 %v18780_v34  ;;  %v18803_v18 = vld [vmem:[%s21294_s13 + $0x2e84] ss:$16 sps:$4 sm:$0xff]   ;;  %v18888_v38 = vld [vmem:[%s21294_s13 + $0x30a0] ss:$16 sps:$4 sm:$0xff]  }
 0x34e   : > { %13660 = vmatpush1.bf16.msra.mxu1 %v18783_v59  ;;  %v13326_v17 = vpop.f32.mrf.mxu0  ;;  %13620 = vmatprep.subr.bf16.mxu0 %v18788_v60 }
 0x34f   : > { %v13367_v29 = vpop.f32.mrf.mxu1  ;;  %13661 = vmatprep.subr.bf16.mxu1 %v18791_v61  ;;  %v22247_v37 = vadd.f32 %v13365_v20, %v13325_v19  ;;  %v13327_v45 = vadd.f32 %v13326_v17, %v22168_v27  ;;  %13650 = vmatprep.mubr.bf16.mxu0 %v22238_v9  ;;  %v18800_v27 = vld [vmem:[%s21294_s13 + $0x2c84] ss:$16 sps:$4 sm:$0xff]   ;;  %v18798_v20 = vld [vmem:[%s21294_s13 + $0x2c80] ss:$16 sps:$4 sm:$0xff]  }
 0x350   : > { %13691 = vmatprep.mubr.bf16.mxu1 %v22240_v16  ;;  %v13328_v30 = vpop.f32.mrf.mxu0  ;;  %v18801_v19 = vld [vmem:[%s21294_s13 + $0x2e80] ss:$16 sps:$4 sm:$0xff]  }
 0x351   : > { %v13369_v34 = vpop.f32.mrf.mxu1  ;;  %v22254_v59 = vadd.f32 %v13367_v29, %v13327_v45  ;;  %13621 = vmatpush1.bf16.msra.mxu0 %v18786_v62  ;;  %v18806_v62 = vld [vmem:[%s21294_s13 + $0x2c64] ss:$16 sps:$4 sm:$0xff]   ;;  %v18804_v17 = vld [vmem:[%s21294_s13 + $0x2c60] ss:$16 sps:$4 sm:$0xff]  }
 0x352   : > { %13662 = vmatpush1.bf16.msra.mxu1 %v18789_v8  ;;  %v13329_v60 = vpop.f32.mrf.mxu0  ;;  %13622 = vmatprep.subr.bf16.mxu0 %v18794_v23  ;;  %v18809_v8 = vld [vmem:[%s21294_s13 + $0x2e64] ss:$16 sps:$4 sm:$0xff]   ;;  %v18807_v29 = vld [vmem:[%s21294_s13 + $0x2e60] ss:$16 sps:$4 sm:$0xff]  }
 0x353   : > { %v13370_v61 = vpop.f32.mrf.mxu1  ;;  %13663 = vmatprep.subr.bf16.mxu1 %v18797_v31  ;;  %v18812_v23 = vld [vmem:[%s21294_s13 + $0x2c44] ss:$16 sps:$4 sm:$0xff]   ;;  %v18810_v31 = vld [vmem:[%s21294_s13 + $0x2c40] ss:$16 sps:$4 sm:$0xff]  }
 0x354   : > { %v18813_v45 = vld [vmem:[%s21294_s13 + $0x2e40] ss:$16 sps:$4 sm:$0xff]   ;;  %v18821_v30 = vld [vmem:[%s21294_s13 + $0x2e24] ss:$16 sps:$4 sm:$0xff]  }
 0x355   : > { %13623 = vmatpush1.bf16.msra.mxu0 %v18792_v58  ;;  %v18818_v58 = vld [vmem:[%s21294_s13 + $0x2c24] ss:$16 sps:$4 sm:$0xff]   ;;  %v18816_v34 = vld [vmem:[%s21294_s13 + $0x2c20] ss:$16 sps:$4 sm:$0xff]  }
 0x356   : > { %13664 = vmatpush1.bf16.msra.mxu1 %v18795_v63  ;;  %13624 = vmatprep.subr.bf16.mxu0 %v18800_v27  ;;  %v18815_v63 = vld [vmem:[%s21294_s13 + $0x2e44] ss:$16 sps:$4 sm:$0xff]   ;;  %v18819_v60 = vld [vmem:[%s21294_s13 + $0x2e20] ss:$16 sps:$4 sm:$0xff]  }
 0x357   : > { %13665 = vmatprep.subr.bf16.mxu1 %v18803_v18  ;;  %v18824_v61 = vld [vmem:[%s21294_s13 + $0x2c04] ss:$16 sps:$4 sm:$0xff]   ;;  %v18822_v18 = vld [vmem:[%s21294_s13 + $0x2c00] ss:$16 sps:$4 sm:$0xff]  }
 0x358   : > { %v18827_v27 = vld [vmem:[%s21294_s13 + $0x2e04] ss:$16 sps:$4 sm:$0xff]  }
 0x359   : > { %13625 = vmatpush1.bf16.msra.mxu0 %v18798_v20  ;;  %v18825_v20 = vld [vmem:[%s21294_s13 + $0x2e00] ss:$16 sps:$4 sm:$0xff]  }
 0x35a   : > { %13666 = vmatpush1.bf16.msra.mxu1 %v18801_v19  ;;  %13626 = vmatprep.subr.bf16.mxu0 %v18806_v62  ;;  %v18830_v19 = vld [vmem:[%s21294_s13 + $0x2de4] ss:$16 sps:$4 sm:$0xff]  }
 0x35b   : > { %13667 = vmatprep.subr.bf16.mxu1 %v18809_v8  ;;  %v18833_v62 = vld [vmem:[%s21294_s13 + $0x2fe4] ss:$16 sps:$4 sm:$0xff]   ;;  %v18828_v8 = vld [vmem:[%s21294_s13 + $0x2de0] ss:$16 sps:$4 sm:$0xff]  }
 0x35d   : > { %13627 = vmatpush1.bf16.msra.mxu0 %v18804_v17  ;;  %v18831_v17 = vld [vmem:[%s21294_s13 + $0x2fe0] ss:$16 sps:$4 sm:$0xff]  }
 0x35e   : > { %13668 = vmatpush1.bf16.msra.mxu1 %v18807_v29  ;;  %13628 = vmatprep.subr.bf16.mxu0 %v18812_v23  ;;  %v18836_v29 = vld [vmem:[%s21294_s13 + $0x2dc4] ss:$16 sps:$4 sm:$0xff]  }
 0x35f   : > { %13669 = vmatprep.subr.bf16.mxu1 %v18815_v63  ;;  %v18839_v23 = vld [vmem:[%s21294_s13 + $0x2fc4] ss:$16 sps:$4 sm:$0xff]   ;;  %v18834_v63 = vld [vmem:[%s21294_s13 + $0x2dc0] ss:$16 sps:$4 sm:$0xff]  }
 0x361   : > { %13629 = vmatpush1.bf16.msra.mxu0 %v18810_v31  ;;  %v18837_v31 = vld [vmem:[%s21294_s13 + $0x2fc0] ss:$16 sps:$4 sm:$0xff]  }
 0x362   : > { %13670 = vmatpush1.bf16.msra.mxu1 %v18813_v45  ;;  %13630 = vmatprep.subr.bf16.mxu0 %v18818_v58  ;;  %v18842_v45 = vld [vmem:[%s21294_s13 + $0x2da4] ss:$16 sps:$4 sm:$0xff]  }
 0x363   : > { %13671 = vmatprep.subr.bf16.mxu1 %v18821_v30  ;;  %v18845_v58 = vld [vmem:[%s21294_s13 + $0x2fa4] ss:$16 sps:$4 sm:$0xff]   ;;  %v18840_v30 = vld [vmem:[%s21294_s13 + $0x2da0] ss:$16 sps:$4 sm:$0xff]  }
 0x365   : > { %13631 = vmatpush1.bf16.msra.mxu0 %v18816_v34  ;;  %v18843_v34 = vld [vmem:[%s21294_s13 + $0x2fa0] ss:$16 sps:$4 sm:$0xff]  }
 0x366   : > { %13672 = vmatpush1.bf16.msra.mxu1 %v18819_v60  ;;  %13632 = vmatprep.subr.bf16.mxu0 %v18824_v61  ;;  %v18848_v60 = vld [vmem:[%s21294_s13 + $0x2d84] ss:$16 sps:$4 sm:$0xff]  }
 0x367   : > { %13673 = vmatprep.subr.bf16.mxu1 %v18827_v27  ;;  %v18851_v61 = vld [vmem:[%s21294_s13 + $0x2f84] ss:$16 sps:$4 sm:$0xff]   ;;  %v18846_v27 = vld [vmem:[%s21294_s13 + $0x2d80] ss:$16 sps:$4 sm:$0xff]  }
 0x369   : > { %13633 = vmatpush1.bf16.msra.mxu0 %v18822_v18  ;;  %v18849_v18 = vld [vmem:[%s21294_s13 + $0x2f80] ss:$16 sps:$4 sm:$0xff]  }
 0x36a   : > { %13674 = vmatpush1.bf16.msra.mxu1 %v18825_v20  ;;  %13634 = vmatprep.subr.bf16.mxu0 %v18830_v19  ;;  %v18854_v20 = vld [vmem:[%s21294_s13 + $0x2d64] ss:$16 sps:$4 sm:$0xff]  }
 0x36b   : > { %13675 = vmatprep.subr.bf16.mxu1 %v18833_v62  ;;  %v18857_v19 = vld [vmem:[%s21294_s13 + $0x2f64] ss:$16 sps:$4 sm:$0xff]   ;;  %v18852_v62 = vld [vmem:[%s21294_s13 + $0x2d60] ss:$16 sps:$4 sm:$0xff]  }
 0x36d   : > { %13635 = vmatpush2.bf16.msra.mxu0 %v18828_v8  ;;  %v18855_v8 = vld [vmem:[%s21294_s13 + $0x2f60] ss:$16 sps:$4 sm:$0xff]  }
 0x36e   : > { %13676 = vmatpush2.bf16.msra.mxu1 %v18831_v17  ;;  %13636 = vmatprep.subr.bf16.mxu0 %v18836_v29  ;;  %v18860_v17 = vld [vmem:[%s21294_s13 + $0x2d44] ss:$16 sps:$4 sm:$0xff]  }
 0x36f   : > { %13677 = vmatprep.subr.bf16.mxu1 %v18839_v23  ;;  %v18863_v29 = vld [vmem:[%s21294_s13 + $0x2f44] ss:$16 sps:$4 sm:$0xff]   ;;  %v18858_v23 = vld [vmem:[%s21294_s13 + $0x2d40] ss:$16 sps:$4 sm:$0xff]  }
 0x371   : > { %13637 = vmatpush2.bf16.msra.mxu0 %v18834_v63  ;;  %v18861_v63 = vld [vmem:[%s21294_s13 + $0x2f40] ss:$16 sps:$4 sm:$0xff]  }
 0x372   : > { %13678 = vmatpush2.bf16.msra.mxu1 %v18837_v31  ;;  %13638 = vmatprep.subr.bf16.mxu0 %v18842_v45  ;;  %v18866_v31 = vld [vmem:[%s21294_s13 + $0x2d24] ss:$16 sps:$4 sm:$0xff]  }
 0x373   : > { %13679 = vmatprep.subr.bf16.mxu1 %v18845_v58  ;;  %v18869_v45 = vld [vmem:[%s21294_s13 + $0x2f24] ss:$16 sps:$4 sm:$0xff]   ;;  %v18864_v58 = vld [vmem:[%s21294_s13 + $0x2d20] ss:$16 sps:$4 sm:$0xff]  }
 0x375   : > { %13639 = vmatpush2.bf16.msra.mxu0 %v18840_v30  ;;  %v18867_v30 = vld [vmem:[%s21294_s13 + $0x2f20] ss:$16 sps:$4 sm:$0xff]  }
 0x376   : > { %13680 = vmatpush2.bf16.msra.mxu1 %v18843_v34  ;;  %13640 = vmatprep.subr.bf16.mxu0 %v18848_v60  ;;  %v18872_v34 = vld [vmem:[%s21294_s13 + $0x2d04] ss:$16 sps:$4 sm:$0xff]  }
 0x377   : > { %13681 = vmatprep.subr.bf16.mxu1 %v18851_v61  ;;  %v18875_v60 = vld [vmem:[%s21294_s13 + $0x2f04] ss:$16 sps:$4 sm:$0xff]   ;;  %v18870_v61 = vld [vmem:[%s21294_s13 + $0x2d00] ss:$16 sps:$4 sm:$0xff]  }
 0x379   : > { %13641 = vmatpush2.bf16.msra.mxu0 %v18846_v27  ;;  %v18873_v27 = vld [vmem:[%s21294_s13 + $0x2f00] ss:$16 sps:$4 sm:$0xff]  }
 0x37a   : > { %13682 = vmatpush2.bf16.msra.mxu1 %v18849_v18  ;;  %13642 = vmatprep.subr.bf16.mxu0 %v18854_v20  ;;  %v344_v18 = vld [vmem:[%s21286_s9 + $0x160] sm:$0xff]  ;;  %v346_v20 = vld [vmem:[%s21286_s9 + $0x170] sm:$0xff] }
 0x37b   : > { %13683 = vmatprep.subr.bf16.mxu1 %v18857_v19  ;;  %v18878_v19 = vld [vmem:[%s21294_s13 + $0x30e4] ss:$16 sps:$4 sm:$0xff]  }
 0x37d   : > { %13643 = vmatpush2.bf16.msra.mxu0 %v18852_v62  ;;  %v18881_v62 = vld [vmem:[%s21294_s13 + $0x32e4] ss:$16 sps:$4 sm:$0xff]  }
 0x37e   : > { %13684 = vmatpush2.bf16.msra.mxu1 %v18855_v8  ;;  %13644 = vmatprep.subr.bf16.mxu0 %v18860_v17  ;;  %v22312_v8 = vpack.c.bf16 %v344_v18, %v344_v18  ;;  %v22314_v17 = vpack.c.bf16 %v346_v20, %v346_v20 }
 0x37f   : > { %13685 = vmatprep.subr.bf16.mxu1 %v18863_v29  ;;  %v349_v29 = vld [vmem:[%s21286_s9 + $0x188] sm:$0xff] }
 0x380   : > { %23983 = vst [vmem:[#allocation24_spill] sm:$0xff] %v22312_v8  ;;  %23984 = vst [vmem:[#allocation25_spill] sm:$0xff] %v22314_v17 }
 0x381   : > { %13645 = vmatpush2.bf16.msra.mxu0 %v18858_v23  ;;  %v351_v23 = vld [vmem:[%s21286_s9 + $0x198] sm:$0xff] }
 0x382   : > { %13686 = vmatpush2.bf16.msra.mxu1 %v18861_v63  ;;  %13646 = vmatprep.subr.bf16.mxu0 %v18866_v31  ;;  %v18876_v63 = vld [vmem:[%s21294_s13 + $0x30e0] ss:$16 sps:$4 sm:$0xff]   ;;  %v22326_v18 = vpack.c.bf16 %v351_v23, %v351_v23 }
 0x383   : > { %13687 = vmatprep.subr.bf16.mxu1 %v18869_v45  ;;  %v18879_v31 = vld [vmem:[%s21294_s13 + $0x32e0] ss:$16 sps:$4 sm:$0xff]   ;;  %v18884_v45 = vld [vmem:[%s21294_s13 + $0x30c4] ss:$16 sps:$4 sm:$0xff]  }
 0x384   : > { %23986 = vst [vmem:[#allocation27_spill] sm:$0xff] %v22326_v18 }
 0x385   : > { %13647 = vmatpush2.bf16.msra.mxu0 %v18864_v58  ;;  %v18887_v58 = vld [vmem:[%s21294_s13 + $0x32c4] ss:$16 sps:$4 sm:$0xff]  }
 0x386   : > { %13688 = vmatpush2.bf16.msra.mxu1 %v18867_v30  ;;  %13648 = vmatprep.subr.bf16.mxu0 %v18872_v34  ;;  %v18882_v30 = vld [vmem:[%s21294_s13 + $0x30c0] ss:$16 sps:$4 sm:$0xff]  }
 0x387   : > { %13689 = vmatprep.subr.bf16.mxu1 %v18875_v60  ;;  %v18885_v34 = vld [vmem:[%s21294_s13 + $0x32c0] ss:$16 sps:$4 sm:$0xff]   ;;  %v22324_v60 = vpack.c.bf16 %v349_v29, %v349_v29  ;;  %v18893_v29 = vld [vmem:[%s21294_s13 + $0x32a4] ss:$16 sps:$4 sm:$0xff]  }
 0x389   : > { %13649 = vmatpush2.bf16.msra.mxu0 %v18870_v61  ;;  %23985 = vst [vmem:[#allocation26_spill] sm:$0xff] %v22324_v60 }
 0x38a   : > { %13690 = vmatpush2.bf16.msra.mxu1 %v18873_v27  ;;  %13700 = vmatprep.subr.bf16.mxu0 %v18878_v19 }
 0x38b   : > { %13741 = vmatprep.subr.bf16.mxu1 %v18881_v62  ;;  %v18890_v62 = vld [vmem:[%s21294_s13 + $0x30a4] ss:$16 sps:$4 sm:$0xff]  }
 0x38c   : > { %v13406_v20 = vpop.f32.mrf.mxu0  ;;  %13651 = vmatmul.mubr.bf16.vlgmr.msra.gmra.mxu0 %v22312_v8  ;;  %v18891_v8 = vld [vmem:[%s21294_s13 + $0x32a0] ss:$16 sps:$4 sm:$0xff]  }
 0x38d   : > { %v13447_v16 = vpop.f32.mrf.mxu1  ;;  %13692 = vmatmul.mubr.bf16.vlgmr.msra.gmra.mxu1 %v22314_v17  ;;  %v13407_v61 = vadd.f32 %v13406_v20, %v22247_v37  ;;  %13701 = vmatpush1.bf16.msra.mxu0 %v18876_v63  ;;  %v18894_v20 = vld [vmem:[%s21294_s13 + $0x3080] ss:$16 sps:$4 sm:$0xff]  }
 0x38e   : > { %13742 = vmatpush1.bf16.msra.mxu1 %v18879_v31  ;;  %v13408_v27 = vpop.f32.mrf.mxu0  ;;  %13702 = vmatprep.subr.bf16.mxu0 %v18884_v45  ;;  %v18984_v17 = vld [vmem:[%s21294_s13 + $0x34a0] ss:$16 sps:$4 sm:$0xff]  }
 0x38f   : > { %v13449_v19 = vpop.f32.mrf.mxu1  ;;  %13743 = vmatprep.subr.bf16.mxu1 %v18887_v58  ;;  %v22333_v23 = vadd.f32 %v13447_v16, %v13407_v61  ;;  %v13409_v9 = vadd.f32 %v13408_v27, %v22254_v59  ;;  %13732 = vmatprep.mubr.bf16.mxu0 %v22324_v60  ;;  %v18896_v59 = vld [vmem:[%s21294_s13 + $0x3084] ss:$16 sps:$4 sm:$0xff]   ;;  %v18897_v61 = vld [vmem:[%s21294_s13 + $0x3280] ss:$16 sps:$4 sm:$0xff]  }
 0x390   : > { %13773 = vmatprep.mubr.bf16.mxu1 %v22326_v18  ;;  %v13410_v37 = vpop.f32.mrf.mxu0  ;;  %v18899_v58 = vld [vmem:[%s21294_s13 + $0x3284] ss:$16 sps:$4 sm:$0xff]   ;;  %v18903_v27 = vld [vmem:[%s21294_s13 + $0x3260] ss:$16 sps:$4 sm:$0xff]  }
 0x391   : > { %v13451_v63 = vpop.f32.mrf.mxu1  ;;  %v22340_v31 = vadd.f32 %v13449_v19, %v13409_v9  ;;  %13703 = vmatpush1.bf16.msra.mxu0 %v18882_v30  ;;  %v18902_v9 = vld [vmem:[%s21294_s13 + $0x3064] ss:$16 sps:$4 sm:$0xff]   ;;  %v18906_v19 = vld [vmem:[%s21294_s13 + $0x3040] ss:$16 sps:$4 sm:$0xff]  }
 0x392   : > { %13744 = vmatpush1.bf16.msra.mxu1 %v18885_v34  ;;  %v13411_v16 = vpop.f32.mrf.mxu0  ;;  %13704 = vmatprep.subr.bf16.mxu0 %v18890_v62  ;;  %v18905_v30 = vld [vmem:[%s21294_s13 + $0x3264] ss:$16 sps:$4 sm:$0xff]   ;;  %v18900_v34 = vld [vmem:[%s21294_s13 + $0x3060] ss:$16 sps:$4 sm:$0xff]  }
 0x393   : > { %v13452_v45 = vpop.f32.mrf.mxu1  ;;  %13745 = vmatprep.subr.bf16.mxu1 %v18893_v29  ;;  %v18909_v62 = vld [vmem:[%s21294_s13 + $0x3240] ss:$16 sps:$4 sm:$0xff]   ;;  %v18914_v29 = vld [vmem:[%s21294_s13 + $0x3024] ss:$16 sps:$4 sm:$0xff]  }
 0x394   : > { %v18917_v37 = vld [vmem:[%s21294_s13 + $0x3224] ss:$16 sps:$4 sm:$0xff]   ;;  %v18912_v63 = vld [vmem:[%s21294_s13 + $0x3020] ss:$16 sps:$4 sm:$0xff]  }
 0x395   : > { %13705 = vmatpush1.bf16.msra.mxu0 %v18888_v38  ;;  %v18908_v38 = vld [vmem:[%s21294_s13 + $0x3044] ss:$16 sps:$4 sm:$0xff]   ;;  %v18915_v16 = vld [vmem:[%s21294_s13 + $0x3220] ss:$16 sps:$4 sm:$0xff]  }
 0x396   : > { %13746 = vmatpush1.bf16.msra.mxu1 %v18891_v8  ;;  %13706 = vmatprep.subr.bf16.mxu0 %v18896_v59  ;;  %v18911_v8 = vld [vmem:[%s21294_s13 + $0x3244] ss:$16 sps:$4 sm:$0xff]  }
 0x397   : > { %13747 = vmatprep.subr.bf16.mxu1 %v18899_v58  ;;  %v18920_v45 = vld [vmem:[%s21294_s13 + $0x3004] ss:$16 sps:$4 sm:$0xff]   ;;  %v18918_v58 = vld [vmem:[%s21294_s13 + $0x3000] ss:$16 sps:$4 sm:$0xff]  }
 0x398   : > { %v18923_v59 = vld [vmem:[%s21294_s13 + $0x3204] ss:$16 sps:$4 sm:$0xff]  }
 0x399   : > { %13707 = vmatpush1.bf16.msra.mxu0 %v18894_v20  ;;  %v18921_v20 = vld [vmem:[%s21294_s13 + $0x3200] ss:$16 sps:$4 sm:$0xff]  }
 0x39a   : > { %13748 = vmatpush1.bf16.msra.mxu1 %v18897_v61  ;;  %13708 = vmatprep.subr.bf16.mxu0 %v18902_v9  ;;  %v18926_v61 = vld [vmem:[%s21294_s13 + $0x31e4] ss:$16 sps:$4 sm:$0xff]  }
 0x39b   : > { %13749 = vmatprep.subr.bf16.mxu1 %v18905_v30  ;;  %v18929_v9 = vld [vmem:[%s21294_s13 + $0x33e4] ss:$16 sps:$4 sm:$0xff]   ;;  %v18924_v30 = vld [vmem:[%s21294_s13 + $0x31e0] ss:$16 sps:$4 sm:$0xff]  }
 0x39d   : > { %13709 = vmatpush1.bf16.msra.mxu0 %v18900_v34  ;;  %v18927_v34 = vld [vmem:[%s21294_s13 + $0x33e0] ss:$16 sps:$4 sm:$0xff]  }
 0x39e   : > { %13750 = vmatpush1.bf16.msra.mxu1 %v18903_v27  ;;  %13710 = vmatprep.subr.bf16.mxu0 %v18908_v38  ;;  %v18932_v27 = vld [vmem:[%s21294_s13 + $0x31c4] ss:$16 sps:$4 sm:$0xff]  }
 0x39f   : > { %13751 = vmatprep.subr.bf16.mxu1 %v18911_v8  ;;  %v18935_v38 = vld [vmem:[%s21294_s13 + $0x33c4] ss:$16 sps:$4 sm:$0xff]   ;;  %v18930_v8 = vld [vmem:[%s21294_s13 + $0x31c0] ss:$16 sps:$4 sm:$0xff]  }
 0x3a1   : > { %13711 = vmatpush1.bf16.msra.mxu0 %v18906_v19  ;;  %v18933_v19 = vld [vmem:[%s21294_s13 + $0x33c0] ss:$16 sps:$4 sm:$0xff]  }
 0x3a2   : > { %13752 = vmatpush1.bf16.msra.mxu1 %v18909_v62  ;;  %13712 = vmatprep.subr.bf16.mxu0 %v18914_v29  ;;  %v18938_v62 = vld [vmem:[%s21294_s13 + $0x31a4] ss:$16 sps:$4 sm:$0xff]  }
 0x3a3   : > { %13753 = vmatprep.subr.bf16.mxu1 %v18917_v37  ;;  %v18941_v29 = vld [vmem:[%s21294_s13 + $0x33a4] ss:$16 sps:$4 sm:$0xff]   ;;  %v18936_v37 = vld [vmem:[%s21294_s13 + $0x31a0] ss:$16 sps:$4 sm:$0xff]  }
 0x3a5   : > { %13713 = vmatpush1.bf16.msra.mxu0 %v18912_v63  ;;  %v18939_v63 = vld [vmem:[%s21294_s13 + $0x33a0] ss:$16 sps:$4 sm:$0xff]  }
 0x3a6   : > { %13754 = vmatpush1.bf16.msra.mxu1 %v18915_v16  ;;  %13714 = vmatprep.subr.bf16.mxu0 %v18920_v45  ;;  %v18944_v16 = vld [vmem:[%s21294_s13 + $0x3184] ss:$16 sps:$4 sm:$0xff]  }
 0x3a7   : > { %13755 = vmatprep.subr.bf16.mxu1 %v18923_v59  ;;  %v18947_v45 = vld [vmem:[%s21294_s13 + $0x3384] ss:$16 sps:$4 sm:$0xff]   ;;  %v18942_v59 = vld [vmem:[%s21294_s13 + $0x3180] ss:$16 sps:$4 sm:$0xff]  }
 0x3a9   : > { %13715 = vmatpush1.bf16.msra.mxu0 %v18918_v58  ;;  %v18945_v58 = vld [vmem:[%s21294_s13 + $0x3380] ss:$16 sps:$4 sm:$0xff]  }
 0x3aa   : > { %13756 = vmatpush1.bf16.msra.mxu1 %v18921_v20  ;;  %13716 = vmatprep.subr.bf16.mxu0 %v18926_v61  ;;  %v18950_v20 = vld [vmem:[%s21294_s13 + $0x3164] ss:$16 sps:$4 sm:$0xff]  }
 0x3ab   : > { %13757 = vmatprep.subr.bf16.mxu1 %v18929_v9  ;;  %v18953_v61 = vld [vmem:[%s21294_s13 + $0x3364] ss:$16 sps:$4 sm:$0xff]   ;;  %v18948_v9 = vld [vmem:[%s21294_s13 + $0x3160] ss:$16 sps:$4 sm:$0xff]  }
 0x3ad   : > { %13717 = vmatpush2.bf16.msra.mxu0 %v18924_v30  ;;  %v18951_v30 = vld [vmem:[%s21294_s13 + $0x3360] ss:$16 sps:$4 sm:$0xff]  }
 0x3ae   : > { %13758 = vmatpush2.bf16.msra.mxu1 %v18927_v34  ;;  %13718 = vmatprep.subr.bf16.mxu0 %v18932_v27  ;;  %v18956_v34 = vld [vmem:[%s21294_s13 + $0x3144] ss:$16 sps:$4 sm:$0xff]  }
 0x3af   : > { %13759 = vmatprep.subr.bf16.mxu1 %v18935_v38  ;;  %v18959_v27 = vld [vmem:[%s21294_s13 + $0x3344] ss:$16 sps:$4 sm:$0xff]   ;;  %v18954_v38 = vld [vmem:[%s21294_s13 + $0x3140] ss:$16 sps:$4 sm:$0xff]  }
 0x3b1   : > { %13719 = vmatpush2.bf16.msra.mxu0 %v18930_v8  ;;  %v18957_v8 = vld [vmem:[%s21294_s13 + $0x3340] ss:$16 sps:$4 sm:$0xff]  }
 0x3b2   : > { %13760 = vmatpush2.bf16.msra.mxu1 %v18933_v19  ;;  %13720 = vmatprep.subr.bf16.mxu0 %v18938_v62  ;;  %v18962_v19 = vld [vmem:[%s21294_s13 + $0x3124] ss:$16 sps:$4 sm:$0xff]  }
 0x3b3   : > { %13761 = vmatprep.subr.bf16.mxu1 %v18941_v29  ;;  %v18965_v62 = vld [vmem:[%s21294_s13 + $0x3324] ss:$16 sps:$4 sm:$0xff]   ;;  %v18960_v29 = vld [vmem:[%s21294_s13 + $0x3120] ss:$16 sps:$4 sm:$0xff]  }
 0x3b5   : > { %13721 = vmatpush2.bf16.msra.mxu0 %v18936_v37  ;;  %v18963_v37 = vld [vmem:[%s21294_s13 + $0x3320] ss:$16 sps:$4 sm:$0xff]  }
 0x3b6   : > { %13762 = vmatpush2.bf16.msra.mxu1 %v18939_v63  ;;  %13722 = vmatprep.subr.bf16.mxu0 %v18944_v16  ;;  %v18968_v63 = vld [vmem:[%s21294_s13 + $0x3104] ss:$16 sps:$4 sm:$0xff]  }
 0x3b7   : > { %13763 = vmatprep.subr.bf16.mxu1 %v18947_v45  ;;  %v18971_v16 = vld [vmem:[%s21294_s13 + $0x3304] ss:$16 sps:$4 sm:$0xff]   ;;  %v18966_v45 = vld [vmem:[%s21294_s13 + $0x3100] ss:$16 sps:$4 sm:$0xff]  }
 0x3b9   : > { %13723 = vmatpush2.bf16.msra.mxu0 %v18942_v59  ;;  %v18969_v59 = vld [vmem:[%s21294_s13 + $0x3300] ss:$16 sps:$4 sm:$0xff]  }
 0x3ba   : > { %13764 = vmatpush2.bf16.msra.mxu1 %v18945_v58  ;;  %13724 = vmatprep.subr.bf16.mxu0 %v18950_v20  ;;  %v348_v58 = vld [vmem:[%s21286_s9 + $0x180] sm:$0xff]  ;;  %v350_v20 = vld [vmem:[%s21286_s9 + $0x190] sm:$0xff] }
 0x3bb   : > { %13765 = vmatprep.subr.bf16.mxu1 %v18953_v61  ;;  %v18974_v61 = vld [vmem:[%s21294_s13 + $0x34e4] ss:$16 sps:$4 sm:$0xff]  }
 0x3bd   : > { %13725 = vmatpush2.bf16.msra.mxu0 %v18948_v9  ;;  %v18977_v9 = vld [vmem:[%s21294_s13 + $0x36e4] ss:$16 sps:$4 sm:$0xff]  }
 0x3be   : > { %13766 = vmatpush2.bf16.msra.mxu1 %v18951_v30  ;;  %13726 = vmatprep.subr.bf16.mxu0 %v18956_v34  ;;  %v22398_v30 = vpack.c.bf16 %v348_v58, %v348_v58  ;;  %v22400_v34 = vpack.c.bf16 %v350_v20, %v350_v20 }
 0x3bf   : > { %13767 = vmatprep.subr.bf16.mxu1 %v18959_v27  ;;  %v353_v27 = vld [vmem:[%s21286_s9 + $0x1a8] sm:$0xff] }
 0x3c0   : > { %23987 = vst [vmem:[#allocation28_spill] sm:$0xff] %v22398_v30  ;;  %23988 = vst [vmem:[#allocation29_spill] sm:$0xff] %v22400_v34 }
 0x3c1   : > { %13727 = vmatpush2.bf16.msra.mxu0 %v18954_v38  ;;  %v355_v38 = vld [vmem:[%s21286_s9 + $0x1b8] sm:$0xff] }
 0x3c2   : > { %13768 = vmatpush2.bf16.msra.mxu1 %v18957_v8  ;;  %13728 = vmatprep.subr.bf16.mxu0 %v18962_v19  ;;  %v18972_v8 = vld [vmem:[%s21294_s13 + $0x34e0] ss:$16 sps:$4 sm:$0xff]   ;;  %v22412_v58 = vpack.c.bf16 %v355_v38, %v355_v38 }
 0x3c3   : > { %13769 = vmatprep.subr.bf16.mxu1 %v18965_v62  ;;  %v18975_v19 = vld [vmem:[%s21294_s13 + $0x36e0] ss:$16 sps:$4 sm:$0xff]   ;;  %v18980_v62 = vld [vmem:[%s21294_s13 + $0x34c4] ss:$16 sps:$4 sm:$0xff]  }
 0x3c4   : > { %23990 = vst [vmem:[#allocation31_spill] sm:$0xff] %v22412_v58 }
 0x3c5   : > { %13729 = vmatpush2.bf16.msra.mxu0 %v18960_v29  ;;  %v18983_v29 = vld [vmem:[%s21294_s13 + $0x36c4] ss:$16 sps:$4 sm:$0xff]  }
 0x3c6   : > { %13770 = vmatpush2.bf16.msra.mxu1 %v18963_v37  ;;  %13730 = vmatprep.subr.bf16.mxu0 %v18968_v63  ;;  %v18978_v37 = vld [vmem:[%s21294_s13 + $0x34c0] ss:$16 sps:$4 sm:$0xff]  }
 0x3c7   : > { %13771 = vmatprep.subr.bf16.mxu1 %v18971_v16  ;;  %v18981_v63 = vld [vmem:[%s21294_s13 + $0x36c0] ss:$16 sps:$4 sm:$0xff]   ;;  %v22410_v16 = vpack.c.bf16 %v353_v27, %v353_v27  ;;  %v18989_v27 = vld [vmem:[%s21294_s13 + $0x36a4] ss:$16 sps:$4 sm:$0xff]  }
 0x3c9   : > { %13731 = vmatpush2.bf16.msra.mxu0 %v18966_v45  ;;  %23989 = vst [vmem:[#allocation30_spill] sm:$0xff] %v22410_v16 }
 0x3ca   : > { %13772 = vmatpush2.bf16.msra.mxu1 %v18969_v59  ;;  %13782 = vmatprep.subr.bf16.mxu0 %v18974_v61 }
 0x3cb   : > { %13823 = vmatprep.subr.bf16.mxu1 %v18977_v9  ;;  %v18986_v9 = vld [vmem:[%s21294_s13 + $0x34a4] ss:$16 sps:$4 sm:$0xff]  }
 0x3cc   : > { %v13488_v20 = vpop.f32.mrf.mxu0  ;;  %13733 = vmatmul.mubr.bf16.vlgmr.msra.gmra.mxu0 %v22398_v30  ;;  %v18987_v30 = vld [vmem:[%s21294_s13 + $0x36a0] ss:$16 sps:$4 sm:$0xff]  }
 0x3cd   : > { %v13529_v18 = vpop.f32.mrf.mxu1  ;;  %13774 = vmatmul.mubr.bf16.vlgmr.msra.gmra.mxu1 %v22400_v34  ;;  %v13489_v45 = vadd.f32 %v13488_v20, %v22333_v23  ;;  %13783 = vmatpush1.bf16.msra.mxu0 %v18972_v8  ;;  %v18990_v20 = vld [vmem:[%s21294_s13 + $0x3480] ss:$16 sps:$4 sm:$0xff]  }
 0x3ce   : > { %13824 = vmatpush1.bf16.msra.mxu1 %v18975_v19  ;;  %v13490_v59 = vpop.f32.mrf.mxu0  ;;  %13784 = vmatprep.subr.bf16.mxu0 %v18980_v62  ;;  %v19080_v34 = vld [vmem:[%s21294_s13 + $0x38a0] ss:$16 sps:$4 sm:$0xff]  }
 0x3cf   : > { %v13531_v61 = vpop.f32.mrf.mxu1  ;;  %13825 = vmatprep.subr.bf16.mxu1 %v18983_v29  ;;  %v22419_v38 = vadd.f32 %v13529_v18, %v13489_v45  ;;  %v13491_v60 = vadd.f32 %v13490_v59, %v22340_v31  ;;  %13814 = vmatprep.mubr.bf16.mxu0 %v22410_v16  ;;  %v18992_v31 = vld [vmem:[%s21294_s13 + $0x3484] ss:$16 sps:$4 sm:$0xff]   ;;  %v18993_v45 = vld [vmem:[%s21294_s13 + $0x3680] ss:$16 sps:$4 sm:$0xff]  }
 0x3d0   : > { %13855 = vmatprep.mubr.bf16.mxu1 %v22412_v58  ;;  %v13492_v23 = vpop.f32.mrf.mxu0  ;;  %v18995_v29 = vld [vmem:[%s21294_s13 + $0x3684] ss:$16 sps:$4 sm:$0xff]   ;;  %v18999_v59 = vld [vmem:[%s21294_s13 + $0x3660] ss:$16 sps:$4 sm:$0xff]  }
 0x3d1   : > { %v13533_v8 = vpop.f32.mrf.mxu1  ;;  %v22426_v19 = vadd.f32 %v13531_v61, %v13491_v60  ;;  %13785 = vmatpush1.bf16.msra.mxu0 %v18978_v37  ;;  %v18998_v60 = vld [vmem:[%s21294_s13 + $0x3464] ss:$16 sps:$4 sm:$0xff]   ;;  %v19002_v61 = vld [vmem:[%s21294_s13 + $0x3440] ss:$16 sps:$4 sm:$0xff]  }
 0x3d2   : > { %13826 = vmatpush1.bf16.msra.mxu1 %v18981_v63  ;;  %v13493_v18 = vpop.f32.mrf.mxu0  ;;  %13786 = vmatprep.subr.bf16.mxu0 %v18986_v9  ;;  %v19001_v37 = vld [vmem:[%s21294_s13 + $0x3664] ss:$16 sps:$4 sm:$0xff]   ;;  %v18996_v63 = vld [vmem:[%s21294_s13 + $0x3460] ss:$16 sps:$4 sm:$0xff]  }
 0x3d3   : > { %v13534_v62 = vpop.f32.mrf.mxu1  ;;  %13827 = vmatprep.subr.bf16.mxu1 %v18989_v27  ;;  %v19005_v9 = vld [vmem:[%s21294_s13 + $0x3640] ss:$16 sps:$4 sm:$0xff]   ;;  %v19010_v27 = vld [vmem:[%s21294_s13 + $0x3424] ss:$16 sps:$4 sm:$0xff]  }
 0x3d4   : > { %v19013_v23 = vld [vmem:[%s21294_s13 + $0x3624] ss:$16 sps:$4 sm:$0xff]   ;;  %v19008_v8 = vld [vmem:[%s21294_s13 + $0x3420] ss:$16 sps:$4 sm:$0xff]  }
 0x3d5   : > { %13787 = vmatpush1.bf16.msra.mxu0 %v18984_v17  ;;  %v19004_v17 = vld [vmem:[%s21294_s13 + $0x3444] ss:$16 sps:$4 sm:$0xff]   ;;  %v19011_v18 = vld [vmem:[%s21294_s13 + $0x3620] ss:$16 sps:$4 sm:$0xff]  }
 0x3d6   : > { %13828 = vmatpush1.bf16.msra.mxu1 %v18987_v30  ;;  %13788 = vmatprep.subr.bf16.mxu0 %v18992_v31  ;;  %v19007_v30 = vld [vmem:[%s21294_s13 + $0x3644] ss:$16 sps:$4 sm:$0xff]  }
 0x3d7   : > { %13829 = vmatprep.subr.bf16.mxu1 %v18995_v29  ;;  %v19016_v62 = vld [vmem:[%s21294_s13 + $0x3404] ss:$16 sps:$4 sm:$0xff]   ;;  %v19014_v29 = vld [vmem:[%s21294_s13 + $0x3400] ss:$16 sps:$4 sm:$0xff]  }
 0x3d8   : > { %v19019_v31 = vld [vmem:[%s21294_s13 + $0x3604] ss:$16 sps:$4 sm:$0xff]  }
 0x3d9   : > { %13789 = vmatpush1.bf16.msra.mxu0 %v18990_v20  ;;  %v19017_v20 = vld [vmem:[%s21294_s13 + $0x3600] ss:$16 sps:$4 sm:$0xff]  }
 0x3da   : > { %13830 = vmatpush1.bf16.msra.mxu1 %v18993_v45  ;;  %13790 = vmatprep.subr.bf16.mxu0 %v18998_v60  ;;  %v19022_v45 = vld [vmem:[%s21294_s13 + $0x35e4] ss:$16 sps:$4 sm:$0xff]  }
 0x3db   : > { %13831 = vmatprep.subr.bf16.mxu1 %v19001_v37  ;;  %v19025_v60 = vld [vmem:[%s21294_s13 + $0x37e4] ss:$16 sps:$4 sm:$0xff]   ;;  %v19020_v37 = vld [vmem:[%s21294_s13 + $0x35e0] ss:$16 sps:$4 sm:$0xff]  }
 0x3dd   : > { %13791 = vmatpush1.bf16.msra.mxu0 %v18996_v63  ;;  %v19023_v63 = vld [vmem:[%s21294_s13 + $0x37e0] ss:$16 sps:$4 sm:$0xff]  }
 0x3de   : > { %13832 = vmatpush1.bf16.msra.mxu1 %v18999_v59  ;;  %13792 = vmatprep.subr.bf16.mxu0 %v19004_v17  ;;  %v19028_v59 = vld [vmem:[%s21294_s13 + $0x35c4] ss:$16 sps:$4 sm:$0xff]  }
 0x3df   : > { %13833 = vmatprep.subr.bf16.mxu1 %v19007_v30  ;;  %v19031_v17 = vld [vmem:[%s21294_s13 + $0x37c4] ss:$16 sps:$4 sm:$0xff]   ;;  %v19026_v30 = vld [vmem:[%s21294_s13 + $0x35c0] ss:$16 sps:$4 sm:$0xff]  }
 0x3e1   : > { %13793 = vmatpush1.bf16.msra.mxu0 %v19002_v61  ;;  %v19029_v61 = vld [vmem:[%s21294_s13 + $0x37c0] ss:$16 sps:$4 sm:$0xff]  }
 0x3e2   : > { %13834 = vmatpush1.bf16.msra.mxu1 %v19005_v9  ;;  %13794 = vmatprep.subr.bf16.mxu0 %v19010_v27  ;;  %v19034_v9 = vld [vmem:[%s21294_s13 + $0x35a4] ss:$16 sps:$4 sm:$0xff]  }
 0x3e3   : > { %13835 = vmatprep.subr.bf16.mxu1 %v19013_v23  ;;  %v19037_v27 = vld [vmem:[%s21294_s13 + $0x37a4] ss:$16 sps:$4 sm:$0xff]   ;;  %v19032_v23 = vld [vmem:[%s21294_s13 + $0x35a0] ss:$16 sps:$4 sm:$0xff]  }
 0x3e5   : > { %13795 = vmatpush1.bf16.msra.mxu0 %v19008_v8  ;;  %v19035_v8 = vld [vmem:[%s21294_s13 + $0x37a0] ss:$16 sps:$4 sm:$0xff]  }
 0x3e6   : > { %13836 = vmatpush1.bf16.msra.mxu1 %v19011_v18  ;;  %13796 = vmatprep.subr.bf16.mxu0 %v19016_v62  ;;  %v19040_v18 = vld [vmem:[%s21294_s13 + $0x3584] ss:$16 sps:$4 sm:$0xff]  }
 0x3e7   : > { %13837 = vmatprep.subr.bf16.mxu1 %v19019_v31  ;;  %v19043_v62 = vld [vmem:[%s21294_s13 + $0x3784] ss:$16 sps:$4 sm:$0xff]   ;;  %v19038_v31 = vld [vmem:[%s21294_s13 + $0x3580] ss:$16 sps:$4 sm:$0xff]  }
 0x3e9   : > { %13797 = vmatpush1.bf16.msra.mxu0 %v19014_v29  ;;  %v19041_v29 = vld [vmem:[%s21294_s13 + $0x3780] ss:$16 sps:$4 sm:$0xff]  }
 0x3ea   : > { %13838 = vmatpush1.bf16.msra.mxu1 %v19017_v20  ;;  %13798 = vmatprep.subr.bf16.mxu0 %v19022_v45  ;;  %v19046_v20 = vld [vmem:[%s21294_s13 + $0x3564] ss:$16 sps:$4 sm:$0xff]  }
 0x3eb   : > { %13839 = vmatprep.subr.bf16.mxu1 %v19025_v60  ;;  %v19049_v45 = vld [vmem:[%s21294_s13 + $0x3764] ss:$16 sps:$4 sm:$0xff]   ;;  %v19044_v60 = vld [vmem:[%s21294_s13 + $0x3560] ss:$16 sps:$4 sm:$0xff]  }
 0x3ed   : > { %13799 = vmatpush2.bf16.msra.mxu0 %v19020_v37  ;;  %v19047_v37 = vld [vmem:[%s21294_s13 + $0x3760] ss:$16 sps:$4 sm:$0xff]  }
 0x3ee   : > { %13840 = vmatpush2.bf16.msra.mxu1 %v19023_v63  ;;  %13800 = vmatprep.subr.bf16.mxu0 %v19028_v59  ;;  %v19052_v63 = vld [vmem:[%s21294_s13 + $0x3544] ss:$16 sps:$4 sm:$0xff]  }
 0x3ef   : > { %13841 = vmatprep.subr.bf16.mxu1 %v19031_v17  ;;  %v19055_v59 = vld [vmem:[%s21294_s13 + $0x3744] ss:$16 sps:$4 sm:$0xff]   ;;  %v19050_v17 = vld [vmem:[%s21294_s13 + $0x3540] ss:$16 sps:$4 sm:$0xff]  }
 0x3f1   : > { %13801 = vmatpush2.bf16.msra.mxu0 %v19026_v30  ;;  %v19053_v30 = vld [vmem:[%s21294_s13 + $0x3740] ss:$16 sps:$4 sm:$0xff]  }
 0x3f2   : > { %13842 = vmatpush2.bf16.msra.mxu1 %v19029_v61  ;;  %13802 = vmatprep.subr.bf16.mxu0 %v19034_v9  ;;  %v19058_v61 = vld [vmem:[%s21294_s13 + $0x3524] ss:$16 sps:$4 sm:$0xff]  }
 0x3f3   : > { %13843 = vmatprep.subr.bf16.mxu1 %v19037_v27  ;;  %v19061_v9 = vld [vmem:[%s21294_s13 + $0x3724] ss:$16 sps:$4 sm:$0xff]   ;;  %v19056_v27 = vld [vmem:[%s21294_s13 + $0x3520] ss:$16 sps:$4 sm:$0xff]  }
 0x3f5   : > { %13803 = vmatpush2.bf16.msra.mxu0 %v19032_v23  ;;  %v19059_v23 = vld [vmem:[%s21294_s13 + $0x3720] ss:$16 sps:$4 sm:$0xff]  }
 0x3f6   : > { %13844 = vmatpush2.bf16.msra.mxu1 %v19035_v8  ;;  %13804 = vmatprep.subr.bf16.mxu0 %v19040_v18  ;;  %v19064_v8 = vld [vmem:[%s21294_s13 + $0x3504] ss:$16 sps:$4 sm:$0xff]  }
 0x3f7   : > { %13845 = vmatprep.subr.bf16.mxu1 %v19043_v62  ;;  %v19067_v18 = vld [vmem:[%s21294_s13 + $0x3704] ss:$16 sps:$4 sm:$0xff]   ;;  %v19062_v62 = vld [vmem:[%s21294_s13 + $0x3500] ss:$16 sps:$4 sm:$0xff]  }
 0x3f9   : > { %13805 = vmatpush2.bf16.msra.mxu0 %v19038_v31  ;;  %v19065_v31 = vld [vmem:[%s21294_s13 + $0x3700] ss:$16 sps:$4 sm:$0xff]  }
 0x3fa   : > { %13846 = vmatpush2.bf16.msra.mxu1 %v19041_v29  ;;  %13806 = vmatprep.subr.bf16.mxu0 %v19046_v20  ;;  %v352_v29 = vld [vmem:[%s21286_s9 + $0x1a0] sm:$0xff]  ;;  %v354_v20 = vld [vmem:[%s21286_s9 + $0x1b0] sm:$0xff] }
 0x3fb   : > { %13847 = vmatprep.subr.bf16.mxu1 %v19049_v45  ;;  %v19070_v45 = vld [vmem:[%s21294_s13 + $0x38e4] ss:$16 sps:$4 sm:$0xff]  }
 0x3fd   : > { %13807 = vmatpush2.bf16.msra.mxu0 %v19044_v60  ;;  %v19073_v60 = vld [vmem:[%s21294_s13 + $0x3ae4] ss:$16 sps:$4 sm:$0xff]  }
 0x3fe   : > { %13848 = vmatpush2.bf16.msra.mxu1 %v19047_v37  ;;  %13808 = vmatprep.subr.bf16.mxu0 %v19052_v63  ;;  %v22484_v37 = vpack.c.bf16 %v352_v29, %v352_v29  ;;  %v22486_v63 = vpack.c.bf16 %v354_v20, %v354_v20 }
 0x3ff   : > { %13849 = vmatprep.subr.bf16.mxu1 %v19055_v59  ;;  %v357_v59 = vld [vmem:[%s21286_s9 + $0x1c8] sm:$0xff] }
 0x400   : > { %23991 = vst [vmem:[#allocation32_spill] sm:$0xff] %v22484_v37  ;;  %23992 = vst [vmem:[#allocation33_spill] sm:$0xff] %v22486_v63 }
 0x401   : > { %13809 = vmatpush2.bf16.msra.mxu0 %v19050_v17  ;;  %v359_v17 = vld [vmem:[%s21286_s9 + $0x1d8] sm:$0xff] }
 0x402   : > { %13850 = vmatpush2.bf16.msra.mxu1 %v19053_v30  ;;  %13810 = vmatprep.subr.bf16.mxu0 %v19058_v61  ;;  %v19068_v30 = vld [vmem:[%s21294_s13 + $0x38e0] ss:$16 sps:$4 sm:$0xff]   ;;  %v22498_v29 = vpack.c.bf16 %v359_v17, %v359_v17 }
 0x403   : > { %13851 = vmatprep.subr.bf16.mxu1 %v19061_v9  ;;  %v19071_v61 = vld [vmem:[%s21294_s13 + $0x3ae0] ss:$16 sps:$4 sm:$0xff]   ;;  %v19076_v9 = vld [vmem:[%s21294_s13 + $0x38c4] ss:$16 sps:$4 sm:$0xff]  }
 0x404   : > { %23994 = vst [vmem:[#allocation35_spill] sm:$0xff] %v22498_v29 }
 0x405   : > { %13811 = vmatpush2.bf16.msra.mxu0 %v19056_v27  ;;  %v19079_v27 = vld [vmem:[%s21294_s13 + $0x3ac4] ss:$16 sps:$4 sm:$0xff]  }
 0x406   : > { %13852 = vmatpush2.bf16.msra.mxu1 %v19059_v23  ;;  %13812 = vmatprep.subr.bf16.mxu0 %v19064_v8  ;;  %v19074_v23 = vld [vmem:[%s21294_s13 + $0x38c0] ss:$16 sps:$4 sm:$0xff]  }
 0x407   : > { %13853 = vmatprep.subr.bf16.mxu1 %v19067_v18  ;;  %v19077_v8 = vld [vmem:[%s21294_s13 + $0x3ac0] ss:$16 sps:$4 sm:$0xff]   ;;  %v22496_v18 = vpack.c.bf16 %v357_v59, %v357_v59  ;;  %v19085_v59 = vld [vmem:[%s21294_s13 + $0x3aa4] ss:$16 sps:$4 sm:$0xff]  }
 0x409   : > { %13813 = vmatpush2.bf16.msra.mxu0 %v19062_v62  ;;  %23993 = vst [vmem:[#allocation34_spill] sm:$0xff] %v22496_v18 }
 0x40a   : > { %13854 = vmatpush2.bf16.msra.mxu1 %v19065_v31  ;;  %13864 = vmatprep.subr.bf16.mxu0 %v19070_v45 }
 0x40b   : > { %13905 = vmatprep.subr.bf16.mxu1 %v19073_v60  ;;  %v19082_v60 = vld [vmem:[%s21294_s13 + $0x38a4] ss:$16 sps:$4 sm:$0xff]  }
 0x40c   : > { %v13570_v20 = vpop.f32.mrf.mxu0  ;;  %13815 = vmatmul.mubr.bf16.vlgmr.msra.gmra.mxu0 %v22484_v37  ;;  %v19083_v37 = vld [vmem:[%s21294_s13 + $0x3aa0] ss:$16 sps:$4 sm:$0xff]  }
 0x40d   : > { %v13611_v58 = vpop.f32.mrf.mxu1  ;;  %13856 = vmatmul.mubr.bf16.vlgmr.msra.gmra.mxu1 %v22486_v63  ;;  %v13571_v62 = vadd.f32 %v13570_v20, %v22419_v38  ;;  %13865 = vmatpush1.bf16.msra.mxu0 %v19068_v30  ;;  %v19086_v20 = vld [vmem:[%s21294_s13 + $0x3880] ss:$16 sps:$4 sm:$0xff]  }
 0x40e   : > { %13906 = vmatpush1.bf16.msra.mxu1 %v19071_v61  ;;  %v13572_v31 = vpop.f32.mrf.mxu0  ;;  %13866 = vmatprep.subr.bf16.mxu0 %v19076_v9  ;;  %v19176_v63 = vld [vmem:[%s21294_s13 + $0x3ca0] ss:$16 sps:$4 sm:$0xff]  }
 0x40f   : > { %v13613_v45 = vpop.f32.mrf.mxu1  ;;  %13907 = vmatprep.subr.bf16.mxu1 %v19079_v27  ;;  %v22505_v17 = vadd.f32 %v13611_v58, %v13571_v62  ;;  %v13573_v16 = vadd.f32 %v13572_v31, %v22426_v19  ;;  %13896 = vmatprep.mubr.bf16.mxu0 %v22496_v18  ;;  %v19088_v19 = vld [vmem:[%s21294_s13 + $0x3884] ss:$16 sps:$4 sm:$0xff]   ;;  %v19089_v62 = vld [vmem:[%s21294_s13 + $0x3a80] ss:$16 sps:$4 sm:$0xff]  }
 0x410   : > { %13937 = vmatprep.mubr.bf16.mxu1 %v22498_v29  ;;  %v13574_v38 = vpop.f32.mrf.mxu0  ;;  %v19091_v27 = vld [vmem:[%s21294_s13 + $0x3a84] ss:$16 sps:$4 sm:$0xff]   ;;  %v19095_v31 = vld [vmem:[%s21294_s13 + $0x3a60] ss:$16 sps:$4 sm:$0xff]  }
 0x411   : > { %v13615_v30 = vpop.f32.mrf.mxu1  ;;  %v22512_v61 = vadd.f32 %v13613_v45, %v13573_v16  ;;  %13867 = vmatpush1.bf16.msra.mxu0 %v19074_v23  ;;  %v19094_v16 = vld [vmem:[%s21294_s13 + $0x3864] ss:$16 sps:$4 sm:$0xff]   ;;  %v19098_v45 = vld [vmem:[%s21294_s13 + $0x3840] ss:$16 sps:$4 sm:$0xff]  }
 0x412   : > { %13908 = vmatpush1.bf16.msra.mxu1 %v19077_v8  ;;  %v13575_v58 = vpop.f32.mrf.mxu0  ;;  %13868 = vmatprep.subr.bf16.mxu0 %v19082_v60  ;;  %v19097_v23 = vld [vmem:[%s21294_s13 + $0x3a64] ss:$16 sps:$4 sm:$0xff]   ;;  %v19092_v8 = vld [vmem:[%s21294_s13 + $0x3860] ss:$16 sps:$4 sm:$0xff]  }
 0x413   : > { %v13616_v9 = vpop.f32.mrf.mxu1  ;;  %13909 = vmatprep.subr.bf16.mxu1 %v19085_v59  ;;  %v19101_v60 = vld [vmem:[%s21294_s13 + $0x3a40] ss:$16 sps:$4 sm:$0xff]   ;;  %v19106_v59 = vld [vmem:[%s21294_s13 + $0x3824] ss:$16 sps:$4 sm:$0xff]  }
 0x414   : > { %v19109_v38 = vld [vmem:[%s21294_s13 + $0x3a24] ss:$16 sps:$4 sm:$0xff]   ;;  %v19104_v30 = vld [vmem:[%s21294_s13 + $0x3820] ss:$16 sps:$4 sm:$0xff]  }
 0x415   : > { %13869 = vmatpush1.bf16.msra.mxu0 %v19080_v34  ;;  %v19100_v34 = vld [vmem:[%s21294_s13 + $0x3844] ss:$16 sps:$4 sm:$0xff]   ;;  %v19107_v58 = vld [vmem:[%s21294_s13 + $0x3a20] ss:$16 sps:$4 sm:$0xff]  }
 0x416   : > { %13910 = vmatpush1.bf16.msra.mxu1 %v19083_v37  ;;  %13870 = vmatprep.subr.bf16.mxu0 %v19088_v19  ;;  %v19103_v37 = vld [vmem:[%s21294_s13 + $0x3a44] ss:$16 sps:$4 sm:$0xff]   ;;  %v19173_v29 = vld [vmem:[%s21294_s13 + $0x3ec0] ss:$16 sps:$4 sm:$0xff]  }
 0x417   : > { %13911 = vmatprep.subr.bf16.mxu1 %v19091_v27  ;;  %v19112_v9 = vld [vmem:[%s21294_s13 + $0x3804] ss:$16 sps:$4 sm:$0xff]   ;;  %v19110_v27 = vld [vmem:[%s21294_s13 + $0x3800] ss:$16 sps:$4 sm:$0xff]  }
 0x418   : > { %v19115_v19 = vld [vmem:[%s21294_s13 + $0x3a04] ss:$16 sps:$4 sm:$0xff]  }
 0x419   : > { %13871 = vmatpush1.bf16.msra.mxu0 %v19086_v20  ;;  %v19113_v20 = vld [vmem:[%s21294_s13 + $0x3a00] ss:$16 sps:$4 sm:$0xff]  }
 0x41a   : > { %13912 = vmatpush1.bf16.msra.mxu1 %v19089_v62  ;;  %13872 = vmatprep.subr.bf16.mxu0 %v19094_v16  ;;  %v19118_v62 = vld [vmem:[%s21294_s13 + $0x39e4] ss:$16 sps:$4 sm:$0xff]  }
 0x41b   : > { %13913 = vmatprep.subr.bf16.mxu1 %v19097_v23  ;;  %v19121_v16 = vld [vmem:[%s21294_s13 + $0x3be4] ss:$16 sps:$4 sm:$0xff]   ;;  %v19116_v23 = vld [vmem:[%s21294_s13 + $0x39e0] ss:$16 sps:$4 sm:$0xff]  }
 0x41d   : > { %13873 = vmatpush1.bf16.msra.mxu0 %v19092_v8  ;;  %v19119_v8 = vld [vmem:[%s21294_s13 + $0x3be0] ss:$16 sps:$4 sm:$0xff]  }
 0x41e   : > { %13914 = vmatpush1.bf16.msra.mxu1 %v19095_v31  ;;  %13874 = vmatprep.subr.bf16.mxu0 %v19100_v34  ;;  %v19124_v31 = vld [vmem:[%s21294_s13 + $0x39c4] ss:$16 sps:$4 sm:$0xff]  }
 0x41f   : > { %13915 = vmatprep.subr.bf16.mxu1 %v19103_v37  ;;  %v19127_v34 = vld [vmem:[%s21294_s13 + $0x3bc4] ss:$16 sps:$4 sm:$0xff]   ;;  %v19122_v37 = vld [vmem:[%s21294_s13 + $0x39c0] ss:$16 sps:$4 sm:$0xff]  }
 0x421   : > { %13875 = vmatpush1.bf16.msra.mxu0 %v19098_v45  ;;  %v19125_v45 = vld [vmem:[%s21294_s13 + $0x3bc0] ss:$16 sps:$4 sm:$0xff]  }
 0x422   : > { %13916 = vmatpush1.bf16.msra.mxu1 %v19101_v60  ;;  %13876 = vmatprep.subr.bf16.mxu0 %v19106_v59  ;;  %v19130_v60 = vld [vmem:[%s21294_s13 + $0x39a4] ss:$16 sps:$4 sm:$0xff]  }
 0x423   : > { %13917 = vmatprep.subr.bf16.mxu1 %v19109_v38  ;;  %v19133_v59 = vld [vmem:[%s21294_s13 + $0x3ba4] ss:$16 sps:$4 sm:$0xff]   ;;  %v19128_v38 = vld [vmem:[%s21294_s13 + $0x39a0] ss:$16 sps:$4 sm:$0xff]  }
 0x425   : > { %13877 = vmatpush1.bf16.msra.mxu0 %v19104_v30  ;;  %v19131_v30 = vld [vmem:[%s21294_s13 + $0x3ba0] ss:$16 sps:$4 sm:$0xff]  }
 0x426   : > { %13918 = vmatpush1.bf16.msra.mxu1 %v19107_v58  ;;  %13878 = vmatprep.subr.bf16.mxu0 %v19112_v9  ;;  %v19136_v58 = vld [vmem:[%s21294_s13 + $0x3984] ss:$16 sps:$4 sm:$0xff]  }
 0x427   : > { %13919 = vmatprep.subr.bf16.mxu1 %v19115_v19  ;;  %v19139_v9 = vld [vmem:[%s21294_s13 + $0x3b84] ss:$16 sps:$4 sm:$0xff]   ;;  %v19134_v19 = vld [vmem:[%s21294_s13 + $0x3980] ss:$16 sps:$4 sm:$0xff]  }
 0x429   : > { %13879 = vmatpush1.bf16.msra.mxu0 %v19110_v27  ;;  %v19137_v27 = vld [vmem:[%s21294_s13 + $0x3b80] ss:$16 sps:$4 sm:$0xff]  }
 0x42a   : > { %13920 = vmatpush1.bf16.msra.mxu1 %v19113_v20  ;;  %13880 = vmatprep.subr.bf16.mxu0 %v19118_v62  ;;  %v19142_v20 = vld [vmem:[%s21294_s13 + $0x3964] ss:$16 sps:$4 sm:$0xff]  }
 0x42b   : > { %13921 = vmatprep.subr.bf16.mxu1 %v19121_v16  ;;  %v19145_v62 = vld [vmem:[%s21294_s13 + $0x3b64] ss:$16 sps:$4 sm:$0xff]   ;;  %v19140_v16 = vld [vmem:[%s21294_s13 + $0x3960] ss:$16 sps:$4 sm:$0xff]  }
 0x42d   : > { %13881 = vmatpush2.bf16.msra.mxu0 %v19116_v23  ;;  %v19143_v23 = vld [vmem:[%s21294_s13 + $0x3b60] ss:$16 sps:$4 sm:$0xff]  }
 0x42e   : > { %13922 = vmatpush2.bf16.msra.mxu1 %v19119_v8  ;;  %13882 = vmatprep.subr.bf16.mxu0 %v19124_v31  ;;  %v19148_v8 = vld [vmem:[%s21294_s13 + $0x3944] ss:$16 sps:$4 sm:$0xff]  }
 0x42f   : > { %13923 = vmatprep.subr.bf16.mxu1 %v19127_v34  ;;  %v19151_v31 = vld [vmem:[%s21294_s13 + $0x3b44] ss:$16 sps:$4 sm:$0xff]   ;;  %v19146_v34 = vld [vmem:[%s21294_s13 + $0x3940] ss:$16 sps:$4 sm:$0xff]  }
 0x431   : > { %13883 = vmatpush2.bf16.msra.mxu0 %v19122_v37  ;;  %v19149_v37 = vld [vmem:[%s21294_s13 + $0x3b40] ss:$16 sps:$4 sm:$0xff]  }
 0x432   : > { %13924 = vmatpush2.bf16.msra.mxu1 %v19125_v45  ;;  %13884 = vmatprep.subr.bf16.mxu0 %v19130_v60  ;;  %v19154_v45 = vld [vmem:[%s21294_s13 + $0x3924] ss:$16 sps:$4 sm:$0xff]  }
 0x433   : > { %13925 = vmatprep.subr.bf16.mxu1 %v19133_v59  ;;  %v19157_v60 = vld [vmem:[%s21294_s13 + $0x3b24] ss:$16 sps:$4 sm:$0xff]   ;;  %v19152_v59 = vld [vmem:[%s21294_s13 + $0x3920] ss:$16 sps:$4 sm:$0xff]  }
 0x435   : > { %13885 = vmatpush2.bf16.msra.mxu0 %v19128_v38  ;;  %v19155_v38 = vld [vmem:[%s21294_s13 + $0x3b20] ss:$16 sps:$4 sm:$0xff]  }
 0x436   : > { %13926 = vmatpush2.bf16.msra.mxu1 %v19131_v30  ;;  %13886 = vmatprep.subr.bf16.mxu0 %v19136_v58  ;;  %v19160_v30 = vld [vmem:[%s21294_s13 + $0x3904] ss:$16 sps:$4 sm:$0xff]  }
 0x437   : > { %13927 = vmatprep.subr.bf16.mxu1 %v19139_v9  ;;  %v19163_v58 = vld [vmem:[%s21294_s13 + $0x3b04] ss:$16 sps:$4 sm:$0xff]   ;;  %v19158_v9 = vld [vmem:[%s21294_s13 + $0x3900] ss:$16 sps:$4 sm:$0xff]  }
 0x439   : > { %13887 = vmatpush2.bf16.msra.mxu0 %v19134_v19  ;;  %v19161_v19 = vld [vmem:[%s21294_s13 + $0x3b00] ss:$16 sps:$4 sm:$0xff]  }
 0x43a   : > { %13928 = vmatpush2.bf16.msra.mxu1 %v19137_v27  ;;  %13888 = vmatprep.subr.bf16.mxu0 %v19142_v20  ;;  %v356_v27 = vld [vmem:[%s21286_s9 + $0x1c0] sm:$0xff]  ;;  %v358_v20 = vld [vmem:[%s21286_s9 + $0x1d0] sm:$0xff] }
 0x43b   : > { %13929 = vmatprep.subr.bf16.mxu1 %v19145_v62  ;;  %v19166_v62 = vld [vmem:[%s21294_s13 + $0x3ce4] ss:$16 sps:$4 sm:$0xff]  }
 0x43d   : > { %13889 = vmatpush2.bf16.msra.mxu0 %v19140_v16  ;;  %v19169_v16 = vld [vmem:[%s21294_s13 + $0x3ee4] ss:$16 sps:$4 sm:$0xff]  }
 0x43e   : > { %13930 = vmatpush2.bf16.msra.mxu1 %v19143_v23  ;;  %13890 = vmatprep.subr.bf16.mxu0 %v19148_v8  ;;  %v361_v23 = vld [vmem:[%s21286_s9 + $0x1e8] sm:$0xff]  ;;  %v363_v8 = vld [vmem:[%s21286_s9 + $0x1f8] sm:$0xff] }
 0x43f   : > { %13931 = vmatprep.subr.bf16.mxu1 %v19151_v31  ;;  %v19164_v31 = vld [vmem:[%s21294_s13 + $0x3ce0] ss:$16 sps:$4 sm:$0xff]  }
 0x441   : > { %13891 = vmatpush2.bf16.msra.mxu0 %v19146_v34  ;;  %v19167_v34 = vld [vmem:[%s21294_s13 + $0x3ee0] ss:$16 sps:$4 sm:$0xff]  }
 0x442   : > { %13932 = vmatpush2.bf16.msra.mxu1 %v19149_v37  ;;  %13892 = vmatprep.subr.bf16.mxu0 %v19154_v45  ;;  %v22574_v37 = vpack.c.bf16 %v356_v27, %v356_v27  ;;  %v22576_v45 = vpack.c.bf16 %v358_v20, %v358_v20 }
 0x443   : > { %13933 = vmatprep.subr.bf16.mxu1 %v19157_v60  ;;  %v19172_v60 = vld [vmem:[%s21294_s13 + $0x3cc4] ss:$16 sps:$4 sm:$0xff]  }
 0x444   : > { %23995 = vst [vmem:[#allocation36_spill] sm:$0xff] %v22574_v37 }
 0x445   : > { %13893 = vmatpush2.bf16.msra.mxu0 %v19152_v59  ;;  %v19175_v59 = vld [vmem:[%s21294_s13 + $0x3ec4] ss:$16 sps:$4 sm:$0xff]  }
 0x446   : > { %13934 = vmatpush2.bf16.msra.mxu1 %v19155_v38  ;;  %13894 = vmatprep.subr.bf16.mxu0 %v19160_v30  ;;  %v19170_v38 = vld [vmem:[%s21294_s13 + $0x3cc0] ss:$16 sps:$4 sm:$0xff]   ;;  %v22582_v30 = vpack.c.bf16 %v361_v23, %v361_v23 }
 0x447   : > { %13935 = vmatprep.subr.bf16.mxu1 %v19163_v58  ;;  %v22584_v58 = vpack.c.bf16 %v363_v8, %v363_v8 }
 0x449   : > { %13895 = vmatpush2.bf16.msra.mxu0 %v19158_v9  ;;  %23996 = vst [vmem:[#allocation37_spill] sm:$0xff] %v22584_v58 }
 0x44a   : > { %13936 = vmatpush2.bf16.msra.mxu1 %v19161_v19  ;;  %13946 = vmatprep.subr.bf16.mxu0 %v19166_v62  ;;  %v19178_v62 = vld [vmem:[%s21294_s13 + $0x3ca4] ss:$16 sps:$4 sm:$0xff]  }
 0x44b   : > { %13987 = vmatprep.subr.bf16.mxu1 %v19169_v16  ;;  %v19181_v16 = vld [vmem:[%s21294_s13 + $0x3ea4] ss:$16 sps:$4 sm:$0xff]  }
 0x44c   : > { %v13652_v18 = vpop.f32.mrf.mxu0  ;;  %13897 = vmatmul.mubr.bf16.vlgmr.msra.gmra.mxu0 %v22574_v37  ;;  %v19179_v37 = vld [vmem:[%s21294_s13 + $0x3ea0] ss:$16 sps:$4 sm:$0xff]  }
 0x44d   : > { %v13693_v27 = vpop.f32.mrf.mxu1  ;;  %13938 = vmatmul.mubr.bf16.vlgmr.msra.gmra.mxu1 %v22576_v45  ;;  %v13653_v9 = vadd.f32 %v13652_v18, %v22505_v17  ;;  %13947 = vmatpush1.bf16.msra.mxu0 %v19164_v31 }
 0x44e   : > { %13988 = vmatpush1.bf16.msra.mxu1 %v19167_v34  ;;  %v13654_v19 = vpop.f32.mrf.mxu0  ;;  %13948 = vmatprep.subr.bf16.mxu0 %v19172_v60 }
 0x44f   : > { %v13695_v20 = vpop.f32.mrf.mxu1  ;;  %13989 = vmatprep.subr.bf16.mxu1 %v19175_v59  ;;  %v22591_v23 = vadd.f32 %v13693_v27, %v13653_v9  ;;  %v13655_v8 = vadd.f32 %v13654_v19, %v22512_v61  ;;  %13978 = vmatprep.mubr.bf16.mxu0 %v22582_v30  ;;  %v19184_v61 = vld [vmem:[%s21294_s13 + $0x3c84] ss:$16 sps:$4 sm:$0xff]   ;;  %v19182_v27 = vld [vmem:[%s21294_s13 + $0x3c80] ss:$16 sps:$4 sm:$0xff]  }
 0x450   : > { %14019 = vmatprep.mubr.bf16.mxu1 %v22584_v58  ;;  %v13656_v18 = vpop.f32.mrf.mxu0  ;;  %v19187_v59 = vld [vmem:[%s21294_s13 + $0x3e84] ss:$16 sps:$4 sm:$0xff]   ;;  %v19185_v9 = vld [vmem:[%s21294_s13 + $0x3e80] ss:$16 sps:$4 sm:$0xff]   ;;  %v19272_v58 = vld [vmem:[%s21294_s13 + $0xa8] ss:$16 sps:$4 sm:$0xff]  }
 0x451   : > { %v13697_v17 = vpop.f32.mrf.mxu1  ;;  %v22598_v31 = vadd.f32 %v13695_v20, %v13655_v8  ;;  %13949 = vmatpush1.bf16.msra.mxu0 %v19170_v38  ;;  %v19190_v38 = vld [vmem:[%s21294_s13 + $0x3c64] ss:$16 sps:$4 sm:$0xff]   ;;  %v19188_v19 = vld [vmem:[%s21294_s13 + $0x3c60] ss:$16 sps:$4 sm:$0xff]  }
 0x452   : > { %13990 = vmatpush1.bf16.msra.mxu1 %v19173_v29  ;;  %v13657_v34 = vpop.f32.mrf.mxu0  ;;  %13950 = vmatprep.subr.bf16.mxu0 %v19178_v62  ;;  %v19193_v29 = vld [vmem:[%s21294_s13 + $0x3e64] ss:$16 sps:$4 sm:$0xff]   ;;  %v19191_v20 = vld [vmem:[%s21294_s13 + $0x3e60] ss:$16 sps:$4 sm:$0xff]  }
 0x453   : > { %v13698_v60 = vpop.f32.mrf.mxu1  ;;  %13991 = vmatprep.subr.bf16.mxu1 %v19181_v16  ;;  %v19194_v62 = vld [vmem:[%s21294_s13 + $0x3c40] ss:$16 sps:$4 sm:$0xff]   ;;  %v19202_v8 = vld [vmem:[%s21294_s13 + $0x3c24] ss:$16 sps:$4 sm:$0xff]  }
 0x454   : > { %v19197_v16 = vld [vmem:[%s21294_s13 + $0x3e40] ss:$16 sps:$4 sm:$0xff]   ;;  %v19205_v18 = vld [vmem:[%s21294_s13 + $0x3e24] ss:$16 sps:$4 sm:$0xff]  }
 0x455   : > { %13951 = vmatpush1.bf16.msra.mxu0 %v19176_v63  ;;  %v19196_v63 = vld [vmem:[%s21294_s13 + $0x3c44] ss:$16 sps:$4 sm:$0xff]   ;;  %v19200_v17 = vld [vmem:[%s21294_s13 + $0x3c20] ss:$16 sps:$4 sm:$0xff]  }
 0x456   : > { %13992 = vmatpush1.bf16.msra.mxu1 %v19179_v37  ;;  %13952 = vmatprep.subr.bf16.mxu0 %v19184_v61  ;;  %v19199_v37 = vld [vmem:[%s21294_s13 + $0x3e44] ss:$16 sps:$4 sm:$0xff]   ;;  %v19203_v34 = vld [vmem:[%s21294_s13 + $0x3e20] ss:$16 sps:$4 sm:$0xff]  }
 0x457   : > { %13993 = vmatprep.subr.bf16.mxu1 %v19187_v59  ;;  %v19208_v60 = vld [vmem:[%s21294_s13 + $0x3c04] ss:$16 sps:$4 sm:$0xff]   ;;  %v19206_v59 = vld [vmem:[%s21294_s13 + $0x3c00] ss:$16 sps:$4 sm:$0xff]  }
 0x458   : > { %v19211_v61 = vld [vmem:[%s21294_s13 + $0x3e04] ss:$16 sps:$4 sm:$0xff]  }
 0x459   : > { %13953 = vmatpush1.bf16.msra.mxu0 %v19182_v27  ;;  %v19209_v27 = vld [vmem:[%s21294_s13 + $0x3e00] ss:$16 sps:$4 sm:$0xff]  }
 0x45a   : > { %13994 = vmatpush1.bf16.msra.mxu1 %v19185_v9  ;;  %13954 = vmatprep.subr.bf16.mxu0 %v19190_v38  ;;  %v19214_v9 = vld [vmem:[%s21294_s13 + $0x3de4] ss:$16 sps:$4 sm:$0xff]  }
 0x45b   : > { %13995 = vmatprep.subr.bf16.mxu1 %v19193_v29  ;;  %v19217_v38 = vld [vmem:[%s21294_s13 + $0x3fe4] ss:$16 sps:$4 sm:$0xff]   ;;  %v19212_v29 = vld [vmem:[%s21294_s13 + $0x3de0] ss:$16 sps:$4 sm:$0xff]  }
 0x45d   : > { %13955 = vmatpush1.bf16.msra.mxu0 %v19188_v19  ;;  %v19215_v19 = vld [vmem:[%s21294_s13 + $0x3fe0] ss:$16 sps:$4 sm:$0xff]  }
 0x45e   : > { %13996 = vmatpush1.bf16.msra.mxu1 %v19191_v20  ;;  %13956 = vmatprep.subr.bf16.mxu0 %v19196_v63  ;;  %v19220_v20 = vld [vmem:[%s21294_s13 + $0x3dc4] ss:$16 sps:$4 sm:$0xff]  }
 0x45f   : > { %13997 = vmatprep.subr.bf16.mxu1 %v19199_v37  ;;  %v19223_v63 = vld [vmem:[%s21294_s13 + $0x3fc4] ss:$16 sps:$4 sm:$0xff]   ;;  %v19218_v37 = vld [vmem:[%s21294_s13 + $0x3dc0] ss:$16 sps:$4 sm:$0xff]  }
 0x461   : > { %13957 = vmatpush1.bf16.msra.mxu0 %v19194_v62  ;;  %v19221_v62 = vld [vmem:[%s21294_s13 + $0x3fc0] ss:$16 sps:$4 sm:$0xff]  }
 0x462   : > { %13998 = vmatpush1.bf16.msra.mxu1 %v19197_v16  ;;  %13958 = vmatprep.subr.bf16.mxu0 %v19202_v8  ;;  %v19226_v16 = vld [vmem:[%s21294_s13 + $0x3da4] ss:$16 sps:$4 sm:$0xff]  }
 0x463   : > { %13999 = vmatprep.subr.bf16.mxu1 %v19205_v18  ;;  %v19229_v8 = vld [vmem:[%s21294_s13 + $0x3fa4] ss:$16 sps:$4 sm:$0xff]   ;;  %v19224_v18 = vld [vmem:[%s21294_s13 + $0x3da0] ss:$16 sps:$4 sm:$0xff]  }
 0x465   : > { %13959 = vmatpush1.bf16.msra.mxu0 %v19200_v17  ;;  %v19227_v17 = vld [vmem:[%s21294_s13 + $0x3fa0] ss:$16 sps:$4 sm:$0xff]  }
 0x466   : > { %14000 = vmatpush1.bf16.msra.mxu1 %v19203_v34  ;;  %13960 = vmatprep.subr.bf16.mxu0 %v19208_v60  ;;  %v19232_v34 = vld [vmem:[%s21294_s13 + $0x3d84] ss:$16 sps:$4 sm:$0xff]  }
 0x467   : > { %14001 = vmatprep.subr.bf16.mxu1 %v19211_v61  ;;  %v19235_v60 = vld [vmem:[%s21294_s13 + $0x3f84] ss:$16 sps:$4 sm:$0xff]   ;;  %v19230_v61 = vld [vmem:[%s21294_s13 + $0x3d80] ss:$16 sps:$4 sm:$0xff]  }
 0x469   : > { %13961 = vmatpush1.bf16.msra.mxu0 %v19206_v59  ;;  %v19233_v59 = vld [vmem:[%s21294_s13 + $0x3f80] ss:$16 sps:$4 sm:$0xff]  }
 0x46a   : > { %14002 = vmatpush1.bf16.msra.mxu1 %v19209_v27  ;;  %13962 = vmatprep.subr.bf16.mxu0 %v19214_v9  ;;  %v19238_v27 = vld [vmem:[%s21294_s13 + $0x3d64] ss:$16 sps:$4 sm:$0xff]  }
 0x46b   : > { %14003 = vmatprep.subr.bf16.mxu1 %v19217_v38  ;;  %v19241_v9 = vld [vmem:[%s21294_s13 + $0x3f64] ss:$16 sps:$4 sm:$0xff]   ;;  %v19236_v38 = vld [vmem:[%s21294_s13 + $0x3d60] ss:$16 sps:$4 sm:$0xff]  }
 0x46d   : > { %13963 = vmatpush2.bf16.msra.mxu0 %v19212_v29  ;;  %v19239_v29 = vld [vmem:[%s21294_s13 + $0x3f60] ss:$16 sps:$4 sm:$0xff]  }
 0x46e   : > { %14004 = vmatpush2.bf16.msra.mxu1 %v19215_v19  ;;  %13964 = vmatprep.subr.bf16.mxu0 %v19220_v20  ;;  %v19244_v19 = vld [vmem:[%s21294_s13 + $0x3d44] ss:$16 sps:$4 sm:$0xff]  }
 0x46f   : > { %14005 = vmatprep.subr.bf16.mxu1 %v19223_v63  ;;  %v19247_v20 = vld [vmem:[%s21294_s13 + $0x3f44] ss:$16 sps:$4 sm:$0xff]   ;;  %v19242_v63 = vld [vmem:[%s21294_s13 + $0x3d40] ss:$16 sps:$4 sm:$0xff]  }
 0x471   : > { %13965 = vmatpush2.bf16.msra.mxu0 %v19218_v37  ;;  %v19245_v37 = vld [vmem:[%s21294_s13 + $0x3f40] ss:$16 sps:$4 sm:$0xff]  }
 0x472   : > { %14006 = vmatpush2.bf16.msra.mxu1 %v19221_v62  ;;  %13966 = vmatprep.subr.bf16.mxu0 %v19226_v16  ;;  %v19250_v62 = vld [vmem:[%s21294_s13 + $0x3d24] ss:$16 sps:$4 sm:$0xff]  }
 0x473   : > { %14007 = vmatprep.subr.bf16.mxu1 %v19229_v8  ;;  %v19253_v16 = vld [vmem:[%s21294_s13 + $0x3f24] ss:$16 sps:$4 sm:$0xff]   ;;  %v19248_v8 = vld [vmem:[%s21294_s13 + $0x3d20] ss:$16 sps:$4 sm:$0xff]  }
 0x475   : > { %13967 = vmatpush2.bf16.msra.mxu0 %v19224_v18  ;;  %v19251_v18 = vld [vmem:[%s21294_s13 + $0x3f20] ss:$16 sps:$4 sm:$0xff]  }
 0x476   : > { %14008 = vmatpush2.bf16.msra.mxu1 %v19227_v17  ;;  %13968 = vmatprep.subr.bf16.mxu0 %v19232_v34  ;;  %v19256_v17 = vld [vmem:[%s21294_s13 + $0x3d04] ss:$16 sps:$4 sm:$0xff]  }
 0x477   : > { %14009 = vmatprep.subr.bf16.mxu1 %v19235_v60  ;;  %v19259_v34 = vld [vmem:[%s21294_s13 + $0x3f04] ss:$16 sps:$4 sm:$0xff]   ;;  %v19254_v60 = vld [vmem:[%s21294_s13 + $0x3d00] ss:$16 sps:$4 sm:$0xff]  }
 0x479   : > { %13969 = vmatpush2.bf16.msra.mxu0 %v19230_v61  ;;  %v19257_v61 = vld [vmem:[%s21294_s13 + $0x3f00] ss:$16 sps:$4 sm:$0xff]  }
 0x47a   : > { %14010 = vmatpush2.bf16.msra.mxu1 %v19233_v59  ;;  %13970 = vmatprep.subr.bf16.mxu0 %v19238_v27  ;;  %v360_v59 = vld [vmem:[%s21286_s9 + $0x1e0] sm:$0xff]  ;;  %v362_v27 = vld [vmem:[%s21286_s9 + $0x1f0] sm:$0xff] }
 0x47b   : > { %14011 = vmatprep.subr.bf16.mxu1 %v19241_v9  ;;  %v19262_v9 = vld [vmem:[%s21294_s13 + $0xec] ss:$16 sps:$4 sm:$0xff]  }
 0x47d   : > { %13971 = vmatpush2.bf16.msra.mxu0 %v19236_v38  ;;  %v19265_v38 = vld [vmem:[%s21294_s13 + $0x2ec] ss:$16 sps:$4 sm:$0xff]  }
 0x47e   : > { %14012 = vmatpush2.bf16.msra.mxu1 %v19239_v29  ;;  %13972 = vmatprep.subr.bf16.mxu0 %v19244_v19  ;;  %v19260_v29 = vld [vmem:[%s21294_s13 + $0xe8] ss:$16 sps:$4 sm:$0xff]  }
 0x47f   : > { %14013 = vmatprep.subr.bf16.mxu1 %v19247_v20  ;;  %v19263_v19 = vld [vmem:[%s21294_s13 + $0x2e8] ss:$16 sps:$4 sm:$0xff]   ;;  %v22658_v20 = vpack.c.bf16 %v360_v59, %v360_v59  ;;  %v19274_v59 = vld [vmem:[%s21294_s13 + $0xac] ss:$16 sps:$4 sm:$0xff]  }
 0x481   : > { %13973 = vmatpush2.bf16.msra.mxu0 %v19242_v63  ;;  %23997 = vst [vmem:[#allocation38_spill] sm:$0xff] %v22658_v20  ;;  %v22660_v63 = vpack.c.bf16 %v362_v27, %v362_v27  ;;  %v19277_v27 = vld [vmem:[%s21294_s13 + $0x2ac] ss:$16 sps:$4 sm:$0xff]  }
 0x482   : > { %14014 = vmatpush2.bf16.msra.mxu1 %v19245_v37  ;;  %13974 = vmatprep.subr.bf16.mxu0 %v19250_v62  ;;  %v19268_v37 = vld [vmem:[%s21294_s13 + $0xcc] ss:$16 sps:$4 sm:$0xff]  }
 0x483   : > { %14015 = vmatprep.subr.bf16.mxu1 %v19253_v16  ;;  %v19271_v62 = vld [vmem:[%s21294_s13 + $0x2cc] ss:$16 sps:$4 sm:$0xff]   ;;  %v19266_v16 = vld [vmem:[%s21294_s13 + $0xc8] ss:$16 sps:$4 sm:$0xff]  }
 0x485   : > { %13975 = vmatpush2.bf16.msra.mxu0 %v19248_v8  ;;  %v19269_v8 = vld [vmem:[%s21294_s13 + $0x2c8] ss:$16 sps:$4 sm:$0xff]  }
 0x486   : > { %14016 = vmatpush2.bf16.msra.mxu1 %v19251_v18  ;;  %13976 = vmatprep.subr.bf16.mxu0 %v19256_v17 }
 0x487   : > { %14017 = vmatprep.subr.bf16.mxu1 %v19259_v34 }
 0x489   : > { %13977 = vmatpush2.bf16.msra.mxu0 %v19254_v60 }
 0x48a   : > { %14018 = vmatpush2.bf16.msra.mxu1 %v19257_v61  ;;  %14028 = vmatprep.subr.bf16.mxu0 %v19262_v9 }
 0x48b   : > { %14069 = vmatprep.subr.bf16.mxu1 %v19265_v38 }
 0x48c   : > { %v13734_v18 = vpop.f32.mrf.mxu0  ;;  %13979 = vmatmul.mubr.bf16.vlgmr.msra.gmra.mxu0 %v22658_v20  ;;  %v19275_v20 = vld [vmem:[%s21294_s13 + $0x2a8] ss:$16 sps:$4 sm:$0xff]  }
 0x48d   : > { %v13775_v17 = vpop.f32.mrf.mxu1  ;;  %14020 = vmatmul.mubr.bf16.vlgmr.msra.gmra.mxu1 %v22660_v63  ;;  %v13735_v34 = vadd.f32 %v13734_v18, %v22591_v23  ;;  %14029 = vmatpush1.bf16.msra.mxu0 %v19260_v29  ;;  %v19281_v18 = vld [vmem:[%s21294_s13 + $0x288] ss:$16 sps:$4 sm:$0xff]  }
 0x48e   : > { %14070 = vmatpush1.bf16.msra.mxu1 %v19263_v19  ;;  %v13736_v60 = vpop.f32.mrf.mxu0  ;;  %14030 = vmatprep.subr.bf16.mxu0 %v19268_v37 }
 0x48f   : > { %v13777_v61 = vpop.f32.mrf.mxu1  ;;  %14071 = vmatprep.subr.bf16.mxu1 %v19271_v62  ;;  %v22671_v9 = vadd.f32 %v13775_v17, %v13735_v34  ;;  %v13737_v38 = vadd.f32 %v13736_v60, %v22598_v31  ;;  %14060 = vmatprep.mubr.bf16.mxu0 %v21359_v53  ;;  %v19280_v31 = vld [vmem:[%s21294_s13 + $0x8c] ss:$16 sps:$4 sm:$0xff]   ;;  %v19284_v17 = vld [vmem:[%s21294_s13 + $0x68] ss:$16 sps:$4 sm:$0xff]  }
 0x490   : > { %14101 = vmatprep.mubr.bf16.mxu1 %v21363_v56  ;;  %v13738_v23 = vpop.f32.mrf.mxu0  ;;  %v19283_v53 = vld [vmem:[%s21294_s13 + $0x28c] ss:$16 sps:$4 sm:$0xff]   ;;  %v19278_v56 = vld [vmem:[%s21294_s13 + $0x88] ss:$16 sps:$4 sm:$0xff]  }
 0x491   : > { %v13779_v29 = vpop.f32.mrf.mxu1  ;;  %v22678_v19 = vadd.f32 %v13777_v61, %v13737_v38  ;;  %14031 = vmatpush1.bf16.msra.mxu0 %v19266_v16  ;;  %v19286_v16 = vld [vmem:[%s21294_s13 + $0x6c] ss:$16 sps:$4 sm:$0xff]   ;;  %v19287_v34 = vld [vmem:[%s21294_s13 + $0x268] ss:$16 sps:$4 sm:$0xff]  }
 0x492   : > { %14072 = vmatpush1.bf16.msra.mxu1 %v19269_v8  ;;  %v13739_v37 = vpop.f32.mrf.mxu0  ;;  %14032 = vmatprep.subr.bf16.mxu0 %v19274_v59  ;;  %v19289_v8 = vld [vmem:[%s21294_s13 + $0x26c] ss:$16 sps:$4 sm:$0xff]   ;;  %v19290_v60 = vld [vmem:[%s21294_s13 + $0x48] ss:$16 sps:$4 sm:$0xff]  }
 0x493   : > { %v13780_v62 = vpop.f32.mrf.mxu1  ;;  %14073 = vmatprep.subr.bf16.mxu1 %v19277_v27  ;;  %v19293_v61 = vld [vmem:[%s21294_s13 + $0x248] ss:$16 sps:$4 sm:$0xff]   ;;  %v19298_v59 = vld [vmem:[%s21294_s13 + $0x2c] ss:$16 sps:$4 sm:$0xff]  }
 0x494   : > { %v19301_v27 = vld [vmem:[%s21294_s13 + $0x22c] ss:$16 sps:$4 sm:$0xff]   ;;  %v19296_v38 = vld [vmem:[%s21294_s13 + $0x28] ss:$16 sps:$4 sm:$0xff]  }
 0x495   : > { %14033 = vmatpush1.bf16.msra.mxu0 %v19272_v58  ;;  %v19292_v58 = vld [vmem:[%s21294_s13 + $0x4c] ss:$16 sps:$4 sm:$0xff]   ;;  %v19299_v23 = vld [vmem:[%s21294_s13 + $0x228] ss:$16 sps:$4 sm:$0xff]  }
 0x496   : > { %14074 = vmatpush1.bf16.msra.mxu1 %v19275_v20  ;;  %14034 = vmatprep.subr.bf16.mxu0 %v19280_v31  ;;  %v19295_v20 = vld [vmem:[%s21294_s13 + $0x24c] ss:$16 sps:$4 sm:$0xff]   ;;  %v19302_v62 = vld [vmem:[%s21294_s13 + $0x8] ss:$16 sps:$4 sm:$0xff]  }
 0x497   : > { %14075 = vmatprep.subr.bf16.mxu1 %v19283_v53  ;;  %v19304_v29 = vld [vmem:[%s21294_s13 + $0xc] ss:$16 sps:$4 sm:$0xff]   ;;  %v19305_v31 = vld [vmem:[%s21294_s13 + $0x208] ss:$16 sps:$4 sm:$0xff]  }
 0x498   : > { %v19307_v37 = vld [vmem:[%s21294_s13 + $0x20c] ss:$16 sps:$4 sm:$0xff]  }
 0x499   : > { %14035 = vmatpush1.bf16.msra.mxu0 %v19278_v56  ;;  %v19310_v53 = vld [vmem:[%s21294_s13 + $0x1ec] ss:$16 sps:$4 sm:$0xff]  }
 0x49a   : > { %14076 = vmatpush1.bf16.msra.mxu1 %v19281_v18  ;;  %14036 = vmatprep.subr.bf16.mxu0 %v19286_v16  ;;  %v19313_v56 = vld [vmem:[%s21294_s13 + $0x3ec] ss:$16 sps:$4 sm:$0xff]   ;;  %v19308_v18 = vld [vmem:[%s21294_s13 + $0x1e8] ss:$16 sps:$4 sm:$0xff]  }
 0x49b   : > { %14077 = vmatprep.subr.bf16.mxu1 %v19289_v8  ;;  %v19311_v16 = vld [vmem:[%s21294_s13 + $0x3e8] ss:$16 sps:$4 sm:$0xff]   ;;  %v19316_v8 = vld [vmem:[%s21294_s13 + $0x1cc] ss:$16 sps:$4 sm:$0xff]  }
 0x49d   : > { %14037 = vmatpush1.bf16.msra.mxu0 %v19284_v17  ;;  %v19319_v17 = vld [vmem:[%s21294_s13 + $0x3cc] ss:$16 sps:$4 sm:$0xff]  }
 0x49e   : > { %14078 = vmatpush1.bf16.msra.mxu1 %v19287_v34  ;;  %14038 = vmatprep.subr.bf16.mxu0 %v19292_v58  ;;  %v19314_v34 = vld [vmem:[%s21294_s13 + $0x1c8] ss:$16 sps:$4 sm:$0xff]  }
 0x49f   : > { %14079 = vmatprep.subr.bf16.mxu1 %v19295_v20  ;;  %v19317_v58 = vld [vmem:[%s21294_s13 + $0x3c8] ss:$16 sps:$4 sm:$0xff]   ;;  %v19322_v20 = vld [vmem:[%s21294_s13 + $0x1ac] ss:$16 sps:$4 sm:$0xff]  }
 0x4a1   : > { %14039 = vmatpush1.bf16.msra.mxu0 %v19290_v60  ;;  %v19325_v60 = vld [vmem:[%s21294_s13 + $0x3ac] ss:$16 sps:$4 sm:$0xff]  }
 0x4a2   : > { %14080 = vmatpush1.bf16.msra.mxu1 %v19293_v61  ;;  %14040 = vmatprep.subr.bf16.mxu0 %v19298_v59  ;;  %v19320_v61 = vld [vmem:[%s21294_s13 + $0x1a8] ss:$16 sps:$4 sm:$0xff]  }
 0x4a3   : > { %14081 = vmatprep.subr.bf16.mxu1 %v19301_v27  ;;  %v19323_v59 = vld [vmem:[%s21294_s13 + $0x3a8] ss:$16 sps:$4 sm:$0xff]   ;;  %v19328_v27 = vld [vmem:[%s21294_s13 + $0x18c] ss:$16 sps:$4 sm:$0xff]  }
 0x4a5   : > { %14041 = vmatpush1.bf16.msra.mxu0 %v19296_v38  ;;  %v19331_v38 = vld [vmem:[%s21294_s13 + $0x38c] ss:$16 sps:$4 sm:$0xff]  }
 0x4a6   : > { %14082 = vmatpush1.bf16.msra.mxu1 %v19299_v23  ;;  %14042 = vmatprep.subr.bf16.mxu0 %v19304_v29  ;;  %v19326_v23 = vld [vmem:[%s21294_s13 + $0x188] ss:$16 sps:$4 sm:$0xff]  }
 0x4a7   : > { %14083 = vmatprep.subr.bf16.mxu1 %v19307_v37  ;;  %v19329_v29 = vld [vmem:[%s21294_s13 + $0x388] ss:$16 sps:$4 sm:$0xff]   ;;  %v19334_v37 = vld [vmem:[%s21294_s13 + $0x16c] ss:$16 sps:$4 sm:$0xff]  }
 0x4a9   : > { %14043 = vmatpush1.bf16.msra.mxu0 %v19302_v62  ;;  %v19337_v62 = vld [vmem:[%s21294_s13 + $0x36c] ss:$16 sps:$4 sm:$0xff]  }
 0x4aa   : > { %14084 = vmatpush1.bf16.msra.mxu1 %v19305_v31  ;;  %14044 = vmatprep.subr.bf16.mxu0 %v19310_v53  ;;  %v19332_v31 = vld [vmem:[%s21294_s13 + $0x168] ss:$16 sps:$4 sm:$0xff]  }
 0x4ab   : > { %14085 = vmatprep.subr.bf16.mxu1 %v19313_v56  ;;  %v19335_v53 = vld [vmem:[%s21294_s13 + $0x368] ss:$16 sps:$4 sm:$0xff]   ;;  %v19340_v56 = vld [vmem:[%s21294_s13 + $0x14c] ss:$16 sps:$4 sm:$0xff]  }
 0x4ad   : > { %14045 = vmatpush2.bf16.msra.mxu0 %v19308_v18  ;;  %v19343_v18 = vld [vmem:[%s21294_s13 + $0x34c] ss:$16 sps:$4 sm:$0xff]  }
 0x4ae   : > { %14086 = vmatpush2.bf16.msra.mxu1 %v19311_v16  ;;  %14046 = vmatprep.subr.bf16.mxu0 %v19316_v8  ;;  %v19338_v16 = vld [vmem:[%s21294_s13 + $0x148] ss:$16 sps:$4 sm:$0xff]  }
 0x4af   : > { %14087 = vmatprep.subr.bf16.mxu1 %v19319_v17  ;;  %v19341_v8 = vld [vmem:[%s21294_s13 + $0x348] ss:$16 sps:$4 sm:$0xff]   ;;  %v19346_v17 = vld [vmem:[%s21294_s13 + $0x12c] ss:$16 sps:$4 sm:$0xff]  }
 0x4b1   : > { %14047 = vmatpush2.bf16.msra.mxu0 %v19314_v34  ;;  %v19349_v34 = vld [vmem:[%s21294_s13 + $0x32c] ss:$16 sps:$4 sm:$0xff]  }
 0x4b2   : > { %14088 = vmatpush2.bf16.msra.mxu1 %v19317_v58  ;;  %14048 = vmatprep.subr.bf16.mxu0 %v19322_v20  ;;  %v19344_v58 = vld [vmem:[%s21294_s13 + $0x128] ss:$16 sps:$4 sm:$0xff]  }
 0x4b3   : > { %14089 = vmatprep.subr.bf16.mxu1 %v19325_v60  ;;  %v19347_v20 = vld [vmem:[%s21294_s13 + $0x328] ss:$16 sps:$4 sm:$0xff]   ;;  %v19352_v60 = vld [vmem:[%s21294_s13 + $0x10c] ss:$16 sps:$4 sm:$0xff]  }
 0x4b5   : > { %14049 = vmatpush2.bf16.msra.mxu0 %v19320_v61  ;;  %v19355_v61 = vld [vmem:[%s21294_s13 + $0x30c] ss:$16 sps:$4 sm:$0xff]  }
 0x4b6   : > { %14090 = vmatpush2.bf16.msra.mxu1 %v19323_v59  ;;  %14050 = vmatprep.subr.bf16.mxu0 %v19328_v27  ;;  %v19350_v59 = vld [vmem:[%s21294_s13 + $0x108] ss:$16 sps:$4 sm:$0xff]  }
 0x4b7   : > { %14091 = vmatprep.subr.bf16.mxu1 %v19331_v38  ;;  %v19353_v27 = vld [vmem:[%s21294_s13 + $0x308] ss:$16 sps:$4 sm:$0xff]   ;;  %v19358_v38 = vld [vmem:[%s21294_s13 + $0x4ec] ss:$16 sps:$4 sm:$0xff]  }
 0x4b9   : > { %14051 = vmatpush2.bf16.msra.mxu0 %v19326_v23  ;;  %v19361_v23 = vld [vmem:[%s21294_s13 + $0x6ec] ss:$16 sps:$4 sm:$0xff]  }
 0x4ba   : > { %14092 = vmatpush2.bf16.msra.mxu1 %v19329_v29  ;;  %14052 = vmatprep.subr.bf16.mxu0 %v19334_v37  ;;  %v19356_v29 = vld [vmem:[%s21294_s13 + $0x4e8] ss:$16 sps:$4 sm:$0xff]  }
 0x4bb   : > { %14093 = vmatprep.subr.bf16.mxu1 %v19337_v62  ;;  %v19359_v37 = vld [vmem:[%s21294_s13 + $0x6e8] ss:$16 sps:$4 sm:$0xff]   ;;  %v19364_v62 = vld [vmem:[%s21294_s13 + $0x4cc] ss:$16 sps:$4 sm:$0xff]  }
 0x4bd   : > { %14053 = vmatpush2.bf16.msra.mxu0 %v19332_v31  ;;  %v19367_v31 = vld [vmem:[%s21294_s13 + $0x6cc] ss:$16 sps:$4 sm:$0xff]  }
 0x4be   : > { %14094 = vmatpush2.bf16.msra.mxu1 %v19335_v53  ;;  %14054 = vmatprep.subr.bf16.mxu0 %v19340_v56  ;;  %v19362_v53 = vld [vmem:[%s21294_s13 + $0x4c8] ss:$16 sps:$4 sm:$0xff]  }
 0x4bf   : > { %14095 = vmatprep.subr.bf16.mxu1 %v19343_v18 }
 0x4c1   : > { %14055 = vmatpush2.bf16.msra.mxu0 %v19338_v16 }
 0x4c2   : > { %14096 = vmatpush2.bf16.msra.mxu1 %v19341_v8  ;;  %14056 = vmatprep.subr.bf16.mxu0 %v19346_v17  ;;  %v19365_v8 = vld [vmem:[%s21294_s13 + $0x6c8] ss:$16 sps:$4 sm:$0xff]  }
 0x4c3   : > { %14097 = vmatprep.subr.bf16.mxu1 %v19349_v34 }
 0x4c5   : > { %14057 = vmatpush2.bf16.msra.mxu0 %v19344_v58  ;;  %v19370_v58 = vld [vmem:[%s21294_s13 + $0x4ac] ss:$16 sps:$4 sm:$0xff]  }
 0x4c6   : > { %14098 = vmatpush2.bf16.msra.mxu1 %v19347_v20  ;;  %14058 = vmatprep.subr.bf16.mxu0 %v19352_v60  ;;  %v19373_v20 = vld [vmem:[%s21294_s13 + $0x6ac] ss:$16 sps:$4 sm:$0xff]  }
 0x4c7   : > { %14099 = vmatprep.subr.bf16.mxu1 %v19355_v61 }
 0x4c9   : > { %14059 = vmatpush2.bf16.msra.mxu0 %v19350_v59  ;;  %v19371_v59 = vld [vmem:[%s21294_s13 + $0x6a8] ss:$16 sps:$4 sm:$0xff]  }
 0x4ca   : > { %14100 = vmatpush2.bf16.msra.mxu1 %v19353_v27  ;;  %14110 = vmatprep.subr.bf16.mxu0 %v19358_v38 }
 0x4cb   : > { %14151 = vmatprep.subr.bf16.mxu1 %v19361_v23 }
 0x4cc   : > { %v13816_v56 = vpop.f32.mrf.mxu0  ;;  %14061 = vmatmul.mubr.bf16.vlgmr.msra.gmra.mxu0 %v21386_v12  ;;  %v19368_v12 = vld [vmem:[%s21294_s13 + $0x4a8] ss:$16 sps:$4 sm:$0xff]  }
 0x4cd   : > { %v13857_v18 = vpop.f32.mrf.mxu1  ;;  %14102 = vmatmul.mubr.bf16.vlgmr.msra.gmra.mxu1 %v21388_v13  ;;  %v13817_v16 = vadd.f32 %v13816_v56, %v22671_v9  ;;  %14111 = vmatpush1.bf16.msra.mxu0 %v19356_v29  ;;  %v19377_v29 = vld [vmem:[%s21294_s13 + $0x688] ss:$16 sps:$4 sm:$0xff]   ;;  %v19388_v56 = vld [vmem:[%s21294_s13 + $0x44c] ss:$16 sps:$4 sm:$0xff]  }
 0x4ce   : > { %14152 = vmatpush1.bf16.msra.mxu1 %v19359_v37  ;;  %v13818_v17 = vpop.f32.mrf.mxu0  ;;  %14112 = vmatprep.subr.bf16.mxu0 %v19364_v62  ;;  %v19382_v37 = vld [vmem:[%s21294_s13 + $0x46c] ss:$16 sps:$4 sm:$0xff]  }
 0x4cf   : > { %v13859_v34 = vpop.f32.mrf.mxu1  ;;  %14153 = vmatprep.subr.bf16.mxu1 %v19367_v31  ;;  %v22745_v60 = vadd.f32 %v13857_v18, %v13817_v16  ;;  %v13819_v61 = vadd.f32 %v13818_v17, %v22678_v19  ;;  %14142 = vmatprep.mubr.bf16.mxu0 %v21419_v41  ;;  %v19376_v19 = vld [vmem:[%s21294_s13 + $0x48c] ss:$16 sps:$4 sm:$0xff]   ;;  %v19380_v31 = vld [vmem:[%s21294_s13 + $0x468] ss:$16 sps:$4 sm:$0xff]  }
 0x4d0   : > { %14183 = vmatprep.mubr.bf16.mxu1 %v21423_v44  ;;  %v13820_v13 = vpop.f32.mrf.mxu0  ;;  %v19379_v41 = vld [vmem:[%s21294_s13 + $0x68c] ss:$16 sps:$4 sm:$0xff]   ;;  %v19374_v44 = vld [vmem:[%s21294_s13 + $0x488] ss:$16 sps:$4 sm:$0xff]  }
 0x4d1   : > { %v13861_v9 = vpop.f32.mrf.mxu1  ;;  %v22752_v27 = vadd.f32 %v13859_v34, %v13819_v61  ;;  %14113 = vmatpush1.bf16.msra.mxu0 %v19362_v53  ;;  %v19385_v62 = vld [vmem:[%s21294_s13 + $0x66c] ss:$16 sps:$4 sm:$0xff]   ;;  %v19383_v53 = vld [vmem:[%s21294_s13 + $0x668] ss:$16 sps:$4 sm:$0xff]  }
 0x4d2   : > { %14154 = vmatpush1.bf16.msra.mxu1 %v19365_v8  ;;  %v13821_v38 = vpop.f32.mrf.mxu0  ;;  %14114 = vmatprep.subr.bf16.mxu0 %v19370_v58  ;;  %v19391_v18 = vld [vmem:[%s21294_s13 + $0x64c] ss:$16 sps:$4 sm:$0xff]   ;;  %v19386_v16 = vld [vmem:[%s21294_s13 + $0x448] ss:$16 sps:$4 sm:$0xff]  }
 0x4d3   : > { %v13862_v23 = vpop.f32.mrf.mxu1  ;;  %14155 = vmatprep.subr.bf16.mxu1 %v19373_v20  ;;  %v19389_v8 = vld [vmem:[%s21294_s13 + $0x648] ss:$16 sps:$4 sm:$0xff]   ;;  %v19394_v17 = vld [vmem:[%s21294_s13 + $0x42c] ss:$16 sps:$4 sm:$0xff]  }
 0x4d4   : > { %v19397_v34 = vld [vmem:[%s21294_s13 + $0x62c] ss:$16 sps:$4 sm:$0xff]   ;;  %v19392_v58 = vld [vmem:[%s21294_s13 + $0x428] ss:$16 sps:$4 sm:$0xff]  }
 0x4d5   : > { %14115 = vmatpush1.bf16.msra.mxu0 %v19368_v12  ;;  %v19395_v20 = vld [vmem:[%s21294_s13 + $0x628] ss:$16 sps:$4 sm:$0xff]   ;;  %v19400_v61 = vld [vmem:[%s21294_s13 + $0x40c] ss:$16 sps:$4 sm:$0xff]  }
 0x4d6   : > { %14156 = vmatpush1.bf16.msra.mxu1 %v19371_v59  ;;  %14116 = vmatprep.subr.bf16.mxu0 %v19376_v19  ;;  %v19403_v12 = vld [vmem:[%s21294_s13 + $0x60c] ss:$16 sps:$4 sm:$0xff]   ;;  %v19398_v59 = vld [vmem:[%s21294_s13 + $0x408] ss:$16 sps:$4 sm:$0xff]  }
 0x4d7   : > { %14157 = vmatprep.subr.bf16.mxu1 %v19379_v41  ;;  %v19401_v13 = vld [vmem:[%s21294_s13 + $0x608] ss:$16 sps:$4 sm:$0xff]   ;;  %v19406_v9 = vld [vmem:[%s21294_s13 + $0x5ec] ss:$16 sps:$4 sm:$0xff]  }
 0x4d8   : > { %v19409_v38 = vld [vmem:[%s21294_s13 + $0x7ec] ss:$16 sps:$4 sm:$0xff]   ;;  %v19404_v23 = vld [vmem:[%s21294_s13 + $0x5e8] ss:$16 sps:$4 sm:$0xff]  }
 0x4d9   : > { %14117 = vmatpush1.bf16.msra.mxu0 %v19374_v44  ;;  %v19407_v19 = vld [vmem:[%s21294_s13 + $0x7e8] ss:$16 sps:$4 sm:$0xff]   ;;  %v19412_v41 = vld [vmem:[%s21294_s13 + $0x5cc] ss:$16 sps:$4 sm:$0xff]  }
 0x4da   : > { %14158 = vmatpush1.bf16.msra.mxu1 %v19377_v29  ;;  %14118 = vmatprep.subr.bf16.mxu0 %v19382_v37  ;;  %v19415_v44 = vld [vmem:[%s21294_s13 + $0x7cc] ss:$16 sps:$4 sm:$0xff]   ;;  %v19410_v29 = vld [vmem:[%s21294_s13 + $0x5c8] ss:$16 sps:$4 sm:$0xff]  }
 0x4db   : > { %14159 = vmatprep.subr.bf16.mxu1 %v19385_v62  ;;  %v19413_v37 = vld [vmem:[%s21294_s13 + $0x7c8] ss:$16 sps:$4 sm:$0xff]   ;;  %v19418_v62 = vld [vmem:[%s21294_s13 + $0x5ac] ss:$16 sps:$4 sm:$0xff]  }
 0x4dd   : > { %14119 = vmatpush1.bf16.msra.mxu0 %v19380_v31  ;;  %v19421_v31 = vld [vmem:[%s21294_s13 + $0x7ac] ss:$16 sps:$4 sm:$0xff]  }
 0x4de   : > { %14160 = vmatpush1.bf16.msra.mxu1 %v19383_v53  ;;  %14120 = vmatprep.subr.bf16.mxu0 %v19388_v56  ;;  %v19416_v53 = vld [vmem:[%s21294_s13 + $0x5a8] ss:$16 sps:$4 sm:$0xff]  }
 0x4df   : > { %14161 = vmatprep.subr.bf16.mxu1 %v19391_v18  ;;  %v19419_v56 = vld [vmem:[%s21294_s13 + $0x7a8] ss:$16 sps:$4 sm:$0xff]   ;;  %v19424_v18 = vld [vmem:[%s21294_s13 + $0x58c] ss:$16 sps:$4 sm:$0xff]  }
 0x4e1   : > { %14121 = vmatpush1.bf16.msra.mxu0 %v19386_v16  ;;  %v19427_v16 = vld [vmem:[%s21294_s13 + $0x78c] ss:$16 sps:$4 sm:$0xff]  }
 0x4e2   : > { %14162 = vmatpush1.bf16.msra.mxu1 %v19389_v8  ;;  %14122 = vmatprep.subr.bf16.mxu0 %v19394_v17  ;;  %v19422_v8 = vld [vmem:[%s21294_s13 + $0x588] ss:$16 sps:$4 sm:$0xff]  }
 0x4e3   : > { %14163 = vmatprep.subr.bf16.mxu1 %v19397_v34  ;;  %v19425_v17 = vld [vmem:[%s21294_s13 + $0x788] ss:$16 sps:$4 sm:$0xff]   ;;  %v19430_v34 = vld [vmem:[%s21294_s13 + $0x56c] ss:$16 sps:$4 sm:$0xff]  }
 0x4e5   : > { %14123 = vmatpush1.bf16.msra.mxu0 %v19392_v58  ;;  %v19433_v58 = vld [vmem:[%s21294_s13 + $0x76c] ss:$16 sps:$4 sm:$0xff]  }
 0x4e6   : > { %14164 = vmatpush1.bf16.msra.mxu1 %v19395_v20  ;;  %14124 = vmatprep.subr.bf16.mxu0 %v19400_v61  ;;  %v19428_v20 = vld [vmem:[%s21294_s13 + $0x568] ss:$16 sps:$4 sm:$0xff]  }
 0x4e7   : > { %14165 = vmatprep.subr.bf16.mxu1 %v19403_v12  ;;  %v19431_v61 = vld [vmem:[%s21294_s13 + $0x768] ss:$16 sps:$4 sm:$0xff]   ;;  %v19436_v12 = vld [vmem:[%s21294_s13 + $0x54c] ss:$16 sps:$4 sm:$0xff]  }
 0x4e9   : > { %14125 = vmatpush1.bf16.msra.mxu0 %v19398_v59  ;;  %v19439_v59 = vld [vmem:[%s21294_s13 + $0x74c] ss:$16 sps:$4 sm:$0xff]  }
 0x4ea   : > { %14166 = vmatpush1.bf16.msra.mxu1 %v19401_v13  ;;  %14126 = vmatprep.subr.bf16.mxu0 %v19406_v9  ;;  %v19434_v13 = vld [vmem:[%s21294_s13 + $0x548] ss:$16 sps:$4 sm:$0xff]  }
 0x4eb   : > { %14167 = vmatprep.subr.bf16.mxu1 %v19409_v38  ;;  %v19437_v9 = vld [vmem:[%s21294_s13 + $0x748] ss:$16 sps:$4 sm:$0xff]   ;;  %v19442_v38 = vld [vmem:[%s21294_s13 + $0x52c] ss:$16 sps:$4 sm:$0xff]  }
 0x4ed   : > { %14127 = vmatpush2.bf16.msra.mxu0 %v19404_v23  ;;  %v19445_v23 = vld [vmem:[%s21294_s13 + $0x72c] ss:$16 sps:$4 sm:$0xff]  }
 0x4ee   : > { %14168 = vmatpush2.bf16.msra.mxu1 %v19407_v19  ;;  %14128 = vmatprep.subr.bf16.mxu0 %v19412_v41  ;;  %v19440_v19 = vld [vmem:[%s21294_s13 + $0x528] ss:$16 sps:$4 sm:$0xff]  }
 0x4ef   : > { %14169 = vmatprep.subr.bf16.mxu1 %v19415_v44  ;;  %v19443_v41 = vld [vmem:[%s21294_s13 + $0x728] ss:$16 sps:$4 sm:$0xff]   ;;  %v19448_v44 = vld [vmem:[%s21294_s13 + $0x50c] ss:$16 sps:$4 sm:$0xff]  }
 0x4f1   : > { %14129 = vmatpush2.bf16.msra.mxu0 %v19410_v29  ;;  %v19451_v29 = vld [vmem:[%s21294_s13 + $0x70c] ss:$16 sps:$4 sm:$0xff]  }
 0x4f2   : > { %14170 = vmatpush2.bf16.msra.mxu1 %v19413_v37  ;;  %14130 = vmatprep.subr.bf16.mxu0 %v19418_v62  ;;  %v19446_v37 = vld [vmem:[%s21294_s13 + $0x508] ss:$16 sps:$4 sm:$0xff]  }
 0x4f3   : > { %14171 = vmatprep.subr.bf16.mxu1 %v19421_v31  ;;  %v19449_v62 = vld [vmem:[%s21294_s13 + $0x708] ss:$16 sps:$4 sm:$0xff]   ;;  %v19454_v31 = vld [vmem:[%s21294_s13 + $0x8ec] ss:$16 sps:$4 sm:$0xff]  }
 0x4f5   : > { %14131 = vmatpush2.bf16.msra.mxu0 %v19416_v53  ;;  %v19457_v53 = vld [vmem:[%s21294_s13 + $0xaec] ss:$16 sps:$4 sm:$0xff]  }
 0x4f6   : > { %14172 = vmatpush2.bf16.msra.mxu1 %v19419_v56  ;;  %14132 = vmatprep.subr.bf16.mxu0 %v19424_v18  ;;  %v19452_v56 = vld [vmem:[%s21294_s13 + $0x8e8] ss:$16 sps:$4 sm:$0xff]  }
 0x4f7   : > { %14173 = vmatprep.subr.bf16.mxu1 %v19427_v16  ;;  %v19455_v18 = vld [vmem:[%s21294_s13 + $0xae8] ss:$16 sps:$4 sm:$0xff]   ;;  %v19460_v16 = vld [vmem:[%s21294_s13 + $0x8cc] ss:$16 sps:$4 sm:$0xff]  }
 0x4f9   : > { %14133 = vmatpush2.bf16.msra.mxu0 %v19422_v8  ;;  %v19463_v8 = vld [vmem:[%s21294_s13 + $0xacc] ss:$16 sps:$4 sm:$0xff]  }
 0x4fa   : > { %14174 = vmatpush2.bf16.msra.mxu1 %v19425_v17  ;;  %14134 = vmatprep.subr.bf16.mxu0 %v19430_v34 }
 0x4fb   : > { %14175 = vmatprep.subr.bf16.mxu1 %v19433_v58  ;;  %v19458_v58 = vld [vmem:[%s21294_s13 + $0x8c8] ss:$16 sps:$4 sm:$0xff]  }
 0x4fd   : > { %14135 = vmatpush2.bf16.msra.mxu0 %v19428_v20  ;;  %v19461_v20 = vld [vmem:[%s21294_s13 + $0xac8] ss:$16 sps:$4 sm:$0xff]  }
 0x4fe   : > { %14176 = vmatpush2.bf16.msra.mxu1 %v19431_v61  ;;  %14136 = vmatprep.subr.bf16.mxu0 %v19436_v12 }
 0x4ff   : > { %14177 = vmatprep.subr.bf16.mxu1 %v19439_v59  ;;  %v19466_v59 = vld [vmem:[%s21294_s13 + $0x8ac] ss:$16 sps:$4 sm:$0xff]  }
 0x501   : > { %14137 = vmatpush2.bf16.msra.mxu0 %v19434_v13  ;;  %v19469_v13 = vld [vmem:[%s21294_s13 + $0xaac] ss:$16 sps:$4 sm:$0xff]  }
 0x502   : > { %14178 = vmatpush2.bf16.msra.mxu1 %v19437_v9  ;;  %14138 = vmatprep.subr.bf16.mxu0 %v19442_v38  ;;  %v19464_v9 = vld [vmem:[%s21294_s13 + $0x8a8] ss:$16 sps:$4 sm:$0xff]  }
 0x503   : > { %14179 = vmatprep.subr.bf16.mxu1 %v19445_v23  ;;  %v19467_v38 = vld [vmem:[%s21294_s13 + $0xaa8] ss:$16 sps:$4 sm:$0xff]  }
 0x505   : > { %14139 = vmatpush2.bf16.msra.mxu0 %v19440_v19 }
 0x506   : > { %14180 = vmatpush2.bf16.msra.mxu1 %v19443_v41  ;;  %14140 = vmatprep.subr.bf16.mxu0 %v19448_v44  ;;  %v19472_v41 = vld [vmem:[%s21294_s13 + $0x88c] ss:$16 sps:$4 sm:$0xff]   ;;  %v19473_v44 = vld [vmem:[%s21294_s13 + $0xa88] ss:$16 sps:$4 sm:$0xff]  }
 0x507   : > { %14181 = vmatprep.subr.bf16.mxu1 %v19451_v29  ;;  %v19478_v29 = vld [vmem:[%s21294_s13 + $0x86c] ss:$16 sps:$4 sm:$0xff]  }
 0x509   : > { %14141 = vmatpush2.bf16.msra.mxu0 %v19446_v37  ;;  %v19481_v37 = vld [vmem:[%s21294_s13 + $0xa6c] ss:$16 sps:$4 sm:$0xff]  }
 0x50a   : > { %14182 = vmatpush2.bf16.msra.mxu1 %v19449_v62  ;;  %14192 = vmatprep.subr.bf16.mxu0 %v19454_v31  ;;  %v19476_v62 = vld [vmem:[%s21294_s13 + $0x868] ss:$16 sps:$4 sm:$0xff]  }
 0x50b   : > { %14233 = vmatprep.subr.bf16.mxu1 %v19457_v53  ;;  %v19479_v31 = vld [vmem:[%s21294_s13 + $0xa68] ss:$16 sps:$4 sm:$0xff]   ;;  %v19484_v53 = vld [vmem:[%s21294_s13 + $0x84c] ss:$16 sps:$4 sm:$0xff]  }
 0x50c   : > { %v22812_v17 = vpop.f32.mrf.mxu0  ;;  %14143 = vmatmul.mubr.bf16.vlgmr.msra.gmra.mxu0 %v21466_v24 }
 0x50d   : > { %v22814_v34 = vpop.f32.mrf.mxu1  ;;  %14184 = vmatmul.mubr.bf16.vlgmr.msra.gmra.mxu1 %v21468_v25  ;;  %14193 = vmatpush1.bf16.msra.mxu0 %v19452_v56  ;;  %v19487_v56 = vld [vmem:[%s21294_s13 + $0xa4c] ss:$16 sps:$4 sm:$0xff]  }
 0x50e   : > { %14234 = vmatpush1.bf16.msra.mxu1 %v19455_v18  ;;  %v22820_v61 = vpop.f32.mrf.mxu0  ;;  %14194 = vmatprep.subr.bf16.mxu0 %v19460_v16  ;;  %v19482_v18 = vld [vmem:[%s21294_s13 + $0x848] ss:$16 sps:$4 sm:$0xff]  }
 0x50f   : > { %v22822_v12 = vpop.f32.mrf.mxu1  ;;  %14235 = vmatprep.subr.bf16.mxu1 %v19463_v8  ;;  %14224 = vmatprep.mubr.bf16.mxu0 %v21479_v33  ;;  %v19475_v33 = vld [vmem:[%s21294_s13 + $0xa8c] ss:$16 sps:$4 sm:$0xff]   ;;  %v19485_v16 = vld [vmem:[%s21294_s13 + $0xa48] ss:$16 sps:$4 sm:$0xff]  }
 0x510   : > { %14265 = vmatprep.mubr.bf16.mxu1 %v21483_v36  ;;  %v13902_v24 = vpop.f32.mrf.mxu0  ;;  %v19470_v36 = vld [vmem:[%s21294_s13 + $0x888] ss:$16 sps:$4 sm:$0xff]   ;;  %v19490_v8 = vld [vmem:[%s21294_s13 + $0x82c] ss:$16 sps:$4 sm:$0xff]  }
 0x511   : > { %v13943_v25 = vpop.f32.mrf.mxu1  ;;  %14195 = vmatpush1.bf16.msra.mxu0 %v19458_v58  ;;  %v19493_v58 = vld [vmem:[%s21294_s13 + $0xa2c] ss:$16 sps:$4 sm:$0xff]  }
 0x512   : > { %14236 = vmatpush1.bf16.msra.mxu1 %v19461_v20  ;;  %v13903_v23 = vpop.f32.mrf.mxu0  ;;  %14196 = vmatprep.subr.bf16.mxu0 %v19466_v59  ;;  %v19488_v20 = vld [vmem:[%s21294_s13 + $0x828] ss:$16 sps:$4 sm:$0xff]   ;;  %v19499_v24 = vld [vmem:[%s21294_s13 + $0xa0c] ss:$16 sps:$4 sm:$0xff]  }
 0x513   : > { %v13944_v19 = vpop.f32.mrf.mxu1  ;;  %14237 = vmatprep.subr.bf16.mxu1 %v19469_v13  ;;  %v19491_v59 = vld [vmem:[%s21294_s13 + $0xa28] ss:$16 sps:$4 sm:$0xff]   ;;  %v19496_v13 = vld [vmem:[%s21294_s13 + $0x80c] ss:$16 sps:$4 sm:$0xff]  }
 0x514   : > { %v19494_v25 = vld [vmem:[%s21294_s13 + $0x808] ss:$16 sps:$4 sm:$0xff]   ;;  %v19505_v23 = vld [vmem:[%s21294_s13 + $0xbec] ss:$16 sps:$4 sm:$0xff]  }
 0x515   : > { %14197 = vmatpush1.bf16.msra.mxu0 %v19464_v9  ;;  %v19497_v9 = vld [vmem:[%s21294_s13 + $0xa08] ss:$16 sps:$4 sm:$0xff]  }
 0x516   : > { %14238 = vmatpush1.bf16.msra.mxu1 %v19467_v38  ;;  %14198 = vmatprep.subr.bf16.mxu0 %v19472_v41  ;;  %v19502_v38 = vld [vmem:[%s21294_s13 + $0x9ec] ss:$16 sps:$4 sm:$0xff]   ;;  %v19500_v19 = vld [vmem:[%s21294_s13 + $0x9e8] ss:$16 sps:$4 sm:$0xff]  }
 0x517   : > { %14239 = vmatprep.subr.bf16.mxu1 %v19475_v33  ;;  %v19503_v41 = vld [vmem:[%s21294_s13 + $0xbe8] ss:$16 sps:$4 sm:$0xff]   ;;  %v19508_v33 = vld [vmem:[%s21294_s13 + $0x9cc] ss:$16 sps:$4 sm:$0xff]  }
 0x519   : > { %14199 = vmatpush1.bf16.msra.mxu0 %v19470_v36  ;;  %v19511_v36 = vld [vmem:[%s21294_s13 + $0xbcc] ss:$16 sps:$4 sm:$0xff]  }
 0x51a   : > { %14240 = vmatpush1.bf16.msra.mxu1 %v19473_v44  ;;  %14200 = vmatprep.subr.bf16.mxu0 %v19478_v29  ;;  %v19506_v44 = vld [vmem:[%s21294_s13 + $0x9c8] ss:$16 sps:$4 sm:$0xff]  }
 0x51b   : > { %14241 = vmatprep.subr.bf16.mxu1 %v19481_v37  ;;  %v19509_v29 = vld [vmem:[%s21294_s13 + $0xbc8] ss:$16 sps:$4 sm:$0xff]   ;;  %v19514_v37 = vld [vmem:[%s21294_s13 + $0x9ac] ss:$16 sps:$4 sm:$0xff]  }
 0x51d   : > { %14201 = vmatpush1.bf16.msra.mxu0 %v19476_v62  ;;  %v19517_v62 = vld [vmem:[%s21294_s13 + $0xbac] ss:$16 sps:$4 sm:$0xff]  }
 0x51e   : > { %14242 = vmatpush1.bf16.msra.mxu1 %v19479_v31  ;;  %14202 = vmatprep.subr.bf16.mxu0 %v19484_v53  ;;  %v19512_v31 = vld [vmem:[%s21294_s13 + $0x9a8] ss:$16 sps:$4 sm:$0xff]  }
 0x51f   : > { %14243 = vmatprep.subr.bf16.mxu1 %v19487_v56  ;;  %v19515_v53 = vld [vmem:[%s21294_s13 + $0xba8] ss:$16 sps:$4 sm:$0xff]   ;;  %v19520_v56 = vld [vmem:[%s21294_s13 + $0x98c] ss:$16 sps:$4 sm:$0xff]  }
 0x521   : > { %14203 = vmatpush1.bf16.msra.mxu0 %v19482_v18  ;;  %v19523_v18 = vld [vmem:[%s21294_s13 + $0xb8c] ss:$16 sps:$4 sm:$0xff]  }
 0x522   : > { %14244 = vmatpush1.bf16.msra.mxu1 %v19485_v16  ;;  %14204 = vmatprep.subr.bf16.mxu0 %v19490_v8  ;;  %v19518_v16 = vld [vmem:[%s21294_s13 + $0x988] ss:$16 sps:$4 sm:$0xff]  }
 0x523   : > { %14245 = vmatprep.subr.bf16.mxu1 %v19493_v58  ;;  %v19521_v8 = vld [vmem:[%s21294_s13 + $0xb88] ss:$16 sps:$4 sm:$0xff]   ;;  %v19526_v58 = vld [vmem:[%s21294_s13 + $0x96c] ss:$16 sps:$4 sm:$0xff]  }
 0x525   : > { %14205 = vmatpush1.bf16.msra.mxu0 %v19488_v20  ;;  %v19529_v20 = vld [vmem:[%s21294_s13 + $0xb6c] ss:$16 sps:$4 sm:$0xff]  }
 0x526   : > { %14246 = vmatpush1.bf16.msra.mxu1 %v19491_v59  ;;  %14206 = vmatprep.subr.bf16.mxu0 %v19496_v13  ;;  %v19524_v59 = vld [vmem:[%s21294_s13 + $0x968] ss:$16 sps:$4 sm:$0xff]  }
 0x527   : > { %14247 = vmatprep.subr.bf16.mxu1 %v19499_v24  ;;  %v19527_v13 = vld [vmem:[%s21294_s13 + $0xb68] ss:$16 sps:$4 sm:$0xff]   ;;  %v19532_v24 = vld [vmem:[%s21294_s13 + $0x94c] ss:$16 sps:$4 sm:$0xff]  }
 0x529   : > { %14207 = vmatpush1.bf16.msra.mxu0 %v19494_v25  ;;  %v19535_v25 = vld [vmem:[%s21294_s13 + $0xb4c] ss:$16 sps:$4 sm:$0xff]  }
 0x52a   : > { %14248 = vmatpush1.bf16.msra.mxu1 %v19497_v9  ;;  %14208 = vmatprep.subr.bf16.mxu0 %v19502_v38  ;;  %v19530_v9 = vld [vmem:[%s21294_s13 + $0x948] ss:$16 sps:$4 sm:$0xff]  }
 0x52b   : > { %14249 = vmatprep.subr.bf16.mxu1 %v19505_v23  ;;  %v19533_v38 = vld [vmem:[%s21294_s13 + $0xb48] ss:$16 sps:$4 sm:$0xff]   ;;  %v19538_v23 = vld [vmem:[%s21294_s13 + $0x92c] ss:$16 sps:$4 sm:$0xff]  }
 0x52d   : > { %14209 = vmatpush2.bf16.msra.mxu0 %v19500_v19  ;;  %v19541_v19 = vld [vmem:[%s21294_s13 + $0xb2c] ss:$16 sps:$4 sm:$0xff]  }
 0x52e   : > { %14250 = vmatpush2.bf16.msra.mxu1 %v19503_v41  ;;  %14210 = vmatprep.subr.bf16.mxu0 %v19508_v33  ;;  %v19536_v41 = vld [vmem:[%s21294_s13 + $0x928] ss:$16 sps:$4 sm:$0xff]  }
 0x52f   : > { %14251 = vmatprep.subr.bf16.mxu1 %v19511_v36  ;;  %v19539_v33 = vld [vmem:[%s21294_s13 + $0xb28] ss:$16 sps:$4 sm:$0xff]   ;;  %v19544_v36 = vld [vmem:[%s21294_s13 + $0x90c] ss:$16 sps:$4 sm:$0xff]  }
 0x531   : > { %14211 = vmatpush2.bf16.msra.mxu0 %v19506_v44  ;;  %v19547_v44 = vld [vmem:[%s21294_s13 + $0xb0c] ss:$16 sps:$4 sm:$0xff]  }
 0x532   : > { %14252 = vmatpush2.bf16.msra.mxu1 %v19509_v29  ;;  %14212 = vmatprep.subr.bf16.mxu0 %v19514_v37  ;;  %v19542_v29 = vld [vmem:[%s21294_s13 + $0x908] ss:$16 sps:$4 sm:$0xff]  }
 0x533   : > { %14253 = vmatprep.subr.bf16.mxu1 %v19517_v62  ;;  %v19545_v37 = vld [vmem:[%s21294_s13 + $0xb08] ss:$16 sps:$4 sm:$0xff]   ;;  %v19550_v62 = vld [vmem:[%s21294_s13 + $0xcec] ss:$16 sps:$4 sm:$0xff]  }
 0x535   : > { %14213 = vmatpush2.bf16.msra.mxu0 %v19512_v31  ;;  %v19553_v31 = vld [vmem:[%s21294_s13 + $0xeec] ss:$16 sps:$4 sm:$0xff]  }
 0x536   : > { %14254 = vmatpush2.bf16.msra.mxu1 %v19515_v53  ;;  %14214 = vmatprep.subr.bf16.mxu0 %v19520_v56  ;;  %v13899_v53 = vadd.f32 %v22812_v17, %v22745_v60  ;;  %v13901_v56 = vadd.f32 %v22820_v61, %v22752_v27  ;;  %v19554_v17 = vld [vmem:[%s21294_s13 + $0xcc8] ss:$16 sps:$4 sm:$0xff]  }
 0x537   : > { %14255 = vmatprep.subr.bf16.mxu1 %v19523_v18  ;;  %v19548_v18 = vld [vmem:[%s21294_s13 + $0xce8] ss:$16 sps:$4 sm:$0xff]  }
 0x538   : > { %v13942_v60 = vadd.f32 %v22822_v12, %v13901_v56  ;;  %v19557_v61 = vld [vmem:[%s21294_s13 + $0xec8] ss:$16 sps:$4 sm:$0xff]   ;;  %v19574_v56 = vld [vmem:[%s21294_s13 + $0xc6c] ss:$16 sps:$4 sm:$0xff]  }
 0x539   : > { %14215 = vmatpush2.bf16.msra.mxu0 %v19518_v16  ;;  %v19551_v16 = vld [vmem:[%s21294_s13 + $0xee8] ss:$16 sps:$4 sm:$0xff]  }
 0x53a   : > { %14256 = vmatpush2.bf16.msra.mxu1 %v19521_v8  ;;  %14216 = vmatprep.subr.bf16.mxu0 %v19526_v58  ;;  %v19556_v8 = vld [vmem:[%s21294_s13 + $0xccc] ss:$16 sps:$4 sm:$0xff]  }
 0x53b   : > { %14257 = vmatprep.subr.bf16.mxu1 %v19529_v20  ;;  %v19559_v58 = vld [vmem:[%s21294_s13 + $0xecc] ss:$16 sps:$4 sm:$0xff]   ;;  %v13940_v20 = vadd.f32 %v22814_v34, %v13899_v53  ;;  %v19569_v53 = vld [vmem:[%s21294_s13 + $0xe88] ss:$16 sps:$4 sm:$0xff]  }
 0x53c   : > { %v19562_v34 = vld [vmem:[%s21294_s13 + $0xcac] ss:$16 sps:$4 sm:$0xff]  }
 0x53d   : > { %14217 = vmatpush2.bf16.msra.mxu0 %v19524_v59 }
 0x53e   : > { %14258 = vmatpush2.bf16.msra.mxu1 %v19527_v13  ;;  %14218 = vmatprep.subr.bf16.mxu0 %v19532_v24  ;;  %v296_v24 = vld [vmem:[#allocation2 + $0x10] sm:$0xff] }
 0x53f   : > { %14259 = vmatprep.subr.bf16.mxu1 %v19535_v25 }
 0x541   : > { %14219 = vmatpush2.bf16.msra.mxu0 %v19530_v9 }
 0x542   : > { %14260 = vmatpush2.bf16.msra.mxu1 %v19533_v38  ;;  %14220 = vmatprep.subr.bf16.mxu0 %v19538_v23  ;;  %v19565_v38 = vld [vmem:[%s21294_s13 + $0xeac] ss:$16 sps:$4 sm:$0xff]  }
 0x543   : > { %14261 = vmatprep.subr.bf16.mxu1 %v19541_v19 }
 0x545   : > { %14221 = vmatpush2.bf16.msra.mxu0 %v19536_v41 }
 0x546   : > { %14262 = vmatpush2.bf16.msra.mxu1 %v19539_v33  ;;  %14222 = vmatprep.subr.bf16.mxu0 %v19544_v36  ;;  %v19560_v36 = vld [vmem:[%s21294_s13 + $0xca8] ss:$16 sps:$4 sm:$0xff]  }
 0x547   : > { %14263 = vmatprep.subr.bf16.mxu1 %v19547_v44  ;;  %v19563_v44 = vld [vmem:[%s21294_s13 + $0xea8] ss:$16 sps:$4 sm:$0xff]  }
 0x549   : > { %14223 = vmatpush2.bf16.msra.mxu0 %v19542_v29 }
 0x54a   : > { %14264 = vmatpush2.bf16.msra.mxu1 %v19545_v37  ;;  %14274 = vmatprep.subr.bf16.mxu0 %v19550_v62 }
 0x54b   : > { %14315 = vmatprep.subr.bf16.mxu1 %v19553_v31  ;;  %v19566_v31 = vld [vmem:[%s21294_s13 + $0xc88] ss:$16 sps:$4 sm:$0xff]  }
 0x54c   : > { %v13980_v59 = vpop.f32.mrf.mxu0  ;;  %14225 = vmatmul.mubr.bf16.vlgmr.msra.gmra.mxu0 %v21548_v46 }
 0x54d   : > { %v14021_v13 = vpop.f32.mrf.mxu1  ;;  %14266 = vmatmul.mubr.bf16.vlgmr.msra.gmra.mxu1 %v21550_v47  ;;  %v13981_v27 = vadd.f32 %v13980_v59, %v13940_v20  ;;  %14275 = vmatpush1.bf16.msra.mxu0 %v19548_v18  ;;  %v297_v47 = vld [vmem:[#allocation2] sm:$0xff]  ;;  %v19577_v18 = vld [vmem:[%s21294_s13 + $0xe6c] ss:$16 sps:$4 sm:$0xff]   ;;  %v19578_v59 = vld [vmem:[%s21294_s13 + $0xc48] ss:$16 sps:$4 sm:$0xff]  }
 0x54e   : > { %14316 = vmatpush1.bf16.msra.mxu1 %v19551_v16  ;;  %v13982_v25 = vpop.f32.mrf.mxu0  ;;  %14276 = vmatprep.subr.bf16.mxu0 %v19556_v8  ;;  %v19572_v16 = vld [vmem:[%s21294_s13 + $0xc68] ss:$16 sps:$4 sm:$0xff]   ;;  %v19583_v20 = vld [vmem:[%s21294_s13 + $0xe4c] ss:$16 sps:$4 sm:$0xff]  }
 0x54f   : > { %v14023_v9 = vpop.f32.mrf.mxu1  ;;  %14317 = vmatprep.subr.bf16.mxu1 %v19559_v58  ;;  %v14022_v23 = vadd.f32 %v14021_v13, %v13981_v27  ;;  %v13983_v46 = vadd.f32 %v13982_v25, %v13942_v60  ;;  %14306 = vmatprep.mubr.bf16.mxu0 %v21556_v52  ;;  %v19568_v52 = vld [vmem:[%s21294_s13 + $0xc8c] ss:$16 sps:$4 sm:$0xff]   ;;  %v19575_v8 = vld [vmem:[%s21294_s13 + $0xe68] ss:$16 sps:$4 sm:$0xff]  }
 0x550   : > { %14347 = vmatprep.mubr.bf16.mxu1 %v21558_v54  ;;  %v13984_v12 = vpop.f32.mrf.mxu0  ;;  %v19571_v54 = vld [vmem:[%s21294_s13 + $0xe8c] ss:$16 sps:$4 sm:$0xff]   ;;  %v19581_v13 = vld [vmem:[%s21294_s13 + $0xe48] ss:$16 sps:$4 sm:$0xff]  }
 0x551   : > { %v14025_v19 = vpop.f32.mrf.mxu1  ;;  %v15340_v41 = vadd.f32 %v14022_v23, %v296_v24  ;;  %v14024_v33 = vadd.f32 %v14023_v9, %v13983_v46  ;;  %14277 = vmatpush1.bf16.msra.mxu0 %v19554_v17  ;;  %v19580_v58 = vld [vmem:[%s21294_s13 + $0xc4c] ss:$16 sps:$4 sm:$0xff]   ;;  %v19584_v17 = vld [vmem:[%s21294_s13 + $0xc28] ss:$16 sps:$4 sm:$0xff]  }
 0x552   : > { %14318 = vmatpush1.bf16.msra.mxu1 %v19557_v61  ;;  %v13985_v29 = vpop.f32.mrf.mxu0  ;;  %14278 = vmatprep.subr.bf16.mxu0 %v19562_v34  ;;  %v19586_v60 = vld [vmem:[%s21294_s13 + $0xc2c] ss:$16 sps:$4 sm:$0xff]   ;;  %v19587_v61 = vld [vmem:[%s21294_s13 + $0xe28] ss:$16 sps:$4 sm:$0xff]  }
 0x553   : > { %v14026_v37 = vpop.f32.mrf.mxu1  ;;  %14319 = vmatprep.subr.bf16.mxu1 %v19565_v38  ;;  %15344 = vst [vmem:[#allocation2 + $0x10] sm:$0xff] %v15340_v41  ;;  %v15341_v62 = vadd.f32 %v14024_v33, %v297_v47  ;;  %v19589_v27 = vld [vmem:[%s21294_s13 + $0xe2c] ss:$16 sps:$4 sm:$0xff]   ;;  %v19590_v9 = vld [vmem:[%s21294_s13 + $0xc08] ss:$16 sps:$4 sm:$0xff]  }
 0x554   : > { %v19592_v24 = vld [vmem:[%s21294_s13 + $0xc0c] ss:$16 sps:$4 sm:$0xff]   ;;  %v19593_v34 = vld [vmem:[%s21294_s13 + $0xe08] ss:$16 sps:$4 sm:$0xff]  }
 0x555   : > { %15345 = vst [vmem:[#allocation2] sm:$0xff] %v15341_v62  ;;  %14279 = vmatpush1.bf16.msra.mxu0 %v19560_v36  ;;  %v19595_v25 = vld [vmem:[%s21294_s13 + $0xe0c] ss:$16 sps:$4 sm:$0xff]   ;;  %v19596_v46 = vld [vmem:[%s21294_s13 + $0xde8] ss:$16 sps:$4 sm:$0xff]  }
 0x556   : > { %14320 = vmatpush1.bf16.msra.mxu1 %v19563_v44  ;;  %14280 = vmatprep.subr.bf16.mxu0 %v19568_v52  ;;  %v19598_v38 = vld [vmem:[%s21294_s13 + $0xdec] ss:$16 sps:$4 sm:$0xff]   ;;  %v19599_v47 = vld [vmem:[%s21294_s13 + $0xfe8] ss:$16 sps:$4 sm:$0xff]  }
 0x557   : > { %14321 = vmatprep.subr.bf16.mxu1 %v19571_v54  ;;  %v19601_v23 = vld [vmem:[%s21294_s13 + $0xfec] ss:$16 sps:$4 sm:$0xff]   ;;  %v19602_v41 = vld [vmem:[%s21294_s13 + $0xdc8] ss:$16 sps:$4 sm:$0xff]  }
 0x558   : > { %v19604_v12 = vld [vmem:[%s21294_s13 + $0xdcc] ss:$16 sps:$4 sm:$0xff]   ;;  %v19605_v33 = vld [vmem:[%s21294_s13 + $0xfc8] ss:$16 sps:$4 sm:$0xff]  }
 0x559   : > { %14281 = vmatpush1.bf16.msra.mxu0 %v19566_v31  ;;  %v19607_v19 = vld [vmem:[%s21294_s13 + $0xfcc] ss:$16 sps:$4 sm:$0xff]   ;;  %v19608_v29 = vld [vmem:[%s21294_s13 + $0xda8] ss:$16 sps:$4 sm:$0xff]  }
 0x55a   : > { %14322 = vmatpush1.bf16.msra.mxu1 %v19569_v53  ;;  %14282 = vmatprep.subr.bf16.mxu0 %v19574_v56  ;;  %v19610_v36 = vld [vmem:[%s21294_s13 + $0xdac] ss:$16 sps:$4 sm:$0xff]   ;;  %v19611_v37 = vld [vmem:[%s21294_s13 + $0xfa8] ss:$16 sps:$4 sm:$0xff]  }
 0x55b   : > { %14323 = vmatprep.subr.bf16.mxu1 %v19577_v18  ;;  %v19613_v44 = vld [vmem:[%s21294_s13 + $0xfac] ss:$16 sps:$4 sm:$0xff]   ;;  %v19614_v62 = vld [vmem:[%s21294_s13 + $0xd88] ss:$16 sps:$4 sm:$0xff]  }
 0x55c   : > { %v19616_v52 = vld [vmem:[%s21294_s13 + $0xd8c] ss:$16 sps:$4 sm:$0xff]   ;;  %v19617_v31 = vld [vmem:[%s21294_s13 + $0xf88] ss:$16 sps:$4 sm:$0xff]  }
 0x55d   : > { %14283 = vmatpush1.bf16.msra.mxu0 %v19572_v16  ;;  %v19619_v54 = vld [vmem:[%s21294_s13 + $0xf8c] ss:$16 sps:$4 sm:$0xff]   ;;  %v19620_v18 = vld [vmem:[%s21294_s13 + $0xd68] ss:$16 sps:$4 sm:$0xff]  }
 0x55e   : > { %14324 = vmatpush1.bf16.msra.mxu1 %v19575_v8  ;;  %14284 = vmatprep.subr.bf16.mxu0 %v19580_v58  ;;  %v19622_v53 = vld [vmem:[%s21294_s13 + $0xd6c] ss:$16 sps:$4 sm:$0xff]   ;;  %v19623_v16 = vld [vmem:[%s21294_s13 + $0xf68] ss:$16 sps:$4 sm:$0xff]  }
 0x55f   : > { %14325 = vmatprep.subr.bf16.mxu1 %v19583_v20  ;;  %v19625_v56 = vld [vmem:[%s21294_s13 + $0xf6c] ss:$16 sps:$4 sm:$0xff]   ;;  %v19626_v20 = vld [vmem:[%s21294_s13 + $0xd48] ss:$16 sps:$4 sm:$0xff]  }
 0x560   : > { %v19628_v8 = vld [vmem:[%s21294_s13 + $0xd4c] ss:$16 sps:$4 sm:$0xff]  }
 0x561   : > { %14285 = vmatpush1.bf16.msra.mxu0 %v19578_v59  ;;  %v19631_v58 = vld [vmem:[%s21294_s13 + $0xf4c] ss:$16 sps:$4 sm:$0xff]   ;;  %v19629_v59 = vld [vmem:[%s21294_s13 + $0xf48] ss:$16 sps:$4 sm:$0xff]  }
 0x562   : > { %14326 = vmatpush1.bf16.msra.mxu1 %v19581_v13  ;;  %14286 = vmatprep.subr.bf16.mxu0 %v19586_v60  ;;  %v19634_v13 = vld [vmem:[%s21294_s13 + $0xd2c] ss:$16 sps:$4 sm:$0xff]  }
 0x563   : > { %14327 = vmatprep.subr.bf16.mxu1 %v19589_v27  ;;  %v19637_v60 = vld [vmem:[%s21294_s13 + $0xf2c] ss:$16 sps:$4 sm:$0xff]   ;;  %v19632_v27 = vld [vmem:[%s21294_s13 + $0xd28] ss:$16 sps:$4 sm:$0xff]  }
 0x565   : > { %14287 = vmatpush1.bf16.msra.mxu0 %v19584_v17  ;;  %v19635_v17 = vld [vmem:[%s21294_s13 + $0xf28] ss:$16 sps:$4 sm:$0xff]  }
 0x566   : > { %14328 = vmatpush1.bf16.msra.mxu1 %v19587_v61  ;;  %14288 = vmatprep.subr.bf16.mxu0 %v19592_v24  ;;  %v19640_v61 = vld [vmem:[%s21294_s13 + $0xd0c] ss:$16 sps:$4 sm:$0xff]  }
 0x567   : > { %14329 = vmatprep.subr.bf16.mxu1 %v19595_v25  ;;  %v19643_v24 = vld [vmem:[%s21294_s13 + $0xf0c] ss:$16 sps:$4 sm:$0xff]   ;;  %v19638_v25 = vld [vmem:[%s21294_s13 + $0xd08] ss:$16 sps:$4 sm:$0xff]  }
 0x569   : > { %14289 = vmatpush1.bf16.msra.mxu0 %v19590_v9  ;;  %v19641_v9 = vld [vmem:[%s21294_s13 + $0xf08] ss:$16 sps:$4 sm:$0xff]  }
 0x56a   : > { %14330 = vmatpush1.bf16.msra.mxu1 %v19593_v34  ;;  %14290 = vmatprep.subr.bf16.mxu0 %v19598_v38  ;;  %v19646_v34 = vld [vmem:[%s21294_s13 + $0x10ec] ss:$16 sps:$4 sm:$0xff]  }
 0x56b   : > { %14331 = vmatprep.subr.bf16.mxu1 %v19601_v23  ;;  %v19649_v38 = vld [vmem:[%s21294_s13 + $0x12ec] ss:$16 sps:$4 sm:$0xff]   ;;  %v19644_v23 = vld [vmem:[%s21294_s13 + $0x10e8] ss:$16 sps:$4 sm:$0xff]  }
 0x56d   : > { %14291 = vmatpush2.bf16.msra.mxu0 %v19596_v46  ;;  %v19647_v46 = vld [vmem:[%s21294_s13 + $0x12e8] ss:$16 sps:$4 sm:$0xff]  }
 0x56e   : > { %14332 = vmatpush2.bf16.msra.mxu1 %v19599_v47  ;;  %14292 = vmatprep.subr.bf16.mxu0 %v19604_v12  ;;  %v19652_v47 = vld [vmem:[%s21294_s13 + $0x10cc] ss:$16 sps:$4 sm:$0xff]  }
 0x56f   : > { %14333 = vmatprep.subr.bf16.mxu1 %v19607_v19  ;;  %v19655_v12 = vld [vmem:[%s21294_s13 + $0x12cc] ss:$16 sps:$4 sm:$0xff]  }
 0x571   : > { %14293 = vmatpush2.bf16.msra.mxu0 %v19602_v41 }
 0x572   : > { %14334 = vmatpush2.bf16.msra.mxu1 %v19605_v33  ;;  %14294 = vmatprep.subr.bf16.mxu0 %v19610_v36  ;;  %v19650_v36 = vld [vmem:[%s21294_s13 + $0x10c8] ss:$16 sps:$4 sm:$0xff]  }
 0x573   : > { %14335 = vmatprep.subr.bf16.mxu1 %v19613_v44  ;;  %v19653_v44 = vld [vmem:[%s21294_s13 + $0x12c8] ss:$16 sps:$4 sm:$0xff]  }
 0x575   : > { %14295 = vmatpush2.bf16.msra.mxu0 %v19608_v29 }
 0x576   : > { %14336 = vmatpush2.bf16.msra.mxu1 %v19611_v37  ;;  %14296 = vmatprep.subr.bf16.mxu0 %v19616_v52  ;;  %v19658_v52 = vld [vmem:[%s21294_s13 + $0x10ac] ss:$16 sps:$4 sm:$0xff]  }
 0x577   : > { %14337 = vmatprep.subr.bf16.mxu1 %v19619_v54  ;;  %v19661_v54 = vld [vmem:[%s21294_s13 + $0x12ac] ss:$16 sps:$4 sm:$0xff]  }
 0x579   : > { %14297 = vmatpush2.bf16.msra.mxu0 %v19614_v62 }
 0x57a   : > { %14338 = vmatpush2.bf16.msra.mxu1 %v19617_v31  ;;  %14298 = vmatprep.subr.bf16.mxu0 %v19622_v53  ;;  %v19656_v31 = vld [vmem:[%s21294_s13 + $0x10a8] ss:$16 sps:$4 sm:$0xff]  }
 0x57b   : > { %14339 = vmatprep.subr.bf16.mxu1 %v19625_v56  ;;  %v19659_v53 = vld [vmem:[%s21294_s13 + $0x12a8] ss:$16 sps:$4 sm:$0xff]  }
 0x57d   : > { %14299 = vmatpush2.bf16.msra.mxu0 %v19620_v18 }
 0x57e   : > { %14340 = vmatpush2.bf16.msra.mxu1 %v19623_v16  ;;  %14300 = vmatprep.subr.bf16.mxu0 %v19628_v8  ;;  %v19664_v16 = vld [vmem:[%s21294_s13 + $0x108c] ss:$16 sps:$4 sm:$0xff]   ;;  %v19665_v8 = vld [vmem:[%s21294_s13 + $0x1288] ss:$16 sps:$4 sm:$0xff]  }
 0x57f   : > { %14341 = vmatprep.subr.bf16.mxu1 %v19631_v58  ;;  %v19670_v58 = vld [vmem:[%s21294_s13 + $0x106c] ss:$16 sps:$4 sm:$0xff]  }
 0x581   : > { %14301 = vmatpush2.bf16.msra.mxu0 %v19626_v20  ;;  %v19673_v20 = vld [vmem:[%s21294_s13 + $0x126c] ss:$16 sps:$4 sm:$0xff]  }
 0x582   : > { %14342 = vmatpush2.bf16.msra.mxu1 %v19629_v59  ;;  %14302 = vmatprep.subr.bf16.mxu0 %v19634_v13  ;;  %v19668_v59 = vld [vmem:[%s21294_s13 + $0x1068] ss:$16 sps:$4 sm:$0xff]  }
 0x583   : > { %14343 = vmatprep.subr.bf16.mxu1 %v19637_v60  ;;  %v19671_v13 = vld [vmem:[%s21294_s13 + $0x1268] ss:$16 sps:$4 sm:$0xff]   ;;  %v19676_v60 = vld [vmem:[%s21294_s13 + $0x104c] ss:$16 sps:$4 sm:$0xff]  }
 0x585   : > { %14303 = vmatpush2.bf16.msra.mxu0 %v19632_v27  ;;  %v19679_v27 = vld [vmem:[%s21294_s13 + $0x124c] ss:$16 sps:$4 sm:$0xff]  }
 0x586   : > { %14344 = vmatpush2.bf16.msra.mxu1 %v19635_v17  ;;  %14304 = vmatprep.subr.bf16.mxu0 %v19640_v61  ;;  %v19674_v17 = vld [vmem:[%s21294_s13 + $0x1048] ss:$16 sps:$4 sm:$0xff]  }
 0x587   : > { %14345 = vmatprep.subr.bf16.mxu1 %v19643_v24  ;;  %v19677_v61 = vld [vmem:[%s21294_s13 + $0x1248] ss:$16 sps:$4 sm:$0xff]   ;;  %v19682_v24 = vld [vmem:[%s21294_s13 + $0x102c] ss:$16 sps:$4 sm:$0xff]  }
 0x589   : > { %14305 = vmatpush2.bf16.msra.mxu0 %v19638_v25  ;;  %v19685_v25 = vld [vmem:[%s21294_s13 + $0x122c] ss:$16 sps:$4 sm:$0xff]  }
 0x58a   : > { %14346 = vmatpush2.bf16.msra.mxu1 %v19641_v9  ;;  %14356 = vmatprep.subr.bf16.mxu0 %v19646_v34  ;;  %v19680_v9 = vld [vmem:[%s21294_s13 + $0x1028] ss:$16 sps:$4 sm:$0xff]  }
 0x58b   : > { %14397 = vmatprep.subr.bf16.mxu1 %v19649_v38  ;;  %v19683_v34 = vld [vmem:[%s21294_s13 + $0x1228] ss:$16 sps:$4 sm:$0xff]   ;;  %v19688_v38 = vld [vmem:[%s21294_s13 + $0x100c] ss:$16 sps:$4 sm:$0xff]  }
 0x58c   : > { %v14062_v19 = vpop.f32.mrf.mxu0  ;;  %14307 = vmatmul.mubr.bf16.vlgmr.msra.gmra.mxu0 %v21628_v6 }
 0x58d   : > { %v14103_v41 = vpop.f32.mrf.mxu1  ;;  %14348 = vmatmul.mubr.bf16.vlgmr.msra.gmra.mxu1 %v21630_v7  ;;  %14357 = vmatpush1.bf16.msra.mxu0 %v19644_v23  ;;  %v19691_v23 = vld [vmem:[%s21294_s13 + $0x120c] ss:$16 sps:$4 sm:$0xff]  }
 0x58e   : > { %v22964_v33 = vadd.f32 %v14103_v41, %v14062_v19  ;;  %14398 = vmatpush1.bf16.msra.mxu1 %v19647_v46  ;;  %v14064_v29 = vpop.f32.mrf.mxu0  ;;  %14358 = vmatprep.subr.bf16.mxu0 %v19652_v47  ;;  %v19686_v46 = vld [vmem:[%s21294_s13 + $0x1008] ss:$16 sps:$4 sm:$0xff]   ;;  %v19697_v19 = vld [vmem:[%s21294_s13 + $0x13ec] ss:$16 sps:$4 sm:$0xff]  }
 0x58f   : > { %v14105_v37 = vpop.f32.mrf.mxu1  ;;  %14399 = vmatprep.subr.bf16.mxu1 %v19655_v12  ;;  %14388 = vmatprep.mubr.bf16.mxu0 %v21636_v14  ;;  %v19667_v14 = vld [vmem:[%s21294_s13 + $0x128c] ss:$16 sps:$4 sm:$0xff]   ;;  %v19689_v47 = vld [vmem:[%s21294_s13 + $0x1208] ss:$16 sps:$4 sm:$0xff]  }
 0x590   : > { %v22970_v62 = vadd.f32 %v14105_v37, %v14064_v29  ;;  %14429 = vmatprep.mubr.bf16.mxu1 %v21638_v15  ;;  %v14066_v6 = vpop.f32.mrf.mxu0  ;;  %v19662_v15 = vld [vmem:[%s21294_s13 + $0x1088] ss:$16 sps:$4 sm:$0xff]   ;;  %v19694_v12 = vld [vmem:[%s21294_s13 + $0x11ec] ss:$16 sps:$4 sm:$0xff]  }
 0x591   : > { %v14107_v7 = vpop.f32.mrf.mxu1  ;;  %14359 = vmatpush1.bf16.msra.mxu0 %v19650_v36  ;;  %v19692_v41 = vld [vmem:[%s21294_s13 + $0x11e8] ss:$16 sps:$4 sm:$0xff]   ;;  %v19703_v29 = vld [vmem:[%s21294_s13 + $0x13cc] ss:$16 sps:$4 sm:$0xff]  }
 0x592   : > { %14400 = vmatpush1.bf16.msra.mxu1 %v19653_v44  ;;  %v14067_v56 = vpop.f32.mrf.mxu0  ;;  %14360 = vmatprep.subr.bf16.mxu0 %v19658_v52  ;;  %v19695_v36 = vld [vmem:[%s21294_s13 + $0x13e8] ss:$16 sps:$4 sm:$0xff]   ;;  %v19700_v44 = vld [vmem:[%s21294_s13 + $0x11cc] ss:$16 sps:$4 sm:$0xff]  }
 0x593   : > { %v14108_v18 = vpop.f32.mrf.mxu1  ;;  %14401 = vmatprep.subr.bf16.mxu1 %v19661_v54  ;;  %v19698_v37 = vld [vmem:[%s21294_s13 + $0x11c8] ss:$16 sps:$4 sm:$0xff]   ;;  %v19706_v54 = vld [vmem:[%s21294_s13 + $0x11ac] ss:$16 sps:$4 sm:$0xff]  }
 0x594   : > { %v19701_v52 = vld [vmem:[%s21294_s13 + $0x13c8] ss:$16 sps:$4 sm:$0xff]   ;;  %v19709_v6 = vld [vmem:[%s21294_s13 + $0x13ac] ss:$16 sps:$4 sm:$0xff]  }
 0x595   : > { %14361 = vmatpush1.bf16.msra.mxu0 %v19656_v31  ;;  %v19704_v7 = vld [vmem:[%s21294_s13 + $0x11a8] ss:$16 sps:$4 sm:$0xff]   ;;  %v19715_v56 = vld [vmem:[%s21294_s13 + $0x138c] ss:$16 sps:$4 sm:$0xff]  }
 0x596   : > { %14402 = vmatpush1.bf16.msra.mxu1 %v19659_v53  ;;  %14362 = vmatprep.subr.bf16.mxu0 %v19664_v16  ;;  %v19707_v31 = vld [vmem:[%s21294_s13 + $0x13a8] ss:$16 sps:$4 sm:$0xff]   ;;  %v19712_v53 = vld [vmem:[%s21294_s13 + $0x118c] ss:$16 sps:$4 sm:$0xff]  }
 0x597   : > { %14403 = vmatprep.subr.bf16.mxu1 %v19667_v14  ;;  %v19710_v18 = vld [vmem:[%s21294_s13 + $0x1188] ss:$16 sps:$4 sm:$0xff]   ;;  %v19718_v14 = vld [vmem:[%s21294_s13 + $0x116c] ss:$16 sps:$4 sm:$0xff]  }
 0x598   : > { %v19713_v16 = vld [vmem:[%s21294_s13 + $0x1388] ss:$16 sps:$4 sm:$0xff]  }
 0x599   : > { %14363 = vmatpush1.bf16.msra.mxu0 %v19662_v15  ;;  %v19721_v15 = vld [vmem:[%s21294_s13 + $0x136c] ss:$16 sps:$4 sm:$0xff]  }
 0x59a   : > { %14404 = vmatpush1.bf16.msra.mxu1 %v19665_v8  ;;  %14364 = vmatprep.subr.bf16.mxu0 %v19670_v58  ;;  %v19716_v8 = vld [vmem:[%s21294_s13 + $0x1168] ss:$16 sps:$4 sm:$0xff]  }
 0x59b   : > { %14405 = vmatprep.subr.bf16.mxu1 %v19673_v20  ;;  %v19719_v58 = vld [vmem:[%s21294_s13 + $0x1368] ss:$16 sps:$4 sm:$0xff]   ;;  %v19724_v20 = vld [vmem:[%s21294_s13 + $0x114c] ss:$16 sps:$4 sm:$0xff]  }
 0x59d   : > { %14365 = vmatpush1.bf16.msra.mxu0 %v19668_v59  ;;  %v19727_v59 = vld [vmem:[%s21294_s13 + $0x134c] ss:$16 sps:$4 sm:$0xff]  }
 0x59e   : > { %14406 = vmatpush1.bf16.msra.mxu1 %v19671_v13  ;;  %14366 = vmatprep.subr.bf16.mxu0 %v19676_v60  ;;  %v19722_v13 = vld [vmem:[%s21294_s13 + $0x1148] ss:$16 sps:$4 sm:$0xff]  }
 0x59f   : > { %14407 = vmatprep.subr.bf16.mxu1 %v19679_v27  ;;  %v19725_v60 = vld [vmem:[%s21294_s13 + $0x1348] ss:$16 sps:$4 sm:$0xff]   ;;  %v19730_v27 = vld [vmem:[%s21294_s13 + $0x112c] ss:$16 sps:$4 sm:$0xff]  }
 0x5a1   : > { %14367 = vmatpush1.bf16.msra.mxu0 %v19674_v17  ;;  %v19733_v17 = vld [vmem:[%s21294_s13 + $0x132c] ss:$16 sps:$4 sm:$0xff]  }
 0x5a2   : > { %14408 = vmatpush1.bf16.msra.mxu1 %v19677_v61  ;;  %14368 = vmatprep.subr.bf16.mxu0 %v19682_v24  ;;  %v19728_v61 = vld [vmem:[%s21294_s13 + $0x1128] ss:$16 sps:$4 sm:$0xff]  }
 0x5a3   : > { %14409 = vmatprep.subr.bf16.mxu1 %v19685_v25  ;;  %v19731_v24 = vld [vmem:[%s21294_s13 + $0x1328] ss:$16 sps:$4 sm:$0xff]   ;;  %v19736_v25 = vld [vmem:[%s21294_s13 + $0x110c] ss:$16 sps:$4 sm:$0xff]  }
 0x5a5   : > { %14369 = vmatpush1.bf16.msra.mxu0 %v19680_v9  ;;  %v19739_v9 = vld [vmem:[%s21294_s13 + $0x130c] ss:$16 sps:$4 sm:$0xff]  }
 0x5a6   : > { %14410 = vmatpush1.bf16.msra.mxu1 %v19683_v34  ;;  %14370 = vmatprep.subr.bf16.mxu0 %v19688_v38  ;;  %v19734_v34 = vld [vmem:[%s21294_s13 + $0x1108] ss:$16 sps:$4 sm:$0xff]  }
 0x5a7   : > { %14411 = vmatprep.subr.bf16.mxu1 %v19691_v23  ;;  %v19737_v38 = vld [vmem:[%s21294_s13 + $0x1308] ss:$16 sps:$4 sm:$0xff]   ;;  %v19742_v23 = vld [vmem:[%s21294_s13 + $0x14ec] ss:$16 sps:$4 sm:$0xff]  }
 0x5a9   : > { %14371 = vmatpush1.bf16.msra.mxu0 %v19686_v46  ;;  %v19745_v46 = vld [vmem:[%s21294_s13 + $0x16ec] ss:$16 sps:$4 sm:$0xff]  }
 0x5aa   : > { %14412 = vmatpush1.bf16.msra.mxu1 %v19689_v47  ;;  %14372 = vmatprep.subr.bf16.mxu0 %v19694_v12  ;;  %v19740_v47 = vld [vmem:[%s21294_s13 + $0x14e8] ss:$16 sps:$4 sm:$0xff]  }
 0x5ab   : > { %14413 = vmatprep.subr.bf16.mxu1 %v19697_v19  ;;  %v19743_v12 = vld [vmem:[%s21294_s13 + $0x16e8] ss:$16 sps:$4 sm:$0xff]   ;;  %v19748_v19 = vld [vmem:[%s21294_s13 + $0x14cc] ss:$16 sps:$4 sm:$0xff]  }
 0x5ad   : > { %14373 = vmatpush2.bf16.msra.mxu0 %v19692_v41  ;;  %v19751_v41 = vld [vmem:[%s21294_s13 + $0x16cc] ss:$16 sps:$4 sm:$0xff]  }
 0x5ae   : > { %14414 = vmatpush2.bf16.msra.mxu1 %v19695_v36  ;;  %14374 = vmatprep.subr.bf16.mxu0 %v19700_v44 }
 0x5af   : > { %14415 = vmatprep.subr.bf16.mxu1 %v19703_v29 }
 0x5b1   : > { %14375 = vmatpush2.bf16.msra.mxu0 %v19698_v37  ;;  %v19746_v37 = vld [vmem:[%s21294_s13 + $0x14c8] ss:$16 sps:$4 sm:$0xff]  }
 0x5b2   : > { %14416 = vmatpush2.bf16.msra.mxu1 %v19701_v52  ;;  %14376 = vmatprep.subr.bf16.mxu0 %v19706_v54  ;;  %v19749_v52 = vld [vmem:[%s21294_s13 + $0x16c8] ss:$16 sps:$4 sm:$0xff]  }
 0x5b3   : > { %14417 = vmatprep.subr.bf16.mxu1 %v19709_v6 }
 0x5b5   : > { %14377 = vmatpush2.bf16.msra.mxu0 %v19704_v7  ;;  %v19754_v7 = vld [vmem:[%s21294_s13 + $0x14ac] ss:$16 sps:$4 sm:$0xff]  }
 0x5b6   : > { %14418 = vmatpush2.bf16.msra.mxu1 %v19707_v31  ;;  %14378 = vmatprep.subr.bf16.mxu0 %v19712_v53  ;;  %v19757_v31 = vld [vmem:[%s21294_s13 + $0x16ac] ss:$16 sps:$4 sm:$0xff]  }
 0x5b7   : > { %14419 = vmatprep.subr.bf16.mxu1 %v19715_v56 }
 0x5b9   : > { %14379 = vmatpush2.bf16.msra.mxu0 %v19710_v18  ;;  %v19752_v18 = vld [vmem:[%s21294_s13 + $0x14a8] ss:$16 sps:$4 sm:$0xff]  }
 0x5ba   : > { %14420 = vmatpush2.bf16.msra.mxu1 %v19713_v16  ;;  %14380 = vmatprep.subr.bf16.mxu0 %v19718_v14  ;;  %v19755_v16 = vld [vmem:[%s21294_s13 + $0x16a8] ss:$16 sps:$4 sm:$0xff]  }
 0x5bb   : > { %14421 = vmatprep.subr.bf16.mxu1 %v19721_v15 }
 0x5bd   : > { %14381 = vmatpush2.bf16.msra.mxu0 %v19716_v8  ;;  %v19761_v8 = vld [vmem:[%s21294_s13 + $0x1688] ss:$16 sps:$4 sm:$0xff]  }
 0x5be   : > { %14422 = vmatpush2.bf16.msra.mxu1 %v19719_v58  ;;  %14382 = vmatprep.subr.bf16.mxu0 %v19724_v20  ;;  %v19766_v58 = vld [vmem:[%s21294_s13 + $0x146c] ss:$16 sps:$4 sm:$0xff]  }
 0x5bf   : > { %14423 = vmatprep.subr.bf16.mxu1 %v19727_v59  ;;  %v19769_v20 = vld [vmem:[%s21294_s13 + $0x166c] ss:$16 sps:$4 sm:$0xff]   ;;  %v19764_v59 = vld [vmem:[%s21294_s13 + $0x1468] ss:$16 sps:$4 sm:$0xff]  }
 0x5c1   : > { %14383 = vmatpush2.bf16.msra.mxu0 %v19722_v13  ;;  %v19767_v13 = vld [vmem:[%s21294_s13 + $0x1668] ss:$16 sps:$4 sm:$0xff]  }
 0x5c2   : > { %14424 = vmatpush2.bf16.msra.mxu1 %v19725_v60  ;;  %14384 = vmatprep.subr.bf16.mxu0 %v19730_v27  ;;  %v19772_v60 = vld [vmem:[%s21294_s13 + $0x144c] ss:$16 sps:$4 sm:$0xff]  }
 0x5c3   : > { %14425 = vmatprep.subr.bf16.mxu1 %v19733_v17  ;;  %v19775_v27 = vld [vmem:[%s21294_s13 + $0x164c] ss:$16 sps:$4 sm:$0xff]   ;;  %v19770_v17 = vld [vmem:[%s21294_s13 + $0x1448] ss:$16 sps:$4 sm:$0xff]  }
 0x5c5   : > { %14385 = vmatpush2.bf16.msra.mxu0 %v19728_v61  ;;  %v19773_v61 = vld [vmem:[%s21294_s13 + $0x1648] ss:$16 sps:$4 sm:$0xff]  }
 0x5c6   : > { %14426 = vmatpush2.bf16.msra.mxu1 %v19731_v24  ;;  %14386 = vmatprep.subr.bf16.mxu0 %v19736_v25  ;;  %v19778_v24 = vld [vmem:[%s21294_s13 + $0x142c] ss:$16 sps:$4 sm:$0xff]  }
 0x5c7   : > { %14427 = vmatprep.subr.bf16.mxu1 %v19739_v9  ;;  %v19781_v25 = vld [vmem:[%s21294_s13 + $0x162c] ss:$16 sps:$4 sm:$0xff]   ;;  %v19776_v9 = vld [vmem:[%s21294_s13 + $0x1428] ss:$16 sps:$4 sm:$0xff]  }
 0x5c9   : > { %14387 = vmatpush2.bf16.msra.mxu0 %v19734_v34  ;;  %v19779_v34 = vld [vmem:[%s21294_s13 + $0x1628] ss:$16 sps:$4 sm:$0xff]  }
 0x5ca   : > { %14428 = vmatpush2.bf16.msra.mxu1 %v19737_v38  ;;  %14438 = vmatprep.subr.bf16.mxu0 %v19742_v23  ;;  %v19784_v38 = vld [vmem:[%s21294_s13 + $0x140c] ss:$16 sps:$4 sm:$0xff]  }
 0x5cb   : > { %14479 = vmatprep.subr.bf16.mxu1 %v19745_v46  ;;  %v19787_v23 = vld [vmem:[%s21294_s13 + $0x160c] ss:$16 sps:$4 sm:$0xff]   ;;  %v19782_v46 = vld [vmem:[%s21294_s13 + $0x1408] ss:$16 sps:$4 sm:$0xff]  }
 0x5cc   : > { %v14144_v36 = vpop.f32.mrf.mxu0  ;;  %14389 = vmatmul.mubr.bf16.vlgmr.msra.gmra.mxu0 %v21710_v55 }
 0x5cd   : > { %v14185_v44 = vpop.f32.mrf.mxu1  ;;  %14430 = vmatmul.mubr.bf16.vlgmr.msra.gmra.mxu1 %v21712_v57  ;;  %v14145_v29 = vadd.f32 %v14144_v36, %v22964_v33  ;;  %14439 = vmatpush1.bf16.msra.mxu0 %v19740_v47  ;;  %v19785_v47 = vld [vmem:[%s21294_s13 + $0x1608] ss:$16 sps:$4 sm:$0xff]  }
 0x5ce   : > { %14480 = vmatpush1.bf16.msra.mxu1 %v19743_v12  ;;  %v14146_v54 = vpop.f32.mrf.mxu0  ;;  %14440 = vmatprep.subr.bf16.mxu0 %v19748_v19  ;;  %v19790_v12 = vld [vmem:[%s21294_s13 + $0x15ec] ss:$16 sps:$4 sm:$0xff]   ;;  %v19791_v36 = vld [vmem:[%s21294_s13 + $0x17e8] ss:$16 sps:$4 sm:$0xff]  }
 0x5cf   : > { %v14187_v6 = vpop.f32.mrf.mxu1  ;;  %14481 = vmatprep.subr.bf16.mxu1 %v19751_v41  ;;  %v23041_v53 = vadd.f32 %v14185_v44, %v14145_v29  ;;  %v14147_v55 = vadd.f32 %v14146_v54, %v22970_v62  ;;  %14470 = vmatprep.mubr.bf16.mxu0 %v21722_v2  ;;  %v19760_v2 = vld [vmem:[%s21294_s13 + $0x148c] ss:$16 sps:$4 sm:$0xff]   ;;  %v19758_v62 = vld [vmem:[%s21294_s13 + $0x1488] ss:$16 sps:$4 sm:$0xff]  }
 0x5d0   : > { %14511 = vmatprep.mubr.bf16.mxu1 %v21724_v3  ;;  %v14148_v57 = vpop.f32.mrf.mxu0  ;;  %v19763_v3 = vld [vmem:[%s21294_s13 + $0x168c] ss:$16 sps:$4 sm:$0xff]   ;;  %v19788_v41 = vld [vmem:[%s21294_s13 + $0x15e8] ss:$16 sps:$4 sm:$0xff]  }
 0x5d1   : > { %v14189_v33 = vpop.f32.mrf.mxu1  ;;  %v23046_v56 = vadd.f32 %v14187_v6, %v14147_v55  ;;  %14441 = vmatpush1.bf16.msra.mxu0 %v19746_v37  ;;  %v19793_v19 = vld [vmem:[%s21294_s13 + $0x17ec] ss:$16 sps:$4 sm:$0xff]   ;;  %v19794_v37 = vld [vmem:[%s21294_s13 + $0x15c8] ss:$16 sps:$4 sm:$0xff]  }
 0x5d2   : > { %14482 = vmatpush1.bf16.msra.mxu1 %v19749_v52  ;;  %v14149_v14 = vpop.f32.mrf.mxu0  ;;  %14442 = vmatprep.subr.bf16.mxu0 %v19754_v7  ;;  %v19796_v44 = vld [vmem:[%s21294_s13 + $0x15cc] ss:$16 sps:$4 sm:$0xff]   ;;  %v19797_v52 = vld [vmem:[%s21294_s13 + $0x17c8] ss:$16 sps:$4 sm:$0xff]  }
 0x5d3   : > { %v14190_v15 = vpop.f32.mrf.mxu1  ;;  %14483 = vmatprep.subr.bf16.mxu1 %v19757_v31  ;;  %v19799_v29 = vld [vmem:[%s21294_s13 + $0x17cc] ss:$16 sps:$4 sm:$0xff]   ;;  %v19800_v7 = vld [vmem:[%s21294_s13 + $0x15a8] ss:$16 sps:$4 sm:$0xff]  }
 0x5d4   : > { %v19802_v54 = vld [vmem:[%s21294_s13 + $0x15ac] ss:$16 sps:$4 sm:$0xff]   ;;  %v19803_v31 = vld [vmem:[%s21294_s13 + $0x17a8] ss:$16 sps:$4 sm:$0xff]  }
 0x5d5   : > { %14443 = vmatpush1.bf16.msra.mxu0 %v19752_v18  ;;  %v19805_v6 = vld [vmem:[%s21294_s13 + $0x17ac] ss:$16 sps:$4 sm:$0xff]   ;;  %v19806_v33 = vld [vmem:[%s21294_s13 + $0x1588] ss:$16 sps:$4 sm:$0xff]  }
 0x5d6   : > { %14484 = vmatpush1.bf16.msra.mxu1 %v19755_v16  ;;  %14444 = vmatprep.subr.bf16.mxu0 %v19760_v2  ;;  %v19808_v55 = vld [vmem:[%s21294_s13 + $0x158c] ss:$16 sps:$4 sm:$0xff]   ;;  %v19809_v18 = vld [vmem:[%s21294_s13 + $0x1788] ss:$16 sps:$4 sm:$0xff]  }
 0x5d7   : > { %14485 = vmatprep.subr.bf16.mxu1 %v19763_v3  ;;  %v19811_v57 = vld [vmem:[%s21294_s13 + $0x178c] ss:$16 sps:$4 sm:$0xff]   ;;  %v19812_v15 = vld [vmem:[%s21294_s13 + $0x1568] ss:$16 sps:$4 sm:$0xff]  }
 0x5d8   : > { %v19814_v16 = vld [vmem:[%s21294_s13 + $0x156c] ss:$16 sps:$4 sm:$0xff]   ;;  %v19815_v2 = vld [vmem:[%s21294_s13 + $0x1768] ss:$16 sps:$4 sm:$0xff]  }
 0x5d9   : > { %14445 = vmatpush1.bf16.msra.mxu0 %v19758_v62  ;;  %v19817_v14 = vld [vmem:[%s21294_s13 + $0x176c] ss:$16 sps:$4 sm:$0xff]  }
 0x5da   : > { %14486 = vmatpush1.bf16.msra.mxu1 %v19761_v8  ;;  %14446 = vmatprep.subr.bf16.mxu0 %v19766_v58  ;;  %v19820_v3 = vld [vmem:[%s21294_s13 + $0x154c] ss:$16 sps:$4 sm:$0xff]   ;;  %v19818_v8 = vld [vmem:[%s21294_s13 + $0x1548] ss:$16 sps:$4 sm:$0xff]  }
 0x5db   : > { %14487 = vmatprep.subr.bf16.mxu1 %v19769_v20  ;;  %v19823_v62 = vld [vmem:[%s21294_s13 + $0x174c] ss:$16 sps:$4 sm:$0xff]   ;;  %v19821_v58 = vld [vmem:[%s21294_s13 + $0x1748] ss:$16 sps:$4 sm:$0xff]  }
 0x5dc   : > { %v19826_v20 = vld [vmem:[%s21294_s13 + $0x152c] ss:$16 sps:$4 sm:$0xff]  }
 0x5dd   : > { %14447 = vmatpush1.bf16.msra.mxu0 %v19764_v59  ;;  %v19829_v59 = vld [vmem:[%s21294_s13 + $0x172c] ss:$16 sps:$4 sm:$0xff]  }
 0x5de   : > { %14488 = vmatpush1.bf16.msra.mxu1 %v19767_v13  ;;  %14448 = vmatprep.subr.bf16.mxu0 %v19772_v60  ;;  %v19824_v13 = vld [vmem:[%s21294_s13 + $0x1528] ss:$16 sps:$4 sm:$0xff]  }
 0x5df   : > { %14489 = vmatprep.subr.bf16.mxu1 %v19775_v27  ;;  %v19827_v60 = vld [vmem:[%s21294_s13 + $0x1728] ss:$16 sps:$4 sm:$0xff]   ;;  %v19832_v27 = vld [vmem:[%s21294_s13 + $0x150c] ss:$16 sps:$4 sm:$0xff]  }
 0x5e1   : > { %14449 = vmatpush1.bf16.msra.mxu0 %v19770_v17  ;;  %v19835_v17 = vld [vmem:[%s21294_s13 + $0x170c] ss:$16 sps:$4 sm:$0xff]  }
 0x5e2   : > { %14490 = vmatpush1.bf16.msra.mxu1 %v19773_v61  ;;  %14450 = vmatprep.subr.bf16.mxu0 %v19778_v24  ;;  %v19830_v61 = vld [vmem:[%s21294_s13 + $0x1508] ss:$16 sps:$4 sm:$0xff]  }
 0x5e3   : > { %14491 = vmatprep.subr.bf16.mxu1 %v19781_v25  ;;  %v19833_v24 = vld [vmem:[%s21294_s13 + $0x1708] ss:$16 sps:$4 sm:$0xff]   ;;  %v19838_v25 = vld [vmem:[%s21294_s13 + $0x18ec] ss:$16 sps:$4 sm:$0xff]  }
 0x5e5   : > { %14451 = vmatpush1.bf16.msra.mxu0 %v19776_v9  ;;  %v19841_v9 = vld [vmem:[%s21294_s13 + $0x1aec] ss:$16 sps:$4 sm:$0xff]  }
 0x5e6   : > { %14492 = vmatpush1.bf16.msra.mxu1 %v19779_v34  ;;  %14452 = vmatprep.subr.bf16.mxu0 %v19784_v38  ;;  %v19836_v34 = vld [vmem:[%s21294_s13 + $0x18e8] ss:$16 sps:$4 sm:$0xff]  }
 0x5e7   : > { %14493 = vmatprep.subr.bf16.mxu1 %v19787_v23  ;;  %v19839_v38 = vld [vmem:[%s21294_s13 + $0x1ae8] ss:$16 sps:$4 sm:$0xff]   ;;  %v19844_v23 = vld [vmem:[%s21294_s13 + $0x18cc] ss:$16 sps:$4 sm:$0xff]  }
 0x5e9   : > { %14453 = vmatpush1.bf16.msra.mxu0 %v19782_v46  ;;  %v19847_v46 = vld [vmem:[%s21294_s13 + $0x1acc] ss:$16 sps:$4 sm:$0xff]  }
 0x5ea   : > { %14494 = vmatpush1.bf16.msra.mxu1 %v19785_v47  ;;  %14454 = vmatprep.subr.bf16.mxu0 %v19790_v12 }
 0x5eb   : > { %14495 = vmatprep.subr.bf16.mxu1 %v19793_v19 }
 0x5ed   : > { %14455 = vmatpush2.bf16.msra.mxu0 %v19788_v41  ;;  %v19842_v41 = vld [vmem:[%s21294_s13 + $0x18c8] ss:$16 sps:$4 sm:$0xff]  }
 0x5ee   : > { %14496 = vmatpush2.bf16.msra.mxu1 %v19791_v36  ;;  %14456 = vmatprep.subr.bf16.mxu0 %v19796_v44  ;;  %v19845_v36 = vld [vmem:[%s21294_s13 + $0x1ac8] ss:$16 sps:$4 sm:$0xff]  }
 0x5ef   : > { %14497 = vmatprep.subr.bf16.mxu1 %v19799_v29 }
 0x5f1   : > { %14457 = vmatpush2.bf16.msra.mxu0 %v19794_v37  ;;  %v19850_v37 = vld [vmem:[%s21294_s13 + $0x18ac] ss:$16 sps:$4 sm:$0xff]  }
 0x5f2   : > { %14498 = vmatpush2.bf16.msra.mxu1 %v19797_v52  ;;  %14458 = vmatprep.subr.bf16.mxu0 %v19802_v54  ;;  %v19853_v52 = vld [vmem:[%s21294_s13 + $0x1aac] ss:$16 sps:$4 sm:$0xff]  }
 0x5f3   : > { %14499 = vmatprep.subr.bf16.mxu1 %v19805_v6 }
 0x5f5   : > { %14459 = vmatpush2.bf16.msra.mxu0 %v19800_v7  ;;  %v19848_v7 = vld [vmem:[%s21294_s13 + $0x18a8] ss:$16 sps:$4 sm:$0xff]  }
 0x5f6   : > { %14500 = vmatpush2.bf16.msra.mxu1 %v19803_v31  ;;  %14460 = vmatprep.subr.bf16.mxu0 %v19808_v55  ;;  %v19851_v31 = vld [vmem:[%s21294_s13 + $0x1aa8] ss:$16 sps:$4 sm:$0xff]  }
 0x5f7   : > { %14501 = vmatprep.subr.bf16.mxu1 %v19811_v57 }
 0x5f9   : > { %14461 = vmatpush2.bf16.msra.mxu0 %v19806_v33  ;;  %v19857_v33 = vld [vmem:[%s21294_s13 + $0x1a88] ss:$16 sps:$4 sm:$0xff]  }
 0x5fa   : > { %14502 = vmatpush2.bf16.msra.mxu1 %v19809_v18  ;;  %14462 = vmatprep.subr.bf16.mxu0 %v19814_v16  ;;  %v19862_v18 = vld [vmem:[%s21294_s13 + $0x186c] ss:$16 sps:$4 sm:$0xff]  }
 0x5fb   : > { %14503 = vmatprep.subr.bf16.mxu1 %v19817_v14  ;;  %v19865_v16 = vld [vmem:[%s21294_s13 + $0x1a6c] ss:$16 sps:$4 sm:$0xff]   ;;  %v19860_v14 = vld [vmem:[%s21294_s13 + $0x1868] ss:$16 sps:$4 sm:$0xff]  }
 0x5fd   : > { %14463 = vmatpush2.bf16.msra.mxu0 %v19812_v15  ;;  %v19863_v15 = vld [vmem:[%s21294_s13 + $0x1a68] ss:$16 sps:$4 sm:$0xff]  }
 0x5fe   : > { %14504 = vmatpush2.bf16.msra.mxu1 %v19815_v2  ;;  %14464 = vmatprep.subr.bf16.mxu0 %v19820_v3  ;;  %v19868_v2 = vld [vmem:[%s21294_s13 + $0x184c] ss:$16 sps:$4 sm:$0xff]  }
 0x5ff   : > { %14505 = vmatprep.subr.bf16.mxu1 %v19823_v62  ;;  %v19871_v3 = vld [vmem:[%s21294_s13 + $0x1a4c] ss:$16 sps:$4 sm:$0xff]   ;;  %v19866_v62 = vld [vmem:[%s21294_s13 + $0x1848] ss:$16 sps:$4 sm:$0xff]  }
 0x601   : > { %14465 = vmatpush2.bf16.msra.mxu0 %v19818_v8  ;;  %v19869_v8 = vld [vmem:[%s21294_s13 + $0x1a48] ss:$16 sps:$4 sm:$0xff]  }
 0x602   : > { %14506 = vmatpush2.bf16.msra.mxu1 %v19821_v58  ;;  %14466 = vmatprep.subr.bf16.mxu0 %v19826_v20  ;;  %v19874_v58 = vld [vmem:[%s21294_s13 + $0x182c] ss:$16 sps:$4 sm:$0xff]  }
 0x603   : > { %14507 = vmatprep.subr.bf16.mxu1 %v19829_v59  ;;  %v19877_v20 = vld [vmem:[%s21294_s13 + $0x1a2c] ss:$16 sps:$4 sm:$0xff]   ;;  %v19872_v59 = vld [vmem:[%s21294_s13 + $0x1828] ss:$16 sps:$4 sm:$0xff]  }
 0x605   : > { %14467 = vmatpush2.bf16.msra.mxu0 %v19824_v13  ;;  %v19875_v13 = vld [vmem:[%s21294_s13 + $0x1a28] ss:$16 sps:$4 sm:$0xff]  }
 0x606   : > { %14508 = vmatpush2.bf16.msra.mxu1 %v19827_v60  ;;  %14468 = vmatprep.subr.bf16.mxu0 %v19832_v27  ;;  %v19880_v60 = vld [vmem:[%s21294_s13 + $0x180c] ss:$16 sps:$4 sm:$0xff]  }
 0x607   : > { %14509 = vmatprep.subr.bf16.mxu1 %v19835_v17  ;;  %v19883_v27 = vld [vmem:[%s21294_s13 + $0x1a0c] ss:$16 sps:$4 sm:$0xff]   ;;  %v19878_v17 = vld [vmem:[%s21294_s13 + $0x1808] ss:$16 sps:$4 sm:$0xff]  }
 0x609   : > { %14469 = vmatpush2.bf16.msra.mxu0 %v19830_v61  ;;  %v19881_v61 = vld [vmem:[%s21294_s13 + $0x1a08] ss:$16 sps:$4 sm:$0xff]  }
 0x60a   : > { %14510 = vmatpush2.bf16.msra.mxu1 %v19833_v24  ;;  %14520 = vmatprep.subr.bf16.mxu0 %v19838_v25  ;;  %v19886_v24 = vld [vmem:[%s21294_s13 + $0x19ec] ss:$16 sps:$4 sm:$0xff]  }
 0x60b   : > { %14561 = vmatprep.subr.bf16.mxu1 %v19841_v9  ;;  %v19889_v25 = vld [vmem:[%s21294_s13 + $0x1bec] ss:$16 sps:$4 sm:$0xff]   ;;  %v19884_v9 = vld [vmem:[%s21294_s13 + $0x19e8] ss:$16 sps:$4 sm:$0xff]  }
 0x60c   : > { %v14226_v47 = vpop.f32.mrf.mxu0  ;;  %14471 = vmatmul.mubr.bf16.vlgmr.msra.gmra.mxu0 %v21796_v50 }
 0x60d   : > { %v14267_v12 = vpop.f32.mrf.mxu1  ;;  %14512 = vmatmul.mubr.bf16.vlgmr.msra.gmra.mxu1 %v21798_v51  ;;  %v14227_v19 = vadd.f32 %v14226_v47, %v23041_v53  ;;  %14521 = vmatpush1.bf16.msra.mxu0 %v19836_v34  ;;  %v19887_v34 = vld [vmem:[%s21294_s13 + $0x1be8] ss:$16 sps:$4 sm:$0xff]  }
 0x60e   : > { %14562 = vmatpush1.bf16.msra.mxu1 %v19839_v38  ;;  %v14228_v44 = vpop.f32.mrf.mxu0  ;;  %14522 = vmatprep.subr.bf16.mxu0 %v19844_v23  ;;  %v19892_v38 = vld [vmem:[%s21294_s13 + $0x19cc] ss:$16 sps:$4 sm:$0xff]   ;;  %v19893_v47 = vld [vmem:[%s21294_s13 + $0x1bc8] ss:$16 sps:$4 sm:$0xff]  }
 0x60f   : > { %v14269_v29 = vpop.f32.mrf.mxu1  ;;  %14563 = vmatprep.subr.bf16.mxu1 %v19847_v46  ;;  %v23115_v54 = vadd.f32 %v14267_v12, %v14227_v19  ;;  %v14229_v50 = vadd.f32 %v14228_v44, %v23046_v56  ;;  %14552 = vmatprep.mubr.bf16.mxu0 %v21808_v4  ;;  %v19856_v4 = vld [vmem:[%s21294_s13 + $0x188c] ss:$16 sps:$4 sm:$0xff]   ;;  %v19854_v56 = vld [vmem:[%s21294_s13 + $0x1888] ss:$16 sps:$4 sm:$0xff]  }
 0x610   : > { %14593 = vmatprep.mubr.bf16.mxu1 %v21810_v5  ;;  %v14230_v51 = vpop.f32.mrf.mxu0  ;;  %v19859_v5 = vld [vmem:[%s21294_s13 + $0x1a8c] ss:$16 sps:$4 sm:$0xff]   ;;  %v19890_v46 = vld [vmem:[%s21294_s13 + $0x19c8] ss:$16 sps:$4 sm:$0xff]  }
 0x611   : > { %v14271_v53 = vpop.f32.mrf.mxu1  ;;  %v23120_v6 = vadd.f32 %v14269_v29, %v14229_v50  ;;  %14523 = vmatpush1.bf16.msra.mxu0 %v19842_v41  ;;  %v19895_v23 = vld [vmem:[%s21294_s13 + $0x1bcc] ss:$16 sps:$4 sm:$0xff]   ;;  %v19896_v41 = vld [vmem:[%s21294_s13 + $0x19a8] ss:$16 sps:$4 sm:$0xff]  }
 0x612   : > { %14564 = vmatpush1.bf16.msra.mxu1 %v19845_v36  ;;  %v14231_v55 = vpop.f32.mrf.mxu0  ;;  %14524 = vmatprep.subr.bf16.mxu0 %v19850_v37  ;;  %v19898_v12 = vld [vmem:[%s21294_s13 + $0x19ac] ss:$16 sps:$4 sm:$0xff]   ;;  %v19899_v36 = vld [vmem:[%s21294_s13 + $0x1ba8] ss:$16 sps:$4 sm:$0xff]  }
 0x613   : > { %v14272_v57 = vpop.f32.mrf.mxu1  ;;  %14565 = vmatprep.subr.bf16.mxu1 %v19853_v52  ;;  %v19901_v19 = vld [vmem:[%s21294_s13 + $0x1bac] ss:$16 sps:$4 sm:$0xff]   ;;  %v19902_v37 = vld [vmem:[%s21294_s13 + $0x1988] ss:$16 sps:$4 sm:$0xff]  }
 0x614   : > { %v19904_v44 = vld [vmem:[%s21294_s13 + $0x198c] ss:$16 sps:$4 sm:$0xff]   ;;  %v19905_v52 = vld [vmem:[%s21294_s13 + $0x1b88] ss:$16 sps:$4 sm:$0xff]  }
 0x615   : > { %14525 = vmatpush1.bf16.msra.mxu0 %v19848_v7  ;;  %v19907_v29 = vld [vmem:[%s21294_s13 + $0x1b8c] ss:$16 sps:$4 sm:$0xff]   ;;  %v19908_v53 = vld [vmem:[%s21294_s13 + $0x1968] ss:$16 sps:$4 sm:$0xff]  }
 0x616   : > { %14566 = vmatpush1.bf16.msra.mxu1 %v19851_v31  ;;  %14526 = vmatprep.subr.bf16.mxu0 %v19856_v4  ;;  %v19910_v50 = vld [vmem:[%s21294_s13 + $0x196c] ss:$16 sps:$4 sm:$0xff]   ;;  %v19911_v7 = vld [vmem:[%s21294_s13 + $0x1b68] ss:$16 sps:$4 sm:$0xff]  }
 0x617   : > { %14567 = vmatprep.subr.bf16.mxu1 %v19859_v5  ;;  %v19913_v51 = vld [vmem:[%s21294_s13 + $0x1b6c] ss:$16 sps:$4 sm:$0xff]   ;;  %v19914_v57 = vld [vmem:[%s21294_s13 + $0x1948] ss:$16 sps:$4 sm:$0xff]  }
 0x618   : > { %v19916_v31 = vld [vmem:[%s21294_s13 + $0x194c] ss:$16 sps:$4 sm:$0xff]   ;;  %v19917_v4 = vld [vmem:[%s21294_s13 + $0x1b48] ss:$16 sps:$4 sm:$0xff]  }
 0x619   : > { %14527 = vmatpush1.bf16.msra.mxu0 %v19854_v56  ;;  %v19919_v55 = vld [vmem:[%s21294_s13 + $0x1b4c] ss:$16 sps:$4 sm:$0xff]  }
 0x61a   : > { %14568 = vmatpush1.bf16.msra.mxu1 %v19857_v33  ;;  %14528 = vmatprep.subr.bf16.mxu0 %v19862_v18  ;;  %v19922_v5 = vld [vmem:[%s21294_s13 + $0x192c] ss:$16 sps:$4 sm:$0xff]   ;;  %v19920_v33 = vld [vmem:[%s21294_s13 + $0x1928] ss:$16 sps:$4 sm:$0xff]  }
 0x61b   : > { %14569 = vmatprep.subr.bf16.mxu1 %v19865_v16  ;;  %v19925_v56 = vld [vmem:[%s21294_s13 + $0x1b2c] ss:$16 sps:$4 sm:$0xff]   ;;  %v19923_v18 = vld [vmem:[%s21294_s13 + $0x1b28] ss:$16 sps:$4 sm:$0xff]  }
 0x61c   : > { %v19928_v16 = vld [vmem:[%s21294_s13 + $0x190c] ss:$16 sps:$4 sm:$0xff]  }
 0x61d   : > { %14529 = vmatpush1.bf16.msra.mxu0 %v19860_v14  ;;  %v19931_v14 = vld [vmem:[%s21294_s13 + $0x1b0c] ss:$16 sps:$4 sm:$0xff]  }
 0x61e   : > { %14570 = vmatpush1.bf16.msra.mxu1 %v19863_v15  ;;  %14530 = vmatprep.subr.bf16.mxu0 %v19868_v2  ;;  %v19926_v15 = vld [vmem:[%s21294_s13 + $0x1908] ss:$16 sps:$4 sm:$0xff]  }
 0x61f   : > { %14571 = vmatprep.subr.bf16.mxu1 %v19871_v3  ;;  %v19929_v2 = vld [vmem:[%s21294_s13 + $0x1b08] ss:$16 sps:$4 sm:$0xff]   ;;  %v19934_v3 = vld [vmem:[%s21294_s13 + $0x1cec] ss:$16 sps:$4 sm:$0xff]  }
 0x621   : > { %14531 = vmatpush1.bf16.msra.mxu0 %v19866_v62  ;;  %v19937_v62 = vld [vmem:[%s21294_s13 + $0x1eec] ss:$16 sps:$4 sm:$0xff]  }
 0x622   : > { %14572 = vmatpush1.bf16.msra.mxu1 %v19869_v8  ;;  %14532 = vmatprep.subr.bf16.mxu0 %v19874_v58  ;;  %v19932_v8 = vld [vmem:[%s21294_s13 + $0x1ce8] ss:$16 sps:$4 sm:$0xff]  }
 0x623   : > { %14573 = vmatprep.subr.bf16.mxu1 %v19877_v20  ;;  %v19935_v58 = vld [vmem:[%s21294_s13 + $0x1ee8] ss:$16 sps:$4 sm:$0xff]   ;;  %v19940_v20 = vld [vmem:[%s21294_s13 + $0x1ccc] ss:$16 sps:$4 sm:$0xff]  }
 0x625   : > { %14533 = vmatpush1.bf16.msra.mxu0 %v19872_v59  ;;  %v19943_v59 = vld [vmem:[%s21294_s13 + $0x1ecc] ss:$16 sps:$4 sm:$0xff]  }
 0x626   : > { %14574 = vmatpush1.bf16.msra.mxu1 %v19875_v13  ;;  %14534 = vmatprep.subr.bf16.mxu0 %v19880_v60 }
 0x627   : > { %14575 = vmatprep.subr.bf16.mxu1 %v19883_v27 }
 0x629   : > { %14535 = vmatpush1.bf16.msra.mxu0 %v19878_v17  ;;  %v19938_v17 = vld [vmem:[%s21294_s13 + $0x1cc8] ss:$16 sps:$4 sm:$0xff]  }
 0x62a   : > { %14576 = vmatpush1.bf16.msra.mxu1 %v19881_v61  ;;  %14536 = vmatprep.subr.bf16.mxu0 %v19886_v24  ;;  %v19941_v61 = vld [vmem:[%s21294_s13 + $0x1ec8] ss:$16 sps:$4 sm:$0xff]  }
 0x62b   : > { %14577 = vmatprep.subr.bf16.mxu1 %v19889_v25 }
 0x62d   : > { %14537 = vmatpush2.bf16.msra.mxu0 %v19884_v9  ;;  %v19946_v9 = vld [vmem:[%s21294_s13 + $0x1cac] ss:$16 sps:$4 sm:$0xff]  }
 0x62e   : > { %14578 = vmatpush2.bf16.msra.mxu1 %v19887_v34  ;;  %14538 = vmatprep.subr.bf16.mxu0 %v19892_v38  ;;  %v19949_v34 = vld [vmem:[%s21294_s13 + $0x1eac] ss:$16 sps:$4 sm:$0xff]  }
 0x62f   : > { %14579 = vmatprep.subr.bf16.mxu1 %v19895_v23 }
 0x631   : > { %14539 = vmatpush2.bf16.msra.mxu0 %v19890_v46  ;;  %v19944_v46 = vld [vmem:[%s21294_s13 + $0x1ca8] ss:$16 sps:$4 sm:$0xff]  }
 0x632   : > { %14580 = vmatpush2.bf16.msra.mxu1 %v19893_v47  ;;  %14540 = vmatprep.subr.bf16.mxu0 %v19898_v12  ;;  %v19947_v47 = vld [vmem:[%s21294_s13 + $0x1ea8] ss:$16 sps:$4 sm:$0xff]  }
 0x633   : > { %14581 = vmatprep.subr.bf16.mxu1 %v19901_v19 }
 0x635   : > { %14541 = vmatpush2.bf16.msra.mxu0 %v19896_v41  ;;  %v19953_v41 = vld [vmem:[%s21294_s13 + $0x1e88] ss:$16 sps:$4 sm:$0xff]  }
 0x636   : > { %14582 = vmatpush2.bf16.msra.mxu1 %v19899_v36  ;;  %14542 = vmatprep.subr.bf16.mxu0 %v19904_v44  ;;  %v19958_v36 = vld [vmem:[%s21294_s13 + $0x1c6c] ss:$16 sps:$4 sm:$0xff]  }
 0x637   : > { %14583 = vmatprep.subr.bf16.mxu1 %v19907_v29  ;;  %v19961_v44 = vld [vmem:[%s21294_s13 + $0x1e6c] ss:$16 sps:$4 sm:$0xff]   ;;  %v19956_v29 = vld [vmem:[%s21294_s13 + $0x1c68] ss:$16 sps:$4 sm:$0xff]  }
 0x639   : > { %14543 = vmatpush2.bf16.msra.mxu0 %v19902_v37  ;;  %v19959_v37 = vld [vmem:[%s21294_s13 + $0x1e68] ss:$16 sps:$4 sm:$0xff]  }
 0x63a   : > { %14584 = vmatpush2.bf16.msra.mxu1 %v19905_v52  ;;  %14544 = vmatprep.subr.bf16.mxu0 %v19910_v50  ;;  %v19964_v52 = vld [vmem:[%s21294_s13 + $0x1c4c] ss:$16 sps:$4 sm:$0xff]  }
 0x63b   : > { %14585 = vmatprep.subr.bf16.mxu1 %v19913_v51  ;;  %v19967_v50 = vld [vmem:[%s21294_s13 + $0x1e4c] ss:$16 sps:$4 sm:$0xff]   ;;  %v19962_v51 = vld [vmem:[%s21294_s13 + $0x1c48] ss:$16 sps:$4 sm:$0xff]  }
 0x63d   : > { %14545 = vmatpush2.bf16.msra.mxu0 %v19908_v53  ;;  %v19965_v53 = vld [vmem:[%s21294_s13 + $0x1e48] ss:$16 sps:$4 sm:$0xff]  }
 0x63e   : > { %14586 = vmatpush2.bf16.msra.mxu1 %v19911_v7  ;;  %14546 = vmatprep.subr.bf16.mxu0 %v19916_v31  ;;  %v19970_v7 = vld [vmem:[%s21294_s13 + $0x1c2c] ss:$16 sps:$4 sm:$0xff]  }
 0x63f   : > { %14587 = vmatprep.subr.bf16.mxu1 %v19919_v55  ;;  %v19973_v31 = vld [vmem:[%s21294_s13 + $0x1e2c] ss:$16 sps:$4 sm:$0xff]   ;;  %v19968_v55 = vld [vmem:[%s21294_s13 + $0x1c28] ss:$16 sps:$4 sm:$0xff]  }
 0x641   : > { %14547 = vmatpush2.bf16.msra.mxu0 %v19914_v57  ;;  %v19971_v57 = vld [vmem:[%s21294_s13 + $0x1e28] ss:$16 sps:$4 sm:$0xff]  }
 0x642   : > { %14588 = vmatpush2.bf16.msra.mxu1 %v19917_v4  ;;  %14548 = vmatprep.subr.bf16.mxu0 %v19922_v5  ;;  %v19976_v4 = vld [vmem:[%s21294_s13 + $0x1c0c] ss:$16 sps:$4 sm:$0xff]  }
 0x643   : > { %14589 = vmatprep.subr.bf16.mxu1 %v19925_v56  ;;  %v19979_v5 = vld [vmem:[%s21294_s13 + $0x1e0c] ss:$16 sps:$4 sm:$0xff]   ;;  %v19974_v56 = vld [vmem:[%s21294_s13 + $0x1c08] ss:$16 sps:$4 sm:$0xff]  }
 0x645   : > { %14549 = vmatpush2.bf16.msra.mxu0 %v19920_v33  ;;  %v19977_v33 = vld [vmem:[%s21294_s13 + $0x1e08] ss:$16 sps:$4 sm:$0xff]  }
 0x646   : > { %14590 = vmatpush2.bf16.msra.mxu1 %v19923_v18  ;;  %14550 = vmatprep.subr.bf16.mxu0 %v19928_v16  ;;  %v19982_v18 = vld [vmem:[%s21294_s13 + $0x1dec] ss:$16 sps:$4 sm:$0xff]  }
 0x647   : > { %14591 = vmatprep.subr.bf16.mxu1 %v19931_v14  ;;  %v19985_v16 = vld [vmem:[%s21294_s13 + $0x1fec] ss:$16 sps:$4 sm:$0xff]   ;;  %v19980_v14 = vld [vmem:[%s21294_s13 + $0x1de8] ss:$16 sps:$4 sm:$0xff]  }
 0x649   : > { %14551 = vmatpush2.bf16.msra.mxu0 %v19926_v15  ;;  %v19983_v15 = vld [vmem:[%s21294_s13 + $0x1fe8] ss:$16 sps:$4 sm:$0xff]  }
 0x64a   : > { %14592 = vmatpush2.bf16.msra.mxu1 %v19929_v2  ;;  %14602 = vmatprep.subr.bf16.mxu0 %v19934_v3  ;;  %v19988_v2 = vld [vmem:[%s21294_s13 + $0x1dcc] ss:$16 sps:$4 sm:$0xff]  }
 0x64b   : > { %14643 = vmatprep.subr.bf16.mxu1 %v19937_v62  ;;  %v19991_v3 = vld [vmem:[%s21294_s13 + $0x1fcc] ss:$16 sps:$4 sm:$0xff]   ;;  %v19986_v62 = vld [vmem:[%s21294_s13 + $0x1dc8] ss:$16 sps:$4 sm:$0xff]  }
 0x64c   : > { %v14308_v13 = vpop.f32.mrf.mxu0  ;;  %14553 = vmatmul.mubr.bf16.vlgmr.msra.gmra.mxu0 %v21882_v0 }
 0x64d   : > { %v14349_v60 = vpop.f32.mrf.mxu1  ;;  %14594 = vmatmul.mubr.bf16.vlgmr.msra.gmra.mxu1 %v21884_v1  ;;  %v14309_v27 = vadd.f32 %v14308_v13, %v23115_v54  ;;  %14603 = vmatpush1.bf16.msra.mxu0 %v19932_v8  ;;  %v19989_v8 = vld [vmem:[%s21294_s13 + $0x1fc8] ss:$16 sps:$4 sm:$0xff]  }
 0x64e   : > { %14644 = vmatpush1.bf16.msra.mxu1 %v19935_v58  ;;  %v14310_v24 = vpop.f32.mrf.mxu0  ;;  %14604 = vmatprep.subr.bf16.mxu0 %v19940_v20  ;;  %v19994_v58 = vld [vmem:[%s21294_s13 + $0x1dac] ss:$16 sps:$4 sm:$0xff]   ;;  %v19995_v13 = vld [vmem:[%s21294_s13 + $0x1fa8] ss:$16 sps:$4 sm:$0xff]  }
 0x64f   : > { %v14351_v25 = vpop.f32.mrf.mxu1  ;;  %14645 = vmatprep.subr.bf16.mxu1 %v19943_v59  ;;  %v23189_v38 = vadd.f32 %v14349_v60, %v14309_v27  ;;  %v14311_v0 = vadd.f32 %v14310_v24, %v23120_v6  ;;  %14634 = vmatprep.mubr.bf16.mxu0 %v21894_v22  ;;  %v19952_v22 = vld [vmem:[%s21294_s13 + $0x1c8c] ss:$16 sps:$4 sm:$0xff]   ;;  %v19950_v6 = vld [vmem:[%s21294_s13 + $0x1c88] ss:$16 sps:$4 sm:$0xff]  }
 0x650   : > { %14675 = vmatprep.mubr.bf16.mxu1 %v21896_v26  ;;  %v14312_v1 = vpop.f32.mrf.mxu0  ;;  %v19955_v26 = vld [vmem:[%s21294_s13 + $0x1e8c] ss:$16 sps:$4 sm:$0xff]   ;;  %v19992_v59 = vld [vmem:[%s21294_s13 + $0x1da8] ss:$16 sps:$4 sm:$0xff]  }
 0x651   : > { %v14353_v54 = vpop.f32.mrf.mxu1  ;;  %v23194_v23 = vadd.f32 %v14351_v25, %v14311_v0  ;;  %14605 = vmatpush1.bf16.msra.mxu0 %v19938_v17  ;;  %v19997_v20 = vld [vmem:[%s21294_s13 + $0x1fac] ss:$16 sps:$4 sm:$0xff]   ;;  %v19998_v17 = vld [vmem:[%s21294_s13 + $0x1d88] ss:$16 sps:$4 sm:$0xff]  }
 0x652   : > { %14646 = vmatpush1.bf16.msra.mxu1 %v19941_v61  ;;  %v14313_v12 = vpop.f32.mrf.mxu0  ;;  %14606 = vmatprep.subr.bf16.mxu0 %v19946_v9  ;;  %v20000_v60 = vld [vmem:[%s21294_s13 + $0x1d8c] ss:$16 sps:$4 sm:$0xff]   ;;  %v20001_v61 = vld [vmem:[%s21294_s13 + $0x1f88] ss:$16 sps:$4 sm:$0xff]  }
 0x653   : > { %v14354_v19 = vpop.f32.mrf.mxu1  ;;  %14647 = vmatprep.subr.bf16.mxu1 %v19949_v34  ;;  %v20003_v27 = vld [vmem:[%s21294_s13 + $0x1f8c] ss:$16 sps:$4 sm:$0xff]   ;;  %v20004_v9 = vld [vmem:[%s21294_s13 + $0x1d68] ss:$16 sps:$4 sm:$0xff]  }
 0x654   : > { %v20006_v24 = vld [vmem:[%s21294_s13 + $0x1d6c] ss:$16 sps:$4 sm:$0xff]   ;;  %v20007_v34 = vld [vmem:[%s21294_s13 + $0x1f68] ss:$16 sps:$4 sm:$0xff]  }
 0x655   : > { %14607 = vmatpush1.bf16.msra.mxu0 %v19944_v46  ;;  %v20009_v25 = vld [vmem:[%s21294_s13 + $0x1f6c] ss:$16 sps:$4 sm:$0xff]   ;;  %v20010_v54 = vld [vmem:[%s21294_s13 + $0x1d48] ss:$16 sps:$4 sm:$0xff]  }
 0x656   : > { %14648 = vmatpush1.bf16.msra.mxu1 %v19947_v47  ;;  %14608 = vmatprep.subr.bf16.mxu0 %v19952_v22  ;;  %v20012_v0 = vld [vmem:[%s21294_s13 + $0x1d4c] ss:$16 sps:$4 sm:$0xff]   ;;  %v20013_v46 = vld [vmem:[%s21294_s13 + $0x1f48] ss:$16 sps:$4 sm:$0xff]  }
 0x657   : > { %14649 = vmatprep.subr.bf16.mxu1 %v19955_v26  ;;  %v20015_v1 = vld [vmem:[%s21294_s13 + $0x1f4c] ss:$16 sps:$4 sm:$0xff]   ;;  %v20016_v19 = vld [vmem:[%s21294_s13 + $0x1d28] ss:$16 sps:$4 sm:$0xff]  }
 0x658   : > { %v20018_v47 = vld [vmem:[%s21294_s13 + $0x1d2c] ss:$16 sps:$4 sm:$0xff]   ;;  %v20019_v22 = vld [vmem:[%s21294_s13 + $0x1f28] ss:$16 sps:$4 sm:$0xff]  }
 0x659   : > { %14609 = vmatpush1.bf16.msra.mxu0 %v19950_v6  ;;  %v20021_v12 = vld [vmem:[%s21294_s13 + $0x1f2c] ss:$16 sps:$4 sm:$0xff]  }
 0x65a   : > { %14650 = vmatpush1.bf16.msra.mxu1 %v19953_v41  ;;  %14610 = vmatprep.subr.bf16.mxu0 %v19958_v36  ;;  %v20024_v26 = vld [vmem:[%s21294_s13 + $0x1d0c] ss:$16 sps:$4 sm:$0xff]   ;;  %v20022_v41 = vld [vmem:[%s21294_s13 + $0x1d08] ss:$16 sps:$4 sm:$0xff]  }
 0x65b   : > { %14651 = vmatprep.subr.bf16.mxu1 %v19961_v44  ;;  %v20027_v6 = vld [vmem:[%s21294_s13 + $0x1f0c] ss:$16 sps:$4 sm:$0xff]   ;;  %v20025_v36 = vld [vmem:[%s21294_s13 + $0x1f08] ss:$16 sps:$4 sm:$0xff]  }
 0x65c   : > { %v20030_v44 = vld [vmem:[%s21294_s13 + $0x20ec] ss:$16 sps:$4 sm:$0xff]  }
 0x65d   : > { %14611 = vmatpush1.bf16.msra.mxu0 %v19956_v29  ;;  %v20033_v29 = vld [vmem:[%s21294_s13 + $0x22ec] ss:$16 sps:$4 sm:$0xff]  }
 0x65e   : > { %14652 = vmatpush1.bf16.msra.mxu1 %v19959_v37  ;;  %14612 = vmatprep.subr.bf16.mxu0 %v19964_v52  ;;  %v20028_v37 = vld [vmem:[%s21294_s13 + $0x20e8] ss:$16 sps:$4 sm:$0xff]  }
 0x65f   : > { %14653 = vmatprep.subr.bf16.mxu1 %v19967_v50  ;;  %v20031_v52 = vld [vmem:[%s21294_s13 + $0x22e8] ss:$16 sps:$4 sm:$0xff]   ;;  %v20036_v50 = vld [vmem:[%s21294_s13 + $0x20cc] ss:$16 sps:$4 sm:$0xff]  }
 0x661   : > { %14613 = vmatpush1.bf16.msra.mxu0 %v19962_v51  ;;  %v20039_v51 = vld [vmem:[%s21294_s13 + $0x22cc] ss:$16 sps:$4 sm:$0xff]  }
 0x662   : > { %14654 = vmatpush1.bf16.msra.mxu1 %v19965_v53  ;;  %14614 = vmatprep.subr.bf16.mxu0 %v19970_v7 }
 0x663   : > { %14655 = vmatprep.subr.bf16.mxu1 %v19973_v31 }
 0x665   : > { %14615 = vmatpush1.bf16.msra.mxu0 %v19968_v55  ;;  %v20034_v55 = vld [vmem:[%s21294_s13 + $0x20c8] ss:$16 sps:$4 sm:$0xff]  }
 0x666   : > { %14656 = vmatpush1.bf16.msra.mxu1 %v19971_v57  ;;  %14616 = vmatprep.subr.bf16.mxu0 %v19976_v4  ;;  %v20037_v57 = vld [vmem:[%s21294_s13 + $0x22c8] ss:$16 sps:$4 sm:$0xff]  }
 0x667   : > { %14657 = vmatprep.subr.bf16.mxu1 %v19979_v5 }
 0x669   : > { %14617 = vmatpush1.bf16.msra.mxu0 %v19974_v56  ;;  %v20042_v56 = vld [vmem:[%s21294_s13 + $0x20ac] ss:$16 sps:$4 sm:$0xff]  }
 0x66a   : > { %14658 = vmatpush1.bf16.msra.mxu1 %v19977_v33  ;;  %14618 = vmatprep.subr.bf16.mxu0 %v19982_v18  ;;  %v20045_v33 = vld [vmem:[%s21294_s13 + $0x22ac] ss:$16 sps:$4 sm:$0xff]  }
 0x66b   : > { %14659 = vmatprep.subr.bf16.mxu1 %v19985_v16 }
 0x66d   : > { %14619 = vmatpush2.bf16.msra.mxu0 %v19980_v14  ;;  %v20040_v14 = vld [vmem:[%s21294_s13 + $0x20a8] ss:$16 sps:$4 sm:$0xff]  }
 0x66e   : > { %14660 = vmatpush2.bf16.msra.mxu1 %v19983_v15  ;;  %14620 = vmatprep.subr.bf16.mxu0 %v19988_v2  ;;  %v20043_v15 = vld [vmem:[%s21294_s13 + $0x22a8] ss:$16 sps:$4 sm:$0xff]  }
 0x66f   : > { %14661 = vmatprep.subr.bf16.mxu1 %v19991_v3 }
 0x671   : > { %14621 = vmatpush2.bf16.msra.mxu0 %v19986_v62  ;;  %v20049_v62 = vld [vmem:[%s21294_s13 + $0x2288] ss:$16 sps:$4 sm:$0xff]  }
 0x672   : > { %14662 = vmatpush2.bf16.msra.mxu1 %v19989_v8  ;;  %14622 = vmatprep.subr.bf16.mxu0 %v19994_v58  ;;  %v20054_v8 = vld [vmem:[%s21294_s13 + $0x206c] ss:$16 sps:$4 sm:$0xff]  }
 0x673   : > { %14663 = vmatprep.subr.bf16.mxu1 %v19997_v20  ;;  %v20057_v58 = vld [vmem:[%s21294_s13 + $0x226c] ss:$16 sps:$4 sm:$0xff]   ;;  %v20052_v20 = vld [vmem:[%s21294_s13 + $0x2068] ss:$16 sps:$4 sm:$0xff]  }
 0x675   : > { %14623 = vmatpush2.bf16.msra.mxu0 %v19992_v59  ;;  %v20055_v59 = vld [vmem:[%s21294_s13 + $0x2268] ss:$16 sps:$4 sm:$0xff]  }
 0x676   : > { %14664 = vmatpush2.bf16.msra.mxu1 %v19995_v13  ;;  %14624 = vmatprep.subr.bf16.mxu0 %v20000_v60  ;;  %v20060_v13 = vld [vmem:[%s21294_s13 + $0x204c] ss:$16 sps:$4 sm:$0xff]  }
 0x677   : > { %14665 = vmatprep.subr.bf16.mxu1 %v20003_v27  ;;  %v20063_v60 = vld [vmem:[%s21294_s13 + $0x224c] ss:$16 sps:$4 sm:$0xff]   ;;  %v20058_v27 = vld [vmem:[%s21294_s13 + $0x2048] ss:$16 sps:$4 sm:$0xff]  }
 0x679   : > { %14625 = vmatpush2.bf16.msra.mxu0 %v19998_v17  ;;  %v20061_v17 = vld [vmem:[%s21294_s13 + $0x2248] ss:$16 sps:$4 sm:$0xff]  }
 0x67a   : > { %14666 = vmatpush2.bf16.msra.mxu1 %v20001_v61  ;;  %14626 = vmatprep.subr.bf16.mxu0 %v20006_v24  ;;  %v20066_v61 = vld [vmem:[%s21294_s13 + $0x202c] ss:$16 sps:$4 sm:$0xff]  }
 0x67b   : > { %14667 = vmatprep.subr.bf16.mxu1 %v20009_v25  ;;  %v20069_v24 = vld [vmem:[%s21294_s13 + $0x222c] ss:$16 sps:$4 sm:$0xff]   ;;  %v20064_v25 = vld [vmem:[%s21294_s13 + $0x2028] ss:$16 sps:$4 sm:$0xff]  }
 0x67d   : > { %14627 = vmatpush2.bf16.msra.mxu0 %v20004_v9  ;;  %v20067_v9 = vld [vmem:[%s21294_s13 + $0x2228] ss:$16 sps:$4 sm:$0xff]  }
 0x67e   : > { %14668 = vmatpush2.bf16.msra.mxu1 %v20007_v34  ;;  %14628 = vmatprep.subr.bf16.mxu0 %v20012_v0  ;;  %v20072_v34 = vld [vmem:[%s21294_s13 + $0x200c] ss:$16 sps:$4 sm:$0xff]  }
 0x67f   : > { %14669 = vmatprep.subr.bf16.mxu1 %v20015_v1  ;;  %v20075_v0 = vld [vmem:[%s21294_s13 + $0x220c] ss:$16 sps:$4 sm:$0xff]   ;;  %v20070_v1 = vld [vmem:[%s21294_s13 + $0x2008] ss:$16 sps:$4 sm:$0xff]  }
 0x681   : > { %14629 = vmatpush2.bf16.msra.mxu0 %v20010_v54  ;;  %v20073_v54 = vld [vmem:[%s21294_s13 + $0x2208] ss:$16 sps:$4 sm:$0xff]  }
 0x682   : > { %14670 = vmatpush2.bf16.msra.mxu1 %v20013_v46  ;;  %14630 = vmatprep.subr.bf16.mxu0 %v20018_v47  ;;  %v20078_v46 = vld [vmem:[%s21294_s13 + $0x21ec] ss:$16 sps:$4 sm:$0xff]  }
 0x683   : > { %14671 = vmatprep.subr.bf16.mxu1 %v20021_v12  ;;  %v20081_v47 = vld [vmem:[%s21294_s13 + $0x23ec] ss:$16 sps:$4 sm:$0xff]   ;;  %v20076_v12 = vld [vmem:[%s21294_s13 + $0x21e8] ss:$16 sps:$4 sm:$0xff]  }
 0x685   : > { %14631 = vmatpush2.bf16.msra.mxu0 %v20016_v19  ;;  %v20079_v19 = vld [vmem:[%s21294_s13 + $0x23e8] ss:$16 sps:$4 sm:$0xff]  }
 0x686   : > { %14672 = vmatpush2.bf16.msra.mxu1 %v20019_v22  ;;  %14632 = vmatprep.subr.bf16.mxu0 %v20024_v26  ;;  %v20084_v22 = vld [vmem:[%s21294_s13 + $0x21cc] ss:$16 sps:$4 sm:$0xff]  }
 0x687   : > { %14673 = vmatprep.subr.bf16.mxu1 %v20027_v6  ;;  %v20087_v26 = vld [vmem:[%s21294_s13 + $0x23cc] ss:$16 sps:$4 sm:$0xff]   ;;  %v20082_v6 = vld [vmem:[%s21294_s13 + $0x21c8] ss:$16 sps:$4 sm:$0xff]  }
 0x689   : > { %14633 = vmatpush2.bf16.msra.mxu0 %v20022_v41  ;;  %v20085_v41 = vld [vmem:[%s21294_s13 + $0x23c8] ss:$16 sps:$4 sm:$0xff]  }
 0x68a   : > { %14674 = vmatpush2.bf16.msra.mxu1 %v20025_v36  ;;  %14684 = vmatprep.subr.bf16.mxu0 %v20030_v44  ;;  %v20090_v36 = vld [vmem:[%s21294_s13 + $0x21ac] ss:$16 sps:$4 sm:$0xff]  }
 0x68b   : > { %14725 = vmatprep.subr.bf16.mxu1 %v20033_v29  ;;  %v20093_v44 = vld [vmem:[%s21294_s13 + $0x23ac] ss:$16 sps:$4 sm:$0xff]   ;;  %v20088_v29 = vld [vmem:[%s21294_s13 + $0x21a8] ss:$16 sps:$4 sm:$0xff]  }
 0x68c   : > { %v14390_v53 = vpop.f32.mrf.mxu0  ;;  %14635 = vmatmul.mubr.bf16.vlgmr.msra.gmra.mxu0 %v21968_v32 }
 0x68d   : > { %v14431_v7 = vpop.f32.mrf.mxu1  ;;  %14676 = vmatmul.mubr.bf16.vlgmr.msra.gmra.mxu1 %v21970_v35  ;;  %v14391_v31 = vadd.f32 %v14390_v53, %v23189_v38  ;;  %14685 = vmatpush1.bf16.msra.mxu0 %v20028_v37  ;;  %v20091_v37 = vld [vmem:[%s21294_s13 + $0x23a8] ss:$16 sps:$4 sm:$0xff]  }
 0x68e   : > { %14726 = vmatpush1.bf16.msra.mxu1 %v20031_v52  ;;  %v14392_v4 = vpop.f32.mrf.mxu0  ;;  %14686 = vmatprep.subr.bf16.mxu0 %v20036_v50  ;;  %v20096_v52 = vld [vmem:[%s21294_s13 + $0x218c] ss:$16 sps:$4 sm:$0xff]   ;;  %v20097_v53 = vld [vmem:[%s21294_s13 + $0x2388] ss:$16 sps:$4 sm:$0xff]  }
 0x68f   : > { %v14433_v5 = vpop.f32.mrf.mxu1  ;;  %14727 = vmatprep.subr.bf16.mxu1 %v20039_v51  ;;  %v23263_v18 = vadd.f32 %v14431_v7, %v14391_v31  ;;  %v14393_v32 = vadd.f32 %v14392_v4, %v23194_v23  ;;  %14716 = vmatprep.mubr.bf16.mxu0 %v21980_v48  ;;  %v20048_v48 = vld [vmem:[%s21294_s13 + $0x208c] ss:$16 sps:$4 sm:$0xff]   ;;  %v20046_v23 = vld [vmem:[%s21294_s13 + $0x2088] ss:$16 sps:$4 sm:$0xff]  }
 0x690   : > { %14757 = vmatprep.mubr.bf16.mxu1 %v21982_v49  ;;  %v14394_v35 = vpop.f32.mrf.mxu0  ;;  %v20051_v49 = vld [vmem:[%s21294_s13 + $0x228c] ss:$16 sps:$4 sm:$0xff]   ;;  %v20094_v51 = vld [vmem:[%s21294_s13 + $0x2188] ss:$16 sps:$4 sm:$0xff]  }
 0x691   : > { %v14435_v38 = vpop.f32.mrf.mxu1  ;;  %v23268_v16 = vadd.f32 %v14433_v5, %v14393_v32  ;;  %14687 = vmatpush1.bf16.msra.mxu0 %v20034_v55  ;;  %v20099_v50 = vld [vmem:[%s21294_s13 + $0x238c] ss:$16 sps:$4 sm:$0xff]   ;;  %v20100_v55 = vld [vmem:[%s21294_s13 + $0x2168] ss:$16 sps:$4 sm:$0xff]  }
 0x692   : > { %14728 = vmatpush1.bf16.msra.mxu1 %v20037_v57  ;;  %v14395_v2 = vpop.f32.mrf.mxu0  ;;  %14688 = vmatprep.subr.bf16.mxu0 %v20042_v56  ;;  %v20102_v7 = vld [vmem:[%s21294_s13 + $0x216c] ss:$16 sps:$4 sm:$0xff]   ;;  %v20103_v57 = vld [vmem:[%s21294_s13 + $0x2368] ss:$16 sps:$4 sm:$0xff]  }
 0x693   : > { %v14436_v3 = vpop.f32.mrf.mxu1  ;;  %14729 = vmatprep.subr.bf16.mxu1 %v20045_v33  ;;  %v20105_v31 = vld [vmem:[%s21294_s13 + $0x236c] ss:$16 sps:$4 sm:$0xff]   ;;  %v20106_v56 = vld [vmem:[%s21294_s13 + $0x2148] ss:$16 sps:$4 sm:$0xff]  }
 0x694   : > { %v20108_v4 = vld [vmem:[%s21294_s13 + $0x214c] ss:$16 sps:$4 sm:$0xff]   ;;  %v20109_v33 = vld [vmem:[%s21294_s13 + $0x2348] ss:$16 sps:$4 sm:$0xff]  }
 0x695   : > { %14689 = vmatpush1.bf16.msra.mxu0 %v20040_v14  ;;  %v20111_v5 = vld [vmem:[%s21294_s13 + $0x234c] ss:$16 sps:$4 sm:$0xff]   ;;  %v20112_v38 = vld [vmem:[%s21294_s13 + $0x2128] ss:$16 sps:$4 sm:$0xff]  }
 0x696   : > { %14730 = vmatpush1.bf16.msra.mxu1 %v20043_v15  ;;  %14690 = vmatprep.subr.bf16.mxu0 %v20048_v48  ;;  %v20114_v32 = vld [vmem:[%s21294_s13 + $0x212c] ss:$16 sps:$4 sm:$0xff]   ;;  %v20115_v14 = vld [vmem:[%s21294_s13 + $0x2328] ss:$16 sps:$4 sm:$0xff]  }
 0x697   : > { %14731 = vmatprep.subr.bf16.mxu1 %v20051_v49  ;;  %v20117_v35 = vld [vmem:[%s21294_s13 + $0x232c] ss:$16 sps:$4 sm:$0xff]   ;;  %v20118_v3 = vld [vmem:[%s21294_s13 + $0x2108] ss:$16 sps:$4 sm:$0xff]  }
 0x698   : > { %v20120_v15 = vld [vmem:[%s21294_s13 + $0x210c] ss:$16 sps:$4 sm:$0xff]   ;;  %v20121_v48 = vld [vmem:[%s21294_s13 + $0x2308] ss:$16 sps:$4 sm:$0xff]  }
 0x699   : > { %14691 = vmatpush1.bf16.msra.mxu0 %v20046_v23  ;;  %v20123_v2 = vld [vmem:[%s21294_s13 + $0x230c] ss:$16 sps:$4 sm:$0xff]  }
 0x69a   : > { %14732 = vmatpush1.bf16.msra.mxu1 %v20049_v62  ;;  %14692 = vmatprep.subr.bf16.mxu0 %v20054_v8  ;;  %v20126_v49 = vld [vmem:[%s21294_s13 + $0x24ec] ss:$16 sps:$4 sm:$0xff]   ;;  %v20124_v62 = vld [vmem:[%s21294_s13 + $0x24e8] ss:$16 sps:$4 sm:$0xff]  }
 0x69b   : > { %14733 = vmatprep.subr.bf16.mxu1 %v20057_v58  ;;  %v20129_v23 = vld [vmem:[%s21294_s13 + $0x26ec] ss:$16 sps:$4 sm:$0xff]   ;;  %v20127_v8 = vld [vmem:[%s21294_s13 + $0x26e8] ss:$16 sps:$4 sm:$0xff]  }
 0x69c   : > { %v20132_v58 = vld [vmem:[%s21294_s13 + $0x24cc] ss:$16 sps:$4 sm:$0xff]  }
 0x69d   : > { %14693 = vmatpush1.bf16.msra.mxu0 %v20052_v20  ;;  %v20135_v20 = vld [vmem:[%s21294_s13 + $0x26cc] ss:$16 sps:$4 sm:$0xff]  }
 0x69e   : > { %14734 = vmatpush1.bf16.msra.mxu1 %v20055_v59  ;;  %14694 = vmatprep.subr.bf16.mxu0 %v20060_v13 }
 0x69f   : > { %14735 = vmatprep.subr.bf16.mxu1 %v20063_v60 }
 0x6a1   : > { %14695 = vmatpush1.bf16.msra.mxu0 %v20058_v27  ;;  %v20130_v27 = vld [vmem:[%s21294_s13 + $0x24c8] ss:$16 sps:$4 sm:$0xff]  }
 0x6a2   : > { %14736 = vmatpush1.bf16.msra.mxu1 %v20061_v17  ;;  %14696 = vmatprep.subr.bf16.mxu0 %v20066_v61  ;;  %v20133_v17 = vld [vmem:[%s21294_s13 + $0x26c8] ss:$16 sps:$4 sm:$0xff]  }
 0x6a3   : > { %14737 = vmatprep.subr.bf16.mxu1 %v20069_v24 }
 0x6a5   : > { %14697 = vmatpush1.bf16.msra.mxu0 %v20064_v25  ;;  %v20138_v25 = vld [vmem:[%s21294_s13 + $0x24ac] ss:$16 sps:$4 sm:$0xff]  }
 0x6a6   : > { %14738 = vmatpush1.bf16.msra.mxu1 %v20067_v9  ;;  %14698 = vmatprep.subr.bf16.mxu0 %v20072_v34  ;;  %v20141_v9 = vld [vmem:[%s21294_s13 + $0x26ac] ss:$16 sps:$4 sm:$0xff]  }
 0x6a7   : > { %14739 = vmatprep.subr.bf16.mxu1 %v20075_v0 }
 0x6a9   : > { %14699 = vmatpush1.bf16.msra.mxu0 %v20070_v1  ;;  %v20136_v1 = vld [vmem:[%s21294_s13 + $0x24a8] ss:$16 sps:$4 sm:$0xff]  }
 0x6aa   : > { %14740 = vmatpush1.bf16.msra.mxu1 %v20073_v54  ;;  %14700 = vmatprep.subr.bf16.mxu0 %v20078_v46  ;;  %v20139_v54 = vld [vmem:[%s21294_s13 + $0x26a8] ss:$16 sps:$4 sm:$0xff]  }
 0x6ab   : > { %14741 = vmatprep.subr.bf16.mxu1 %v20081_v47 }
 0x6ad   : > { %14701 = vmatpush2.bf16.msra.mxu0 %v20076_v12  ;;  %v20145_v12 = vld [vmem:[%s21294_s13 + $0x2688] ss:$16 sps:$4 sm:$0xff]  }
 0x6ae   : > { %14742 = vmatpush2.bf16.msra.mxu1 %v20079_v19  ;;  %14702 = vmatprep.subr.bf16.mxu0 %v20084_v22  ;;  %v20150_v19 = vld [vmem:[%s21294_s13 + $0x246c] ss:$16 sps:$4 sm:$0xff]  }
 0x6af   : > { %14743 = vmatprep.subr.bf16.mxu1 %v20087_v26  ;;  %v20153_v22 = vld [vmem:[%s21294_s13 + $0x266c] ss:$16 sps:$4 sm:$0xff]   ;;  %v20148_v26 = vld [vmem:[%s21294_s13 + $0x2468] ss:$16 sps:$4 sm:$0xff]  }
 0x6b1   : > { %14703 = vmatpush2.bf16.msra.mxu0 %v20082_v6  ;;  %v20151_v6 = vld [vmem:[%s21294_s13 + $0x2668] ss:$16 sps:$4 sm:$0xff]  }
 0x6b2   : > { %14744 = vmatpush2.bf16.msra.mxu1 %v20085_v41  ;;  %14704 = vmatprep.subr.bf16.mxu0 %v20090_v36  ;;  %v20156_v41 = vld [vmem:[%s21294_s13 + $0x244c] ss:$16 sps:$4 sm:$0xff]  }
 0x6b3   : > { %14745 = vmatprep.subr.bf16.mxu1 %v20093_v44  ;;  %v20159_v36 = vld [vmem:[%s21294_s13 + $0x264c] ss:$16 sps:$4 sm:$0xff]   ;;  %v20154_v44 = vld [vmem:[%s21294_s13 + $0x2448] ss:$16 sps:$4 sm:$0xff]  }
 0x6b5   : > { %14705 = vmatpush2.bf16.msra.mxu0 %v20088_v29  ;;  %v20157_v29 = vld [vmem:[%s21294_s13 + $0x2648] ss:$16 sps:$4 sm:$0xff]  }
 0x6b6   : > { %14746 = vmatpush2.bf16.msra.mxu1 %v20091_v37  ;;  %14706 = vmatprep.subr.bf16.mxu0 %v20096_v52  ;;  %v20162_v37 = vld [vmem:[%s21294_s13 + $0x242c] ss:$16 sps:$4 sm:$0xff]  }
 0x6b7   : > { %14747 = vmatprep.subr.bf16.mxu1 %v20099_v50  ;;  %v20165_v52 = vld [vmem:[%s21294_s13 + $0x262c] ss:$16 sps:$4 sm:$0xff]   ;;  %v20160_v50 = vld [vmem:[%s21294_s13 + $0x2428] ss:$16 sps:$4 sm:$0xff]  }
 0x6b9   : > { %14707 = vmatpush2.bf16.msra.mxu0 %v20094_v51  ;;  %v20163_v51 = vld [vmem:[%s21294_s13 + $0x2628] ss:$16 sps:$4 sm:$0xff]  }
 0x6ba   : > { %14748 = vmatpush2.bf16.msra.mxu1 %v20097_v53  ;;  %14708 = vmatprep.subr.bf16.mxu0 %v20102_v7  ;;  %v20168_v53 = vld [vmem:[%s21294_s13 + $0x240c] ss:$16 sps:$4 sm:$0xff]  }
 0x6bb   : > { %14749 = vmatprep.subr.bf16.mxu1 %v20105_v31  ;;  %v20171_v7 = vld [vmem:[%s21294_s13 + $0x260c] ss:$16 sps:$4 sm:$0xff]   ;;  %v20166_v31 = vld [vmem:[%s21294_s13 + $0x2408] ss:$16 sps:$4 sm:$0xff]  }
 0x6bd   : > { %14709 = vmatpush2.bf16.msra.mxu0 %v20100_v55  ;;  %v20169_v55 = vld [vmem:[%s21294_s13 + $0x2608] ss:$16 sps:$4 sm:$0xff]  }
 0x6be   : > { %14750 = vmatpush2.bf16.msra.mxu1 %v20103_v57  ;;  %14710 = vmatprep.subr.bf16.mxu0 %v20108_v4  ;;  %v20174_v57 = vld [vmem:[%s21294_s13 + $0x25ec] ss:$16 sps:$4 sm:$0xff]  }
 0x6bf   : > { %14751 = vmatprep.subr.bf16.mxu1 %v20111_v5  ;;  %v20177_v4 = vld [vmem:[%s21294_s13 + $0x27ec] ss:$16 sps:$4 sm:$0xff]   ;;  %v20172_v5 = vld [vmem:[%s21294_s13 + $0x25e8] ss:$16 sps:$4 sm:$0xff]  }
 0x6c1   : > { %14711 = vmatpush2.bf16.msra.mxu0 %v20106_v56  ;;  %v20175_v56 = vld [vmem:[%s21294_s13 + $0x27e8] ss:$16 sps:$4 sm:$0xff]  }
 0x6c2   : > { %14752 = vmatpush2.bf16.msra.mxu1 %v20109_v33  ;;  %14712 = vmatprep.subr.bf16.mxu0 %v20114_v32  ;;  %v20180_v33 = vld [vmem:[%s21294_s13 + $0x25cc] ss:$16 sps:$4 sm:$0xff]  }
 0x6c3   : > { %14753 = vmatprep.subr.bf16.mxu1 %v20117_v35  ;;  %v20183_v32 = vld [vmem:[%s21294_s13 + $0x27cc] ss:$16 sps:$4 sm:$0xff]   ;;  %v20178_v35 = vld [vmem:[%s21294_s13 + $0x25c8] ss:$16 sps:$4 sm:$0xff]  }
 0x6c5   : > { %14713 = vmatpush2.bf16.msra.mxu0 %v20112_v38  ;;  %v20181_v38 = vld [vmem:[%s21294_s13 + $0x27c8] ss:$16 sps:$4 sm:$0xff]  }
 0x6c6   : > { %14754 = vmatpush2.bf16.msra.mxu1 %v20115_v14  ;;  %14714 = vmatprep.subr.bf16.mxu0 %v20120_v15  ;;  %v20186_v14 = vld [vmem:[%s21294_s13 + $0x25ac] ss:$16 sps:$4 sm:$0xff]  }
 0x6c7   : > { %14755 = vmatprep.subr.bf16.mxu1 %v20123_v2  ;;  %v20189_v15 = vld [vmem:[%s21294_s13 + $0x27ac] ss:$16 sps:$4 sm:$0xff]   ;;  %v20184_v2 = vld [vmem:[%s21294_s13 + $0x25a8] ss:$16 sps:$4 sm:$0xff]  }
 0x6c9   : > { %14715 = vmatpush2.bf16.msra.mxu0 %v20118_v3  ;;  %v20187_v3 = vld [vmem:[%s21294_s13 + $0x27a8] ss:$16 sps:$4 sm:$0xff]  }
 0x6ca   : > { %14756 = vmatpush2.bf16.msra.mxu1 %v20121_v48  ;;  %14766 = vmatprep.subr.bf16.mxu0 %v20126_v49  ;;  %v20192_v48 = vld [vmem:[%s21294_s13 + $0x258c] ss:$16 sps:$4 sm:$0xff]  }
 0x6cb   : > { %14807 = vmatprep.subr.bf16.mxu1 %v20129_v23  ;;  %v20195_v49 = vld [vmem:[%s21294_s13 + $0x278c] ss:$16 sps:$4 sm:$0xff]   ;;  %v20190_v23 = vld [vmem:[%s21294_s13 + $0x2588] ss:$16 sps:$4 sm:$0xff]  }
 0x6cc   : > { %v14472_v59 = vpop.f32.mrf.mxu0  ;;  %14717 = vmatmul.mubr.bf16.vlgmr.msra.gmra.mxu0 %v22054_v40 }
 0x6cd   : > { %v14513_v13 = vpop.f32.mrf.mxu1  ;;  %14758 = vmatmul.mubr.bf16.vlgmr.msra.gmra.mxu1 %v22056_v28  ;;  %v14473_v60 = vadd.f32 %v14472_v59, %v23263_v18  ;;  %14767 = vmatpush1.bf16.msra.mxu0 %v20124_v62  ;;  %v20193_v62 = vld [vmem:[%s21294_s13 + $0x2788] ss:$16 sps:$4 sm:$0xff]  }
 0x6ce   : > { %14808 = vmatpush1.bf16.msra.mxu1 %v20127_v8  ;;  %v14474_v61 = vpop.f32.mrf.mxu0  ;;  %14768 = vmatprep.subr.bf16.mxu0 %v20132_v58  ;;  %v20198_v8 = vld [vmem:[%s21294_s13 + $0x256c] ss:$16 sps:$4 sm:$0xff]   ;;  %v20199_v59 = vld [vmem:[%s21294_s13 + $0x2768] ss:$16 sps:$4 sm:$0xff]  }
 0x6cf   : > { %v14515_v24 = vpop.f32.mrf.mxu1  ;;  %14809 = vmatprep.subr.bf16.mxu1 %v20135_v20  ;;  %v23337_v34 = vadd.f32 %v14513_v13, %v14473_v60  ;;  %v14475_v40 = vadd.f32 %v14474_v61, %v23268_v16  ;;  %14798 = vmatprep.mubr.bf16.mxu0 %v22066_v42  ;;  %v20144_v42 = vld [vmem:[%s21294_s13 + $0x248c] ss:$16 sps:$4 sm:$0xff]   ;;  %v20142_v16 = vld [vmem:[%s21294_s13 + $0x2488] ss:$16 sps:$4 sm:$0xff]  }
 0x6d0   : > { %14839 = vmatprep.mubr.bf16.mxu1 %v22068_v43  ;;  %v14476_v28 = vpop.f32.mrf.mxu0  ;;  %v20147_v43 = vld [vmem:[%s21294_s13 + $0x268c] ss:$16 sps:$4 sm:$0xff]   ;;  %v20196_v20 = vld [vmem:[%s21294_s13 + $0x2568] ss:$16 sps:$4 sm:$0xff]  }
 0x6d1   : > { %v14517_v18 = vpop.f32.mrf.mxu1  ;;  %v23342_v0 = vadd.f32 %v14515_v24, %v14475_v40  ;;  %14769 = vmatpush1.bf16.msra.mxu0 %v20130_v27  ;;  %v20201_v58 = vld [vmem:[%s21294_s13 + $0x276c] ss:$16 sps:$4 sm:$0xff]   ;;  %v20202_v27 = vld [vmem:[%s21294_s13 + $0x2548] ss:$16 sps:$4 sm:$0xff]  }
 0x6d2   : > { %14810 = vmatpush1.bf16.msra.mxu1 %v20133_v17  ;;  %v14477_v46 = vpop.f32.mrf.mxu0  ;;  %14770 = vmatprep.subr.bf16.mxu0 %v20138_v25  ;;  %v20204_v13 = vld [vmem:[%s21294_s13 + $0x254c] ss:$16 sps:$4 sm:$0xff]   ;;  %v20205_v17 = vld [vmem:[%s21294_s13 + $0x2748] ss:$16 sps:$4 sm:$0xff]  }
 0x6d3   : > { %v14518_v47 = vpop.f32.mrf.mxu1  ;;  %14811 = vmatprep.subr.bf16.mxu1 %v20141_v9  ;;  %v20207_v60 = vld [vmem:[%s21294_s13 + $0x274c] ss:$16 sps:$4 sm:$0xff]   ;;  %v20208_v25 = vld [vmem:[%s21294_s13 + $0x2528] ss:$16 sps:$4 sm:$0xff]  }
 0x6d4   : > { %v20210_v61 = vld [vmem:[%s21294_s13 + $0x252c] ss:$16 sps:$4 sm:$0xff]   ;;  %v20211_v9 = vld [vmem:[%s21294_s13 + $0x2728] ss:$16 sps:$4 sm:$0xff]  }
 0x6d5   : > { %14771 = vmatpush1.bf16.msra.mxu0 %v20136_v1  ;;  %v20213_v24 = vld [vmem:[%s21294_s13 + $0x272c] ss:$16 sps:$4 sm:$0xff]   ;;  %v20214_v18 = vld [vmem:[%s21294_s13 + $0x2508] ss:$16 sps:$4 sm:$0xff]  }
 0x6d6   : > { %14812 = vmatpush1.bf16.msra.mxu1 %v20139_v54  ;;  %14772 = vmatprep.subr.bf16.mxu0 %v20144_v42  ;;  %v20216_v40 = vld [vmem:[%s21294_s13 + $0x250c] ss:$16 sps:$4 sm:$0xff]   ;;  %v20217_v1 = vld [vmem:[%s21294_s13 + $0x2708] ss:$16 sps:$4 sm:$0xff]  }
 0x6d7   : > { %14813 = vmatprep.subr.bf16.mxu1 %v20147_v43  ;;  %v20219_v28 = vld [vmem:[%s21294_s13 + $0x270c] ss:$16 sps:$4 sm:$0xff]   ;;  %v20220_v47 = vld [vmem:[%s21294_s13 + $0x28e8] ss:$16 sps:$4 sm:$0xff]  }
 0x6d8   : > { %v20222_v54 = vld [vmem:[%s21294_s13 + $0x28ec] ss:$16 sps:$4 sm:$0xff]   ;;  %v20223_v42 = vld [vmem:[%s21294_s13 + $0x2ae8] ss:$16 sps:$4 sm:$0xff]  }
 0x6d9   : > { %14773 = vmatpush1.bf16.msra.mxu0 %v20142_v16  ;;  %v20225_v46 = vld [vmem:[%s21294_s13 + $0x2aec] ss:$16 sps:$4 sm:$0xff]  }
 0x6da   : > { %14814 = vmatpush1.bf16.msra.mxu1 %v20145_v12  ;;  %14774 = vmatprep.subr.bf16.mxu0 %v20150_v19  ;;  %v20228_v43 = vld [vmem:[%s21294_s13 + $0x28cc] ss:$16 sps:$4 sm:$0xff]  }
 0x6db   : > { %14815 = vmatprep.subr.bf16.mxu1 %v20153_v22  ;;  %v20231_v16 = vld [vmem:[%s21294_s13 + $0x2acc] ss:$16 sps:$4 sm:$0xff]  }
 0x6dd   : > { %14775 = vmatpush1.bf16.msra.mxu0 %v20148_v26  ;;  %v20226_v26 = vld [vmem:[%s21294_s13 + $0x28c8] ss:$16 sps:$4 sm:$0xff]  }
 0x6de   : > { %14816 = vmatpush1.bf16.msra.mxu1 %v20151_v6  ;;  %14776 = vmatprep.subr.bf16.mxu0 %v20156_v41  ;;  %v20229_v6 = vld [vmem:[%s21294_s13 + $0x2ac8] ss:$16 sps:$4 sm:$0xff]  }
 0x6df   : > { %14817 = vmatprep.subr.bf16.mxu1 %v20159_v36 }
 0x6e1   : > { %14777 = vmatpush1.bf16.msra.mxu0 %v20154_v44  ;;  %v20234_v44 = vld [vmem:[%s21294_s13 + $0x28ac] ss:$16 sps:$4 sm:$0xff]  }
 0x6e2   : > { %14818 = vmatpush1.bf16.msra.mxu1 %v20157_v29  ;;  %14778 = vmatprep.subr.bf16.mxu0 %v20162_v37  ;;  %v20237_v29 = vld [vmem:[%s21294_s13 + $0x2aac] ss:$16 sps:$4 sm:$0xff]  }
 0x6e3   : > { %14819 = vmatprep.subr.bf16.mxu1 %v20165_v52 }
 0x6e5   : > { %14779 = vmatpush1.bf16.msra.mxu0 %v20160_v50  ;;  %v20232_v50 = vld [vmem:[%s21294_s13 + $0x28a8] ss:$16 sps:$4 sm:$0xff]  }
 0x6e6   : > { %14820 = vmatpush1.bf16.msra.mxu1 %v20163_v51  ;;  %14780 = vmatprep.subr.bf16.mxu0 %v20168_v53  ;;  %v20235_v51 = vld [vmem:[%s21294_s13 + $0x2aa8] ss:$16 sps:$4 sm:$0xff]  }
 0x6e7   : > { %14821 = vmatprep.subr.bf16.mxu1 %v20171_v7 }
 0x6e9   : > { %14781 = vmatpush1.bf16.msra.mxu0 %v20166_v31  ;;  %v20241_v31 = vld [vmem:[%s21294_s13 + $0x2a88] ss:$16 sps:$4 sm:$0xff]  }
 0x6ea   : > { %14822 = vmatpush1.bf16.msra.mxu1 %v20169_v55  ;;  %14782 = vmatprep.subr.bf16.mxu0 %v20174_v57  ;;  %v20246_v55 = vld [vmem:[%s21294_s13 + $0x286c] ss:$16 sps:$4 sm:$0xff]  }
 0x6eb   : > { %14823 = vmatprep.subr.bf16.mxu1 %v20177_v4  ;;  %v20249_v57 = vld [vmem:[%s21294_s13 + $0x2a6c] ss:$16 sps:$4 sm:$0xff]   ;;  %v20244_v4 = vld [vmem:[%s21294_s13 + $0x2868] ss:$16 sps:$4 sm:$0xff]  }
 0x6ed   : > { %14783 = vmatpush2.bf16.msra.mxu0 %v20172_v5  ;;  %v20247_v5 = vld [vmem:[%s21294_s13 + $0x2a68] ss:$16 sps:$4 sm:$0xff]  }
 0x6ee   : > { %14824 = vmatpush2.bf16.msra.mxu1 %v20175_v56  ;;  %14784 = vmatprep.subr.bf16.mxu0 %v20180_v33  ;;  %v20252_v56 = vld [vmem:[%s21294_s13 + $0x284c] ss:$16 sps:$4 sm:$0xff]  }
 0x6ef   : > { %14825 = vmatprep.subr.bf16.mxu1 %v20183_v32  ;;  %v20255_v33 = vld [vmem:[%s21294_s13 + $0x2a4c] ss:$16 sps:$4 sm:$0xff]   ;;  %v20250_v32 = vld [vmem:[%s21294_s13 + $0x2848] ss:$16 sps:$4 sm:$0xff]  }
 0x6f1   : > { %14785 = vmatpush2.bf16.msra.mxu0 %v20178_v35  ;;  %v20253_v35 = vld [vmem:[%s21294_s13 + $0x2a48] ss:$16 sps:$4 sm:$0xff]  }
 0x6f2   : > { %14826 = vmatpush2.bf16.msra.mxu1 %v20181_v38  ;;  %14786 = vmatprep.subr.bf16.mxu0 %v20186_v14  ;;  %v20258_v38 = vld [vmem:[%s21294_s13 + $0x282c] ss:$16 sps:$4 sm:$0xff]  }
 0x6f3   : > { %14827 = vmatprep.subr.bf16.mxu1 %v20189_v15  ;;  %v20261_v14 = vld [vmem:[%s21294_s13 + $0x2a2c] ss:$16 sps:$4 sm:$0xff]   ;;  %v20256_v15 = vld [vmem:[%s21294_s13 + $0x2828] ss:$16 sps:$4 sm:$0xff]  }
 0x6f5   : > { %14787 = vmatpush2.bf16.msra.mxu0 %v20184_v2  ;;  %v20259_v2 = vld [vmem:[%s21294_s13 + $0x2a28] ss:$16 sps:$4 sm:$0xff]  }
 0x6f6   : > { %14828 = vmatpush2.bf16.msra.mxu1 %v20187_v3  ;;  %14788 = vmatprep.subr.bf16.mxu0 %v20192_v48  ;;  %v20264_v3 = vld [vmem:[%s21294_s13 + $0x280c] ss:$16 sps:$4 sm:$0xff]  }
 0x6f7   : > { %14829 = vmatprep.subr.bf16.mxu1 %v20195_v49  ;;  %v20267_v48 = vld [vmem:[%s21294_s13 + $0x2a0c] ss:$16 sps:$4 sm:$0xff]   ;;  %v20262_v49 = vld [vmem:[%s21294_s13 + $0x2808] ss:$16 sps:$4 sm:$0xff]  }
 0x6f9   : > { %14789 = vmatpush2.bf16.msra.mxu0 %v20190_v23  ;;  %v20265_v23 = vld [vmem:[%s21294_s13 + $0x2a08] ss:$16 sps:$4 sm:$0xff]  }
 0x6fa   : > { %14830 = vmatpush2.bf16.msra.mxu1 %v20193_v62  ;;  %14790 = vmatprep.subr.bf16.mxu0 %v20198_v8  ;;  %v20270_v62 = vld [vmem:[%s21294_s13 + $0x29ec] ss:$16 sps:$4 sm:$0xff]  }
 0x6fb   : > { %14831 = vmatprep.subr.bf16.mxu1 %v20201_v58  ;;  %v20273_v8 = vld [vmem:[%s21294_s13 + $0x2bec] ss:$16 sps:$4 sm:$0xff]   ;;  %v20268_v58 = vld [vmem:[%s21294_s13 + $0x29e8] ss:$16 sps:$4 sm:$0xff]  }
 0x6fd   : > { %14791 = vmatpush2.bf16.msra.mxu0 %v20196_v20  ;;  %v20271_v20 = vld [vmem:[%s21294_s13 + $0x2be8] ss:$16 sps:$4 sm:$0xff]  }
 0x6fe   : > { %14832 = vmatpush2.bf16.msra.mxu1 %v20199_v59  ;;  %14792 = vmatprep.subr.bf16.mxu0 %v20204_v13  ;;  %v20276_v59 = vld [vmem:[%s21294_s13 + $0x29cc] ss:$16 sps:$4 sm:$0xff]  }
 0x6ff   : > { %14833 = vmatprep.subr.bf16.mxu1 %v20207_v60  ;;  %v20279_v13 = vld [vmem:[%s21294_s13 + $0x2bcc] ss:$16 sps:$4 sm:$0xff]   ;;  %v20274_v60 = vld [vmem:[%s21294_s13 + $0x29c8] ss:$16 sps:$4 sm:$0xff]  }
 0x701   : > { %14793 = vmatpush2.bf16.msra.mxu0 %v20202_v27  ;;  %v20277_v27 = vld [vmem:[%s21294_s13 + $0x2bc8] ss:$16 sps:$4 sm:$0xff]  }
 0x702   : > { %14834 = vmatpush2.bf16.msra.mxu1 %v20205_v17  ;;  %14794 = vmatprep.subr.bf16.mxu0 %v20210_v61  ;;  %v20282_v17 = vld [vmem:[%s21294_s13 + $0x29ac] ss:$16 sps:$4 sm:$0xff]  }
 0x703   : > { %14835 = vmatprep.subr.bf16.mxu1 %v20213_v24  ;;  %v20285_v61 = vld [vmem:[%s21294_s13 + $0x2bac] ss:$16 sps:$4 sm:$0xff]   ;;  %v20280_v24 = vld [vmem:[%s21294_s13 + $0x29a8] ss:$16 sps:$4 sm:$0xff]  }
 0x705   : > { %14795 = vmatpush2.bf16.msra.mxu0 %v20208_v25  ;;  %v20283_v25 = vld [vmem:[%s21294_s13 + $0x2ba8] ss:$16 sps:$4 sm:$0xff]  }
 0x706   : > { %14836 = vmatpush2.bf16.msra.mxu1 %v20211_v9  ;;  %14796 = vmatprep.subr.bf16.mxu0 %v20216_v40  ;;  %v20288_v9 = vld [vmem:[%s21294_s13 + $0x298c] ss:$16 sps:$4 sm:$0xff]  }
 0x707   : > { %14837 = vmatprep.subr.bf16.mxu1 %v20219_v28  ;;  %v20291_v40 = vld [vmem:[%s21294_s13 + $0x2b8c] ss:$16 sps:$4 sm:$0xff]   ;;  %v20286_v28 = vld [vmem:[%s21294_s13 + $0x2988] ss:$16 sps:$4 sm:$0xff]  }
 0x709   : > { %14797 = vmatpush2.bf16.msra.mxu0 %v20214_v18  ;;  %v20289_v18 = vld [vmem:[%s21294_s13 + $0x2b88] ss:$16 sps:$4 sm:$0xff]  }
 0x70a   : > { %14838 = vmatpush2.bf16.msra.mxu1 %v20217_v1  ;;  %14848 = vmatprep.subr.bf16.mxu0 %v20222_v54  ;;  %v20294_v1 = vld [vmem:[%s21294_s13 + $0x296c] ss:$16 sps:$4 sm:$0xff]  }
 0x70b   : > { %14889 = vmatprep.subr.bf16.mxu1 %v20225_v46  ;;  %v20297_v54 = vld [vmem:[%s21294_s13 + $0x2b6c] ss:$16 sps:$4 sm:$0xff]   ;;  %v20292_v46 = vld [vmem:[%s21294_s13 + $0x2968] ss:$16 sps:$4 sm:$0xff]  }
 0x70c   : > { %v14554_v12 = vpop.f32.mrf.mxu0  ;;  %14799 = vmatmul.mubr.bf16.vlgmr.msra.gmra.mxu0 %v22140_v21 }
 0x70d   : > { %v14595_v19 = vpop.f32.mrf.mxu1  ;;  %14840 = vmatmul.mubr.bf16.vlgmr.msra.gmra.mxu1 %v22142_v39  ;;  %v14555_v22 = vadd.f32 %v14554_v12, %v23337_v34  ;;  %14849 = vmatpush1.bf16.msra.mxu0 %v20220_v47  ;;  %v20295_v47 = vld [vmem:[%s21294_s13 + $0x2b68] ss:$16 sps:$4 sm:$0xff]  }
 0x70e   : > { %14890 = vmatpush1.bf16.msra.mxu1 %v20223_v42  ;;  %v14556_v41 = vpop.f32.mrf.mxu0  ;;  %14850 = vmatprep.subr.bf16.mxu0 %v20228_v43  ;;  %v20300_v42 = vld [vmem:[%s21294_s13 + $0x294c] ss:$16 sps:$4 sm:$0xff]   ;;  %v20301_v12 = vld [vmem:[%s21294_s13 + $0x2b48] ss:$16 sps:$4 sm:$0xff]  }
 0x70f   : > { %v14597_v36 = vpop.f32.mrf.mxu1  ;;  %14891 = vmatprep.subr.bf16.mxu1 %v20231_v16  ;;  %v23411_v37 = vadd.f32 %v14595_v19, %v14555_v22  ;;  %v14557_v21 = vadd.f32 %v14556_v41, %v23342_v0  ;;  %14880 = vmatprep.mubr.bf16.mxu0 %v22152_v10  ;;  %v20240_v10 = vld [vmem:[%s21294_s13 + $0x288c] ss:$16 sps:$4 sm:$0xff]   ;;  %v20238_v0 = vld [vmem:[%s21294_s13 + $0x2888] ss:$16 sps:$4 sm:$0xff]  }
 0x710   : > { %14921 = vmatprep.mubr.bf16.mxu1 %v22154_v11  ;;  %v14558_v39 = vpop.f32.mrf.mxu0  ;;  %v20243_v11 = vld [vmem:[%s21294_s13 + $0x2a8c] ss:$16 sps:$4 sm:$0xff]   ;;  %v20298_v16 = vld [vmem:[%s21294_s13 + $0x2948] ss:$16 sps:$4 sm:$0xff]  }
 0x711   : > { %v14599_v34 = vpop.f32.mrf.mxu1  ;;  %v23416_v52 = vadd.f32 %v14597_v36, %v14557_v21  ;;  %14851 = vmatpush1.bf16.msra.mxu0 %v20226_v26  ;;  %v20303_v43 = vld [vmem:[%s21294_s13 + $0x2b4c] ss:$16 sps:$4 sm:$0xff]   ;;  %v20304_v26 = vld [vmem:[%s21294_s13 + $0x2928] ss:$16 sps:$4 sm:$0xff]  }
 0x712   : > { %14892 = vmatpush1.bf16.msra.mxu1 %v20229_v6  ;;  %v14559_v53 = vpop.f32.mrf.mxu0  ;;  %14852 = vmatprep.subr.bf16.mxu0 %v20234_v44  ;;  %v20306_v19 = vld [vmem:[%s21294_s13 + $0x292c] ss:$16 sps:$4 sm:$0xff]   ;;  %v20307_v6 = vld [vmem:[%s21294_s13 + $0x2b28] ss:$16 sps:$4 sm:$0xff]  }
 0x713   : > { %v14600_v7 = vpop.f32.mrf.mxu1  ;;  %14893 = vmatprep.subr.bf16.mxu1 %v20237_v29  ;;  %v20309_v22 = vld [vmem:[%s21294_s13 + $0x2b2c] ss:$16 sps:$4 sm:$0xff]   ;;  %v20310_v44 = vld [vmem:[%s21294_s13 + $0x2908] ss:$16 sps:$4 sm:$0xff]  }
 0x714   : > { %v20312_v41 = vld [vmem:[%s21294_s13 + $0x290c] ss:$16 sps:$4 sm:$0xff]   ;;  %v20313_v29 = vld [vmem:[%s21294_s13 + $0x2b08] ss:$16 sps:$4 sm:$0xff]  }
 0x715   : > { %14853 = vmatpush1.bf16.msra.mxu0 %v20232_v50  ;;  %v20315_v36 = vld [vmem:[%s21294_s13 + $0x2b0c] ss:$16 sps:$4 sm:$0xff]   ;;  %v20316_v34 = vld [vmem:[%s21294_s13 + $0x2ce8] ss:$16 sps:$4 sm:$0xff]  }
 0x716   : > { %14894 = vmatpush1.bf16.msra.mxu1 %v20235_v51  ;;  %14854 = vmatprep.subr.bf16.mxu0 %v20240_v10  ;;  %v20318_v21 = vld [vmem:[%s21294_s13 + $0x2cec] ss:$16 sps:$4 sm:$0xff]   ;;  %v20319_v50 = vld [vmem:[%s21294_s13 + $0x2ee8] ss:$16 sps:$4 sm:$0xff]  }
 0x717   : > { %14895 = vmatprep.subr.bf16.mxu1 %v20243_v11  ;;  %v20321_v39 = vld [vmem:[%s21294_s13 + $0x2eec] ss:$16 sps:$4 sm:$0xff]   ;;  %v23998_v11 = vld [vmem:[#allocation20_spill] sm:$0xff] }
 0x718   : > { %v20324_v51 = vld [vmem:[%s21294_s13 + $0x2ccc] ss:$16 sps:$4 sm:$0xff]  }
 0x719   : > { %14855 = vmatpush1.bf16.msra.mxu0 %v20238_v0  ;;  %v20327_v53 = vld [vmem:[%s21294_s13 + $0x2ecc] ss:$16 sps:$4 sm:$0xff]  }
 0x71a   : > { %14896 = vmatpush1.bf16.msra.mxu1 %v20241_v31  ;;  %14856 = vmatprep.subr.bf16.mxu0 %v20246_v55  ;;  %v23999_v0 = vld [vmem:[#allocation21_spill] sm:$0xff] }
 0x71b   : > { %14897 = vmatprep.subr.bf16.mxu1 %v20249_v57  ;;  %v20322_v55 = vld [vmem:[%s21294_s13 + $0x2cc8] ss:$16 sps:$4 sm:$0xff]  }
 0x71c   : > { %v20325_v57 = vld [vmem:[%s21294_s13 + $0x2ec8] ss:$16 sps:$4 sm:$0xff]  }
 0x71d   : > { %14857 = vmatpush1.bf16.msra.mxu0 %v20244_v4 }
 0x71e   : > { %14898 = vmatpush1.bf16.msra.mxu1 %v20247_v5  ;;  %14858 = vmatprep.subr.bf16.mxu0 %v20252_v56  ;;  %v20330_v56 = vld [vmem:[%s21294_s13 + $0x2cac] ss:$16 sps:$4 sm:$0xff]  }
 0x71f   : > { %14899 = vmatprep.subr.bf16.mxu1 %v20255_v33  ;;  %v20333_v33 = vld [vmem:[%s21294_s13 + $0x2eac] ss:$16 sps:$4 sm:$0xff]  }
 0x721   : > { %14859 = vmatpush1.bf16.msra.mxu0 %v20250_v32 }
 0x722   : > { %14900 = vmatpush1.bf16.msra.mxu1 %v20253_v35  ;;  %14860 = vmatprep.subr.bf16.mxu0 %v20258_v38  ;;  %v24000_v38 = vld [vmem:[#allocation22_spill] sm:$0xff] }
 0x723   : > { %14901 = vmatprep.subr.bf16.mxu1 %v20261_v14 }
 0x725   : > { %14861 = vmatpush1.bf16.msra.mxu0 %v20256_v15 }
 0x726   : > { %14902 = vmatpush1.bf16.msra.mxu1 %v20259_v2  ;;  %14862 = vmatprep.subr.bf16.mxu0 %v20264_v3  ;;  %v20328_v3 = vld [vmem:[%s21294_s13 + $0x2ca8] ss:$16 sps:$4 sm:$0xff]  }
 0x727   : > { %14903 = vmatprep.subr.bf16.mxu1 %v20267_v48  ;;  %v20331_v48 = vld [vmem:[%s21294_s13 + $0x2ea8] ss:$16 sps:$4 sm:$0xff]  }
 0x729   : > { %14863 = vmatpush1.bf16.msra.mxu0 %v20262_v49 }
 0x72a   : > { %14904 = vmatpush1.bf16.msra.mxu1 %v20265_v23  ;;  %14864 = vmatprep.subr.bf16.mxu0 %v20270_v62  ;;  %v20339_v62 = vld [vmem:[%s21294_s13 + $0x2e8c] ss:$16 sps:$4 sm:$0xff]  }
 0x72b   : > { %14905 = vmatprep.subr.bf16.mxu1 %v20273_v8  ;;  %v20334_v8 = vld [vmem:[%s21294_s13 + $0x2c88] ss:$16 sps:$4 sm:$0xff]  }
 0x72d   : > { %14865 = vmatpush2.bf16.msra.mxu0 %v20268_v58  ;;  %v20337_v58 = vld [vmem:[%s21294_s13 + $0x2e88] ss:$16 sps:$4 sm:$0xff]  }
 0x72e   : > { %14906 = vmatpush2.bf16.msra.mxu1 %v20271_v20  ;;  %14866 = vmatprep.subr.bf16.mxu0 %v20276_v59  ;;  %v20342_v20 = vld [vmem:[%s21294_s13 + $0x2c6c] ss:$16 sps:$4 sm:$0xff]  }
 0x72f   : > { %14907 = vmatprep.subr.bf16.mxu1 %v20279_v13  ;;  %v20345_v59 = vld [vmem:[%s21294_s13 + $0x2e6c] ss:$16 sps:$4 sm:$0xff]   ;;  %v20340_v13 = vld [vmem:[%s21294_s13 + $0x2c68] ss:$16 sps:$4 sm:$0xff]  }
 0x731   : > { %14867 = vmatpush2.bf16.msra.mxu0 %v20274_v60  ;;  %v20343_v60 = vld [vmem:[%s21294_s13 + $0x2e68] ss:$16 sps:$4 sm:$0xff]  }
 0x732   : > { %14908 = vmatpush2.bf16.msra.mxu1 %v20277_v27  ;;  %14868 = vmatprep.subr.bf16.mxu0 %v20282_v17  ;;  %v20348_v27 = vld [vmem:[%s21294_s13 + $0x2c4c] ss:$16 sps:$4 sm:$0xff]  }
 0x733   : > { %14909 = vmatprep.subr.bf16.mxu1 %v20285_v61  ;;  %v20351_v17 = vld [vmem:[%s21294_s13 + $0x2e4c] ss:$16 sps:$4 sm:$0xff]   ;;  %v20346_v61 = vld [vmem:[%s21294_s13 + $0x2c48] ss:$16 sps:$4 sm:$0xff]  }
 0x735   : > { %14869 = vmatpush2.bf16.msra.mxu0 %v20280_v24  ;;  %v20349_v24 = vld [vmem:[%s21294_s13 + $0x2e48] ss:$16 sps:$4 sm:$0xff]  }
 0x736   : > { %14910 = vmatpush2.bf16.msra.mxu1 %v20283_v25  ;;  %14870 = vmatprep.subr.bf16.mxu0 %v20288_v9  ;;  %v20354_v25 = vld [vmem:[%s21294_s13 + $0x2c2c] ss:$16 sps:$4 sm:$0xff]  }
 0x737   : > { %14911 = vmatprep.subr.bf16.mxu1 %v20291_v40  ;;  %v20357_v9 = vld [vmem:[%s21294_s13 + $0x2e2c] ss:$16 sps:$4 sm:$0xff]   ;;  %v20352_v40 = vld [vmem:[%s21294_s13 + $0x2c28] ss:$16 sps:$4 sm:$0xff]  }
 0x739   : > { %14871 = vmatpush2.bf16.msra.mxu0 %v20286_v28  ;;  %v20355_v28 = vld [vmem:[%s21294_s13 + $0x2e28] ss:$16 sps:$4 sm:$0xff]  }
 0x73a   : > { %14912 = vmatpush2.bf16.msra.mxu1 %v20289_v18  ;;  %14872 = vmatprep.subr.bf16.mxu0 %v20294_v1  ;;  %v20360_v18 = vld [vmem:[%s21294_s13 + $0x2c0c] ss:$16 sps:$4 sm:$0xff]  }
 0x73b   : > { %14913 = vmatprep.subr.bf16.mxu1 %v20297_v54  ;;  %v20363_v1 = vld [vmem:[%s21294_s13 + $0x2e0c] ss:$16 sps:$4 sm:$0xff]   ;;  %v20358_v54 = vld [vmem:[%s21294_s13 + $0x2c08] ss:$16 sps:$4 sm:$0xff]  }
 0x73d   : > { %14873 = vmatpush2.bf16.msra.mxu0 %v20292_v46  ;;  %v20361_v46 = vld [vmem:[%s21294_s13 + $0x2e08] ss:$16 sps:$4 sm:$0xff]  }
 0x73e   : > { %14914 = vmatpush2.bf16.msra.mxu1 %v20295_v47  ;;  %14874 = vmatprep.subr.bf16.mxu0 %v20300_v42  ;;  %v20366_v47 = vld [vmem:[%s21294_s13 + $0x2dec] ss:$16 sps:$4 sm:$0xff]  }
 0x73f   : > { %14915 = vmatprep.subr.bf16.mxu1 %v20303_v43  ;;  %v20369_v42 = vld [vmem:[%s21294_s13 + $0x2fec] ss:$16 sps:$4 sm:$0xff]   ;;  %v20364_v43 = vld [vmem:[%s21294_s13 + $0x2de8] ss:$16 sps:$4 sm:$0xff]  }
 0x741   : > { %14875 = vmatpush2.bf16.msra.mxu0 %v20298_v16  ;;  %v20367_v16 = vld [vmem:[%s21294_s13 + $0x2fe8] ss:$16 sps:$4 sm:$0xff]  }
 0x742   : > { %14916 = vmatpush2.bf16.msra.mxu1 %v20301_v12  ;;  %14876 = vmatprep.subr.bf16.mxu0 %v20306_v19  ;;  %v20372_v12 = vld [vmem:[%s21294_s13 + $0x2dcc] ss:$16 sps:$4 sm:$0xff]  }
 0x743   : > { %14917 = vmatprep.subr.bf16.mxu1 %v20309_v22  ;;  %v20375_v19 = vld [vmem:[%s21294_s13 + $0x2fcc] ss:$16 sps:$4 sm:$0xff]   ;;  %v20370_v22 = vld [vmem:[%s21294_s13 + $0x2dc8] ss:$16 sps:$4 sm:$0xff]  }
 0x745   : > { %14877 = vmatpush2.bf16.msra.mxu0 %v20304_v26  ;;  %v20373_v26 = vld [vmem:[%s21294_s13 + $0x2fc8] ss:$16 sps:$4 sm:$0xff]  }
 0x746   : > { %14918 = vmatpush2.bf16.msra.mxu1 %v20307_v6  ;;  %14878 = vmatprep.subr.bf16.mxu0 %v20312_v41  ;;  %v20378_v6 = vld [vmem:[%s21294_s13 + $0x2dac] ss:$16 sps:$4 sm:$0xff]  }
 0x747   : > { %14919 = vmatprep.subr.bf16.mxu1 %v20315_v36  ;;  %v20381_v41 = vld [vmem:[%s21294_s13 + $0x2fac] ss:$16 sps:$4 sm:$0xff]   ;;  %v20376_v36 = vld [vmem:[%s21294_s13 + $0x2da8] ss:$16 sps:$4 sm:$0xff]  }
 0x749   : > { %14879 = vmatpush2.bf16.msra.mxu0 %v20310_v44  ;;  %v20379_v44 = vld [vmem:[%s21294_s13 + $0x2fa8] ss:$16 sps:$4 sm:$0xff]  }
 0x74a   : > { %14920 = vmatpush2.bf16.msra.mxu1 %v20313_v29  ;;  %14930 = vmatprep.subr.bf16.mxu0 %v20318_v21  ;;  %v20384_v29 = vld [vmem:[%s21294_s13 + $0x2d8c] ss:$16 sps:$4 sm:$0xff]  }
 0x74b   : > { %14971 = vmatprep.subr.bf16.mxu1 %v20321_v39  ;;  %v20387_v21 = vld [vmem:[%s21294_s13 + $0x2f8c] ss:$16 sps:$4 sm:$0xff]   ;;  %v20382_v39 = vld [vmem:[%s21294_s13 + $0x2d88] ss:$16 sps:$4 sm:$0xff]  }
 0x74c   : > { %v14636_v7 = vpop.f32.mrf.mxu0  ;;  %14881 = vmatmul.mubr.bf16.vlgmr.msra.gmra.mxu0 %v23998_v11  ;;  %v20399_v11 = vld [vmem:[%s21294_s13 + $0x2f4c] ss:$16 sps:$4 sm:$0xff]  }
 0x74d   : > { %v14677_v10 = vpop.f32.mrf.mxu1  ;;  %14922 = vmatmul.mubr.bf16.vlgmr.msra.gmra.mxu1 %v23999_v0  ;;  %v14637_v31 = vadd.f32 %v14636_v7, %v23411_v37  ;;  %14931 = vmatpush1.bf16.msra.mxu0 %v20316_v34  ;;  %v24001_v37 = vld [vmem:[#allocation23_spill] sm:$0xff] }
 0x74e   : > { %14972 = vmatpush1.bf16.msra.mxu1 %v20319_v50  ;;  %v14638_v4 = vpop.f32.mrf.mxu0  ;;  %14932 = vmatprep.subr.bf16.mxu0 %v20324_v51  ;;  %v20385_v34 = vld [vmem:[%s21294_s13 + $0x2f88] ss:$16 sps:$4 sm:$0xff]   ;;  %v20390_v50 = vld [vmem:[%s21294_s13 + $0x2d6c] ss:$16 sps:$4 sm:$0xff]  }
 0x74f   : > { %v14679_v5 = vpop.f32.mrf.mxu1  ;;  %14973 = vmatprep.subr.bf16.mxu1 %v20327_v53  ;;  %v23485_v32 = vadd.f32 %v14677_v10, %v14637_v31  ;;  %v14639_v35 = vadd.f32 %v14638_v4, %v23416_v52  ;;  %14962 = vmatprep.mubr.bf16.mxu0 %v24000_v38  ;;  %v20336_v52 = vld [vmem:[%s21294_s13 + $0x2c8c] ss:$16 sps:$4 sm:$0xff]   ;;  %v20388_v53 = vld [vmem:[%s21294_s13 + $0x2d68] ss:$16 sps:$4 sm:$0xff]  }
 0x750   : > { %15003 = vmatprep.mubr.bf16.mxu1 %v24001_v37  ;;  %v14640_v14 = vpop.f32.mrf.mxu0  ;;  %v20393_v51 = vld [vmem:[%s21294_s13 + $0x2f6c] ss:$16 sps:$4 sm:$0xff]   ;;  %v20391_v7 = vld [vmem:[%s21294_s13 + $0x2f68] ss:$16 sps:$4 sm:$0xff]  }
 0x751   : > { %v14681_v15 = vpop.f32.mrf.mxu1  ;;  %v23490_v2 = vadd.f32 %v14679_v5, %v14639_v35  ;;  %14933 = vmatpush1.bf16.msra.mxu0 %v20322_v55  ;;  %v20396_v10 = vld [vmem:[%s21294_s13 + $0x2d4c] ss:$16 sps:$4 sm:$0xff]   ;;  %v20394_v0 = vld [vmem:[%s21294_s13 + $0x2d48] ss:$16 sps:$4 sm:$0xff]  }
 0x752   : > { %14974 = vmatpush1.bf16.msra.mxu1 %v20325_v57  ;;  %v14641_v49 = vpop.f32.mrf.mxu0  ;;  %14934 = vmatprep.subr.bf16.mxu0 %v20330_v56  ;;  %v20397_v31 = vld [vmem:[%s21294_s13 + $0x2f48] ss:$16 sps:$4 sm:$0xff]   ;;  %v20402_v55 = vld [vmem:[%s21294_s13 + $0x2d2c] ss:$16 sps:$4 sm:$0xff]  }
 0x753   : > { %v14682_v23 = vpop.f32.mrf.mxu1  ;;  %14975 = vmatprep.subr.bf16.mxu1 %v20333_v33  ;;  %v20405_v57 = vld [vmem:[%s21294_s13 + $0x2f2c] ss:$16 sps:$4 sm:$0xff]   ;;  %v20400_v4 = vld [vmem:[%s21294_s13 + $0x2d28] ss:$16 sps:$4 sm:$0xff]  }
 0x754   : > { %v20403_v5 = vld [vmem:[%s21294_s13 + $0x2f28] ss:$16 sps:$4 sm:$0xff]   ;;  %v20408_v56 = vld [vmem:[%s21294_s13 + $0x2d0c] ss:$16 sps:$4 sm:$0xff]  }
 0x755   : > { %14935 = vmatpush1.bf16.msra.mxu0 %v20328_v3  ;;  %v20411_v33 = vld [vmem:[%s21294_s13 + $0x2f0c] ss:$16 sps:$4 sm:$0xff]   ;;  %v20406_v35 = vld [vmem:[%s21294_s13 + $0x2d08] ss:$16 sps:$4 sm:$0xff]  }
 0x756   : > { %14976 = vmatpush1.bf16.msra.mxu1 %v20331_v48  ;;  %14936 = vmatprep.subr.bf16.mxu0 %v20336_v52  ;;  %v20409_v38 = vld [vmem:[%s21294_s13 + $0x2f08] ss:$16 sps:$4 sm:$0xff]   ;;  %v20414_v37 = vld [vmem:[%s21294_s13 + $0x30ec] ss:$16 sps:$4 sm:$0xff]  }
 0x757   : > { %14977 = vmatprep.subr.bf16.mxu1 %v20339_v62  ;;  %v20417_v14 = vld [vmem:[%s21294_s13 + $0x32ec] ss:$16 sps:$4 sm:$0xff]   ;;  %v20412_v15 = vld [vmem:[%s21294_s13 + $0x30e8] ss:$16 sps:$4 sm:$0xff]   ;;  %v24002_v62 = vld [vmem:[#allocation24_spill] sm:$0xff] }
 0x758   : > { %v20415_v3 = vld [vmem:[%s21294_s13 + $0x32e8] ss:$16 sps:$4 sm:$0xff]   ;;  %v20420_v48 = vld [vmem:[%s21294_s13 + $0x30cc] ss:$16 sps:$4 sm:$0xff]  }
 0x759   : > { %14937 = vmatpush1.bf16.msra.mxu0 %v20334_v8  ;;  %v20423_v49 = vld [vmem:[%s21294_s13 + $0x32cc] ss:$16 sps:$4 sm:$0xff]  }
 0x75a   : > { %14978 = vmatpush1.bf16.msra.mxu1 %v20337_v58  ;;  %14938 = vmatprep.subr.bf16.mxu0 %v20342_v20  ;;  %v24003_v8 = vld [vmem:[#allocation25_spill] sm:$0xff] }
 0x75b   : > { %14979 = vmatprep.subr.bf16.mxu1 %v20345_v59  ;;  %v20418_v20 = vld [vmem:[%s21294_s13 + $0x30c8] ss:$16 sps:$4 sm:$0xff]  }
 0x75c   : > { %v20421_v59 = vld [vmem:[%s21294_s13 + $0x32c8] ss:$16 sps:$4 sm:$0xff]  }
 0x75d   : > { %14939 = vmatpush1.bf16.msra.mxu0 %v20340_v13 }
 0x75e   : > { %14980 = vmatpush1.bf16.msra.mxu1 %v20343_v60  ;;  %14940 = vmatprep.subr.bf16.mxu0 %v20348_v27  ;;  %v20426_v27 = vld [vmem:[%s21294_s13 + $0x30ac] ss:$16 sps:$4 sm:$0xff]  }
 0x75f   : > { %14981 = vmatprep.subr.bf16.mxu1 %v20351_v17  ;;  %v20429_v17 = vld [vmem:[%s21294_s13 + $0x32ac] ss:$16 sps:$4 sm:$0xff]  }
 0x761   : > { %14941 = vmatpush1.bf16.msra.mxu0 %v20346_v61 }
 0x762   : > { %14982 = vmatpush1.bf16.msra.mxu1 %v20349_v24  ;;  %14942 = vmatprep.subr.bf16.mxu0 %v20354_v25  ;;  %v24004_v25 = vld [vmem:[#allocation26_spill] sm:$0xff] }
 0x763   : > { %14983 = vmatprep.subr.bf16.mxu1 %v20357_v9 }
 0x765   : > { %14943 = vmatpush1.bf16.msra.mxu0 %v20352_v40 }
 0x766   : > { %14984 = vmatpush1.bf16.msra.mxu1 %v20355_v28  ;;  %14944 = vmatprep.subr.bf16.mxu0 %v20360_v18  ;;  %v20424_v18 = vld [vmem:[%s21294_s13 + $0x30a8] ss:$16 sps:$4 sm:$0xff]  }
 0x767   : > { %14985 = vmatprep.subr.bf16.mxu1 %v20363_v1  ;;  %v20427_v1 = vld [vmem:[%s21294_s13 + $0x32a8] ss:$16 sps:$4 sm:$0xff]  }
 0x769   : > { %14945 = vmatpush1.bf16.msra.mxu0 %v20358_v54 }
 0x76a   : > { %14986 = vmatpush1.bf16.msra.mxu1 %v20361_v46  ;;  %14946 = vmatprep.subr.bf16.mxu0 %v20366_v47  ;;  %v20435_v47 = vld [vmem:[%s21294_s13 + $0x328c] ss:$16 sps:$4 sm:$0xff]  }
 0x76b   : > { %14987 = vmatprep.subr.bf16.mxu1 %v20369_v42  ;;  %v20430_v42 = vld [vmem:[%s21294_s13 + $0x3088] ss:$16 sps:$4 sm:$0xff]  }
 0x76d   : > { %14947 = vmatpush2.bf16.msra.mxu0 %v20364_v43  ;;  %v20433_v43 = vld [vmem:[%s21294_s13 + $0x3288] ss:$16 sps:$4 sm:$0xff]  }
 0x76e   : > { %14988 = vmatpush2.bf16.msra.mxu1 %v20367_v16  ;;  %14948 = vmatprep.subr.bf16.mxu0 %v20372_v12  ;;  %v20438_v16 = vld [vmem:[%s21294_s13 + $0x306c] ss:$16 sps:$4 sm:$0xff]  }
 0x76f   : > { %14989 = vmatprep.subr.bf16.mxu1 %v20375_v19  ;;  %v20441_v12 = vld [vmem:[%s21294_s13 + $0x326c] ss:$16 sps:$4 sm:$0xff]   ;;  %v20436_v19 = vld [vmem:[%s21294_s13 + $0x3068] ss:$16 sps:$4 sm:$0xff]  }
 0x771   : > { %14949 = vmatpush2.bf16.msra.mxu0 %v20370_v22  ;;  %v20439_v22 = vld [vmem:[%s21294_s13 + $0x3268] ss:$16 sps:$4 sm:$0xff]  }
 0x772   : > { %14990 = vmatpush2.bf16.msra.mxu1 %v20373_v26  ;;  %14950 = vmatprep.subr.bf16.mxu0 %v20378_v6  ;;  %v20444_v26 = vld [vmem:[%s21294_s13 + $0x304c] ss:$16 sps:$4 sm:$0xff]  }
 0x773   : > { %14991 = vmatprep.subr.bf16.mxu1 %v20381_v41  ;;  %v20447_v6 = vld [vmem:[%s21294_s13 + $0x324c] ss:$16 sps:$4 sm:$0xff]   ;;  %v20442_v41 = vld [vmem:[%s21294_s13 + $0x3048] ss:$16 sps:$4 sm:$0xff]  }
 0x775   : > { %14951 = vmatpush2.bf16.msra.mxu0 %v20376_v36  ;;  %v20445_v36 = vld [vmem:[%s21294_s13 + $0x3248] ss:$16 sps:$4 sm:$0xff]  }
 0x776   : > { %14992 = vmatpush2.bf16.msra.mxu1 %v20379_v44  ;;  %14952 = vmatprep.subr.bf16.mxu0 %v20384_v29  ;;  %v20450_v44 = vld [vmem:[%s21294_s13 + $0x302c] ss:$16 sps:$4 sm:$0xff]  }
 0x777   : > { %14993 = vmatprep.subr.bf16.mxu1 %v20387_v21  ;;  %v20453_v29 = vld [vmem:[%s21294_s13 + $0x322c] ss:$16 sps:$4 sm:$0xff]   ;;  %v20448_v21 = vld [vmem:[%s21294_s13 + $0x3028] ss:$16 sps:$4 sm:$0xff]  }
 0x779   : > { %14953 = vmatpush2.bf16.msra.mxu0 %v20382_v39  ;;  %v20451_v39 = vld [vmem:[%s21294_s13 + $0x3228] ss:$16 sps:$4 sm:$0xff]  }
 0x77a   : > { %14994 = vmatpush2.bf16.msra.mxu1 %v20385_v34  ;;  %14954 = vmatprep.subr.bf16.mxu0 %v20390_v50  ;;  %v20456_v34 = vld [vmem:[%s21294_s13 + $0x300c] ss:$16 sps:$4 sm:$0xff]  }
 0x77b   : > { %14995 = vmatprep.subr.bf16.mxu1 %v20393_v51  ;;  %v20459_v50 = vld [vmem:[%s21294_s13 + $0x320c] ss:$16 sps:$4 sm:$0xff]   ;;  %v20454_v51 = vld [vmem:[%s21294_s13 + $0x3008] ss:$16 sps:$4 sm:$0xff]  }
 0x77d   : > { %14955 = vmatpush2.bf16.msra.mxu0 %v20388_v53  ;;  %v20457_v53 = vld [vmem:[%s21294_s13 + $0x3208] ss:$16 sps:$4 sm:$0xff]  }
 0x77e   : > { %14996 = vmatpush2.bf16.msra.mxu1 %v20391_v7  ;;  %14956 = vmatprep.subr.bf16.mxu0 %v20396_v10  ;;  %v20462_v7 = vld [vmem:[%s21294_s13 + $0x31ec] ss:$16 sps:$4 sm:$0xff]  }
 0x77f   : > { %14997 = vmatprep.subr.bf16.mxu1 %v20399_v11  ;;  %v20465_v10 = vld [vmem:[%s21294_s13 + $0x33ec] ss:$16 sps:$4 sm:$0xff]   ;;  %v20460_v11 = vld [vmem:[%s21294_s13 + $0x31e8] ss:$16 sps:$4 sm:$0xff]  }
 0x781   : > { %14957 = vmatpush2.bf16.msra.mxu0 %v20394_v0  ;;  %v20463_v0 = vld [vmem:[%s21294_s13 + $0x33e8] ss:$16 sps:$4 sm:$0xff]  }
 0x782   : > { %14998 = vmatpush2.bf16.msra.mxu1 %v20397_v31  ;;  %14958 = vmatprep.subr.bf16.mxu0 %v20402_v55  ;;  %v20468_v31 = vld [vmem:[%s21294_s13 + $0x31cc] ss:$16 sps:$4 sm:$0xff]  }
 0x783   : > { %14999 = vmatprep.subr.bf16.mxu1 %v20405_v57  ;;  %v20471_v55 = vld [vmem:[%s21294_s13 + $0x33cc] ss:$16 sps:$4 sm:$0xff]   ;;  %v20466_v57 = vld [vmem:[%s21294_s13 + $0x31c8] ss:$16 sps:$4 sm:$0xff]  }
 0x785   : > { %14959 = vmatpush2.bf16.msra.mxu0 %v20400_v4  ;;  %v20469_v4 = vld [vmem:[%s21294_s13 + $0x33c8] ss:$16 sps:$4 sm:$0xff]  }
 0x786   : > { %15000 = vmatpush2.bf16.msra.mxu1 %v20403_v5  ;;  %14960 = vmatprep.subr.bf16.mxu0 %v20408_v56  ;;  %v20474_v5 = vld [vmem:[%s21294_s13 + $0x31ac] ss:$16 sps:$4 sm:$0xff]  }
 0x787   : > { %15001 = vmatprep.subr.bf16.mxu1 %v20411_v33  ;;  %v20477_v56 = vld [vmem:[%s21294_s13 + $0x33ac] ss:$16 sps:$4 sm:$0xff]   ;;  %v20472_v33 = vld [vmem:[%s21294_s13 + $0x31a8] ss:$16 sps:$4 sm:$0xff]  }
 0x789   : > { %14961 = vmatpush2.bf16.msra.mxu0 %v20406_v35  ;;  %v20475_v35 = vld [vmem:[%s21294_s13 + $0x33a8] ss:$16 sps:$4 sm:$0xff]  }
 0x78a   : > { %15002 = vmatpush2.bf16.msra.mxu1 %v20409_v38  ;;  %15012 = vmatprep.subr.bf16.mxu0 %v20414_v37  ;;  %v20480_v38 = vld [vmem:[%s21294_s13 + $0x318c] ss:$16 sps:$4 sm:$0xff]  }
 0x78b   : > { %15053 = vmatprep.subr.bf16.mxu1 %v20417_v14  ;;  %v20483_v37 = vld [vmem:[%s21294_s13 + $0x338c] ss:$16 sps:$4 sm:$0xff]   ;;  %v20478_v14 = vld [vmem:[%s21294_s13 + $0x3188] ss:$16 sps:$4 sm:$0xff]  }
 0x78c   : > { %v14718_v23 = vpop.f32.mrf.mxu0  ;;  %14963 = vmatmul.mubr.bf16.vlgmr.msra.gmra.mxu0 %v24002_v62  ;;  %v20495_v62 = vld [vmem:[%s21294_s13 + $0x334c] ss:$16 sps:$4 sm:$0xff]  }
 0x78d   : > { %v14759_v52 = vpop.f32.mrf.mxu1  ;;  %15004 = vmatmul.mubr.bf16.vlgmr.msra.gmra.mxu1 %v24003_v8  ;;  %v14719_v58 = vadd.f32 %v14718_v23, %v23485_v32  ;;  %15013 = vmatpush1.bf16.msra.mxu0 %v20412_v15  ;;  %v24005_v32 = vld [vmem:[#allocation27_spill] sm:$0xff] }
 0x78e   : > { %15054 = vmatpush1.bf16.msra.mxu1 %v20415_v3  ;;  %v14720_v13 = vpop.f32.mrf.mxu0  ;;  %15014 = vmatprep.subr.bf16.mxu0 %v20420_v48  ;;  %v20481_v15 = vld [vmem:[%s21294_s13 + $0x3388] ss:$16 sps:$4 sm:$0xff]   ;;  %v20486_v3 = vld [vmem:[%s21294_s13 + $0x316c] ss:$16 sps:$4 sm:$0xff]  }
 0x78f   : > { %v14761_v60 = vpop.f32.mrf.mxu1  ;;  %15055 = vmatprep.subr.bf16.mxu1 %v20423_v49  ;;  %v23559_v61 = vadd.f32 %v14759_v52, %v14719_v58  ;;  %v14721_v24 = vadd.f32 %v14720_v13, %v23490_v2  ;;  %15044 = vmatprep.mubr.bf16.mxu0 %v24004_v25  ;;  %v20432_v2 = vld [vmem:[%s21294_s13 + $0x308c] ss:$16 sps:$4 sm:$0xff]   ;;  %v20484_v49 = vld [vmem:[%s21294_s13 + $0x3168] ss:$16 sps:$4 sm:$0xff]  }
 0x790   : > { %15085 = vmatprep.mubr.bf16.mxu1 %v24005_v32  ;;  %v14722_v9 = vpop.f32.mrf.mxu0  ;;  %v20489_v48 = vld [vmem:[%s21294_s13 + $0x336c] ss:$16 sps:$4 sm:$0xff]   ;;  %v20487_v23 = vld [vmem:[%s21294_s13 + $0x3368] ss:$16 sps:$4 sm:$0xff]  }
 0x791   : > { %v14763_v40 = vpop.f32.mrf.mxu1  ;;  %v23564_v28 = vadd.f32 %v14761_v60, %v14721_v24  ;;  %15015 = vmatpush1.bf16.msra.mxu0 %v20418_v20  ;;  %v20492_v52 = vld [vmem:[%s21294_s13 + $0x314c] ss:$16 sps:$4 sm:$0xff]   ;;  %v20490_v8 = vld [vmem:[%s21294_s13 + $0x3148] ss:$16 sps:$4 sm:$0xff]  }
 0x792   : > { %15056 = vmatpush1.bf16.msra.mxu1 %v20421_v59  ;;  %v14723_v54 = vpop.f32.mrf.mxu0  ;;  %15016 = vmatprep.subr.bf16.mxu0 %v20426_v27  ;;  %v20493_v58 = vld [vmem:[%s21294_s13 + $0x3348] ss:$16 sps:$4 sm:$0xff]   ;;  %v20498_v20 = vld [vmem:[%s21294_s13 + $0x312c] ss:$16 sps:$4 sm:$0xff]  }
 0x793   : > { %v14764_v46 = vpop.f32.mrf.mxu1  ;;  %15057 = vmatprep.subr.bf16.mxu1 %v20429_v17  ;;  %v20501_v59 = vld [vmem:[%s21294_s13 + $0x332c] ss:$16 sps:$4 sm:$0xff]   ;;  %v20496_v13 = vld [vmem:[%s21294_s13 + $0x3128] ss:$16 sps:$4 sm:$0xff]  }
 0x794   : > { %v20499_v60 = vld [vmem:[%s21294_s13 + $0x3328] ss:$16 sps:$4 sm:$0xff]   ;;  %v20504_v27 = vld [vmem:[%s21294_s13 + $0x310c] ss:$16 sps:$4 sm:$0xff]  }
 0x795   : > { %15017 = vmatpush1.bf16.msra.mxu0 %v20424_v18  ;;  %v20507_v17 = vld [vmem:[%s21294_s13 + $0x330c] ss:$16 sps:$4 sm:$0xff]   ;;  %v20502_v24 = vld [vmem:[%s21294_s13 + $0x3108] ss:$16 sps:$4 sm:$0xff]  }
 0x796   : > { %15058 = vmatpush1.bf16.msra.mxu1 %v20427_v1  ;;  %15018 = vmatprep.subr.bf16.mxu0 %v20432_v2  ;;  %v20505_v25 = vld [vmem:[%s21294_s13 + $0x3308] ss:$16 sps:$4 sm:$0xff]   ;;  %v20510_v32 = vld [vmem:[%s21294_s13 + $0x34ec] ss:$16 sps:$4 sm:$0xff]  }
 0x797   : > { %15059 = vmatprep.subr.bf16.mxu1 %v20435_v47  ;;  %v20513_v9 = vld [vmem:[%s21294_s13 + $0x36ec] ss:$16 sps:$4 sm:$0xff]   ;;  %v20508_v40 = vld [vmem:[%s21294_s13 + $0x34e8] ss:$16 sps:$4 sm:$0xff]   ;;  %v24006_v47 = vld [vmem:[#allocation28_spill] sm:$0xff] }
 0x798   : > { %v20511_v18 = vld [vmem:[%s21294_s13 + $0x36e8] ss:$16 sps:$4 sm:$0xff]   ;;  %v20516_v1 = vld [vmem:[%s21294_s13 + $0x34cc] ss:$16 sps:$4 sm:$0xff]  }
 0x799   : > { %15019 = vmatpush1.bf16.msra.mxu0 %v20430_v42  ;;  %v20519_v54 = vld [vmem:[%s21294_s13 + $0x36cc] ss:$16 sps:$4 sm:$0xff]  }
 0x79a   : > { %15060 = vmatpush1.bf16.msra.mxu1 %v20433_v43  ;;  %15020 = vmatprep.subr.bf16.mxu0 %v20438_v16  ;;  %v24007_v42 = vld [vmem:[#allocation29_spill] sm:$0xff] }
 0x79b   : > { %15061 = vmatprep.subr.bf16.mxu1 %v20441_v12  ;;  %v20514_v16 = vld [vmem:[%s21294_s13 + $0x34c8] ss:$16 sps:$4 sm:$0xff]  }
 0x79c   : > { %v20517_v12 = vld [vmem:[%s21294_s13 + $0x36c8] ss:$16 sps:$4 sm:$0xff]  }
 0x79d   : > { %15021 = vmatpush1.bf16.msra.mxu0 %v20436_v19 }
 0x79e   : > { %15062 = vmatpush1.bf16.msra.mxu1 %v20439_v22  ;;  %15022 = vmatprep.subr.bf16.mxu0 %v20444_v26  ;;  %v20522_v26 = vld [vmem:[%s21294_s13 + $0x34ac] ss:$16 sps:$4 sm:$0xff]  }
 0x79f   : > { %15063 = vmatprep.subr.bf16.mxu1 %v20447_v6  ;;  %v20525_v6 = vld [vmem:[%s21294_s13 + $0x36ac] ss:$16 sps:$4 sm:$0xff]  }
 0x7a1   : > { %15023 = vmatpush1.bf16.msra.mxu0 %v20442_v41 }
 0x7a2   : > { %15064 = vmatpush1.bf16.msra.mxu1 %v20445_v36  ;;  %15024 = vmatprep.subr.bf16.mxu0 %v20450_v44  ;;  %v24008_v44 = vld [vmem:[#allocation30_spill] sm:$0xff] }
 0x7a3   : > { %15065 = vmatprep.subr.bf16.mxu1 %v20453_v29 }
 0x7a5   : > { %15025 = vmatpush1.bf16.msra.mxu0 %v20448_v21 }
 0x7a6   : > { %15066 = vmatpush1.bf16.msra.mxu1 %v20451_v39  ;;  %15026 = vmatprep.subr.bf16.mxu0 %v20456_v34  ;;  %v20520_v34 = vld [vmem:[%s21294_s13 + $0x34a8] ss:$16 sps:$4 sm:$0xff]  }
 0x7a7   : > { %15067 = vmatprep.subr.bf16.mxu1 %v20459_v50  ;;  %v20523_v50 = vld [vmem:[%s21294_s13 + $0x36a8] ss:$16 sps:$4 sm:$0xff]  }
 0x7a9   : > { %15027 = vmatpush1.bf16.msra.mxu0 %v20454_v51 }
 0x7aa   : > { %15068 = vmatpush1.bf16.msra.mxu1 %v20457_v53  ;;  %15028 = vmatprep.subr.bf16.mxu0 %v20462_v7  ;;  %v20531_v7 = vld [vmem:[%s21294_s13 + $0x368c] ss:$16 sps:$4 sm:$0xff]  }
 0x7ab   : > { %15069 = vmatprep.subr.bf16.mxu1 %v20465_v10  ;;  %v20526_v10 = vld [vmem:[%s21294_s13 + $0x3488] ss:$16 sps:$4 sm:$0xff]  }
 0x7ad   : > { %15029 = vmatpush2.bf16.msra.mxu0 %v20460_v11  ;;  %v20529_v11 = vld [vmem:[%s21294_s13 + $0x3688] ss:$16 sps:$4 sm:$0xff]  }
 0x7ae   : > { %15070 = vmatpush2.bf16.msra.mxu1 %v20463_v0  ;;  %15030 = vmatprep.subr.bf16.mxu0 %v20468_v31  ;;  %v20534_v0 = vld [vmem:[%s21294_s13 + $0x346c] ss:$16 sps:$4 sm:$0xff]  }
 0x7af   : > { %15071 = vmatprep.subr.bf16.mxu1 %v20471_v55  ;;  %v20537_v31 = vld [vmem:[%s21294_s13 + $0x366c] ss:$16 sps:$4 sm:$0xff]   ;;  %v20532_v55 = vld [vmem:[%s21294_s13 + $0x3468] ss:$16 sps:$4 sm:$0xff]  }
 0x7b1   : > { %15031 = vmatpush2.bf16.msra.mxu0 %v20466_v57  ;;  %v20535_v57 = vld [vmem:[%s21294_s13 + $0x3668] ss:$16 sps:$4 sm:$0xff]  }
 0x7b2   : > { %15072 = vmatpush2.bf16.msra.mxu1 %v20469_v4  ;;  %15032 = vmatprep.subr.bf16.mxu0 %v20474_v5  ;;  %v20540_v4 = vld [vmem:[%s21294_s13 + $0x344c] ss:$16 sps:$4 sm:$0xff]  }
 0x7b3   : > { %15073 = vmatprep.subr.bf16.mxu1 %v20477_v56  ;;  %v20543_v5 = vld [vmem:[%s21294_s13 + $0x364c] ss:$16 sps:$4 sm:$0xff]   ;;  %v20538_v56 = vld [vmem:[%s21294_s13 + $0x3448] ss:$16 sps:$4 sm:$0xff]  }
 0x7b5   : > { %15033 = vmatpush2.bf16.msra.mxu0 %v20472_v33  ;;  %v20541_v33 = vld [vmem:[%s21294_s13 + $0x3648] ss:$16 sps:$4 sm:$0xff]  }
 0x7b6   : > { %15074 = vmatpush2.bf16.msra.mxu1 %v20475_v35  ;;  %15034 = vmatprep.subr.bf16.mxu0 %v20480_v38  ;;  %v20546_v35 = vld [vmem:[%s21294_s13 + $0x342c] ss:$16 sps:$4 sm:$0xff]  }
 0x7b7   : > { %15075 = vmatprep.subr.bf16.mxu1 %v20483_v37  ;;  %v20549_v38 = vld [vmem:[%s21294_s13 + $0x362c] ss:$16 sps:$4 sm:$0xff]   ;;  %v20544_v37 = vld [vmem:[%s21294_s13 + $0x3428] ss:$16 sps:$4 sm:$0xff]  }
 0x7b9   : > { %15035 = vmatpush2.bf16.msra.mxu0 %v20478_v14  ;;  %v20547_v14 = vld [vmem:[%s21294_s13 + $0x3628] ss:$16 sps:$4 sm:$0xff]  }
 0x7ba   : > { %15076 = vmatpush2.bf16.msra.mxu1 %v20481_v15  ;;  %15036 = vmatprep.subr.bf16.mxu0 %v20486_v3  ;;  %v20552_v15 = vld [vmem:[%s21294_s13 + $0x340c] ss:$16 sps:$4 sm:$0xff]  }
 0x7bb   : > { %15077 = vmatprep.subr.bf16.mxu1 %v20489_v48  ;;  %v20555_v3 = vld [vmem:[%s21294_s13 + $0x360c] ss:$16 sps:$4 sm:$0xff]   ;;  %v20550_v48 = vld [vmem:[%s21294_s13 + $0x3408] ss:$16 sps:$4 sm:$0xff]  }
 0x7bd   : > { %15037 = vmatpush2.bf16.msra.mxu0 %v20484_v49  ;;  %v20553_v49 = vld [vmem:[%s21294_s13 + $0x3608] ss:$16 sps:$4 sm:$0xff]  }
 0x7be   : > { %15078 = vmatpush2.bf16.msra.mxu1 %v20487_v23  ;;  %15038 = vmatprep.subr.bf16.mxu0 %v20492_v52  ;;  %v20558_v23 = vld [vmem:[%s21294_s13 + $0x35ec] ss:$16 sps:$4 sm:$0xff]  }
 0x7bf   : > { %15079 = vmatprep.subr.bf16.mxu1 %v20495_v62  ;;  %v20561_v52 = vld [vmem:[%s21294_s13 + $0x37ec] ss:$16 sps:$4 sm:$0xff]   ;;  %v20556_v62 = vld [vmem:[%s21294_s13 + $0x35e8] ss:$16 sps:$4 sm:$0xff]  }
 0x7c1   : > { %15039 = vmatpush2.bf16.msra.mxu0 %v20490_v8  ;;  %v20559_v8 = vld [vmem:[%s21294_s13 + $0x37e8] ss:$16 sps:$4 sm:$0xff]  }
 0x7c2   : > { %15080 = vmatpush2.bf16.msra.mxu1 %v20493_v58  ;;  %15040 = vmatprep.subr.bf16.mxu0 %v20498_v20  ;;  %v20564_v58 = vld [vmem:[%s21294_s13 + $0x35cc] ss:$16 sps:$4 sm:$0xff]  }
 0x7c3   : > { %15081 = vmatprep.subr.bf16.mxu1 %v20501_v59  ;;  %v20567_v20 = vld [vmem:[%s21294_s13 + $0x37cc] ss:$16 sps:$4 sm:$0xff]   ;;  %v20562_v59 = vld [vmem:[%s21294_s13 + $0x35c8] ss:$16 sps:$4 sm:$0xff]  }
 0x7c5   : > { %15041 = vmatpush2.bf16.msra.mxu0 %v20496_v13  ;;  %v20565_v13 = vld [vmem:[%s21294_s13 + $0x37c8] ss:$16 sps:$4 sm:$0xff]  }
 0x7c6   : > { %15082 = vmatpush2.bf16.msra.mxu1 %v20499_v60  ;;  %15042 = vmatprep.subr.bf16.mxu0 %v20504_v27  ;;  %v20570_v60 = vld [vmem:[%s21294_s13 + $0x35ac] ss:$16 sps:$4 sm:$0xff]  }
 0x7c7   : > { %15083 = vmatprep.subr.bf16.mxu1 %v20507_v17  ;;  %v20573_v27 = vld [vmem:[%s21294_s13 + $0x37ac] ss:$16 sps:$4 sm:$0xff]   ;;  %v20568_v17 = vld [vmem:[%s21294_s13 + $0x35a8] ss:$16 sps:$4 sm:$0xff]  }
 0x7c9   : > { %15043 = vmatpush2.bf16.msra.mxu0 %v20502_v24  ;;  %v20571_v24 = vld [vmem:[%s21294_s13 + $0x37a8] ss:$16 sps:$4 sm:$0xff]  }
 0x7ca   : > { %15084 = vmatpush2.bf16.msra.mxu1 %v20505_v25  ;;  %15094 = vmatprep.subr.bf16.mxu0 %v20510_v32  ;;  %v20576_v25 = vld [vmem:[%s21294_s13 + $0x358c] ss:$16 sps:$4 sm:$0xff]  }
 0x7cb   : > { %15135 = vmatprep.subr.bf16.mxu1 %v20513_v9  ;;  %v20579_v32 = vld [vmem:[%s21294_s13 + $0x378c] ss:$16 sps:$4 sm:$0xff]   ;;  %v20574_v9 = vld [vmem:[%s21294_s13 + $0x3588] ss:$16 sps:$4 sm:$0xff]  }
 0x7cc   : > { %v14800_v46 = vpop.f32.mrf.mxu0  ;;  %15045 = vmatmul.mubr.bf16.vlgmr.msra.gmra.mxu0 %v24006_v47  ;;  %v20591_v47 = vld [vmem:[%s21294_s13 + $0x374c] ss:$16 sps:$4 sm:$0xff]  }
 0x7cd   : > { %v14841_v2 = vpop.f32.mrf.mxu1  ;;  %15086 = vmatmul.mubr.bf16.vlgmr.msra.gmra.mxu1 %v24007_v42  ;;  %v14801_v43 = vadd.f32 %v14800_v46, %v23559_v61  ;;  %15095 = vmatpush1.bf16.msra.mxu0 %v20508_v40  ;;  %v24009_v61 = vld [vmem:[#allocation31_spill] sm:$0xff] }
 0x7ce   : > { %15136 = vmatpush1.bf16.msra.mxu1 %v20511_v18  ;;  %v14802_v19 = vpop.f32.mrf.mxu0  ;;  %15096 = vmatprep.subr.bf16.mxu0 %v20516_v1  ;;  %v20577_v40 = vld [vmem:[%s21294_s13 + $0x3788] ss:$16 sps:$4 sm:$0xff]   ;;  %v20582_v18 = vld [vmem:[%s21294_s13 + $0x356c] ss:$16 sps:$4 sm:$0xff]  }
 0x7cf   : > { %v14843_v22 = vpop.f32.mrf.mxu1  ;;  %15137 = vmatprep.subr.bf16.mxu1 %v20519_v54  ;;  %v23633_v41 = vadd.f32 %v14841_v2, %v14801_v43  ;;  %v14803_v36 = vadd.f32 %v14802_v19, %v23564_v28  ;;  %15126 = vmatprep.mubr.bf16.mxu0 %v24008_v44  ;;  %v20528_v28 = vld [vmem:[%s21294_s13 + $0x348c] ss:$16 sps:$4 sm:$0xff]   ;;  %v20580_v54 = vld [vmem:[%s21294_s13 + $0x3568] ss:$16 sps:$4 sm:$0xff]  }
 0x7d0   : > { %15167 = vmatprep.mubr.bf16.mxu1 %v24009_v61  ;;  %v14804_v29 = vpop.f32.mrf.mxu0  ;;  %v20585_v1 = vld [vmem:[%s21294_s13 + $0x376c] ss:$16 sps:$4 sm:$0xff]   ;;  %v20583_v46 = vld [vmem:[%s21294_s13 + $0x3768] ss:$16 sps:$4 sm:$0xff]  }
 0x7d1   : > { %v14845_v21 = vpop.f32.mrf.mxu1  ;;  %v23638_v39 = vadd.f32 %v14843_v22, %v14803_v36  ;;  %15097 = vmatpush1.bf16.msra.mxu0 %v20514_v16  ;;  %v20588_v2 = vld [vmem:[%s21294_s13 + $0x354c] ss:$16 sps:$4 sm:$0xff]   ;;  %v20586_v42 = vld [vmem:[%s21294_s13 + $0x3548] ss:$16 sps:$4 sm:$0xff]  }
 0x7d2   : > { %15138 = vmatpush1.bf16.msra.mxu1 %v20517_v12  ;;  %v14805_v51 = vpop.f32.mrf.mxu0  ;;  %15098 = vmatprep.subr.bf16.mxu0 %v20522_v26  ;;  %v20589_v43 = vld [vmem:[%s21294_s13 + $0x3748] ss:$16 sps:$4 sm:$0xff]   ;;  %v20594_v16 = vld [vmem:[%s21294_s13 + $0x352c] ss:$16 sps:$4 sm:$0xff]  }
 0x7d3   : > { %v14846_v53 = vpop.f32.mrf.mxu1  ;;  %15139 = vmatprep.subr.bf16.mxu1 %v20525_v6  ;;  %v20597_v12 = vld [vmem:[%s21294_s13 + $0x372c] ss:$16 sps:$4 sm:$0xff]   ;;  %v20592_v19 = vld [vmem:[%s21294_s13 + $0x3528] ss:$16 sps:$4 sm:$0xff]  }
 0x7d4   : > { %v20595_v22 = vld [vmem:[%s21294_s13 + $0x3728] ss:$16 sps:$4 sm:$0xff]   ;;  %v20600_v26 = vld [vmem:[%s21294_s13 + $0x350c] ss:$16 sps:$4 sm:$0xff]  }
 0x7d5   : > { %15099 = vmatpush1.bf16.msra.mxu0 %v20520_v34  ;;  %v20603_v6 = vld [vmem:[%s21294_s13 + $0x370c] ss:$16 sps:$4 sm:$0xff]   ;;  %v20598_v36 = vld [vmem:[%s21294_s13 + $0x3508] ss:$16 sps:$4 sm:$0xff]  }
 0x7d6   : > { %15140 = vmatpush1.bf16.msra.mxu1 %v20523_v50  ;;  %15100 = vmatprep.subr.bf16.mxu0 %v20528_v28  ;;  %v20601_v44 = vld [vmem:[%s21294_s13 + $0x3708] ss:$16 sps:$4 sm:$0xff]   ;;  %v20606_v61 = vld [vmem:[%s21294_s13 + $0x38ec] ss:$16 sps:$4 sm:$0xff]  }
 0x7d7   : > { %15141 = vmatprep.subr.bf16.mxu1 %v20531_v7  ;;  %v20609_v29 = vld [vmem:[%s21294_s13 + $0x3aec] ss:$16 sps:$4 sm:$0xff]   ;;  %v20604_v21 = vld [vmem:[%s21294_s13 + $0x38e8] ss:$16 sps:$4 sm:$0xff]   ;;  %v24010_v7 = vld [vmem:[#allocation32_spill] sm:$0xff] }
 0x7d8   : > { %v20607_v34 = vld [vmem:[%s21294_s13 + $0x3ae8] ss:$16 sps:$4 sm:$0xff]   ;;  %v20612_v50 = vld [vmem:[%s21294_s13 + $0x38cc] ss:$16 sps:$4 sm:$0xff]  }
 0x7d9   : > { %15101 = vmatpush1.bf16.msra.mxu0 %v20526_v10  ;;  %v20615_v51 = vld [vmem:[%s21294_s13 + $0x3acc] ss:$16 sps:$4 sm:$0xff]  }
 0x7da   : > { %15142 = vmatpush1.bf16.msra.mxu1 %v20529_v11  ;;  %15102 = vmatprep.subr.bf16.mxu0 %v20534_v0  ;;  %v24011_v10 = vld [vmem:[#allocation33_spill] sm:$0xff] }
 0x7db   : > { %15143 = vmatprep.subr.bf16.mxu1 %v20537_v31  ;;  %v20610_v0 = vld [vmem:[%s21294_s13 + $0x38c8] ss:$16 sps:$4 sm:$0xff]  }
 0x7dc   : > { %v20613_v31 = vld [vmem:[%s21294_s13 + $0x3ac8] ss:$16 sps:$4 sm:$0xff]  }
 0x7dd   : > { %15103 = vmatpush1.bf16.msra.mxu0 %v20532_v55 }
 0x7de   : > { %15144 = vmatpush1.bf16.msra.mxu1 %v20535_v57  ;;  %15104 = vmatprep.subr.bf16.mxu0 %v20540_v4  ;;  %v20618_v4 = vld [vmem:[%s21294_s13 + $0x38ac] ss:$16 sps:$4 sm:$0xff]  }
 0x7df   : > { %15145 = vmatprep.subr.bf16.mxu1 %v20543_v5  ;;  %v20621_v5 = vld [vmem:[%s21294_s13 + $0x3aac] ss:$16 sps:$4 sm:$0xff]  }
 0x7e1   : > { %15105 = vmatpush1.bf16.msra.mxu0 %v20538_v56 }
 0x7e2   : > { %15146 = vmatpush1.bf16.msra.mxu1 %v20541_v33  ;;  %15106 = vmatprep.subr.bf16.mxu0 %v20546_v35  ;;  %v24012_v35 = vld [vmem:[#allocation34_spill] sm:$0xff] }
 0x7e3   : > { %15147 = vmatprep.subr.bf16.mxu1 %v20549_v38 }
 0x7e5   : > { %15107 = vmatpush1.bf16.msra.mxu0 %v20544_v37 }
 0x7e6   : > { %15148 = vmatpush1.bf16.msra.mxu1 %v20547_v14  ;;  %15108 = vmatprep.subr.bf16.mxu0 %v20552_v15  ;;  %v20616_v15 = vld [vmem:[%s21294_s13 + $0x38a8] ss:$16 sps:$4 sm:$0xff]  }
 0x7e7   : > { %15149 = vmatprep.subr.bf16.mxu1 %v20555_v3  ;;  %v20619_v3 = vld [vmem:[%s21294_s13 + $0x3aa8] ss:$16 sps:$4 sm:$0xff]  }
 0x7e9   : > { %15109 = vmatpush1.bf16.msra.mxu0 %v20550_v48 }
 0x7ea   : > { %15150 = vmatpush1.bf16.msra.mxu1 %v20553_v49  ;;  %15110 = vmatprep.subr.bf16.mxu0 %v20558_v23  ;;  %v20627_v23 = vld [vmem:[%s21294_s13 + $0x3a8c] ss:$16 sps:$4 sm:$0xff]  }
 0x7eb   : > { %15151 = vmatprep.subr.bf16.mxu1 %v20561_v52  ;;  %v20622_v52 = vld [vmem:[%s21294_s13 + $0x3888] ss:$16 sps:$4 sm:$0xff]  }
 0x7ed   : > { %15111 = vmatpush2.bf16.msra.mxu0 %v20556_v62  ;;  %v20625_v62 = vld [vmem:[%s21294_s13 + $0x3a88] ss:$16 sps:$4 sm:$0xff]  }
 0x7ee   : > { %15152 = vmatpush2.bf16.msra.mxu1 %v20559_v8  ;;  %15112 = vmatprep.subr.bf16.mxu0 %v20564_v58  ;;  %v20630_v8 = vld [vmem:[%s21294_s13 + $0x386c] ss:$16 sps:$4 sm:$0xff]  }
 0x7ef   : > { %15153 = vmatprep.subr.bf16.mxu1 %v20567_v20  ;;  %v20633_v58 = vld [vmem:[%s21294_s13 + $0x3a6c] ss:$16 sps:$4 sm:$0xff]   ;;  %v20628_v20 = vld [vmem:[%s21294_s13 + $0x3868] ss:$16 sps:$4 sm:$0xff]  }
 0x7f1   : > { %15113 = vmatpush2.bf16.msra.mxu0 %v20562_v59  ;;  %v20631_v59 = vld [vmem:[%s21294_s13 + $0x3a68] ss:$16 sps:$4 sm:$0xff]  }
 0x7f2   : > { %15154 = vmatpush2.bf16.msra.mxu1 %v20565_v13  ;;  %15114 = vmatprep.subr.bf16.mxu0 %v20570_v60  ;;  %v20636_v13 = vld [vmem:[%s21294_s13 + $0x384c] ss:$16 sps:$4 sm:$0xff]  }
 0x7f3   : > { %15155 = vmatprep.subr.bf16.mxu1 %v20573_v27  ;;  %v20639_v60 = vld [vmem:[%s21294_s13 + $0x3a4c] ss:$16 sps:$4 sm:$0xff]   ;;  %v20634_v27 = vld [vmem:[%s21294_s13 + $0x3848] ss:$16 sps:$4 sm:$0xff]  }
 0x7f5   : > { %15115 = vmatpush2.bf16.msra.mxu0 %v20568_v17  ;;  %v20637_v17 = vld [vmem:[%s21294_s13 + $0x3a48] ss:$16 sps:$4 sm:$0xff]  }
 0x7f6   : > { %15156 = vmatpush2.bf16.msra.mxu1 %v20571_v24  ;;  %15116 = vmatprep.subr.bf16.mxu0 %v20576_v25  ;;  %v20642_v24 = vld [vmem:[%s21294_s13 + $0x382c] ss:$16 sps:$4 sm:$0xff]  }
 0x7f7   : > { %15157 = vmatprep.subr.bf16.mxu1 %v20579_v32  ;;  %v20645_v25 = vld [vmem:[%s21294_s13 + $0x3a2c] ss:$16 sps:$4 sm:$0xff]   ;;  %v20640_v32 = vld [vmem:[%s21294_s13 + $0x3828] ss:$16 sps:$4 sm:$0xff]  }
 0x7f9   : > { %15117 = vmatpush2.bf16.msra.mxu0 %v20574_v9  ;;  %v20643_v9 = vld [vmem:[%s21294_s13 + $0x3a28] ss:$16 sps:$4 sm:$0xff]  }
 0x7fa   : > { %15158 = vmatpush2.bf16.msra.mxu1 %v20577_v40  ;;  %15118 = vmatprep.subr.bf16.mxu0 %v20582_v18  ;;  %v20648_v40 = vld [vmem:[%s21294_s13 + $0x380c] ss:$16 sps:$4 sm:$0xff]  }
 0x7fb   : > { %15159 = vmatprep.subr.bf16.mxu1 %v20585_v1  ;;  %v20651_v18 = vld [vmem:[%s21294_s13 + $0x3a0c] ss:$16 sps:$4 sm:$0xff]   ;;  %v20646_v1 = vld [vmem:[%s21294_s13 + $0x3808] ss:$16 sps:$4 sm:$0xff]  }
 0x7fd   : > { %15119 = vmatpush2.bf16.msra.mxu0 %v20580_v54  ;;  %v20649_v54 = vld [vmem:[%s21294_s13 + $0x3a08] ss:$16 sps:$4 sm:$0xff]  }
 0x7fe   : > { %15160 = vmatpush2.bf16.msra.mxu1 %v20583_v46  ;;  %15120 = vmatprep.subr.bf16.mxu0 %v20588_v2  ;;  %v20654_v46 = vld [vmem:[%s21294_s13 + $0x39ec] ss:$16 sps:$4 sm:$0xff]  }
 0x7ff   : > { %15161 = vmatprep.subr.bf16.mxu1 %v20591_v47  ;;  %v20657_v2 = vld [vmem:[%s21294_s13 + $0x3bec] ss:$16 sps:$4 sm:$0xff]   ;;  %v20652_v47 = vld [vmem:[%s21294_s13 + $0x39e8] ss:$16 sps:$4 sm:$0xff]  }
 0x801   : > { %15121 = vmatpush2.bf16.msra.mxu0 %v20586_v42  ;;  %v20655_v42 = vld [vmem:[%s21294_s13 + $0x3be8] ss:$16 sps:$4 sm:$0xff]  }
 0x802   : > { %15162 = vmatpush2.bf16.msra.mxu1 %v20589_v43  ;;  %15122 = vmatprep.subr.bf16.mxu0 %v20594_v16  ;;  %v20660_v43 = vld [vmem:[%s21294_s13 + $0x39cc] ss:$16 sps:$4 sm:$0xff]  }
 0x803   : > { %15163 = vmatprep.subr.bf16.mxu1 %v20597_v12  ;;  %v20663_v16 = vld [vmem:[%s21294_s13 + $0x3bcc] ss:$16 sps:$4 sm:$0xff]   ;;  %v20658_v12 = vld [vmem:[%s21294_s13 + $0x39c8] ss:$16 sps:$4 sm:$0xff]  }
 0x805   : > { %15123 = vmatpush2.bf16.msra.mxu0 %v20592_v19  ;;  %v20661_v19 = vld [vmem:[%s21294_s13 + $0x3bc8] ss:$16 sps:$4 sm:$0xff]  }
 0x806   : > { %15164 = vmatpush2.bf16.msra.mxu1 %v20595_v22  ;;  %15124 = vmatprep.subr.bf16.mxu0 %v20600_v26  ;;  %v20666_v22 = vld [vmem:[%s21294_s13 + $0x39ac] ss:$16 sps:$4 sm:$0xff]  }
 0x807   : > { %15165 = vmatprep.subr.bf16.mxu1 %v20603_v6  ;;  %v20669_v26 = vld [vmem:[%s21294_s13 + $0x3bac] ss:$16 sps:$4 sm:$0xff]   ;;  %v20664_v6 = vld [vmem:[%s21294_s13 + $0x39a8] ss:$16 sps:$4 sm:$0xff]  }
 0x809   : > { %15125 = vmatpush2.bf16.msra.mxu0 %v20598_v36  ;;  %v20667_v36 = vld [vmem:[%s21294_s13 + $0x3ba8] ss:$16 sps:$4 sm:$0xff]  }
 0x80a   : > { %15166 = vmatpush2.bf16.msra.mxu1 %v20601_v44  ;;  %15176 = vmatprep.subr.bf16.mxu0 %v20606_v61  ;;  %v20672_v44 = vld [vmem:[%s21294_s13 + $0x398c] ss:$16 sps:$4 sm:$0xff]  }
 0x80b   : > { %15217 = vmatprep.subr.bf16.mxu1 %v20609_v29  ;;  %v20675_v61 = vld [vmem:[%s21294_s13 + $0x3b8c] ss:$16 sps:$4 sm:$0xff]   ;;  %v20670_v29 = vld [vmem:[%s21294_s13 + $0x3988] ss:$16 sps:$4 sm:$0xff]  }
 0x80c   : > { %v14882_v53 = vpop.f32.mrf.mxu0  ;;  %15127 = vmatmul.mubr.bf16.vlgmr.msra.gmra.mxu0 %v24010_v7  ;;  %v20687_v7 = vld [vmem:[%s21294_s13 + $0x3b4c] ss:$16 sps:$4 sm:$0xff]  }
 0x80d   : > { %v14923_v28 = vpop.f32.mrf.mxu1  ;;  %15168 = vmatmul.mubr.bf16.vlgmr.msra.gmra.mxu1 %v24011_v10  ;;  %v14883_v11 = vadd.f32 %v14882_v53, %v23633_v41  ;;  %15177 = vmatpush1.bf16.msra.mxu0 %v20604_v21  ;;  %v24013_v41 = vld [vmem:[#allocation35_spill] sm:$0xff] }
 0x80e   : > { %15218 = vmatpush1.bf16.msra.mxu1 %v20607_v34  ;;  %v14884_v55 = vpop.f32.mrf.mxu0  ;;  %15178 = vmatprep.subr.bf16.mxu0 %v20612_v50  ;;  %v20673_v21 = vld [vmem:[%s21294_s13 + $0x3b88] ss:$16 sps:$4 sm:$0xff]   ;;  %v20678_v34 = vld [vmem:[%s21294_s13 + $0x396c] ss:$16 sps:$4 sm:$0xff]  }
 0x80f   : > { %v14925_v57 = vpop.f32.mrf.mxu1  ;;  %15219 = vmatprep.subr.bf16.mxu1 %v20615_v51  ;;  %v23707_v56 = vadd.f32 %v14923_v28, %v14883_v11  ;;  %v14885_v33 = vadd.f32 %v14884_v55, %v23638_v39  ;;  %15208 = vmatprep.mubr.bf16.mxu0 %v24012_v35  ;;  %v20624_v39 = vld [vmem:[%s21294_s13 + $0x388c] ss:$16 sps:$4 sm:$0xff]   ;;  %v20676_v51 = vld [vmem:[%s21294_s13 + $0x3968] ss:$16 sps:$4 sm:$0xff]  }
 0x810   : > { %15249 = vmatprep.mubr.bf16.mxu1 %v24013_v41  ;;  %v14886_v38 = vpop.f32.mrf.mxu0  ;;  %v20681_v50 = vld [vmem:[%s21294_s13 + $0x3b6c] ss:$16 sps:$4 sm:$0xff]   ;;  %v20679_v53 = vld [vmem:[%s21294_s13 + $0x3b68] ss:$16 sps:$4 sm:$0xff]  }
 0x811   : > { %v14927_v37 = vpop.f32.mrf.mxu1  ;;  %v23712_v14 = vadd.f32 %v14925_v57, %v14885_v33  ;;  %15179 = vmatpush1.bf16.msra.mxu0 %v20610_v0  ;;  %v20684_v28 = vld [vmem:[%s21294_s13 + $0x394c] ss:$16 sps:$4 sm:$0xff]   ;;  %v20682_v10 = vld [vmem:[%s21294_s13 + $0x3948] ss:$16 sps:$4 sm:$0xff]  }
 0x812   : > { %15220 = vmatpush1.bf16.msra.mxu1 %v20613_v31  ;;  %v14887_v48 = vpop.f32.mrf.mxu0  ;;  %15180 = vmatprep.subr.bf16.mxu0 %v20618_v4  ;;  %v20685_v11 = vld [vmem:[%s21294_s13 + $0x3b48] ss:$16 sps:$4 sm:$0xff]   ;;  %v20690_v0 = vld [vmem:[%s21294_s13 + $0x392c] ss:$16 sps:$4 sm:$0xff]  }
 0x813   : > { %v14928_v49 = vpop.f32.mrf.mxu1  ;;  %15221 = vmatprep.subr.bf16.mxu1 %v20621_v5  ;;  %v20693_v31 = vld [vmem:[%s21294_s13 + $0x3b2c] ss:$16 sps:$4 sm:$0xff]   ;;  %v20688_v55 = vld [vmem:[%s21294_s13 + $0x3928] ss:$16 sps:$4 sm:$0xff]  }
 0x814   : > { %v20691_v57 = vld [vmem:[%s21294_s13 + $0x3b28] ss:$16 sps:$4 sm:$0xff]   ;;  %v20696_v4 = vld [vmem:[%s21294_s13 + $0x390c] ss:$16 sps:$4 sm:$0xff]  }
 0x815   : > { %15181 = vmatpush1.bf16.msra.mxu0 %v20616_v15  ;;  %v20699_v5 = vld [vmem:[%s21294_s13 + $0x3b0c] ss:$16 sps:$4 sm:$0xff]   ;;  %v20694_v33 = vld [vmem:[%s21294_s13 + $0x3908] ss:$16 sps:$4 sm:$0xff]  }
 0x816   : > { %15222 = vmatpush1.bf16.msra.mxu1 %v20619_v3  ;;  %15182 = vmatprep.subr.bf16.mxu0 %v20624_v39  ;;  %v20697_v35 = vld [vmem:[%s21294_s13 + $0x3b08] ss:$16 sps:$4 sm:$0xff]   ;;  %v20702_v41 = vld [vmem:[%s21294_s13 + $0x3cec] ss:$16 sps:$4 sm:$0xff]  }
 0x817   : > { %15223 = vmatprep.subr.bf16.mxu1 %v20627_v23  ;;  %v20705_v38 = vld [vmem:[%s21294_s13 + $0x3eec] ss:$16 sps:$4 sm:$0xff]   ;;  %v20700_v37 = vld [vmem:[%s21294_s13 + $0x3ce8] ss:$16 sps:$4 sm:$0xff]   ;;  %v24014_v23 = vld [vmem:[#allocation36_spill] sm:$0xff] }
 0x818   : > { %v20703_v15 = vld [vmem:[%s21294_s13 + $0x3ee8] ss:$16 sps:$4 sm:$0xff]   ;;  %v20708_v3 = vld [vmem:[%s21294_s13 + $0x3ccc] ss:$16 sps:$4 sm:$0xff]  }
 0x819   : > { %15183 = vmatpush1.bf16.msra.mxu0 %v20622_v52  ;;  %v20711_v48 = vld [vmem:[%s21294_s13 + $0x3ecc] ss:$16 sps:$4 sm:$0xff]  }
 0x81a   : > { %15224 = vmatpush1.bf16.msra.mxu1 %v20625_v62  ;;  %15184 = vmatprep.subr.bf16.mxu0 %v20630_v8  ;;  %v20706_v62 = vld [vmem:[%s21294_s13 + $0x3cc8] ss:$16 sps:$4 sm:$0xff]  }
 0x81b   : > { %15225 = vmatprep.subr.bf16.mxu1 %v20633_v58  ;;  %v20709_v8 = vld [vmem:[%s21294_s13 + $0x3ec8] ss:$16 sps:$4 sm:$0xff]  }
 0x81d   : > { %15185 = vmatpush1.bf16.msra.mxu0 %v20628_v20 }
 0x81e   : > { %15226 = vmatpush1.bf16.msra.mxu1 %v20631_v59  ;;  %15186 = vmatprep.subr.bf16.mxu0 %v20636_v13  ;;  %v20714_v59 = vld [vmem:[%s21294_s13 + $0x3cac] ss:$16 sps:$4 sm:$0xff]  }
 0x81f   : > { %15227 = vmatprep.subr.bf16.mxu1 %v20639_v60  ;;  %v20717_v13 = vld [vmem:[%s21294_s13 + $0x3eac] ss:$16 sps:$4 sm:$0xff]  }
 0x821   : > { %15187 = vmatpush1.bf16.msra.mxu0 %v20634_v27 }
 0x822   : > { %15228 = vmatpush1.bf16.msra.mxu1 %v20637_v17  ;;  %15188 = vmatprep.subr.bf16.mxu0 %v20642_v24 }
 0x823   : > { %15229 = vmatprep.subr.bf16.mxu1 %v20645_v25  ;;  %v20712_v25 = vld [vmem:[%s21294_s13 + $0x3ca8] ss:$16 sps:$4 sm:$0xff]  }
 0x825   : > { %15189 = vmatpush1.bf16.msra.mxu0 %v20640_v32  ;;  %v20715_v32 = vld [vmem:[%s21294_s13 + $0x3ea8] ss:$16 sps:$4 sm:$0xff]  }
 0x826   : > { %15230 = vmatpush1.bf16.msra.mxu1 %v20643_v9  ;;  %15190 = vmatprep.subr.bf16.mxu0 %v20648_v40 }
 0x827   : > { %15231 = vmatprep.subr.bf16.mxu1 %v20651_v18  ;;  %v20718_v18 = vld [vmem:[%s21294_s13 + $0x3c88] ss:$16 sps:$4 sm:$0xff]  }
 0x829   : > { %15191 = vmatpush1.bf16.msra.mxu0 %v20646_v1  ;;  %v20721_v1 = vld [vmem:[%s21294_s13 + $0x3e88] ss:$16 sps:$4 sm:$0xff]  }
 0x82a   : > { %15232 = vmatpush1.bf16.msra.mxu1 %v20649_v54  ;;  %15192 = vmatprep.subr.bf16.mxu0 %v20654_v46  ;;  %v20726_v54 = vld [vmem:[%s21294_s13 + $0x3c6c] ss:$16 sps:$4 sm:$0xff]  }
 0x82b   : > { %15233 = vmatprep.subr.bf16.mxu1 %v20657_v2  ;;  %v20729_v46 = vld [vmem:[%s21294_s13 + $0x3e6c] ss:$16 sps:$4 sm:$0xff]   ;;  %v20724_v2 = vld [vmem:[%s21294_s13 + $0x3c68] ss:$16 sps:$4 sm:$0xff]  }
 0x82d   : > { %15193 = vmatpush2.bf16.msra.mxu0 %v20652_v47  ;;  %v20727_v47 = vld [vmem:[%s21294_s13 + $0x3e68] ss:$16 sps:$4 sm:$0xff]  }
 0x82e   : > { %15234 = vmatpush2.bf16.msra.mxu1 %v20655_v42  ;;  %15194 = vmatprep.subr.bf16.mxu0 %v20660_v43  ;;  %v20732_v42 = vld [vmem:[%s21294_s13 + $0x3c4c] ss:$16 sps:$4 sm:$0xff]  }
 0x82f   : > { %15235 = vmatprep.subr.bf16.mxu1 %v20663_v16  ;;  %v20735_v43 = vld [vmem:[%s21294_s13 + $0x3e4c] ss:$16 sps:$4 sm:$0xff]   ;;  %v20730_v16 = vld [vmem:[%s21294_s13 + $0x3c48] ss:$16 sps:$4 sm:$0xff]  }
 0x831   : > { %15195 = vmatpush2.bf16.msra.mxu0 %v20658_v12  ;;  %v20733_v12 = vld [vmem:[%s21294_s13 + $0x3e48] ss:$16 sps:$4 sm:$0xff]  }
 0x832   : > { %15236 = vmatpush2.bf16.msra.mxu1 %v20661_v19  ;;  %15196 = vmatprep.subr.bf16.mxu0 %v20666_v22  ;;  %v20738_v19 = vld [vmem:[%s21294_s13 + $0x3c2c] ss:$16 sps:$4 sm:$0xff]  }
 0x833   : > { %15237 = vmatprep.subr.bf16.mxu1 %v20669_v26  ;;  %v20741_v22 = vld [vmem:[%s21294_s13 + $0x3e2c] ss:$16 sps:$4 sm:$0xff]   ;;  %v20736_v26 = vld [vmem:[%s21294_s13 + $0x3c28] ss:$16 sps:$4 sm:$0xff]  }
 0x835   : > { %15197 = vmatpush2.bf16.msra.mxu0 %v20664_v6  ;;  %v20739_v6 = vld [vmem:[%s21294_s13 + $0x3e28] ss:$16 sps:$4 sm:$0xff]  }
 0x836   : > { %15238 = vmatpush2.bf16.msra.mxu1 %v20667_v36  ;;  %15198 = vmatprep.subr.bf16.mxu0 %v20672_v44  ;;  %v20744_v36 = vld [vmem:[%s21294_s13 + $0x3c0c] ss:$16 sps:$4 sm:$0xff]  }
 0x837   : > { %15239 = vmatprep.subr.bf16.mxu1 %v20675_v61  ;;  %v20747_v44 = vld [vmem:[%s21294_s13 + $0x3e0c] ss:$16 sps:$4 sm:$0xff]   ;;  %v20742_v61 = vld [vmem:[%s21294_s13 + $0x3c08] ss:$16 sps:$4 sm:$0xff]  }
 0x839   : > { %15199 = vmatpush2.bf16.msra.mxu0 %v20670_v29  ;;  %v20745_v29 = vld [vmem:[%s21294_s13 + $0x3e08] ss:$16 sps:$4 sm:$0xff]  }
 0x83a   : > { %15240 = vmatpush2.bf16.msra.mxu1 %v20673_v21  ;;  %15200 = vmatprep.subr.bf16.mxu0 %v20678_v34  ;;  %v20750_v21 = vld [vmem:[%s21294_s13 + $0x3dec] ss:$16 sps:$4 sm:$0xff]  }
 0x83b   : > { %15241 = vmatprep.subr.bf16.mxu1 %v20681_v50  ;;  %v20753_v34 = vld [vmem:[%s21294_s13 + $0x3fec] ss:$16 sps:$4 sm:$0xff]   ;;  %v20748_v50 = vld [vmem:[%s21294_s13 + $0x3de8] ss:$16 sps:$4 sm:$0xff]  }
 0x83d   : > { %15201 = vmatpush2.bf16.msra.mxu0 %v20676_v51  ;;  %v20751_v51 = vld [vmem:[%s21294_s13 + $0x3fe8] ss:$16 sps:$4 sm:$0xff]  }
 0x83e   : > { %15242 = vmatpush2.bf16.msra.mxu1 %v20679_v53  ;;  %15202 = vmatprep.subr.bf16.mxu0 %v20684_v28  ;;  %v20756_v53 = vld [vmem:[%s21294_s13 + $0x3dcc] ss:$16 sps:$4 sm:$0xff]  }
 0x83f   : > { %15243 = vmatprep.subr.bf16.mxu1 %v20687_v7  ;;  %v20759_v28 = vld [vmem:[%s21294_s13 + $0x3fcc] ss:$16 sps:$4 sm:$0xff]   ;;  %v20754_v7 = vld [vmem:[%s21294_s13 + $0x3dc8] ss:$16 sps:$4 sm:$0xff]  }
 0x841   : > { %15203 = vmatpush2.bf16.msra.mxu0 %v20682_v10  ;;  %v20757_v10 = vld [vmem:[%s21294_s13 + $0x3fc8] ss:$16 sps:$4 sm:$0xff]  }
 0x842   : > { %15244 = vmatpush2.bf16.msra.mxu1 %v20685_v11  ;;  %15204 = vmatprep.subr.bf16.mxu0 %v20690_v0  ;;  %v20762_v11 = vld [vmem:[%s21294_s13 + $0x3dac] ss:$16 sps:$4 sm:$0xff]  }
 0x843   : > { %15245 = vmatprep.subr.bf16.mxu1 %v20693_v31  ;;  %v20765_v0 = vld [vmem:[%s21294_s13 + $0x3fac] ss:$16 sps:$4 sm:$0xff]   ;;  %v20760_v31 = vld [vmem:[%s21294_s13 + $0x3da8] ss:$16 sps:$4 sm:$0xff]  }
 0x845   : > { %15205 = vmatpush2.bf16.msra.mxu0 %v20688_v55  ;;  %v20763_v55 = vld [vmem:[%s21294_s13 + $0x3fa8] ss:$16 sps:$4 sm:$0xff]  }
 0x846   : > { %15246 = vmatpush2.bf16.msra.mxu1 %v20691_v57  ;;  %15206 = vmatprep.subr.bf16.mxu0 %v20696_v4  ;;  %v20768_v57 = vld [vmem:[%s21294_s13 + $0x3d8c] ss:$16 sps:$4 sm:$0xff]  }
 0x847   : > { %15247 = vmatprep.subr.bf16.mxu1 %v20699_v5  ;;  %v20771_v4 = vld [vmem:[%s21294_s13 + $0x3f8c] ss:$16 sps:$4 sm:$0xff]   ;;  %v20766_v5 = vld [vmem:[%s21294_s13 + $0x3d88] ss:$16 sps:$4 sm:$0xff]  }
 0x849   : > { %15207 = vmatpush2.bf16.msra.mxu0 %v20694_v33  ;;  %v20769_v33 = vld [vmem:[%s21294_s13 + $0x3f88] ss:$16 sps:$4 sm:$0xff]  }
 0x84a   : > { %15248 = vmatpush2.bf16.msra.mxu1 %v20697_v35  ;;  %15258 = vmatprep.subr.bf16.mxu0 %v20702_v41  ;;  %v20774_v35 = vld [vmem:[%s21294_s13 + $0x3d6c] ss:$16 sps:$4 sm:$0xff]  }
 0x84b   : > { %15299 = vmatprep.subr.bf16.mxu1 %v20705_v38  ;;  %v20777_v41 = vld [vmem:[%s21294_s13 + $0x3f6c] ss:$16 sps:$4 sm:$0xff]   ;;  %v20772_v38 = vld [vmem:[%s21294_s13 + $0x3d68] ss:$16 sps:$4 sm:$0xff]  }
 0x84c   : > { %v14964_v49 = vpop.f32.mrf.mxu0  ;;  %15209 = vmatmul.mubr.bf16.vlgmr.msra.gmra.mxu0 %v24014_v23  ;;  %v20789_v23 = vld [vmem:[%s21294_s13 + $0x3f2c] ss:$16 sps:$4 sm:$0xff]  }
 0x84d   : > { %v15005_v39 = vpop.f32.mrf.mxu1  ;;  %15250 = vmatmul.mubr.bf16.vlgmr.msra.gmra.mxu1 %v22576_v45  ;;  %v14965_v52 = vadd.f32 %v14964_v49, %v23707_v56  ;;  %15259 = vmatpush1.bf16.msra.mxu0 %v20700_v37  ;;  %v24015_v56 = vld [vmem:[#allocation37_spill] sm:$0xff] }
 0x84e   : > { %15300 = vmatpush1.bf16.msra.mxu1 %v20703_v15  ;;  %v14966_v58 = vpop.f32.mrf.mxu0  ;;  %15260 = vmatprep.subr.bf16.mxu0 %v20708_v3  ;;  %v20775_v37 = vld [vmem:[%s21294_s13 + $0x3f68] ss:$16 sps:$4 sm:$0xff]   ;;  %v20780_v15 = vld [vmem:[%s21294_s13 + $0x3d4c] ss:$16 sps:$4 sm:$0xff]  }
 0x84f   : > { %v15007_v20 = vpop.f32.mrf.mxu1  ;;  %15301 = vmatprep.subr.bf16.mxu1 %v20711_v48  ;;  %v23781_v60 = vadd.f32 %v15005_v39, %v14965_v52  ;;  %v14967_v45 = vadd.f32 %v14966_v58, %v23712_v14  ;;  %15290 = vmatprep.mubr.bf16.mxu0 %v22582_v30  ;;  %v20720_v30 = vld [vmem:[%s21294_s13 + $0x3c8c] ss:$16 sps:$4 sm:$0xff]   ;;  %v20778_v48 = vld [vmem:[%s21294_s13 + $0x3d48] ss:$16 sps:$4 sm:$0xff]  }
 0x850   : > { %15331 = vmatprep.mubr.bf16.mxu1 %v24015_v56  ;;  %v14968_v27 = vpop.f32.mrf.mxu0  ;;  %v20723_v14 = vld [vmem:[%s21294_s13 + $0x3e8c] ss:$16 sps:$4 sm:$0xff]   ;;  %v20781_v49 = vld [vmem:[%s21294_s13 + $0x3f48] ss:$16 sps:$4 sm:$0xff]   ;;  %v24016_v56 = vld [vmem:[#allocation38_spill] sm:$0xff] }
 0x851   : > { %v15009_v17 = vpop.f32.mrf.mxu1  ;;  %v23786_v24 = vadd.f32 %v15007_v20, %v14967_v45  ;;  %15261 = vmatpush1.bf16.msra.mxu0 %v20706_v62  ;;  %v20783_v3 = vld [vmem:[%s21294_s13 + $0x3f4c] ss:$16 sps:$4 sm:$0xff]   ;;  %v20784_v52 = vld [vmem:[%s21294_s13 + $0x3d28] ss:$16 sps:$4 sm:$0xff]  }
 0x852   : > { %15302 = vmatpush1.bf16.msra.mxu1 %v20709_v8  ;;  %v14969_v9 = vpop.f32.mrf.mxu0  ;;  %15262 = vmatprep.subr.bf16.mxu0 %v20714_v59  ;;  %v20786_v39 = vld [vmem:[%s21294_s13 + $0x3d2c] ss:$16 sps:$4 sm:$0xff]   ;;  %v20787_v62 = vld [vmem:[%s21294_s13 + $0x3f28] ss:$16 sps:$4 sm:$0xff]  }
 0x853   : > { %v15010_v40 = vpop.f32.mrf.mxu1  ;;  %15303 = vmatprep.subr.bf16.mxu1 %v20717_v13  ;;  %v20792_v8 = vld [vmem:[%s21294_s13 + $0x3d0c] ss:$16 sps:$4 sm:$0xff]   ;;  %v20790_v20 = vld [vmem:[%s21294_s13 + $0x3d08] ss:$16 sps:$4 sm:$0xff]  }
 0x854   : > { %v20795_v58 = vld [vmem:[%s21294_s13 + $0x3f0c] ss:$16 sps:$4 sm:$0xff]   ;;  %v20793_v59 = vld [vmem:[%s21294_s13 + $0x3f08] ss:$16 sps:$4 sm:$0xff]  }
 0x855   : > { %15263 = vmatpush1.bf16.msra.mxu0 %v20712_v25 }
 0x856   : > { %15304 = vmatpush1.bf16.msra.mxu1 %v20715_v32  ;;  %15264 = vmatprep.subr.bf16.mxu0 %v20720_v30 }
 0x857   : > { %15305 = vmatprep.subr.bf16.mxu1 %v20723_v14 }
 0x859   : > { %15265 = vmatpush1.bf16.msra.mxu0 %v20718_v18 }
 0x85a   : > { %15306 = vmatpush1.bf16.msra.mxu1 %v20721_v1  ;;  %15266 = vmatprep.subr.bf16.mxu0 %v20726_v54 }
 0x85b   : > { %15307 = vmatprep.subr.bf16.mxu1 %v20729_v46 }
 0x85d   : > { %15267 = vmatpush1.bf16.msra.mxu0 %v20724_v2 }
 0x85e   : > { %15308 = vmatpush1.bf16.msra.mxu1 %v20727_v47  ;;  %15268 = vmatprep.subr.bf16.mxu0 %v20732_v42 }
 0x85f   : > { %15309 = vmatprep.subr.bf16.mxu1 %v20735_v43 }
 0x861   : > { %15269 = vmatpush1.bf16.msra.mxu0 %v20730_v16 }
 0x862   : > { %15310 = vmatpush1.bf16.msra.mxu1 %v20733_v12  ;;  %15270 = vmatprep.subr.bf16.mxu0 %v20738_v19 }
 0x863   : > { %15311 = vmatprep.subr.bf16.mxu1 %v20741_v22 }
 0x865   : > { %15271 = vmatpush1.bf16.msra.mxu0 %v20736_v26 }
 0x866   : > { %15312 = vmatpush1.bf16.msra.mxu1 %v20739_v6  ;;  %15272 = vmatprep.subr.bf16.mxu0 %v20744_v36 }
 0x867   : > { %15313 = vmatprep.subr.bf16.mxu1 %v20747_v44 }
 0x869   : > { %15273 = vmatpush1.bf16.msra.mxu0 %v20742_v61 }
 0x86a   : > { %15314 = vmatpush1.bf16.msra.mxu1 %v20745_v29  ;;  %15274 = vmatprep.subr.bf16.mxu0 %v20750_v21 }
 0x86b   : > { %15315 = vmatprep.subr.bf16.mxu1 %v20753_v34 }
 0x86d   : > { %15275 = vmatpush2.bf16.msra.mxu0 %v20748_v50 }
 0x86e   : > { %15316 = vmatpush2.bf16.msra.mxu1 %v20751_v51  ;;  %15276 = vmatprep.subr.bf16.mxu0 %v20756_v53 }
 0x86f   : > { %15317 = vmatprep.subr.bf16.mxu1 %v20759_v28 }
 0x871   : > { %15277 = vmatpush2.bf16.msra.mxu0 %v20754_v7 }
 0x872   : > { %15318 = vmatpush2.bf16.msra.mxu1 %v20757_v10  ;;  %15278 = vmatprep.subr.bf16.mxu0 %v20762_v11  ;;  %v298_v11 = vld [vmem:[#allocation2 + $0x18] sm:$0xff] }
 0x873   : > { %15319 = vmatprep.subr.bf16.mxu1 %v20765_v0 }
 0x875   : > { %15279 = vmatpush2.bf16.msra.mxu0 %v20760_v31 }
 0x876   : > { %15320 = vmatpush2.bf16.msra.mxu1 %v20763_v55  ;;  %15280 = vmatprep.subr.bf16.mxu0 %v20768_v57 }
 0x877   : > { %15321 = vmatprep.subr.bf16.mxu1 %v20771_v4  ;;  %v299_v4 = vld [vmem:[#allocation2 + $0x8] sm:$0xff] }
 0x879   : > { %15281 = vmatpush2.bf16.msra.mxu0 %v20766_v5 }
 0x87a   : > { %15322 = vmatpush2.bf16.msra.mxu1 %v20769_v33  ;;  %15282 = vmatprep.subr.bf16.mxu0 %v20774_v35 }
 0x87b   : > { %15323 = vmatprep.subr.bf16.mxu1 %v20777_v41 }
 0x87d   : > { %15283 = vmatpush2.bf16.msra.mxu0 %v20772_v38 }
 0x87e   : > { %15324 = vmatpush2.bf16.msra.mxu1 %v20775_v37  ;;  %15284 = vmatprep.subr.bf16.mxu0 %v20780_v15 }
 0x87f   : > { %15325 = vmatprep.subr.bf16.mxu1 %v20783_v3 }
 0x881   : > { %15285 = vmatpush2.bf16.msra.mxu0 %v20778_v48 }
 0x882   : > { %15326 = vmatpush2.bf16.msra.mxu1 %v20781_v49  ;;  %15286 = vmatprep.subr.bf16.mxu0 %v20786_v39 }
 0x883   : > { %15327 = vmatprep.subr.bf16.mxu1 %v20789_v23 }
 0x885   : > { %15287 = vmatpush2.bf16.msra.mxu0 %v20784_v52 }
 0x886   : > { %15328 = vmatpush2.bf16.msra.mxu1 %v20787_v62  ;;  %15288 = vmatprep.subr.bf16.mxu0 %v20792_v8 }
 0x887   : > { %15329 = vmatprep.subr.bf16.mxu1 %v20795_v58 }
 0x889   : > { %15289 = vmatpush2.bf16.msra.mxu0 %v20790_v20 }
 0x88a   : > { %15330 = vmatpush2.bf16.msra.mxu1 %v20793_v59 }
 0x88c   : > { %v15046_v13 = vpop.f32.mrf.mxu0  ;;  %15291 = vmatmul.mubr.bf16.vlgmr.msra.gmra.mxu0 %v24016_v56 }
 0x88d   : > { %v15087_v45 = vpop.f32.mrf.mxu1  ;;  %15332 = vmatmul.mubr.bf16.vlgmr.msra.gmra.mxu1 %v22660_v63  ;;  %v15047_v27 = vadd.f32 %v15046_v13, %v23781_v60 }
 0x88e   : > { %v15048_v17 = vpop.f32.mrf.mxu0 }
 0x88f   : > { %v15089_v25 = vpop.f32.mrf.mxu1  ;;  %v15088_v32 = vadd.f32 %v15087_v45, %v15047_v27  ;;  %v15049_v9 = vadd.f32 %v15048_v17, %v23786_v24 }
 0x890   : > { %v15050_v40 = vpop.f32.mrf.mxu0 }
 0x891   : > { %v15091_v30 = vpop.f32.mrf.mxu1  ;;  %v15090_v14 = vadd.f32 %v15089_v25, %v15049_v9 }
 0x892   : > { %v15051_v18 = vpop.f32.mrf.mxu0 }
 0x893   : > { %v15092_v1 = vpop.f32.mrf.mxu1 }
 0x8cc   : > { %v15128_v54 = vpop.f32.mrf.mxu0 }
 0x8cd   : > { %v15169_v46 = vpop.f32.mrf.mxu1  ;;  %v15129_v2 = vadd.f32 %v15128_v54, %v15088_v32 }
 0x8ce   : > { %v15130_v47 = vpop.f32.mrf.mxu0 }
 0x8cf   : > { %v15171_v42 = vpop.f32.mrf.mxu1  ;;  %v15170_v43 = vadd.f32 %v15169_v46, %v15129_v2  ;;  %v15131_v16 = vadd.f32 %v15130_v47, %v15090_v14 }
 0x8d0   : > { %v15132_v63 = vpop.f32.mrf.mxu0 }
 0x8d1   : > { %v15173_v12 = vpop.f32.mrf.mxu1  ;;  %v15172_v60 = vadd.f32 %v15171_v42, %v15131_v16 }
 0x8d2   : > { %v15133_v19 = vpop.f32.mrf.mxu0 }
 0x8d3   : > { %v15174_v22 = vpop.f32.mrf.mxu1 }
 0x90c   : > { %v15210_v26 = vpop.f32.mrf.mxu0 }
 0x90d   : > { %v15251_v6 = vpop.f32.mrf.mxu1  ;;  %v15211_v34 = vadd.f32 %v15210_v26, %v15170_v43 }
 0x90e   : > { %v15212_v24 = vpop.f32.mrf.mxu0 }
 0x90f   : > { %v15253_v36 = vpop.f32.mrf.mxu1  ;;  %v15213_v50 = vadd.f32 %v15212_v24, %v15172_v60  ;;  %v15252_v51 = vadd.f32 %v15251_v6, %v15211_v34 }
 0x910   : > { %v15214_v44 = vpop.f32.mrf.mxu0 }
 0x911   : > { %v15255_v61 = vpop.f32.mrf.mxu1  ;;  %v15254_v7 = vadd.f32 %v15253_v36, %v15213_v50 }
 0x912   : > { %v15215_v29 = vpop.f32.mrf.mxu0 }
 0x913   : > { %v15256_v21 = vpop.f32.mrf.mxu1 }
 0x94c   : > { %v15292_v53 = vpop.f32.mrf.mxu0 }
 0x94d   : > { %v15333_v28 = vpop.f32.mrf.mxu1  ;;  %v15293_v10 = vadd.f32 %v15292_v53, %v15252_v51 }
 0x94e   : > { %v15294_v0 = vpop.f32.mrf.mxu0 }
 0x94f   : > { %v15335_v31 = vpop.f32.mrf.mxu1  ;;  %v15334_v55 = vadd.f32 %v15333_v28, %v15293_v10  ;;  %v15295_v57 = vadd.f32 %v15294_v0, %v15254_v7 }
 0x950   : > { %v15296_v5 = vpop.f32.mrf.mxu0 }
 0x951   : > { %v15337_v33 = vpop.f32.mrf.mxu1  ;;  %v15342_v35 = vadd.f32 %v15334_v55, %v298_v11  ;;  %v15336_v41 = vadd.f32 %v15335_v31, %v15295_v57  ;;  %15351 = sbr.rel (%p17575_p0) target bundleno = 2400 (0x960), region = 52 }
 0x952   : > { %v15297_v38 = vpop.f32.mrf.mxu0 }
 0x953   : > { %v15338_v37 = vpop.f32.mrf.mxu1  ;;  %15346 = vst [vmem:[#allocation2 + $0x18] sm:$0xff] %v15342_v35  ;;  %v15343_v15 = vadd.f32 %v15336_v41, %v299_v4 }
 0x955   : > { %15347 = vst [vmem:[#allocation2 + $0x8] sm:$0xff] %v15343_v15 }
 0x956   : > { %v15352_v3 = vld [vmem:[#allocation2 + $0x10] sm:$0xff]  ;;  %v15353_v48 = vld [vmem:[#allocation2] sm:$0xff] }
 0x957   : > { %v15356_v39 = vmax.f32 %v15352_v3, 0.0  ;;  %v15357_v23 = vmax.f32 %v15353_v48, 0.0 }
 0x959   : > { %15360 = vst [vmem:[%s21307_s8] sm:$0xff] %v15356_v39  ;;  %15361 = vst [vmem:[%s21307_s8 + $0x8] sm:$0xff] %v15357_v23 }
 0x95a   : > { %v15354_v49 = vld [vmem:[#allocation2 + $0x18] sm:$0xff] }
 0x95b   : > { %v15358_v52 = vmax.f32 %v15354_v49, 0.0 }
 0x95c   : > { %v15355_v62 = vld [vmem:[#allocation2 + $0x8] sm:$0xff] }
 0x95d   : > { %v15359_v8 = vmax.f32 %v15355_v62, 0.0  ;;  %15362 = vst [vmem:[%s21307_s8 + $0x10] sm:$0xff] %v15358_v52 }
 0x95f   : > { %15363 = vst [vmem:[%s21307_s8 + $0x18] sm:$0xff] %v15359_v8 }
 0x960 PF: > { %s24018_s2 = sld [smem:[#allocation17_spill]]  ;;  %s15379_s1 = sshll.u32 %s21307_s8, 4  ;;  %s15380_s1 = int_to_ptr.vmem [resolvable:$true] %s15379_s1 }
 0x961   : > { %s24020_s9 = sld [smem:[#allocation42_spill]]  ;;  %s15365_s7 = scalar_lea.sflag [#allocation5], %s244_s10 }
 0x962   : > { %s20880_s5 = scalar_lea.vmem %s15380_s1, 512  ;;  %s21040_s13 = smov [#allocation9]  }
 0x963   : > { %p20881_p2 = scmp.ne.s32.totalorder %s15380_s1, %s20880_s5  ;;  %s20884_s22 = sshll.u32 %s21040_s13, 4  ;;  %s20885_s22 = int_to_ptr.vmem [resolvable:$false] %s20884_s22 }
 0x964   : > { %s20886_s3 = scalar_lea.vmem %s20885_s22, 1024  ;;  %p20887_p13 = scmp.lt.s32.totalorder %s15380_s1, %s20885_s22 }
 0x965   : > { %p20882_p5 = pnand %p20881_p2, %p21261_p3  ;;  %p20888_p4 = scmp.lt.s32.totalorder %s20886_s3, %s20880_s5 }
 0x966   : > { %s17584_s15 = sshll.u32 %s24018_s2, 9 }
 0x967   : > { %s15377_s0 = scalar_lea.hbm %s24020_s9, %s17584_s15  ;;  %p20883_p8 = pneg %p20882_p5 }
 0x968   : > { %p20889_p6 = por %p20888_p4, %p20887_p13 }
 0x96a   : > { %p20890_p7 = pnand %p20889_p6, %p20883_p8 }
 0x96c   : > { %20893 = shalt.err (!%p20890_p7)
}
 0x96d   : > { %s20894_s29 = scalar_lea.hbm %s15377_s0, 512  ;;  %s20898_s21 = scalar_lea.hbm %s24020_s9, 1024 }
 0x96e   : > { %p20895_p11 = scmp.ne.s32.totalorder %s15377_s0, %s20894_s29  ;;  %p20899_p1 = scmp.lt.s32.totalorder %s15377_s0, %s24020_s9 }
 0x96f   : > { %p20900_p9 = scmp.lt.s32.totalorder %s20898_s21, %s20894_s29 }
 0x970   : > { %p20896_p12 = pnand %p20895_p11, %p21261_p3 }
 0x971   : > { %p20901_p0 = por %p20900_p9, %p20899_p1 }
 0x972   : > { %p20897_p10 = pneg %p20896_p12 }
 0x974   : > { %p20902_p2 = pnand %p20901_p0, %p20897_p10 }
 0x976   : > { %20905 = shalt.err (!%p20902_p2)
}
 0x977   : > { %17591 = dma.vmem_to_hbm [thread:$0]  (%p21261_p3), %s15380_s1, 512, %s15377_s0, %s15365_s7  }
 0x978 PF: > { %s24021_s12 = sld [smem:[#allocation14_spill]]  ;;  %p17608_p5 = scmp.ge.s32.totalorder %s21032_s25, 2 }
 0x979   : > { %p24022_p8 = scmp.ne.s32.totalorder %s23973_s6, 0 }
 0x97b   : > { %p17604_p13 = pnand %p17608_p5, %p24022_p8 }
 0x97d   : > { %p17605_p4 = pneg %p17604_p13 }
 0x97e   : > { %s15391_s15 = sand.u32 1, %s24021_s12  }
 0x97f   : > { %s15392_s4 = scalar_lea.sflag [#allocation5], %s15391_s15 }
 0x980   : > { %20975 = dma.done.wait (%p17605_p4), %s15392_s4, 512  }
 0x981   : > { %20977 = vsyncadd (%p17605_p4), %s15392_s4, 4294966784  ;;  %s22_s25 = sadd.s32 1, %s21032_s25   ;;  %s24024_s12 = sld [smem:[#allocation15_spill]] }
 0x982   : > { %p23875_p6 = scmp.ge.s32.totalorder %s22_s25, 16   ;;  %s24025_s28 = sld [smem:[#allocation18_spill]] }
 0x983   : > { %s24026_s6 = sld [smem:[#allocation19_spill]]  ;;  %s24027_s13 = smov %s20988_s14 }
 0x984   : > { %s24028_s14 = smov %s21248_s26  ;;  %s24029_s15 = smov %s20996_s16 }
 0x985   : > { %s24030_s16 = smov %s21000_s17  ;;  %s24031_s17 = smov %s21166_s11 }
 0x986   : > { %s24032_s18 = smov %s21008_s19  ;;  %s24033_s19 = smov %s21012_s20 }
 0x987   : > { %s24034_s20 = smov %s21204_s27  ;;  %s24035_s21 = smov %s21024_s23 }
 0x988   : > { %s24036_s22 = smov %s21028_s24  ;;  %s24037_s23 = smov %s24025_s28 }
 0x989   : > { %s24038_s24 = smov %s24026_s6  ;;  %21 = sbr.rel (!%p23875_p6) target bundleno = 17 (0x11), region = 109 }
 0x98e   :  { %15397 = vsyncpa [#allocation4], 1 }
 0x98f   :  { %15399 = vsyncpa [#allocation4 + $0x1], 1 }
 0x990   :  { %15400 = vsyncpa [#allocation7], 1 }
 0x991   :  { %15402 = vsyncpa [#allocation7 + $0x1], 1 }
 0x992   :  { %15403 = vsyncpa [#allocation5], 1 }
 0x993   :  { %15405 = vsyncpa [#allocation5 + $0x1], 1 }

</bundles_post_ra>
